<compile_context>
chip_gen: v7x
topology: tpu7x:2x2x1
jax: 0.10.0
libtpu: 0.0.40
codegen_flags: <defaults>
</compile_context>

<pallas_src>
import jax
import jax.numpy as jnp
from jax.experimental import pallas as pl
from jax.experimental.pallas import tpu as pltpu

C1 = 32   # conv1 output channels
C2 = 64   # conv2 output channels


# ----------------------------------------------------------------------------
# The single fused kernel.
# ----------------------------------------------------------------------------
def _fused_forward_kernel(p1_ref, w1_ref, b1_ref, w2_ref, b2_ref,
                          fc1w_ref, fc1b_ref, fc2w_ref, fc2b_ref,
                          out_ref,
                          p1pad_ref, patch2_ref, y2_ref, flat_ref):
    # p1_ref    : (9*N*Ho*Wo, 9)    conv1 im2col patches, pooling-offset-major rows
    # w1_ref    : (9, C1)           conv1 taps (kh*3+kw, cout)
    # b1_ref    : (1, C1)
    # w2_ref    : (9*C1, C2)        conv2 im2col weight ((kh*3+kw)*C1+cin, cout)
    # b2_ref    : (1, C2)
    # fc1w_ref  : (Ho*Wo*C2, 256)   bf16, rows already permuted to (ho, wo, c) order
    # fc1b_ref  : (1, 256)
    # fc2w_ref  : (256, NC)
    # fc2b_ref  : (1, NC)
    # out_ref   : (N, NC)           log_softmax output
    # scratch   : p1pad (N,Ho+2,Wo+2,C1), patch2 (N,Ho,Wo,9*C1),
    #             y2 (N,Ho*Wo,C2), flat (N,Ho*Wo*C2)
    N, Hp, Wp, _ = p1pad_ref.shape
    Ho, Wo = Hp - 2, Wp - 2
    P = Ho * Wo
    M = N * P

    # ---- conv1 + ReLU: single im2col matmul; MaxPool2d(3) fused as a max over
    #      the 9 pooling offsets, laid out as the (tile-aligned) leading axis. ----
    m1 = jnp.dot(p1_ref[...], w1_ref[...], preferred_element_type=jnp.float32)
    m1 = jnp.maximum(m1 + b1_ref[...], 0.0)              # (9*M, C1)
    pooled = jnp.max(m1.reshape(9, M, C1), axis=0)       # (M, C1)   rows = (n,ho,wo)
    # TODO(synk): nn.Dropout is an inference-mode identity here (no RNG masking).

    # ---- conv2 + ReLU: zero-pad in VMEM, assemble im2col patches with 9 static
    #      tap copies, then a single (M, 9*C1) x (9*C1, C2) MXU matmul (K=288). ----
    p1pad_ref[...] = jnp.zeros(p1pad_ref.shape, jnp.float32)
    p1pad_ref[:, 1:1 + Ho, 1:1 + Wo, :] = pooled.reshape(N, Ho, Wo, C1)
    for kh in range(3):
        for kw in range(3):
            t = kh * 3 + kw
            patch2_ref[:, :, :, t * C1:(t + 1) * C1] = (
                p1pad_ref[:, kh:kh + Ho, kw:kw + Wo, :])
    patches2 = patch2_ref[...].reshape(M, 9 * C1)
    y2 = jnp.dot(patches2, w2_ref[...], preferred_element_type=jnp.float32)
    y2 = jnp.maximum(y2 + b2_ref[...], 0.0)               # (M, C2)
    y2_ref[...] = y2.reshape(N, P, C2)

    # ---- flatten to (N, P*C2) in NHWC order (the matching permutation is folded
    #      into fc1's weight).  Done with P small static copies: this is the one
    #      unavoidable sublane->lane relayout between conv and fc layouts. ----
    for p in range(P):
        flat_ref[:, p * C2:(p + 1) * C2] = y2_ref[:, p, :]

    # ---- fc1 -> (dropout = identity) -> fc2 -> log_softmax, all fused. ----
    flat = flat_ref[...].astype(fc1w_ref.dtype)           # bf16 activations
    h = jnp.dot(flat, fc1w_ref[...], preferred_element_type=jnp.float32)
    h = h + fc1b_ref[...]
    logits = jnp.dot(h, fc2w_ref[...], preferred_element_type=jnp.float32)
    logits = logits + fc2b_ref[...]
    m = jnp.max(logits, axis=1, keepdims=True)
    lse = jnp.log(jnp.sum(jnp.exp(logits - m), axis=1, keepdims=True)) + m
    out_ref[...] = logits - lse                            # log_softmax(dim=1)


# ----------------------------------------------------------------------------
# Wrapper glue (tiny, one-time / O(input-size) only).
# ----------------------------------------------------------------------------
def _conv1_pool_patches(x_nhw, Ho, Wo):
    """Build conv1 im2col patches with pooling-window ordering.

    Output row = (dh*3+dw)*(N*Ho*Wo) + n*Ho*Wo + ho*Wo + wo, column = kh*3+kw,
    value = xpad[n, 3*ho+dh+kh, 3*wo+dw+kw]  (pad=1).  This makes the in-kernel
    max-pool a reduction over a leading, tile-aligned axis.
    """
    N = x_nhw.shape[0]
    xpad = jnp.pad(x_nhw, ((0, 0), (1, 1), (1, 1)))
    n = jnp.arange(N).reshape(N, 1, 1, 1, 1, 1, 1)
    dh = jnp.arange(3).reshape(1, 3, 1, 1, 1, 1, 1)
    dw = jnp.arange(3).reshape(1, 1, 3, 1, 1, 1, 1)
    ho = jnp.arange(Ho).reshape(1, 1, 1, Ho, 1, 1, 1)
    wo = jnp.arange(Wo).reshape(1, 1, 1, 1, Wo, 1, 1)
    kh = jnp.arange(3).reshape(1, 1, 1, 1, 1, 3, 1)
    kw = jnp.arange(3).reshape(1, 1, 1, 1, 1, 1, 3)
    patches = xpad[n, 3 * ho + dh + kh, 3 * wo + dw + kw]  # (N,3,3,Ho,Wo,3,3)
    patches = jnp.transpose(patches, (1, 2, 0, 3, 4, 5, 6))
    return patches.reshape(9 * N * Ho * Wo, 9).astype(jnp.float32)


def forward(pk, x_nchw):
    N, Cin, H, W = x_nchw.shape
    assert Cin == 1 and H % 3 == 0 and W % 3 == 0
    Ho, Wo = H // 3, W // 3
    # keep all in-kernel reshapes tile-aligned (sublane = 8)
    assert Wo % 8 == 0 and (N * Ho * Wo) % 8 == 0
    M = N * Ho * Wo
    HID = pk["fc1_w"].shape[1]
    NC = pk["fc2_w"].shape[1]

    p1 = _conv1_pool_patches(x_nchw[:, 0], Ho, Wo)         # (9*M, 9)

    return pl.pallas_call(
        _fused_forward_kernel,
        out_shape=jax.ShapeDtypeStruct((N, NC), jnp.float32),
        grid=(1,),
        in_specs=[
            pl.BlockSpec((9 * M, 9), lambda i: (0, 0)),
            pl.BlockSpec((9, C1), lambda i: (0, 0)),
            pl.BlockSpec((1, C1), lambda i: (0, 0)),
            pl.BlockSpec((9 * C1, C2), lambda i: (0, 0)),
            pl.BlockSpec((1, C2), lambda i: (0, 0)),
            pl.BlockSpec((Ho * Wo * C2, HID), lambda i: (0, 0)),
            pl.BlockSpec((1, HID), lambda i: (0, 0)),
            pl.BlockSpec((HID, NC), lambda i: (0, 0)),
            pl.BlockSpec((1, NC), lambda i: (0, 0)),
        ],
        out_specs=pl.BlockSpec((N, NC), lambda i: (0, 0)),
        scratch_shapes=[
            pltpu.VMEM((N, Ho + 2, Wo + 2, C1), jnp.float32),
            pltpu.VMEM((N, Ho, Wo, 9 * C1), jnp.float32),
            pltpu.VMEM((N, Ho * Wo, C2), jnp.float32),
            pltpu.VMEM((N, Ho * Wo * C2), jnp.float32),
        ],
        compiler_params=pltpu.CompilerParams(dimension_semantics=("arbitrary",)),
    )(p1, pk["w1"], pk["b1"], pk["w2"], pk["b2"],
      pk["fc1_w"], pk["fc1_b"], pk["fc2_w"], pk["fc2_b"])


# ----------------------------------------------------------------------------
# Parameters: torch-layout init + one-time conversion to kernel layouts
# (flatten permutation folded into fc1_w; fc1_w stored in bf16).
# ----------------------------------------------------------------------------
def init_torch_like_params(key, num_classes, fc1_in):
    k1, k2, k3, k4 = jax.random.split(key, 4)
    return {
        "conv1_w": jax.random.normal(k1, (C1, 1, 3, 3), jnp.float32) * (2.0 / 9) ** 0.5,
        "conv1_b": jnp.zeros((C1,), jnp.float32),
        "conv2_w": jax.random.normal(k2, (C2, C1, 3, 3), jnp.float32) * (2.0 / (C1 * 9)) ** 0.5,
        "conv2_b": jnp.zeros((C2,), jnp.float32),
        "fc1_w": jax.random.normal(k3, (256, fc1_in), jnp.float32) * (2.0 / fc1_in) ** 0.5,
        "fc1_b": jnp.zeros((256,), jnp.float32),
        "fc2_w": jax.random.normal(k4, (num_classes, 256), jnp.float32) * (2.0 / 256) ** 0.5,
        "fc2_b": jnp.zeros((num_classes,), jnp.float32),
    }


def prepare_kernel_params(tp, Ho, Wo):
    hid = tp["fc1_w"].shape[0]
    nc = tp["fc2_w"].shape[0]
    # conv taps: (cout, cin, kh, kw) -> ((kh*3+kw)*cin_extent + cin, cout)
    w1 = jnp.transpose(tp["conv1_w"], (2, 3, 1, 0)).reshape(9, C1)
    w2 = jnp.transpose(tp["conv2_w"], (2, 3, 1, 0)).reshape(9 * C1, C2)
    # fc1: torch in-index = c*Ho*Wo + ho*Wo + wo  ->  kernel order (ho*Wo+wo)*C2 + c
    fc1 = tp["fc1_w"].T.reshape(C2, Ho, Wo, hid)
    fc1 = jnp.transpose(fc1, (1, 2, 0, 3)).reshape(Ho * Wo * C2, hid)
    return {
        "w1": w1, "b1": tp["conv1_b"].reshape(1, C1),
        "w2": w2, "b2": tp["conv2_b"].reshape(1, C2),
        "fc1_w": fc1.astype(jnp.bfloat16), "fc1_b": tp["fc1_b"].reshape(1, hid),
        "fc2_w": tp["fc2_w"].T, "fc2_b": tp["fc2_b"].reshape(1, nc),
    }


# ----------------------------------------------------------------------------
# Pure-XLA reference (mirrors the torch module; fc1 uses the same bf16
# weight/activation quantization the kernel uses).
# ----------------------------------------------------------------------------
def reference_forward(tp, x):
    hp = jax.lax.Precision.HIGHEST
    y = jax.lax.conv_general_dilated(
        x, tp["conv1_w"], window_strides=(1, 1), padding=((1, 1), (1, 1)),
        dimension_numbers=("NCHW", "OIHW", "NCHW"), precision=hp)
    y = jnp.maximum(y + tp["conv1_b"][None, :, None, None], 0.0)
    y = jax.lax.reduce_window(y, -jnp.inf, jax.lax.max,
                              (1, 1, 3, 3), (1, 1, 3, 3), "VALID")
    y = jax.lax.conv_general_dilated(
        y, tp["conv2_w"], window_strides=(1, 1), padding=((1, 1), (1, 1)),
        dimension_numbers=("NCHW", "OIHW", "NCHW"), precision=hp)
    y = jnp.maximum(y + tp["conv2_b"][None, :, None, None], 0.0)
    flat = y.reshape(y.shape[0], -1)
    flat = flat.astype(jnp.bfloat16).astype(jnp.float32)
    w1fc = tp["fc1_w"].astype(jnp.bfloat16).astype(jnp.float32)
    h = jnp.dot(flat, w1fc.T, precision=hp) + tp["fc1_b"]
    logits = jnp.dot(h, tp["fc2_w"].T, precision=hp) + tp["fc2_b"]
    return jax.nn.log_softmax(logits, axis=1)


if __name__ == "__main__":
    N, H, W = 2, 24, 24
    num_classes = 2
    Ho, Wo = H // 3, W // 3

    x = jax.random.normal(jax.random.PRNGKey(0), (N, 1, H, W), jnp.float32)
    tp = init_torch_like_params(jax.random.PRNGKey(1), num_classes,
                                fc1_in=C2 * Ho * Wo)
    pk = prepare_kernel_params(tp, Ho, Wo)

    out = jax.jit(forward)(pk, x)
    out = jax.block_until_ready(out)

    assert out.shape == (N, num_classes)
    assert bool(jnp.all(jnp.isfinite(out)))
    # rows of log_softmax should sum to 1 after exp
    assert bool(jnp.all(jnp.abs(jnp.sum(jnp.exp(out), axis=1) - 1.0) < 1e-3))
    # parity with a pure-XLA reference of the same module
    ref = reference_forward(tp, x)
    assert bool(jnp.max(jnp.abs(out - ref)) < 2e-2)
    print("KERNEL_OK")
</pallas_src>

<mosaic_0001>
module attributes {stable_mosaic.version = 11 : i64} {
  func.func @_fused_forward_kernel(%arg0: i32, %arg1: memref<1152x9xf32, #tpu.memory_space<vmem>>, %arg2: memref<9x32xf32, #tpu.memory_space<vmem>>, %arg3: memref<1x32xf32, #tpu.memory_space<vmem>>, %arg4: memref<288x64xf32, #tpu.memory_space<vmem>>, %arg5: memref<1x64xf32, #tpu.memory_space<vmem>>, %arg6: memref<4096x256xbf16, #tpu.memory_space<vmem>>, %arg7: memref<1x256xf32, #tpu.memory_space<vmem>>, %arg8: memref<256x2xf32, #tpu.memory_space<vmem>>, %arg9: memref<1x2xf32, #tpu.memory_space<vmem>>, %arg10: memref<2x2xf32, #tpu.memory_space<vmem>>, %arg11: memref<2x10x10x32xf32, #tpu.memory_space<vmem>>, %arg12: memref<2x8x8x288xf32, #tpu.memory_space<vmem>>, %arg13: memref<2x64x64xf32, #tpu.memory_space<vmem>>, %arg14: memref<2x4096xf32, #tpu.memory_space<vmem>>) attributes {dimension_semantics = [#tpu.dimension_semantics<arbitrary>], iteration_bounds = array<i64: 1>, scalar_prefetch = 0 : i64, scratch_operands = 4 : i64, tpu.core_type = #tpu.core_type<tc>, window_params = [{pipeline_mode = #tpu.pipeline_mode<synchronous>, transform_indices = @transform_0, window_bounds = array<i64: 1152, 9>}, {pipeline_mode = #tpu.pipeline_mode<synchronous>, transform_indices = @transform_1, window_bounds = array<i64: 9, 32>}, {pipeline_mode = #tpu.pipeline_mode<synchronous>, transform_indices = @transform_2, window_bounds = array<i64: 1, 32>}, {pipeline_mode = #tpu.pipeline_mode<synchronous>, transform_indices = @transform_3, window_bounds = array<i64: 288, 64>}, {pipeline_mode = #tpu.pipeline_mode<synchronous>, transform_indices = @transform_4, window_bounds = array<i64: 1, 64>}, {pipeline_mode = #tpu.pipeline_mode<synchronous>, transform_indices = @transform_5, window_bounds = array<i64: 4096, 256>}, {pipeline_mode = #tpu.pipeline_mode<synchronous>, transform_indices = @transform_6, window_bounds = array<i64: 1, 256>}, {pipeline_mode = #tpu.pipeline_mode<synchronous>, transform_indices = @transform_7, window_bounds = array<i64: 256, 2>}, {pipeline_mode = #tpu.pipeline_mode<synchronous>, transform_indices = @transform_8, window_bounds = array<i64: 1, 2>}, {pipeline_mode = #tpu.pipeline_mode<synchronous>, transform_indices = @transform_9, window_bounds = array<i64: 2, 2>}]} {
    %c0 = arith.constant 0 : index
    %c0_0 = arith.constant 0 : index
    %0 = vector.load %arg1[%c0, %c0_0] : memref<1152x9xf32, #tpu.memory_space<vmem>>, vector<1152x9xf32>
    %c0_1 = arith.constant 0 : index
    %c0_2 = arith.constant 0 : index
    %1 = vector.load %arg2[%c0_1, %c0_2] : memref<9x32xf32, #tpu.memory_space<vmem>>, vector<9x32xf32>
    %cst = arith.constant dense<0.000000e+00> : vector<1152x32xf32>
    %2 = tpu.matmul %0, %1, %cst {dimension_numbers = #tpu.dot_dimension_numbers<[1], [0], [0], [1], [0, 0, 1, 1], [], []>} : vector<1152x9xf32>, vector<9x32xf32>, vector<1152x32xf32> -> vector<1152x32xf32>
    %c0_3 = arith.constant 0 : index
    %c0_4 = arith.constant 0 : index
    %3 = vector.load %arg3[%c0_3, %c0_4] : memref<1x32xf32, #tpu.memory_space<vmem>>, vector<1x32xf32>
    %4 = vector.broadcast %3 : vector<1x32xf32> to vector<1152x32xf32>
    %5 = arith.addf %2, %4 : vector<1152x32xf32>
    %cst_5 = arith.constant 0.000000e+00 : f32
    %6 = vector.broadcast %cst_5 : f32 to vector<1152x32xf32>
    %7 = arith.maximumf %5, %6 : vector<1152x32xf32>
    %8 = vector.shape_cast %7 : vector<1152x32xf32> to vector<9x128x32xf32>
    %cst_6 = arith.constant dense<0xFF800000> : vector<128x32xf32>
    %9 = vector.multi_reduction <maximumf>, %8, %cst_6 [0] : vector<9x128x32xf32> to vector<128x32xf32>
    %cst_7 = arith.constant 0.000000e+00 : f32
    %10 = vector.broadcast %cst_7 : f32 to vector<2x10x10x32xf32>
    %c0_8 = arith.constant 0 : index
    %c0_9 = arith.constant 0 : index
    %c0_10 = arith.constant 0 : index
    %c0_11 = arith.constant 0 : index
    %11 = vector.load %arg11[%c0_8, %c0_9, %c0_10, %c0_11] : memref<2x10x10x32xf32, #tpu.memory_space<vmem>>, vector<2x10x10x32xf32>
    tpu.vector_store %arg11[%c0_8, %c0_9, %c0_10, %c0_11], %10 {strides = array<i32>} : memref<2x10x10x32xf32, #tpu.memory_space<vmem>>, vector<2x10x10x32xf32>,
    %12 = vector.shape_cast %9 : vector<128x32xf32> to vector<2x8x8x32xf32>
    %c0_12 = arith.constant 0 : index
    %c1 = arith.constant 1 : index
    %c1_13 = arith.constant 1 : index
    %c0_14 = arith.constant 0 : index
    %13 = vector.load %arg11[%c0_12, %c1, %c1_13, %c0_14] : memref<2x10x10x32xf32, #tpu.memory_space<vmem>>, vector<2x8x8x32xf32>
    tpu.vector_store %arg11[%c0_12, %c1, %c1_13, %c0_14], %12 {strides = array<i32>} : memref<2x10x10x32xf32, #tpu.memory_space<vmem>>, vector<2x8x8x32xf32>,
    %c0_15 = arith.constant 0 : index
    %c0_16 = arith.constant 0 : index
    %c0_17 = arith.constant 0 : index
    %c0_18 = arith.constant 0 : index
    %14 = vector.load %arg11[%c0_15, %c0_16, %c0_17, %c0_18] : memref<2x10x10x32xf32, #tpu.memory_space<vmem>>, vector<2x8x8x32xf32>
    %c0_19 = arith.constant 0 : index
    %c0_20 = arith.constant 0 : index
    %c0_21 = arith.constant 0 : index
    %c0_22 = arith.constant 0 : index
    %15 = vector.load %arg12[%c0_19, %c0_20, %c0_21, %c0_22] : memref<2x8x8x288xf32, #tpu.memory_space<vmem>>, vector<2x8x8x32xf32>
    tpu.vector_store %arg12[%c0_19, %c0_20, %c0_21, %c0_22], %14 {strides = array<i32>} : memref<2x8x8x288xf32, #tpu.memory_space<vmem>>, vector<2x8x8x32xf32>,
    %c0_23 = arith.constant 0 : index
    %c0_24 = arith.constant 0 : index
    %c1_25 = arith.constant 1 : index
    %c0_26 = arith.constant 0 : index
    %16 = vector.load %arg11[%c0_23, %c0_24, %c1_25, %c0_26] : memref<2x10x10x32xf32, #tpu.memory_space<vmem>>, vector<2x8x8x32xf32>
    %c0_27 = arith.constant 0 : index
    %c0_28 = arith.constant 0 : index
    %c0_29 = arith.constant 0 : index
    %c32 = arith.constant 32 : index
    %17 = vector.load %arg12[%c0_27, %c0_28, %c0_29, %c32] : memref<2x8x8x288xf32, #tpu.memory_space<vmem>>, vector<2x8x8x32xf32>
    tpu.vector_store %arg12[%c0_27, %c0_28, %c0_29, %c32], %16 {strides = array<i32>} : memref<2x8x8x288xf32, #tpu.memory_space<vmem>>, vector<2x8x8x32xf32>,
    %c0_30 = arith.constant 0 : index
    %c0_31 = arith.constant 0 : index
    %c2 = arith.constant 2 : index
    %c0_32 = arith.constant 0 : index
    %18 = vector.load %arg11[%c0_30, %c0_31, %c2, %c0_32] : memref<2x10x10x32xf32, #tpu.memory_space<vmem>>, vector<2x8x8x32xf32>
    %c0_33 = arith.constant 0 : index
    %c0_34 = arith.constant 0 : index
    %c0_35 = arith.constant 0 : index
    %c64 = arith.constant 64 : index
    %19 = vector.load %arg12[%c0_33, %c0_34, %c0_35, %c64] : memref<2x8x8x288xf32, #tpu.memory_space<vmem>>, vector<2x8x8x32xf32>
    tpu.vector_store %arg12[%c0_33, %c0_34, %c0_35, %c64], %18 {strides = array<i32>} : memref<2x8x8x288xf32, #tpu.memory_space<vmem>>, vector<2x8x8x32xf32>,
    %c0_36 = arith.constant 0 : index
    %c1_37 = arith.constant 1 : index
    %c0_38 = arith.constant 0 : index
    %c0_39 = arith.constant 0 : index
    %20 = vector.load %arg11[%c0_36, %c1_37, %c0_38, %c0_39] : memref<2x10x10x32xf32, #tpu.memory_space<vmem>>, vector<2x8x8x32xf32>
    %c0_40 = arith.constant 0 : index
    %c0_41 = arith.constant 0 : index
    %c0_42 = arith.constant 0 : index
    %c96 = arith.constant 96 : index
    %21 = vector.load %arg12[%c0_40, %c0_41, %c0_42, %c96] : memref<2x8x8x288xf32, #tpu.memory_space<vmem>>, vector<2x8x8x32xf32>
    tpu.vector_store %arg12[%c0_40, %c0_41, %c0_42, %c96], %20 {strides = array<i32>} : memref<2x8x8x288xf32, #tpu.memory_space<vmem>>, vector<2x8x8x32xf32>,
    %c0_43 = arith.constant 0 : index
    %c1_44 = arith.constant 1 : index
    %c1_45 = arith.constant 1 : index
    %c0_46 = arith.constant 0 : index
    %22 = vector.load %arg11[%c0_43, %c1_44, %c1_45, %c0_46] : memref<2x10x10x32xf32, #tpu.memory_space<vmem>>, vector<2x8x8x32xf32>
    %c0_47 = arith.constant 0 : index
    %c0_48 = arith.constant 0 : index
    %c0_49 = arith.constant 0 : index
    %c128 = arith.constant 128 : index
    %23 = vector.load %arg12[%c0_47, %c0_48, %c0_49, %c128] : memref<2x8x8x288xf32, #tpu.memory_space<vmem>>, vector<2x8x8x32xf32>
    tpu.vector_store %arg12[%c0_47, %c0_48, %c0_49, %c128], %22 {strides = array<i32>} : memref<2x8x8x288xf32, #tpu.memory_space<vmem>>, vector<2x8x8x32xf32>,
    %c0_50 = arith.constant 0 : index
    %c1_51 = arith.constant 1 : index
    %c2_52 = arith.constant 2 : index
    %c0_53 = arith.constant 0 : index
    %24 = vector.load %arg11[%c0_50, %c1_51, %c2_52, %c0_53] : memref<2x10x10x32xf32, #tpu.memory_space<vmem>>, vector<2x8x8x32xf32>
    %c0_54 = arith.constant 0 : index
    %c0_55 = arith.constant 0 : index
    %c0_56 = arith.constant 0 : index
    %c160 = arith.constant 160 : index
    %25 = vector.load %arg12[%c0_54, %c0_55, %c0_56, %c160] : memref<2x8x8x288xf32, #tpu.memory_space<vmem>>, vector<2x8x8x32xf32>
    tpu.vector_store %arg12[%c0_54, %c0_55, %c0_56, %c160], %24 {strides = array<i32>} : memref<2x8x8x288xf32, #tpu.memory_space<vmem>>, vector<2x8x8x32xf32>,
    %c0_57 = arith.constant 0 : index
    %c2_58 = arith.constant 2 : index
    %c0_59 = arith.constant 0 : index
    %c0_60 = arith.constant 0 : index
    %26 = vector.load %arg11[%c0_57, %c2_58, %c0_59, %c0_60] : memref<2x10x10x32xf32, #tpu.memory_space<vmem>>, vector<2x8x8x32xf32>
    %c0_61 = arith.constant 0 : index
    %c0_62 = arith.constant 0 : index
    %c0_63 = arith.constant 0 : index
    %c192 = arith.constant 192 : index
    %27 = vector.load %arg12[%c0_61, %c0_62, %c0_63, %c192] : memref<2x8x8x288xf32, #tpu.memory_space<vmem>>, vector<2x8x8x32xf32>
    tpu.vector_store %arg12[%c0_61, %c0_62, %c0_63, %c192], %26 {strides = array<i32>} : memref<2x8x8x288xf32, #tpu.memory_space<vmem>>, vector<2x8x8x32xf32>,
    %c0_64 = arith.constant 0 : index
    %c2_65 = arith.constant 2 : index
    %c1_66 = arith.constant 1 : index
    %c0_67 = arith.constant 0 : index
    %28 = vector.load %arg11[%c0_64, %c2_65, %c1_66, %c0_67] : memref<2x10x10x32xf32, #tpu.memory_space<vmem>>, vector<2x8x8x32xf32>
    %c0_68 = arith.constant 0 : index
    %c0_69 = arith.constant 0 : index
    %c0_70 = arith.constant 0 : index
    %c224 = arith.constant 224 : index
    %29 = vector.load %arg12[%c0_68, %c0_69, %c0_70, %c224] : memref<2x8x8x288xf32, #tpu.memory_space<vmem>>, vector<2x8x8x32xf32>
    tpu.vector_store %arg12[%c0_68, %c0_69, %c0_70, %c224], %28 {strides = array<i32>} : memref<2x8x8x288xf32, #tpu.memory_space<vmem>>, vector<2x8x8x32xf32>,
    %c0_71 = arith.constant 0 : index
    %c2_72 = arith.constant 2 : index
    %c2_73 = arith.constant 2 : index
    %c0_74 = arith.constant 0 : index
    %30 = vector.load %arg11[%c0_71, %c2_72, %c2_73, %c0_74] : memref<2x10x10x32xf32, #tpu.memory_space<vmem>>, vector<2x8x8x32xf32>
    %c0_75 = arith.constant 0 : index
    %c0_76 = arith.constant 0 : index
    %c0_77 = arith.constant 0 : index
    %c256 = arith.constant 256 : index
    %31 = vector.load %arg12[%c0_75, %c0_76, %c0_77, %c256] : memref<2x8x8x288xf32, #tpu.memory_space<vmem>>, vector<2x8x8x32xf32>
    tpu.vector_store %arg12[%c0_75, %c0_76, %c0_77, %c256], %30 {strides = array<i32>} : memref<2x8x8x288xf32, #tpu.memory_space<vmem>>, vector<2x8x8x32xf32>,
    %c0_78 = arith.constant 0 : index
    %c0_79 = arith.constant 0 : index
    %c0_80 = arith.constant 0 : index
    %c0_81 = arith.constant 0 : index
    %32 = vector.load %arg12[%c0_78, %c0_79, %c0_80, %c0_81] : memref<2x8x8x288xf32, #tpu.memory_space<vmem>>, vector<2x8x8x288xf32>
    %33 = vector.shape_cast %32 : vector<2x8x8x288xf32> to vector<128x288xf32>
    %c0_82 = arith.constant 0 : index
    %c0_83 = arith.constant 0 : index
    %34 = vector.load %arg4[%c0_82, %c0_83] : memref<288x64xf32, #tpu.memory_space<vmem>>, vector<288x64xf32>
    %cst_84 = arith.constant dense<0.000000e+00> : vector<128x64xf32>
    %35 = tpu.matmul %33, %34, %cst_84 {dimension_numbers = #tpu.dot_dimension_numbers<[1], [0], [0], [1], [0, 0, 1, 1], [], []>} : vector<128x288xf32>, vector<288x64xf32>, vector<128x64xf32> -> vector<128x64xf32>
    %c0_85 = arith.constant 0 : index
    %c0_86 = arith.constant 0 : index
    %36 = vector.load %arg5[%c0_85, %c0_86] : memref<1x64xf32, #tpu.memory_space<vmem>>, vector<1x64xf32>
    %37 = vector.broadcast %36 : vector<1x64xf32> to vector<128x64xf32>
    %38 = arith.addf %35, %37 : vector<128x64xf32>
    %cst_87 = arith.constant 0.000000e+00 : f32
    %39 = vector.broadcast %cst_87 : f32 to vector<128x64xf32>
    %40 = arith.maximumf %38, %39 : vector<128x64xf32>
    %41 = vector.shape_cast %40 : vector<128x64xf32> to vector<2x64x64xf32>
    %c0_88 = arith.constant 0 : index
    %c0_89 = arith.constant 0 : index
    %c0_90 = arith.constant 0 : index
    %42 = vector.load %arg13[%c0_88, %c0_89, %c0_90] : memref<2x64x64xf32, #tpu.memory_space<vmem>>, vector<2x64x64xf32>
    tpu.vector_store %arg13[%c0_88, %c0_89, %c0_90], %41 {strides = array<i32>} : memref<2x64x64xf32, #tpu.memory_space<vmem>>, vector<2x64x64xf32>,
    %c0_91 = arith.constant 0 : index
    %c0_92 = arith.constant 0 : index
    %c0_93 = arith.constant 0 : index
    %43 = vector.load %arg13[%c0_91, %c0_92, %c0_93] : memref<2x64x64xf32, #tpu.memory_space<vmem>>, vector<2x1x64xf32>
    %44 = vector.shape_cast %43 : vector<2x1x64xf32> to vector<2x64xf32>
    %c0_94 = arith.constant 0 : index
    %c0_95 = arith.constant 0 : index
    %45 = vector.load %arg14[%c0_94, %c0_95] : memref<2x4096xf32, #tpu.memory_space<vmem>>, vector<2x64xf32>
    tpu.vector_store %arg14[%c0_94, %c0_95], %44 {strides = array<i32>} : memref<2x4096xf32, #tpu.memory_space<vmem>>, vector<2x64xf32>,
    %c0_96 = arith.constant 0 : index
    %c1_97 = arith.constant 1 : index
    %c0_98 = arith.constant 0 : index
    %46 = vector.load %arg13[%c0_96, %c1_97, %c0_98] : memref<2x64x64xf32, #tpu.memory_space<vmem>>, vector<2x1x64xf32>
    %47 = vector.shape_cast %46 : vector<2x1x64xf32> to vector<2x64xf32>
    %c0_99 = arith.constant 0 : index
    %c64_100 = arith.constant 64 : index
    %48 = vector.load %arg14[%c0_99, %c64_100] : memref<2x4096xf32, #tpu.memory_space<vmem>>, vector<2x64xf32>
    tpu.vector_store %arg14[%c0_99, %c64_100], %47 {strides = array<i32>} : memref<2x4096xf32, #tpu.memory_space<vmem>>, vector<2x64xf32>,
    %c0_101 = arith.constant 0 : index
    %c2_102 = arith.constant 2 : index
    %c0_103 = arith.constant 0 : index
    %49 = vector.load %arg13[%c0_101, %c2_102, %c0_103] : memref<2x64x64xf32, #tpu.memory_space<vmem>>, vector<2x1x64xf32>
    %50 = vector.shape_cast %49 : vector<2x1x64xf32> to vector<2x64xf32>
    %c0_104 = arith.constant 0 : index
    %c128_105 = arith.constant 128 : index
    %51 = vector.load %arg14[%c0_104, %c128_105] : memref<2x4096xf32, #tpu.memory_space<vmem>>, vector<2x64xf32>
    tpu.vector_store %arg14[%c0_104, %c128_105], %50 {strides = array<i32>} : memref<2x4096xf32, #tpu.memory_space<vmem>>, vector<2x64xf32>,
    %c0_106 = arith.constant 0 : index
    %c3 = arith.constant 3 : index
    %c0_107 = arith.constant 0 : index
    %52 = vector.load %arg13[%c0_106, %c3, %c0_107] : memref<2x64x64xf32, #tpu.memory_space<vmem>>, vector<2x1x64xf32>
    %53 = vector.shape_cast %52 : vector<2x1x64xf32> to vector<2x64xf32>
    %c0_108 = arith.constant 0 : index
    %c192_109 = arith.constant 192 : index
    %54 = vector.load %arg14[%c0_108, %c192_109] : memref<2x4096xf32, #tpu.memory_space<vmem>>, vector<2x64xf32>
    tpu.vector_store %arg14[%c0_108, %c192_109], %53 {strides = array<i32>} : memref<2x4096xf32, #tpu.memory_space<vmem>>, vector<2x64xf32>,
    %c0_110 = arith.constant 0 : index
    %c4 = arith.constant 4 : index
    %c0_111 = arith.constant 0 : index
    %55 = vector.load %arg13[%c0_110, %c4, %c0_111] : memref<2x64x64xf32, #tpu.memory_space<vmem>>, vector<2x1x64xf32>
    %56 = vector.shape_cast %55 : vector<2x1x64xf32> to vector<2x64xf32>
    %c0_112 = arith.constant 0 : index
    %c256_113 = arith.constant 256 : index
    %57 = vector.load %arg14[%c0_112, %c256_113] : memref<2x4096xf32, #tpu.memory_space<vmem>>, vector<2x64xf32>
    tpu.vector_store %arg14[%c0_112, %c256_113], %56 {strides = array<i32>} : memref<2x4096xf32, #tpu.memory_space<vmem>>, vector<2x64xf32>,
    %c0_114 = arith.constant 0 : index
    %c5 = arith.constant 5 : index
    %c0_115 = arith.constant 0 : index
    %58 = vector.load %arg13[%c0_114, %c5, %c0_115] : memref<2x64x64xf32, #tpu.memory_space<vmem>>, vector<2x1x64xf32>
    %59 = vector.shape_cast %58 : vector<2x1x64xf32> to vector<2x64xf32>
    %c0_116 = arith.constant 0 : index
    %c320 = arith.constant 320 : index
    %60 = vector.load %arg14[%c0_116, %c320] : memref<2x4096xf32, #tpu.memory_space<vmem>>, vector<2x64xf32>
    tpu.vector_store %arg14[%c0_116, %c320], %59 {strides = array<i32>} : memref<2x4096xf32, #tpu.memory_space<vmem>>, vector<2x64xf32>,
    %c0_117 = arith.constant 0 : index
    %c6 = arith.constant 6 : index
    %c0_118 = arith.constant 0 : index
    %61 = vector.load %arg13[%c0_117, %c6, %c0_118] : memref<2x64x64xf32, #tpu.memory_space<vmem>>, vector<2x1x64xf32>
    %62 = vector.shape_cast %61 : vector<2x1x64xf32> to vector<2x64xf32>
    %c0_119 = arith.constant 0 : index
    %c384 = arith.constant 384 : index
    %63 = vector.load %arg14[%c0_119, %c384] : memref<2x4096xf32, #tpu.memory_space<vmem>>, vector<2x64xf32>
    tpu.vector_store %arg14[%c0_119, %c384], %62 {strides = array<i32>} : memref<2x4096xf32, #tpu.memory_space<vmem>>, vector<2x64xf32>,
    %c0_120 = arith.constant 0 : index
    %c7 = arith.constant 7 : index
    %c0_121 = arith.constant 0 : index
    %64 = vector.load %arg13[%c0_120, %c7, %c0_121] : memref<2x64x64xf32, #tpu.memory_space<vmem>>, vector<2x1x64xf32>
    %65 = vector.shape_cast %64 : vector<2x1x64xf32> to vector<2x64xf32>
    %c0_122 = arith.constant 0 : index
    %c448 = arith.constant 448 : index
    %66 = vector.load %arg14[%c0_122, %c448] : memref<2x4096xf32, #tpu.memory_space<vmem>>, vector<2x64xf32>
    tpu.vector_store %arg14[%c0_122, %c448], %65 {strides = array<i32>} : memref<2x4096xf32, #tpu.memory_space<vmem>>, vector<2x64xf32>,
    %c0_123 = arith.constant 0 : index
    %c8 = arith.constant 8 : index
    %c0_124 = arith.constant 0 : index
    %67 = vector.load %arg13[%c0_123, %c8, %c0_124] : memref<2x64x64xf32, #tpu.memory_space<vmem>>, vector<2x1x64xf32>
    %68 = vector.shape_cast %67 : vector<2x1x64xf32> to vector<2x64xf32>
    %c0_125 = arith.constant 0 : index
    %c512 = arith.constant 512 : index
    %69 = vector.load %arg14[%c0_125, %c512] : memref<2x4096xf32, #tpu.memory_space<vmem>>, vector<2x64xf32>
    tpu.vector_store %arg14[%c0_125, %c512], %68 {strides = array<i32>} : memref<2x4096xf32, #tpu.memory_space<vmem>>, vector<2x64xf32>,
    %c0_126 = arith.constant 0 : index
    %c9 = arith.constant 9 : index
    %c0_127 = arith.constant 0 : index
    %70 = vector.load %arg13[%c0_126, %c9, %c0_127] : memref<2x64x64xf32, #tpu.memory_space<vmem>>, vector<2x1x64xf32>
    %71 = vector.shape_cast %70 : vector<2x1x64xf32> to vector<2x64xf32>
    %c0_128 = arith.constant 0 : index
    %c576 = arith.constant 576 : index
    %72 = vector.load %arg14[%c0_128, %c576] : memref<2x4096xf32, #tpu.memory_space<vmem>>, vector<2x64xf32>
    tpu.vector_store %arg14[%c0_128, %c576], %71 {strides = array<i32>} : memref<2x4096xf32, #tpu.memory_space<vmem>>, vector<2x64xf32>,
    %c0_129 = arith.constant 0 : index
    %c10 = arith.constant 10 : index
    %c0_130 = arith.constant 0 : index
    %73 = vector.load %arg13[%c0_129, %c10, %c0_130] : memref<2x64x64xf32, #tpu.memory_space<vmem>>, vector<2x1x64xf32>
    %74 = vector.shape_cast %73 : vector<2x1x64xf32> to vector<2x64xf32>
    %c0_131 = arith.constant 0 : index
    %c640 = arith.constant 640 : index
    %75 = vector.load %arg14[%c0_131, %c640] : memref<2x4096xf32, #tpu.memory_space<vmem>>, vector<2x64xf32>
    tpu.vector_store %arg14[%c0_131, %c640], %74 {strides = array<i32>} : memref<2x4096xf32, #tpu.memory_space<vmem>>, vector<2x64xf32>,
    %c0_132 = arith.constant 0 : index
    %c11 = arith.constant 11 : index
    %c0_133 = arith.constant 0 : index
    %76 = vector.load %arg13[%c0_132, %c11, %c0_133] : memref<2x64x64xf32, #tpu.memory_space<vmem>>, vector<2x1x64xf32>
    %77 = vector.shape_cast %76 : vector<2x1x64xf32> to vector<2x64xf32>
    %c0_134 = arith.constant 0 : index
    %c704 = arith.constant 704 : index
    %78 = vector.load %arg14[%c0_134, %c704] : memref<2x4096xf32, #tpu.memory_space<vmem>>, vector<2x64xf32>
    tpu.vector_store %arg14[%c0_134, %c704], %77 {strides = array<i32>} : memref<2x4096xf32, #tpu.memory_space<vmem>>, vector<2x64xf32>,
    %c0_135 = arith.constant 0 : index
    %c12 = arith.constant 12 : index
    %c0_136 = arith.constant 0 : index
    %79 = vector.load %arg13[%c0_135, %c12, %c0_136] : memref<2x64x64xf32, #tpu.memory_space<vmem>>, vector<2x1x64xf32>
    %80 = vector.shape_cast %79 : vector<2x1x64xf32> to vector<2x64xf32>
    %c0_137 = arith.constant 0 : index
    %c768 = arith.constant 768 : index
    %81 = vector.load %arg14[%c0_137, %c768] : memref<2x4096xf32, #tpu.memory_space<vmem>>, vector<2x64xf32>
    tpu.vector_store %arg14[%c0_137, %c768], %80 {strides = array<i32>} : memref<2x4096xf32, #tpu.memory_space<vmem>>, vector<2x64xf32>,
    %c0_138 = arith.constant 0 : index
    %c13 = arith.constant 13 : index
    %c0_139 = arith.constant 0 : index
    %82 = vector.load %arg13[%c0_138, %c13, %c0_139] : memref<2x64x64xf32, #tpu.memory_space<vmem>>, vector<2x1x64xf32>
    %83 = vector.shape_cast %82 : vector<2x1x64xf32> to vector<2x64xf32>
    %c0_140 = arith.constant 0 : index
    %c832 = arith.constant 832 : index
    %84 = vector.load %arg14[%c0_140, %c832] : memref<2x4096xf32, #tpu.memory_space<vmem>>, vector<2x64xf32>
    tpu.vector_store %arg14[%c0_140, %c832], %83 {strides = array<i32>} : memref<2x4096xf32, #tpu.memory_space<vmem>>, vector<2x64xf32>,
    %c0_141 = arith.constant 0 : index
    %c14 = arith.constant 14 : index
    %c0_142 = arith.constant 0 : index
    %85 = vector.load %arg13[%c0_141, %c14, %c0_142] : memref<2x64x64xf32, #tpu.memory_space<vmem>>, vector<2x1x64xf32>
    %86 = vector.shape_cast %85 : vector<2x1x64xf32> to vector<2x64xf32>
    %c0_143 = arith.constant 0 : index
    %c896 = arith.constant 896 : index
    %87 = vector.load %arg14[%c0_143, %c896] : memref<2x4096xf32, #tpu.memory_space<vmem>>, vector<2x64xf32>
    tpu.vector_store %arg14[%c0_143, %c896], %86 {strides = array<i32>} : memref<2x4096xf32, #tpu.memory_space<vmem>>, vector<2x64xf32>,
    %c0_144 = arith.constant 0 : index
    %c15 = arith.constant 15 : index
    %c0_145 = arith.constant 0 : index
    %88 = vector.load %arg13[%c0_144, %c15, %c0_145] : memref<2x64x64xf32, #tpu.memory_space<vmem>>, vector<2x1x64xf32>
    %89 = vector.shape_cast %88 : vector<2x1x64xf32> to vector<2x64xf32>
    %c0_146 = arith.constant 0 : index
    %c960 = arith.constant 960 : index
    %90 = vector.load %arg14[%c0_146, %c960] : memref<2x4096xf32, #tpu.memory_space<vmem>>, vector<2x64xf32>
    tpu.vector_store %arg14[%c0_146, %c960], %89 {strides = array<i32>} : memref<2x4096xf32, #tpu.memory_space<vmem>>, vector<2x64xf32>,
    %c0_147 = arith.constant 0 : index
    %c16 = arith.constant 16 : index
    %c0_148 = arith.constant 0 : index
    %91 = vector.load %arg13[%c0_147, %c16, %c0_148] : memref<2x64x64xf32, #tpu.memory_space<vmem>>, vector<2x1x64xf32>
    %92 = vector.shape_cast %91 : vector<2x1x64xf32> to vector<2x64xf32>
    %c0_149 = arith.constant 0 : index
    %c1024 = arith.constant 1024 : index
    %93 = vector.load %arg14[%c0_149, %c1024] : memref<2x4096xf32, #tpu.memory_space<vmem>>, vector<2x64xf32>
    tpu.vector_store %arg14[%c0_149, %c1024], %92 {strides = array<i32>} : memref<2x4096xf32, #tpu.memory_space<vmem>>, vector<2x64xf32>,
    %c0_150 = arith.constant 0 : index
    %c17 = arith.constant 17 : index
    %c0_151 = arith.constant 0 : index
    %94 = vector.load %arg13[%c0_150, %c17, %c0_151] : memref<2x64x64xf32, #tpu.memory_space<vmem>>, vector<2x1x64xf32>
    %95 = vector.shape_cast %94 : vector<2x1x64xf32> to vector<2x64xf32>
    %c0_152 = arith.constant 0 : index
    %c1088 = arith.constant 1088 : index
    %96 = vector.load %arg14[%c0_152, %c1088] : memref<2x4096xf32, #tpu.memory_space<vmem>>, vector<2x64xf32>
    tpu.vector_store %arg14[%c0_152, %c1088], %95 {strides = array<i32>} : memref<2x4096xf32, #tpu.memory_space<vmem>>, vector<2x64xf32>,
    %c0_153 = arith.constant 0 : index
    %c18 = arith.constant 18 : index
    %c0_154 = arith.constant 0 : index
    %97 = vector.load %arg13[%c0_153, %c18, %c0_154] : memref<2x64x64xf32, #tpu.memory_space<vmem>>, vector<2x1x64xf32>
    %98 = vector.shape_cast %97 : vector<2x1x64xf32> to vector<2x64xf32>
    %c0_155 = arith.constant 0 : index
    %c1152 = arith.constant 1152 : index
    %99 = vector.load %arg14[%c0_155, %c1152] : memref<2x4096xf32, #tpu.memory_space<vmem>>, vector<2x64xf32>
    tpu.vector_store %arg14[%c0_155, %c1152], %98 {strides = array<i32>} : memref<2x4096xf32, #tpu.memory_space<vmem>>, vector<2x64xf32>,
    %c0_156 = arith.constant 0 : index
    %c19 = arith.constant 19 : index
    %c0_157 = arith.constant 0 : index
    %100 = vector.load %arg13[%c0_156, %c19, %c0_157] : memref<2x64x64xf32, #tpu.memory_space<vmem>>, vector<2x1x64xf32>
    %101 = vector.shape_cast %100 : vector<2x1x64xf32> to vector<2x64xf32>
    %c0_158 = arith.constant 0 : index
    %c1216 = arith.constant 1216 : index
    %102 = vector.load %arg14[%c0_158, %c1216] : memref<2x4096xf32, #tpu.memory_space<vmem>>, vector<2x64xf32>
    tpu.vector_store %arg14[%c0_158, %c1216], %101 {strides = array<i32>} : memref<2x4096xf32, #tpu.memory_space<vmem>>, vector<2x64xf32>,
    %c0_159 = arith.constant 0 : index
    %c20 = arith.constant 20 : index
    %c0_160 = arith.constant 0 : index
    %103 = vector.load %arg13[%c0_159, %c20, %c0_160] : memref<2x64x64xf32, #tpu.memory_space<vmem>>, vector<2x1x64xf32>
    %104 = vector.shape_cast %103 : vector<2x1x64xf32> to vector<2x64xf32>
    %c0_161 = arith.constant 0 : index
    %c1280 = arith.constant 1280 : index
    %105 = vector.load %arg14[%c0_161, %c1280] : memref<2x4096xf32, #tpu.memory_space<vmem>>, vector<2x64xf32>
    tpu.vector_store %arg14[%c0_161, %c1280], %104 {strides = array<i32>} : memref<2x4096xf32, #tpu.memory_space<vmem>>, vector<2x64xf32>,
    %c0_162 = arith.constant 0 : index
    %c21 = arith.constant 21 : index
    %c0_163 = arith.constant 0 : index
    %106 = vector.load %arg13[%c0_162, %c21, %c0_163] : memref<2x64x64xf32, #tpu.memory_space<vmem>>, vector<2x1x64xf32>
    %107 = vector.shape_cast %106 : vector<2x1x64xf32> to vector<2x64xf32>
    %c0_164 = arith.constant 0 : index
    %c1344 = arith.constant 1344 : index
    %108 = vector.load %arg14[%c0_164, %c1344] : memref<2x4096xf32, #tpu.memory_space<vmem>>, vector<2x64xf32>
    tpu.vector_store %arg14[%c0_164, %c1344], %107 {strides = array<i32>} : memref<2x4096xf32, #tpu.memory_space<vmem>>, vector<2x64xf32>,
    %c0_165 = arith.constant 0 : index
    %c22 = arith.constant 22 : index
    %c0_166 = arith.constant 0 : index
    %109 = vector.load %arg13[%c0_165, %c22, %c0_166] : memref<2x64x64xf32, #tpu.memory_space<vmem>>, vector<2x1x64xf32>
    %110 = vector.shape_cast %109 : vector<2x1x64xf32> to vector<2x64xf32>
    %c0_167 = arith.constant 0 : index
    %c1408 = arith.constant 1408 : index
    %111 = vector.load %arg14[%c0_167, %c1408] : memref<2x4096xf32, #tpu.memory_space<vmem>>, vector<2x64xf32>
    tpu.vector_store %arg14[%c0_167, %c1408], %110 {strides = array<i32>} : memref<2x4096xf32, #tpu.memory_space<vmem>>, vector<2x64xf32>,
    %c0_168 = arith.constant 0 : index
    %c23 = arith.constant 23 : index
    %c0_169 = arith.constant 0 : index
    %112 = vector.load %arg13[%c0_168, %c23, %c0_169] : memref<2x64x64xf32, #tpu.memory_space<vmem>>, vector<2x1x64xf32>
    %113 = vector.shape_cast %112 : vector<2x1x64xf32> to vector<2x64xf32>
    %c0_170 = arith.constant 0 : index
    %c1472 = arith.constant 1472 : index
    %114 = vector.load %arg14[%c0_170, %c1472] : memref<2x4096xf32, #tpu.memory_space<vmem>>, vector<2x64xf32>
    tpu.vector_store %arg14[%c0_170, %c1472], %113 {strides = array<i32>} : memref<2x4096xf32, #tpu.memory_space<vmem>>, vector<2x64xf32>,
    %c0_171 = arith.constant 0 : index
    %c24 = arith.constant 24 : index
    %c0_172 = arith.constant 0 : index
    %115 = vector.load %arg13[%c0_171, %c24, %c0_172] : memref<2x64x64xf32, #tpu.memory_space<vmem>>, vector<2x1x64xf32>
    %116 = vector.shape_cast %115 : vector<2x1x64xf32> to vector<2x64xf32>
    %c0_173 = arith.constant 0 : index
    %c1536 = arith.constant 1536 : index
    %117 = vector.load %arg14[%c0_173, %c1536] : memref<2x4096xf32, #tpu.memory_space<vmem>>, vector<2x64xf32>
    tpu.vector_store %arg14[%c0_173, %c1536], %116 {strides = array<i32>} : memref<2x4096xf32, #tpu.memory_space<vmem>>, vector<2x64xf32>,
    %c0_174 = arith.constant 0 : index
    %c25 = arith.constant 25 : index
    %c0_175 = arith.constant 0 : index
    %118 = vector.load %arg13[%c0_174, %c25, %c0_175] : memref<2x64x64xf32, #tpu.memory_space<vmem>>, vector<2x1x64xf32>
    %119 = vector.shape_cast %118 : vector<2x1x64xf32> to vector<2x64xf32>
    %c0_176 = arith.constant 0 : index
    %c1600 = arith.constant 1600 : index
    %120 = vector.load %arg14[%c0_176, %c1600] : memref<2x4096xf32, #tpu.memory_space<vmem>>, vector<2x64xf32>
    tpu.vector_store %arg14[%c0_176, %c1600], %119 {strides = array<i32>} : memref<2x4096xf32, #tpu.memory_space<vmem>>, vector<2x64xf32>,
    %c0_177 = arith.constant 0 : index
    %c26 = arith.constant 26 : index
    %c0_178 = arith.constant 0 : index
    %121 = vector.load %arg13[%c0_177, %c26, %c0_178] : memref<2x64x64xf32, #tpu.memory_space<vmem>>, vector<2x1x64xf32>
    %122 = vector.shape_cast %121 : vector<2x1x64xf32> to vector<2x64xf32>
    %c0_179 = arith.constant 0 : index
    %c1664 = arith.constant 1664 : index
    %123 = vector.load %arg14[%c0_179, %c1664] : memref<2x4096xf32, #tpu.memory_space<vmem>>, vector<2x64xf32>
    tpu.vector_store %arg14[%c0_179, %c1664], %122 {strides = array<i32>} : memref<2x4096xf32, #tpu.memory_space<vmem>>, vector<2x64xf32>,
    %c0_180 = arith.constant 0 : index
    %c27 = arith.constant 27 : index
    %c0_181 = arith.constant 0 : index
    %124 = vector.load %arg13[%c0_180, %c27, %c0_181] : memref<2x64x64xf32, #tpu.memory_space<vmem>>, vector<2x1x64xf32>
    %125 = vector.shape_cast %124 : vector<2x1x64xf32> to vector<2x64xf32>
    %c0_182 = arith.constant 0 : index
    %c1728 = arith.constant 1728 : index
    %126 = vector.load %arg14[%c0_182, %c1728] : memref<2x4096xf32, #tpu.memory_space<vmem>>, vector<2x64xf32>
    tpu.vector_store %arg14[%c0_182, %c1728], %125 {strides = array<i32>} : memref<2x4096xf32, #tpu.memory_space<vmem>>, vector<2x64xf32>,
    %c0_183 = arith.constant 0 : index
    %c28 = arith.constant 28 : index
    %c0_184 = arith.constant 0 : index
    %127 = vector.load %arg13[%c0_183, %c28, %c0_184] : memref<2x64x64xf32, #tpu.memory_space<vmem>>, vector<2x1x64xf32>
    %128 = vector.shape_cast %127 : vector<2x1x64xf32> to vector<2x64xf32>
    %c0_185 = arith.constant 0 : index
    %c1792 = arith.constant 1792 : index
    %129 = vector.load %arg14[%c0_185, %c1792] : memref<2x4096xf32, #tpu.memory_space<vmem>>, vector<2x64xf32>
    tpu.vector_store %arg14[%c0_185, %c1792], %128 {strides = array<i32>} : memref<2x4096xf32, #tpu.memory_space<vmem>>, vector<2x64xf32>,
    %c0_186 = arith.constant 0 : index
    %c29 = arith.constant 29 : index
    %c0_187 = arith.constant 0 : index
    %130 = vector.load %arg13[%c0_186, %c29, %c0_187] : memref<2x64x64xf32, #tpu.memory_space<vmem>>, vector<2x1x64xf32>
    %131 = vector.shape_cast %130 : vector<2x1x64xf32> to vector<2x64xf32>
    %c0_188 = arith.constant 0 : index
    %c1856 = arith.constant 1856 : index
    %132 = vector.load %arg14[%c0_188, %c1856] : memref<2x4096xf32, #tpu.memory_space<vmem>>, vector<2x64xf32>
    tpu.vector_store %arg14[%c0_188, %c1856], %131 {strides = array<i32>} : memref<2x4096xf32, #tpu.memory_space<vmem>>, vector<2x64xf32>,
    %c0_189 = arith.constant 0 : index
    %c30 = arith.constant 30 : index
    %c0_190 = arith.constant 0 : index
    %133 = vector.load %arg13[%c0_189, %c30, %c0_190] : memref<2x64x64xf32, #tpu.memory_space<vmem>>, vector<2x1x64xf32>
    %134 = vector.shape_cast %133 : vector<2x1x64xf32> to vector<2x64xf32>
    %c0_191 = arith.constant 0 : index
    %c1920 = arith.constant 1920 : index
    %135 = vector.load %arg14[%c0_191, %c1920] : memref<2x4096xf32, #tpu.memory_space<vmem>>, vector<2x64xf32>
    tpu.vector_store %arg14[%c0_191, %c1920], %134 {strides = array<i32>} : memref<2x4096xf32, #tpu.memory_space<vmem>>, vector<2x64xf32>,
    %c0_192 = arith.constant 0 : index
    %c31 = arith.constant 31 : index
    %c0_193 = arith.constant 0 : index
    %136 = vector.load %arg13[%c0_192, %c31, %c0_193] : memref<2x64x64xf32, #tpu.memory_space<vmem>>, vector<2x1x64xf32>
    %137 = vector.shape_cast %136 : vector<2x1x64xf32> to vector<2x64xf32>
    %c0_194 = arith.constant 0 : index
    %c1984 = arith.constant 1984 : index
    %138 = vector.load %arg14[%c0_194, %c1984] : memref<2x4096xf32, #tpu.memory_space<vmem>>, vector<2x64xf32>
    tpu.vector_store %arg14[%c0_194, %c1984], %137 {strides = array<i32>} : memref<2x4096xf32, #tpu.memory_space<vmem>>, vector<2x64xf32>,
    %c0_195 = arith.constant 0 : index
    %c32_196 = arith.constant 32 : index
    %c0_197 = arith.constant 0 : index
    %139 = vector.load %arg13[%c0_195, %c32_196, %c0_197] : memref<2x64x64xf32, #tpu.memory_space<vmem>>, vector<2x1x64xf32>
    %140 = vector.shape_cast %139 : vector<2x1x64xf32> to vector<2x64xf32>
    %c0_198 = arith.constant 0 : index
    %c2048 = arith.constant 2048 : index
    %141 = vector.load %arg14[%c0_198, %c2048] : memref<2x4096xf32, #tpu.memory_space<vmem>>, vector<2x64xf32>
    tpu.vector_store %arg14[%c0_198, %c2048], %140 {strides = array<i32>} : memref<2x4096xf32, #tpu.memory_space<vmem>>, vector<2x64xf32>,
    %c0_199 = arith.constant 0 : index
    %c33 = arith.constant 33 : index
    %c0_200 = arith.constant 0 : index
    %142 = vector.load %arg13[%c0_199, %c33, %c0_200] : memref<2x64x64xf32, #tpu.memory_space<vmem>>, vector<2x1x64xf32>
    %143 = vector.shape_cast %142 : vector<2x1x64xf32> to vector<2x64xf32>
    %c0_201 = arith.constant 0 : index
    %c2112 = arith.constant 2112 : index
    %144 = vector.load %arg14[%c0_201, %c2112] : memref<2x4096xf32, #tpu.memory_space<vmem>>, vector<2x64xf32>
    tpu.vector_store %arg14[%c0_201, %c2112], %143 {strides = array<i32>} : memref<2x4096xf32, #tpu.memory_space<vmem>>, vector<2x64xf32>,
    %c0_202 = arith.constant 0 : index
    %c34 = arith.constant 34 : index
    %c0_203 = arith.constant 0 : index
    %145 = vector.load %arg13[%c0_202, %c34, %c0_203] : memref<2x64x64xf32, #tpu.memory_space<vmem>>, vector<2x1x64xf32>
    %146 = vector.shape_cast %145 : vector<2x1x64xf32> to vector<2x64xf32>
    %c0_204 = arith.constant 0 : index
    %c2176 = arith.constant 2176 : index
    %147 = vector.load %arg14[%c0_204, %c2176] : memref<2x4096xf32, #tpu.memory_space<vmem>>, vector<2x64xf32>
    tpu.vector_store %arg14[%c0_204, %c2176], %146 {strides = array<i32>} : memref<2x4096xf32, #tpu.memory_space<vmem>>, vector<2x64xf32>,
    %c0_205 = arith.constant 0 : index
    %c35 = arith.constant 35 : index
    %c0_206 = arith.constant 0 : index
    %148 = vector.load %arg13[%c0_205, %c35, %c0_206] : memref<2x64x64xf32, #tpu.memory_space<vmem>>, vector<2x1x64xf32>
    %149 = vector.shape_cast %148 : vector<2x1x64xf32> to vector<2x64xf32>
    %c0_207 = arith.constant 0 : index
    %c2240 = arith.constant 2240 : index
    %150 = vector.load %arg14[%c0_207, %c2240] : memref<2x4096xf32, #tpu.memory_space<vmem>>, vector<2x64xf32>
    tpu.vector_store %arg14[%c0_207, %c2240], %149 {strides = array<i32>} : memref<2x4096xf32, #tpu.memory_space<vmem>>, vector<2x64xf32>,
    %c0_208 = arith.constant 0 : index
    %c36 = arith.constant 36 : index
    %c0_209 = arith.constant 0 : index
    %151 = vector.load %arg13[%c0_208, %c36, %c0_209] : memref<2x64x64xf32, #tpu.memory_space<vmem>>, vector<2x1x64xf32>
    %152 = vector.shape_cast %151 : vector<2x1x64xf32> to vector<2x64xf32>
    %c0_210 = arith.constant 0 : index
    %c2304 = arith.constant 2304 : index
    %153 = vector.load %arg14[%c0_210, %c2304] : memref<2x4096xf32, #tpu.memory_space<vmem>>, vector<2x64xf32>
    tpu.vector_store %arg14[%c0_210, %c2304], %152 {strides = array<i32>} : memref<2x4096xf32, #tpu.memory_space<vmem>>, vector<2x64xf32>,
    %c0_211 = arith.constant 0 : index
    %c37 = arith.constant 37 : index
    %c0_212 = arith.constant 0 : index
    %154 = vector.load %arg13[%c0_211, %c37, %c0_212] : memref<2x64x64xf32, #tpu.memory_space<vmem>>, vector<2x1x64xf32>
    %155 = vector.shape_cast %154 : vector<2x1x64xf32> to vector<2x64xf32>
    %c0_213 = arith.constant 0 : index
    %c2368 = arith.constant 2368 : index
    %156 = vector.load %arg14[%c0_213, %c2368] : memref<2x4096xf32, #tpu.memory_space<vmem>>, vector<2x64xf32>
    tpu.vector_store %arg14[%c0_213, %c2368], %155 {strides = array<i32>} : memref<2x4096xf32, #tpu.memory_space<vmem>>, vector<2x64xf32>,
    %c0_214 = arith.constant 0 : index
    %c38 = arith.constant 38 : index
    %c0_215 = arith.constant 0 : index
    %157 = vector.load %arg13[%c0_214, %c38, %c0_215] : memref<2x64x64xf32, #tpu.memory_space<vmem>>, vector<2x1x64xf32>
    %158 = vector.shape_cast %157 : vector<2x1x64xf32> to vector<2x64xf32>
    %c0_216 = arith.constant 0 : index
    %c2432 = arith.constant 2432 : index
    %159 = vector.load %arg14[%c0_216, %c2432] : memref<2x4096xf32, #tpu.memory_space<vmem>>, vector<2x64xf32>
    tpu.vector_store %arg14[%c0_216, %c2432], %158 {strides = array<i32>} : memref<2x4096xf32, #tpu.memory_space<vmem>>, vector<2x64xf32>,
    %c0_217 = arith.constant 0 : index
    %c39 = arith.constant 39 : index
    %c0_218 = arith.constant 0 : index
    %160 = vector.load %arg13[%c0_217, %c39, %c0_218] : memref<2x64x64xf32, #tpu.memory_space<vmem>>, vector<2x1x64xf32>
    %161 = vector.shape_cast %160 : vector<2x1x64xf32> to vector<2x64xf32>
    %c0_219 = arith.constant 0 : index
    %c2496 = arith.constant 2496 : index
    %162 = vector.load %arg14[%c0_219, %c2496] : memref<2x4096xf32, #tpu.memory_space<vmem>>, vector<2x64xf32>
    tpu.vector_store %arg14[%c0_219, %c2496], %161 {strides = array<i32>} : memref<2x4096xf32, #tpu.memory_space<vmem>>, vector<2x64xf32>,
    %c0_220 = arith.constant 0 : index
    %c40 = arith.constant 40 : index
    %c0_221 = arith.constant 0 : index
    %163 = vector.load %arg13[%c0_220, %c40, %c0_221] : memref<2x64x64xf32, #tpu.memory_space<vmem>>, vector<2x1x64xf32>
    %164 = vector.shape_cast %163 : vector<2x1x64xf32> to vector<2x64xf32>
    %c0_222 = arith.constant 0 : index
    %c2560 = arith.constant 2560 : index
    %165 = vector.load %arg14[%c0_222, %c2560] : memref<2x4096xf32, #tpu.memory_space<vmem>>, vector<2x64xf32>
    tpu.vector_store %arg14[%c0_222, %c2560], %164 {strides = array<i32>} : memref<2x4096xf32, #tpu.memory_space<vmem>>, vector<2x64xf32>,
    %c0_223 = arith.constant 0 : index
    %c41 = arith.constant 41 : index
    %c0_224 = arith.constant 0 : index
    %166 = vector.load %arg13[%c0_223, %c41, %c0_224] : memref<2x64x64xf32, #tpu.memory_space<vmem>>, vector<2x1x64xf32>
    %167 = vector.shape_cast %166 : vector<2x1x64xf32> to vector<2x64xf32>
    %c0_225 = arith.constant 0 : index
    %c2624 = arith.constant 2624 : index
    %168 = vector.load %arg14[%c0_225, %c2624] : memref<2x4096xf32, #tpu.memory_space<vmem>>, vector<2x64xf32>
    tpu.vector_store %arg14[%c0_225, %c2624], %167 {strides = array<i32>} : memref<2x4096xf32, #tpu.memory_space<vmem>>, vector<2x64xf32>,
    %c0_226 = arith.constant 0 : index
    %c42 = arith.constant 42 : index
    %c0_227 = arith.constant 0 : index
    %169 = vector.load %arg13[%c0_226, %c42, %c0_227] : memref<2x64x64xf32, #tpu.memory_space<vmem>>, vector<2x1x64xf32>
    %170 = vector.shape_cast %169 : vector<2x1x64xf32> to vector<2x64xf32>
    %c0_228 = arith.constant 0 : index
    %c2688 = arith.constant 2688 : index
    %171 = vector.load %arg14[%c0_228, %c2688] : memref<2x4096xf32, #tpu.memory_space<vmem>>, vector<2x64xf32>
    tpu.vector_store %arg14[%c0_228, %c2688], %170 {strides = array<i32>} : memref<2x4096xf32, #tpu.memory_space<vmem>>, vector<2x64xf32>,
    %c0_229 = arith.constant 0 : index
    %c43 = arith.constant 43 : index
    %c0_230 = arith.constant 0 : index
    %172 = vector.load %arg13[%c0_229, %c43, %c0_230] : memref<2x64x64xf32, #tpu.memory_space<vmem>>, vector<2x1x64xf32>
    %173 = vector.shape_cast %172 : vector<2x1x64xf32> to vector<2x64xf32>
    %c0_231 = arith.constant 0 : index
    %c2752 = arith.constant 2752 : index
    %174 = vector.load %arg14[%c0_231, %c2752] : memref<2x4096xf32, #tpu.memory_space<vmem>>, vector<2x64xf32>
    tpu.vector_store %arg14[%c0_231, %c2752], %173 {strides = array<i32>} : memref<2x4096xf32, #tpu.memory_space<vmem>>, vector<2x64xf32>,
    %c0_232 = arith.constant 0 : index
    %c44 = arith.constant 44 : index
    %c0_233 = arith.constant 0 : index
    %175 = vector.load %arg13[%c0_232, %c44, %c0_233] : memref<2x64x64xf32, #tpu.memory_space<vmem>>, vector<2x1x64xf32>
    %176 = vector.shape_cast %175 : vector<2x1x64xf32> to vector<2x64xf32>
    %c0_234 = arith.constant 0 : index
    %c2816 = arith.constant 2816 : index
    %177 = vector.load %arg14[%c0_234, %c2816] : memref<2x4096xf32, #tpu.memory_space<vmem>>, vector<2x64xf32>
    tpu.vector_store %arg14[%c0_234, %c2816], %176 {strides = array<i32>} : memref<2x4096xf32, #tpu.memory_space<vmem>>, vector<2x64xf32>,
    %c0_235 = arith.constant 0 : index
    %c45 = arith.constant 45 : index
    %c0_236 = arith.constant 0 : index
    %178 = vector.load %arg13[%c0_235, %c45, %c0_236] : memref<2x64x64xf32, #tpu.memory_space<vmem>>, vector<2x1x64xf32>
    %179 = vector.shape_cast %178 : vector<2x1x64xf32> to vector<2x64xf32>
    %c0_237 = arith.constant 0 : index
    %c2880 = arith.constant 2880 : index
    %180 = vector.load %arg14[%c0_237, %c2880] : memref<2x4096xf32, #tpu.memory_space<vmem>>, vector<2x64xf32>
    tpu.vector_store %arg14[%c0_237, %c2880], %179 {strides = array<i32>} : memref<2x4096xf32, #tpu.memory_space<vmem>>, vector<2x64xf32>,
    %c0_238 = arith.constant 0 : index
    %c46 = arith.constant 46 : index
    %c0_239 = arith.constant 0 : index
    %181 = vector.load %arg13[%c0_238, %c46, %c0_239] : memref<2x64x64xf32, #tpu.memory_space<vmem>>, vector<2x1x64xf32>
    %182 = vector.shape_cast %181 : vector<2x1x64xf32> to vector<2x64xf32>
    %c0_240 = arith.constant 0 : index
    %c2944 = arith.constant 2944 : index
    %183 = vector.load %arg14[%c0_240, %c2944] : memref<2x4096xf32, #tpu.memory_space<vmem>>, vector<2x64xf32>
    tpu.vector_store %arg14[%c0_240, %c2944], %182 {strides = array<i32>} : memref<2x4096xf32, #tpu.memory_space<vmem>>, vector<2x64xf32>,
    %c0_241 = arith.constant 0 : index
    %c47 = arith.constant 47 : index
    %c0_242 = arith.constant 0 : index
    %184 = vector.load %arg13[%c0_241, %c47, %c0_242] : memref<2x64x64xf32, #tpu.memory_space<vmem>>, vector<2x1x64xf32>
    %185 = vector.shape_cast %184 : vector<2x1x64xf32> to vector<2x64xf32>
    %c0_243 = arith.constant 0 : index
    %c3008 = arith.constant 3008 : index
    %186 = vector.load %arg14[%c0_243, %c3008] : memref<2x4096xf32, #tpu.memory_space<vmem>>, vector<2x64xf32>
    tpu.vector_store %arg14[%c0_243, %c3008], %185 {strides = array<i32>} : memref<2x4096xf32, #tpu.memory_space<vmem>>, vector<2x64xf32>,
    %c0_244 = arith.constant 0 : index
    %c48 = arith.constant 48 : index
    %c0_245 = arith.constant 0 : index
    %187 = vector.load %arg13[%c0_244, %c48, %c0_245] : memref<2x64x64xf32, #tpu.memory_space<vmem>>, vector<2x1x64xf32>
    %188 = vector.shape_cast %187 : vector<2x1x64xf32> to vector<2x64xf32>
    %c0_246 = arith.constant 0 : index
    %c3072 = arith.constant 3072 : index
    %189 = vector.load %arg14[%c0_246, %c3072] : memref<2x4096xf32, #tpu.memory_space<vmem>>, vector<2x64xf32>
    tpu.vector_store %arg14[%c0_246, %c3072], %188 {strides = array<i32>} : memref<2x4096xf32, #tpu.memory_space<vmem>>, vector<2x64xf32>,
    %c0_247 = arith.constant 0 : index
    %c49 = arith.constant 49 : index
    %c0_248 = arith.constant 0 : index
    %190 = vector.load %arg13[%c0_247, %c49, %c0_248] : memref<2x64x64xf32, #tpu.memory_space<vmem>>, vector<2x1x64xf32>
    %191 = vector.shape_cast %190 : vector<2x1x64xf32> to vector<2x64xf32>
    %c0_249 = arith.constant 0 : index
    %c3136 = arith.constant 3136 : index
    %192 = vector.load %arg14[%c0_249, %c3136] : memref<2x4096xf32, #tpu.memory_space<vmem>>, vector<2x64xf32>
    tpu.vector_store %arg14[%c0_249, %c3136], %191 {strides = array<i32>} : memref<2x4096xf32, #tpu.memory_space<vmem>>, vector<2x64xf32>,
    %c0_250 = arith.constant 0 : index
    %c50 = arith.constant 50 : index
    %c0_251 = arith.constant 0 : index
    %193 = vector.load %arg13[%c0_250, %c50, %c0_251] : memref<2x64x64xf32, #tpu.memory_space<vmem>>, vector<2x1x64xf32>
    %194 = vector.shape_cast %193 : vector<2x1x64xf32> to vector<2x64xf32>
    %c0_252 = arith.constant 0 : index
    %c3200 = arith.constant 3200 : index
    %195 = vector.load %arg14[%c0_252, %c3200] : memref<2x4096xf32, #tpu.memory_space<vmem>>, vector<2x64xf32>
    tpu.vector_store %arg14[%c0_252, %c3200], %194 {strides = array<i32>} : memref<2x4096xf32, #tpu.memory_space<vmem>>, vector<2x64xf32>,
    %c0_253 = arith.constant 0 : index
    %c51 = arith.constant 51 : index
    %c0_254 = arith.constant 0 : index
    %196 = vector.load %arg13[%c0_253, %c51, %c0_254] : memref<2x64x64xf32, #tpu.memory_space<vmem>>, vector<2x1x64xf32>
    %197 = vector.shape_cast %196 : vector<2x1x64xf32> to vector<2x64xf32>
    %c0_255 = arith.constant 0 : index
    %c3264 = arith.constant 3264 : index
    %198 = vector.load %arg14[%c0_255, %c3264] : memref<2x4096xf32, #tpu.memory_space<vmem>>, vector<2x64xf32>
    tpu.vector_store %arg14[%c0_255, %c3264], %197 {strides = array<i32>} : memref<2x4096xf32, #tpu.memory_space<vmem>>, vector<2x64xf32>,
    %c0_256 = arith.constant 0 : index
    %c52 = arith.constant 52 : index
    %c0_257 = arith.constant 0 : index
    %199 = vector.load %arg13[%c0_256, %c52, %c0_257] : memref<2x64x64xf32, #tpu.memory_space<vmem>>, vector<2x1x64xf32>
    %200 = vector.shape_cast %199 : vector<2x1x64xf32> to vector<2x64xf32>
    %c0_258 = arith.constant 0 : index
    %c3328 = arith.constant 3328 : index
    %201 = vector.load %arg14[%c0_258, %c3328] : memref<2x4096xf32, #tpu.memory_space<vmem>>, vector<2x64xf32>
    tpu.vector_store %arg14[%c0_258, %c3328], %200 {strides = array<i32>} : memref<2x4096xf32, #tpu.memory_space<vmem>>, vector<2x64xf32>,
    %c0_259 = arith.constant 0 : index
    %c53 = arith.constant 53 : index
    %c0_260 = arith.constant 0 : index
    %202 = vector.load %arg13[%c0_259, %c53, %c0_260] : memref<2x64x64xf32, #tpu.memory_space<vmem>>, vector<2x1x64xf32>
    %203 = vector.shape_cast %202 : vector<2x1x64xf32> to vector<2x64xf32>
    %c0_261 = arith.constant 0 : index
    %c3392 = arith.constant 3392 : index
    %204 = vector.load %arg14[%c0_261, %c3392] : memref<2x4096xf32, #tpu.memory_space<vmem>>, vector<2x64xf32>
    tpu.vector_store %arg14[%c0_261, %c3392], %203 {strides = array<i32>} : memref<2x4096xf32, #tpu.memory_space<vmem>>, vector<2x64xf32>,
    %c0_262 = arith.constant 0 : index
    %c54 = arith.constant 54 : index
    %c0_263 = arith.constant 0 : index
    %205 = vector.load %arg13[%c0_262, %c54, %c0_263] : memref<2x64x64xf32, #tpu.memory_space<vmem>>, vector<2x1x64xf32>
    %206 = vector.shape_cast %205 : vector<2x1x64xf32> to vector<2x64xf32>
    %c0_264 = arith.constant 0 : index
    %c3456 = arith.constant 3456 : index
    %207 = vector.load %arg14[%c0_264, %c3456] : memref<2x4096xf32, #tpu.memory_space<vmem>>, vector<2x64xf32>
    tpu.vector_store %arg14[%c0_264, %c3456], %206 {strides = array<i32>} : memref<2x4096xf32, #tpu.memory_space<vmem>>, vector<2x64xf32>,
    %c0_265 = arith.constant 0 : index
    %c55 = arith.constant 55 : index
    %c0_266 = arith.constant 0 : index
    %208 = vector.load %arg13[%c0_265, %c55, %c0_266] : memref<2x64x64xf32, #tpu.memory_space<vmem>>, vector<2x1x64xf32>
    %209 = vector.shape_cast %208 : vector<2x1x64xf32> to vector<2x64xf32>
    %c0_267 = arith.constant 0 : index
    %c3520 = arith.constant 3520 : index
    %210 = vector.load %arg14[%c0_267, %c3520] : memref<2x4096xf32, #tpu.memory_space<vmem>>, vector<2x64xf32>
    tpu.vector_store %arg14[%c0_267, %c3520], %209 {strides = array<i32>} : memref<2x4096xf32, #tpu.memory_space<vmem>>, vector<2x64xf32>,
    %c0_268 = arith.constant 0 : index
    %c56 = arith.constant 56 : index
    %c0_269 = arith.constant 0 : index
    %211 = vector.load %arg13[%c0_268, %c56, %c0_269] : memref<2x64x64xf32, #tpu.memory_space<vmem>>, vector<2x1x64xf32>
    %212 = vector.shape_cast %211 : vector<2x1x64xf32> to vector<2x64xf32>
    %c0_270 = arith.constant 0 : index
    %c3584 = arith.constant 3584 : index
    %213 = vector.load %arg14[%c0_270, %c3584] : memref<2x4096xf32, #tpu.memory_space<vmem>>, vector<2x64xf32>
    tpu.vector_store %arg14[%c0_270, %c3584], %212 {strides = array<i32>} : memref<2x4096xf32, #tpu.memory_space<vmem>>, vector<2x64xf32>,
    %c0_271 = arith.constant 0 : index
    %c57 = arith.constant 57 : index
    %c0_272 = arith.constant 0 : index
    %214 = vector.load %arg13[%c0_271, %c57, %c0_272] : memref<2x64x64xf32, #tpu.memory_space<vmem>>, vector<2x1x64xf32>
    %215 = vector.shape_cast %214 : vector<2x1x64xf32> to vector<2x64xf32>
    %c0_273 = arith.constant 0 : index
    %c3648 = arith.constant 3648 : index
    %216 = vector.load %arg14[%c0_273, %c3648] : memref<2x4096xf32, #tpu.memory_space<vmem>>, vector<2x64xf32>
    tpu.vector_store %arg14[%c0_273, %c3648], %215 {strides = array<i32>} : memref<2x4096xf32, #tpu.memory_space<vmem>>, vector<2x64xf32>,
    %c0_274 = arith.constant 0 : index
    %c58 = arith.constant 58 : index
    %c0_275 = arith.constant 0 : index
    %217 = vector.load %arg13[%c0_274, %c58, %c0_275] : memref<2x64x64xf32, #tpu.memory_space<vmem>>, vector<2x1x64xf32>
    %218 = vector.shape_cast %217 : vector<2x1x64xf32> to vector<2x64xf32>
    %c0_276 = arith.constant 0 : index
    %c3712 = arith.constant 3712 : index
    %219 = vector.load %arg14[%c0_276, %c3712] : memref<2x4096xf32, #tpu.memory_space<vmem>>, vector<2x64xf32>
    tpu.vector_store %arg14[%c0_276, %c3712], %218 {strides = array<i32>} : memref<2x4096xf32, #tpu.memory_space<vmem>>, vector<2x64xf32>,
    %c0_277 = arith.constant 0 : index
    %c59 = arith.constant 59 : index
    %c0_278 = arith.constant 0 : index
    %220 = vector.load %arg13[%c0_277, %c59, %c0_278] : memref<2x64x64xf32, #tpu.memory_space<vmem>>, vector<2x1x64xf32>
    %221 = vector.shape_cast %220 : vector<2x1x64xf32> to vector<2x64xf32>
    %c0_279 = arith.constant 0 : index
    %c3776 = arith.constant 3776 : index
    %222 = vector.load %arg14[%c0_279, %c3776] : memref<2x4096xf32, #tpu.memory_space<vmem>>, vector<2x64xf32>
    tpu.vector_store %arg14[%c0_279, %c3776], %221 {strides = array<i32>} : memref<2x4096xf32, #tpu.memory_space<vmem>>, vector<2x64xf32>,
    %c0_280 = arith.constant 0 : index
    %c60 = arith.constant 60 : index
    %c0_281 = arith.constant 0 : index
    %223 = vector.load %arg13[%c0_280, %c60, %c0_281] : memref<2x64x64xf32, #tpu.memory_space<vmem>>, vector<2x1x64xf32>
    %224 = vector.shape_cast %223 : vector<2x1x64xf32> to vector<2x64xf32>
    %c0_282 = arith.constant 0 : index
    %c3840 = arith.constant 3840 : index
    %225 = vector.load %arg14[%c0_282, %c3840] : memref<2x4096xf32, #tpu.memory_space<vmem>>, vector<2x64xf32>
    tpu.vector_store %arg14[%c0_282, %c3840], %224 {strides = array<i32>} : memref<2x4096xf32, #tpu.memory_space<vmem>>, vector<2x64xf32>,
    %c0_283 = arith.constant 0 : index
    %c61 = arith.constant 61 : index
    %c0_284 = arith.constant 0 : index
    %226 = vector.load %arg13[%c0_283, %c61, %c0_284] : memref<2x64x64xf32, #tpu.memory_space<vmem>>, vector<2x1x64xf32>
    %227 = vector.shape_cast %226 : vector<2x1x64xf32> to vector<2x64xf32>
    %c0_285 = arith.constant 0 : index
    %c3904 = arith.constant 3904 : index
    %228 = vector.load %arg14[%c0_285, %c3904] : memref<2x4096xf32, #tpu.memory_space<vmem>>, vector<2x64xf32>
    tpu.vector_store %arg14[%c0_285, %c3904], %227 {strides = array<i32>} : memref<2x4096xf32, #tpu.memory_space<vmem>>, vector<2x64xf32>,
    %c0_286 = arith.constant 0 : index
    %c62 = arith.constant 62 : index
    %c0_287 = arith.constant 0 : index
    %229 = vector.load %arg13[%c0_286, %c62, %c0_287] : memref<2x64x64xf32, #tpu.memory_space<vmem>>, vector<2x1x64xf32>
    %230 = vector.shape_cast %229 : vector<2x1x64xf32> to vector<2x64xf32>
    %c0_288 = arith.constant 0 : index
    %c3968 = arith.constant 3968 : index
    %231 = vector.load %arg14[%c0_288, %c3968] : memref<2x4096xf32, #tpu.memory_space<vmem>>, vector<2x64xf32>
    tpu.vector_store %arg14[%c0_288, %c3968], %230 {strides = array<i32>} : memref<2x4096xf32, #tpu.memory_space<vmem>>, vector<2x64xf32>,
    %c0_289 = arith.constant 0 : index
    %c63 = arith.constant 63 : index
    %c0_290 = arith.constant 0 : index
    %232 = vector.load %arg13[%c0_289, %c63, %c0_290] : memref<2x64x64xf32, #tpu.memory_space<vmem>>, vector<2x1x64xf32>
    %233 = vector.shape_cast %232 : vector<2x1x64xf32> to vector<2x64xf32>
    %c0_291 = arith.constant 0 : index
    %c4032 = arith.constant 4032 : index
    %234 = vector.load %arg14[%c0_291, %c4032] : memref<2x4096xf32, #tpu.memory_space<vmem>>, vector<2x64xf32>
    tpu.vector_store %arg14[%c0_291, %c4032], %233 {strides = array<i32>} : memref<2x4096xf32, #tpu.memory_space<vmem>>, vector<2x64xf32>,
    %c0_292 = arith.constant 0 : index
    %c0_293 = arith.constant 0 : index
    %235 = vector.load %arg14[%c0_292, %c0_293] : memref<2x4096xf32, #tpu.memory_space<vmem>>, vector<2x4096xf32>
    %236 = arith.truncf %235 : vector<2x4096xf32> to vector<2x4096xbf16>
    %c0_294 = arith.constant 0 : index
    %c0_295 = arith.constant 0 : index
    %237 = vector.load %arg6[%c0_294, %c0_295] : memref<4096x256xbf16, #tpu.memory_space<vmem>>, vector<4096x256xbf16>
    %cst_296 = arith.constant dense<0.000000e+00> : vector<2x256xf32>
    %238 = tpu.matmul %236, %237, %cst_296 {dimension_numbers = #tpu.dot_dimension_numbers<[1], [0], [0], [1], [0, 0, 1, 1], [], []>} : vector<2x4096xbf16>, vector<4096x256xbf16>, vector<2x256xf32> -> vector<2x256xf32>
    %c0_297 = arith.constant 0 : index
    %c0_298 = arith.constant 0 : index
    %239 = vector.load %arg7[%c0_297, %c0_298] : memref<1x256xf32, #tpu.memory_space<vmem>>, vector<1x256xf32>
    %240 = vector.broadcast %239 : vector<1x256xf32> to vector<2x256xf32>
    %241 = arith.addf %238, %240 : vector<2x256xf32>
    %c0_299 = arith.constant 0 : index
    %c0_300 = arith.constant 0 : index
    %242 = vector.load %arg8[%c0_299, %c0_300] : memref<256x2xf32, #tpu.memory_space<vmem>>, vector<256x2xf32>
    %cst_301 = arith.constant dense<0.000000e+00> : vector<2x2xf32>
    %243 = tpu.matmul %241, %242, %cst_301 {dimension_numbers = #tpu.dot_dimension_numbers<[1], [0], [0], [1], [0, 0, 1, 1], [], []>} : vector<2x256xf32>, vector<256x2xf32>, vector<2x2xf32> -> vector<2x2xf32>
    %c0_302 = arith.constant 0 : index
    %c0_303 = arith.constant 0 : index
    %244 = vector.load %arg9[%c0_302, %c0_303] : memref<1x2xf32, #tpu.memory_space<vmem>>, vector<1x2xf32>
    %245 = vector.broadcast %244 : vector<1x2xf32> to vector<2x2xf32>
    %246 = arith.addf %243, %245 : vector<2x2xf32>
    %cst_304 = arith.constant dense<0xFF800000> : vector<2xf32>
    %247 = vector.multi_reduction <maximumf>, %246, %cst_304 [1] : vector<2x2xf32> to vector<2xf32>
    %248 = vector.shape_cast %247 : vector<2xf32> to vector<2x1xf32>
    %249 = vector.broadcast %248 : vector<2x1xf32> to vector<2x2xf32>
    %250 = arith.subf %246, %249 : vector<2x2xf32>
    %251 = math.exp %250 : vector<2x2xf32>
    %cst_305 = arith.constant dense<0.000000e+00> : vector<2xf32>
    %252 = vector.multi_reduction <add>, %251, %cst_305 [1] : vector<2x2xf32> to vector<2xf32>
    %253 = vector.shape_cast %252 : vector<2xf32> to vector<2x1xf32>
    %254 = math.log %253 : vector<2x1xf32>
    %255 = arith.addf %254, %248 : vector<2x1xf32>
    %256 = vector.broadcast %255 : vector<2x1xf32> to vector<2x2xf32>
    %257 = arith.subf %246, %256 : vector<2x2xf32>
    %c0_306 = arith.constant 0 : index
    %c0_307 = arith.constant 0 : index
    %258 = vector.load %arg10[%c0_306, %c0_307] : memref<2x2xf32, #tpu.memory_space<vmem>>, vector<2x2xf32>
    tpu.vector_store %arg10[%c0_306, %c0_307], %257 {strides = array<i32>} : memref<2x2xf32, #tpu.memory_space<vmem>>, vector<2x2xf32>,
    return
  }
  func.func @transform_0(%arg0: i32) -> (i32, i32) {
    %c0_i32 = arith.constant 0 : i32
    %c0_i32_0 = arith.constant 0 : i32
    %c0_i32_1 = arith.constant 0 : i32
    return %c0_i32, %c0_i32_0 : i32, i32
  }
  func.func @transform_1(%arg0: i32) -> (i32, i32) {
    %c0_i32 = arith.constant 0 : i32
    %c0_i32_0 = arith.constant 0 : i32
    %c0_i32_1 = arith.constant 0 : i32
    return %c0_i32, %c0_i32_0 : i32, i32
  }
  func.func @transform_2(%arg0: i32) -> (i32, i32) {
    %c0_i32 = arith.constant 0 : i32
    %c0_i32_0 = arith.constant 0 : i32
    %c0_i32_1 = arith.constant 0 : i32
    return %c0_i32, %c0_i32_0 : i32, i32
  }
  func.func @transform_3(%arg0: i32) -> (i32, i32) {
    %c0_i32 = arith.constant 0 : i32
    %c0_i32_0 = arith.constant 0 : i32
    %c0_i32_1 = arith.constant 0 : i32
    return %c0_i32, %c0_i32_0 : i32, i32
  }
  func.func @transform_4(%arg0: i32) -> (i32, i32) {
    %c0_i32 = arith.constant 0 : i32
    %c0_i32_0 = arith.constant 0 : i32
    %c0_i32_1 = arith.constant 0 : i32
    return %c0_i32, %c0_i32_0 : i32, i32
  }
  func.func @transform_5(%arg0: i32) -> (i32, i32) {
    %c0_i32 = arith.constant 0 : i32
    %c0_i32_0 = arith.constant 0 : i32
    %c0_i32_1 = arith.constant 0 : i32
    return %c0_i32, %c0_i32_0 : i32, i32
  }
  func.func @transform_6(%arg0: i32) -> (i32, i32) {
    %c0_i32 = arith.constant 0 : i32
    %c0_i32_0 = arith.constant 0 : i32
    %c0_i32_1 = arith.constant 0 : i32
    return %c0_i32, %c0_i32_0 : i32, i32
  }
  func.func @transform_7(%arg0: i32) -> (i32, i32) {
    %c0_i32 = arith.constant 0 : i32
    %c0_i32_0 = arith.constant 0 : i32
    %c0_i32_1 = arith.constant 0 : i32
    return %c0_i32, %c0_i32_0 : i32, i32
  }
  func.func @transform_8(%arg0: i32) -> (i32, i32) {
    %c0_i32 = arith.constant 0 : i32
    %c0_i32_0 = arith.constant 0 : i32
    %c0_i32_1 = arith.constant 0 : i32
    return %c0_i32, %c0_i32_0 : i32, i32
  }
  func.func @transform_9(%arg0: i32) -> (i32, i32) {
    %c0_i32 = arith.constant 0 : i32
    %c0_i32_0 = arith.constant 0 : i32
    %c0_i32_1 = arith.constant 0 : i32
    return %c0_i32, %c0_i32_0 : i32, i32
  }
}

</mosaic_0001>

<bundles_post_ra>
// kernel: forward.1
= control target key start
LH: loop header
LB: loop body
LE: loop exit
PB: predicated region body
PF: predicated region fallthrough
CT: control target
= control target key end

     0   :  { %vm619_vm0 = vcmask 1040384   ;;  %vm11200_vm1 = vmmov 1   ;;  %vm186_vm3 = vcmask 72704   ;;  %s15747_s0 = inlined_call_operand.vmem [shape: f32[1152,9], index: 0, kind: input, shape index: {}]   ;;  %s15748_s1 = inlined_call_operand.vmem [shape: f32[9,32], index: 1, kind: input, shape index: {}]   ;;  %s15749_s2 = inlined_call_operand.vmem [shape: f32[1,32], index: 2, kind: input, shape index: {}]   ;;  %s15750_s3 = inlined_call_operand.vmem [shape: f32[288,64], index: 3, kind: input, shape index: {}]   ;;  %s15751_s4 = inlined_call_operand.vmem [shape: f32[1,64], index: 4, kind: input, shape index: {}]   ;;  %s15752_s5 = inlined_call_operand.vmem [shape: bf16[4096,256], index: 5, kind: input, shape index: {}]   ;;  %s15753_s6 = inlined_call_operand.vmem [shape: f32[1,256], index: 6, kind: input, shape index: {}]   ;;  %s15754_s7 = inlined_call_operand.vmem [shape: f32[256,2], index: 7, kind: input, shape index: {}]   ;;  %s15755_s8 = inlined_call_operand.vmem [shape: f32[1,2], index: 8, kind: input, shape index: {}]   ;;  %s15756_s9 = inlined_call_operand.hbm [shape: f32[2,2], index: 9, kind: output, shape index: {}]  }
   0x1   :  { %v177_v0 = vld [vmem:[%s15748_s1] sm:$0xff]  ;;  %v178_v1 = vld [vmem:[%s15748_s1 + $0x8] sm:$0x1]  ;;  %vm10253_vm2 = vmpackc.low %vm619_vm0, %vm11200_vm1 }
   0x2   :  { %v33_v2 = vld [vmem:[%s15747_s0] sm:$0xff]  ;;  %v10252_v3 = vpack.c.bf16 %v178_v1, %v177_v0  ;;  %v34_v4 = vld [vmem:[%s15747_s0 + $0x8] sm:$0xff]  ;;  %v35_v5 = vld [vmem:[%s15747_s0 + $0x10] sm:$0xff] }
   0x3   :  { %10004 = vmatprep.mubr.msk.f32.mxu0 %vm186_vm3, %v33_v2  ;;  %v36_v6 = vld [vmem:[%s15747_s0 + $0x18] sm:$0xff]  ;;  %v37_v7 = vld [vmem:[%s15747_s0 + $0x20] sm:$0xff]  ;;  %v38_v8 = vld [vmem:[%s15747_s0 + $0x28] sm:$0xff] }
   0x4   :  { %10254 = vmatprep.subr.msk.bf16.mxu0 %vm10253_vm2, %v10252_v3  ;;  %v39_v9 = vld [vmem:[%s15747_s0 + $0x30] sm:$0xff]  ;;  %v40_v10 = vld [vmem:[%s15747_s0 + $0x38] sm:$0xff]  ;;  %v41_v11 = vld [vmem:[%s15747_s0 + $0x40] sm:$0xff] }
   0x5   :  { %10257 = vmatpush3.bf16.msk.msra.mxu0 %vm10253_vm2, %v10252_v3  ;;  %v42_v12 = vld [vmem:[%s15747_s0 + $0x48] sm:$0xff]  ;;  %v43_v13 = vld [vmem:[%s15747_s0 + $0x50] sm:$0xff]  ;;  %v44_v14 = vld [vmem:[%s15747_s0 + $0x58] sm:$0xff] }
   0x6   :  { %v45_v15 = vld [vmem:[%s15747_s0 + $0x60] sm:$0xff]  ;;  %v46_v16 = vld [vmem:[%s15747_s0 + $0x68] sm:$0xff]  ;;  %v47_v17 = vld [vmem:[%s15747_s0 + $0x70] sm:$0xff] }
   0x7   :  { %v48_v18 = vld [vmem:[%s15747_s0 + $0x78] sm:$0xff]  ;;  %v49_v19 = vld [vmem:[%s15747_s0 + $0x80] sm:$0xff]  ;;  %v50_v20 = vld [vmem:[%s15747_s0 + $0x88] sm:$0xff] }
   0x8   :  { %10005 = vmatmul.mubr.msk.f32.vlgmr.msra.gmra.mrb[0].mxu0 %vm186_vm3, %v34_v4  ;;  %v51_v21 = vld [vmem:[%s15747_s0 + $0x90] sm:$0xff]  ;;  %v52_v22 = vld [vmem:[%s15747_s0 + $0x98] sm:$0xff]  ;;  %v53_v23 = vld [vmem:[%s15747_s0 + $0xa0] sm:$0xff] }
   0x9   :  { %10007 = vmatprep.mubr.msk.f32.mxu0 %vm186_vm3, %v35_v5  ;;  %v54_v24 = vld [vmem:[%s15747_s0 + $0xa8] sm:$0xff]  ;;  %v55_v25 = vld [vmem:[%s15747_s0 + $0xb0] sm:$0xff]  ;;  %v56_v26 = vld [vmem:[%s15747_s0 + $0xb8] sm:$0xff] }
   0xa   :  { %v57_v27 = vld [vmem:[%s15747_s0 + $0xc0] sm:$0xff]  ;;  %v58_v28 = vld [vmem:[%s15747_s0 + $0xc8] sm:$0xff]  ;;  %v59_v29 = vld [vmem:[%s15747_s0 + $0xd0] sm:$0xff] }
   0xb   :  { %v60_v30 = vld [vmem:[%s15747_s0 + $0xd8] sm:$0xff]  ;;  %v61_v31 = vld [vmem:[%s15747_s0 + $0xe0] sm:$0xff]  ;;  %v62_v32 = vld [vmem:[%s15747_s0 + $0xe8] sm:$0xff] }
   0xc   :  { %10008 = vmatmul.mubr.msk.f32.gmra.mrb[2].mxu0 %vm186_vm3, %v36_v6  ;;  %v63_v33 = vld [vmem:[%s15747_s0 + $0xf0] sm:$0xff]  ;;  %v64_v34 = vld [vmem:[%s15747_s0 + $0xf8] sm:$0xff]  ;;  %v65_v35 = vld [vmem:[%s15747_s0 + $0x100] sm:$0xff] }
   0xd   :  { %10010 = vmatprep.mubr.msk.f32.mxu0 %vm186_vm3, %v37_v7  ;;  %v66_v36 = vld [vmem:[%s15747_s0 + $0x108] sm:$0xff]  ;;  %v67_v37 = vld [vmem:[%s15747_s0 + $0x110] sm:$0xff]  ;;  %v68_v38 = vld [vmem:[%s15747_s0 + $0x118] sm:$0xff] }
   0xe   :  { %v69_v39 = vld [vmem:[%s15747_s0 + $0x120] sm:$0xff]  ;;  %v70_v40 = vld [vmem:[%s15747_s0 + $0x128] sm:$0xff]  ;;  %v71_v41 = vld [vmem:[%s15747_s0 + $0x130] sm:$0xff] }
   0xf   :  { %v72_v42 = vld [vmem:[%s15747_s0 + $0x138] sm:$0xff]  ;;  %v73_v43 = vld [vmem:[%s15747_s0 + $0x140] sm:$0xff]  ;;  %v74_v44 = vld [vmem:[%s15747_s0 + $0x148] sm:$0xff] }
  0x10   :  { %10011 = vmatmul.mubr.msk.f32.gmra.mrb[4].mxu0 %vm186_vm3, %v38_v8  ;;  %v75_v45 = vld [vmem:[%s15747_s0 + $0x150] sm:$0xff]  ;;  %v76_v46 = vld [vmem:[%s15747_s0 + $0x158] sm:$0xff]  ;;  %v77_v47 = vld [vmem:[%s15747_s0 + $0x160] sm:$0xff] }
  0x11   :  { %10013 = vmatprep.mubr.msk.f32.mxu0 %vm186_vm3, %v39_v9  ;;  %v78_v48 = vld [vmem:[%s15747_s0 + $0x168] sm:$0xff]  ;;  %v79_v49 = vld [vmem:[%s15747_s0 + $0x170] sm:$0xff]  ;;  %v80_v50 = vld [vmem:[%s15747_s0 + $0x178] sm:$0xff] }
  0x12   :  { %v81_v51 = vld [vmem:[%s15747_s0 + $0x180] sm:$0xff]  ;;  %v82_v52 = vld [vmem:[%s15747_s0 + $0x188] sm:$0xff]  ;;  %v83_v53 = vld [vmem:[%s15747_s0 + $0x190] sm:$0xff] }
  0x13   :  { %v84_v54 = vld [vmem:[%s15747_s0 + $0x198] sm:$0xff]  ;;  %v85_v55 = vld [vmem:[%s15747_s0 + $0x1a0] sm:$0xff]  ;;  %v86_v56 = vld [vmem:[%s15747_s0 + $0x1a8] sm:$0xff] }
  0x14   :  { %10014 = vmatmul.mubr.msk.f32.gmra.mrb[6].mxu0 %vm186_vm3, %v40_v10  ;;  %v87_v57 = vld [vmem:[%s15747_s0 + $0x1b0] sm:$0xff]  ;;  %v88_v58 = vld [vmem:[%s15747_s0 + $0x1b8] sm:$0xff]  ;;  %v89_v59 = vld [vmem:[%s15747_s0 + $0x1c0] sm:$0xff] }
  0x15   :  { %10016 = vmatprep.mubr.msk.f32.mxu0 %vm186_vm3, %v41_v11  ;;  %v90_v60 = vld [vmem:[%s15747_s0 + $0x1c8] sm:$0xff]  ;;  %v91_v61 = vld [vmem:[%s15747_s0 + $0x1d0] sm:$0xff]  ;;  %v92_v62 = vld [vmem:[%s15747_s0 + $0x1d8] sm:$0xff] }
  0x16   :  { %v93_v63 = vld [vmem:[%s15747_s0 + $0x1e0] sm:$0xff]  ;;  %v94_v0 = vld [vmem:[%s15747_s0 + $0x1e8] sm:$0xff]  ;;  %v95_v1 = vld [vmem:[%s15747_s0 + $0x1f0] sm:$0xff] }
  0x17   :  { %v96_v2 = vld [vmem:[%s15747_s0 + $0x1f8] sm:$0xff]  ;;  %v97_v3 = vld [vmem:[%s15747_s0 + $0x200] sm:$0xff]  ;;  %v98_v4 = vld [vmem:[%s15747_s0 + $0x208] sm:$0xff] }
  0x18   :  { %10017 = vmatmul.mubr.msk.f32.gmra.mrb[8].mxu0 %vm186_vm3, %v42_v12  ;;  %v99_v5 = vld [vmem:[%s15747_s0 + $0x210] sm:$0xff]  ;;  %v100_v6 = vld [vmem:[%s15747_s0 + $0x218] sm:$0xff]  ;;  %v101_v7 = vld [vmem:[%s15747_s0 + $0x220] sm:$0xff] }
  0x19   :  { %10019 = vmatprep.mubr.msk.f32.mxu0 %vm186_vm3, %v43_v13  ;;  %v102_v8 = vld [vmem:[%s15747_s0 + $0x228] sm:$0xff]  ;;  %v103_v9 = vld [vmem:[%s15747_s0 + $0x230] sm:$0xff]  ;;  %v104_v10 = vld [vmem:[%s15747_s0 + $0x238] sm:$0xff] }
  0x1a   :  { %v105_v11 = vld [vmem:[%s15747_s0 + $0x240] sm:$0xff]  ;;  %v106_v12 = vld [vmem:[%s15747_s0 + $0x248] sm:$0xff]  ;;  %v107_v13 = vld [vmem:[%s15747_s0 + $0x250] sm:$0xff] }
  0x1c   :  { %10020 = vmatmul.mubr.msk.f32.gmra.mrb[10].mxu0 %vm186_vm3, %v44_v14  ;;  %v108_v14 = vld [vmem:[%s15747_s0 + $0x258] sm:$0xff] }
  0x1d   :  { %10022 = vmatprep.mubr.msk.f32.mxu0 %vm186_vm3, %v45_v15  ;;  %v109_v15 = vld [vmem:[%s15747_s0 + $0x260] sm:$0xff] }
  0x20   :  { %10023 = vmatmul.mubr.msk.f32.gmra.mrb[12].mxu0 %vm186_vm3, %v46_v16  ;;  %v110_v16 = vld [vmem:[%s15747_s0 + $0x268] sm:$0xff] }
  0x21   :  { %10025 = vmatprep.mubr.msk.f32.mxu0 %vm186_vm3, %v47_v17  ;;  %v111_v17 = vld [vmem:[%s15747_s0 + $0x270] sm:$0xff] }
  0x24   :  { %10026 = vmatmul.mubr.msk.f32.gmra.mrb[14].mxu0 %vm186_vm3, %v48_v18  ;;  %v112_v18 = vld [vmem:[%s15747_s0 + $0x278] sm:$0xff] }
  0x25   :  { %10028 = vmatprep.mubr.msk.f32.mxu0 %vm186_vm3, %v49_v19  ;;  %v113_v19 = vld [vmem:[%s15747_s0 + $0x280] sm:$0xff] }
  0x28   :  { %10029 = vmatmul.mubr.msk.f32.gmra.mrb[16].mxu0 %vm186_vm3, %v50_v20  ;;  %v114_v20 = vld [vmem:[%s15747_s0 + $0x288] sm:$0xff] }
  0x29   :  { %10031 = vmatprep.mubr.msk.f32.mxu0 %vm186_vm3, %v51_v21  ;;  %v115_v21 = vld [vmem:[%s15747_s0 + $0x290] sm:$0xff] }
  0x2c   :  { %10032 = vmatmul.mubr.msk.f32.gmra.mrb[18].mxu0 %vm186_vm3, %v52_v22  ;;  %v116_v22 = vld [vmem:[%s15747_s0 + $0x298] sm:$0xff] }
  0x2d   :  { %10034 = vmatprep.mubr.msk.f32.mxu0 %vm186_vm3, %v53_v23  ;;  %v117_v23 = vld [vmem:[%s15747_s0 + $0x2a0] sm:$0xff] }
  0x30   :  { %10035 = vmatmul.mubr.msk.f32.gmra.mrb[20].mxu0 %vm186_vm3, %v54_v24  ;;  %v118_v24 = vld [vmem:[%s15747_s0 + $0x2a8] sm:$0xff] }
  0x31   :  { %10037 = vmatprep.mubr.msk.f32.mxu0 %vm186_vm3, %v55_v25  ;;  %v119_v25 = vld [vmem:[%s15747_s0 + $0x2b0] sm:$0xff] }
  0x34   :  { %10038 = vmatmul.mubr.msk.f32.gmra.mrb[22].mxu0 %vm186_vm3, %v56_v26  ;;  %v120_v26 = vld [vmem:[%s15747_s0 + $0x2b8] sm:$0xff] }
  0x35   :  { %10040 = vmatprep.mubr.msk.f32.mxu0 %vm186_vm3, %v57_v27  ;;  %v121_v27 = vld [vmem:[%s15747_s0 + $0x2c0] sm:$0xff] }
  0x38   :  { %10041 = vmatmul.mubr.msk.f32.gmra.mrb[24].mxu0 %vm186_vm3, %v58_v28  ;;  %v122_v28 = vld [vmem:[%s15747_s0 + $0x2c8] sm:$0xff] }
  0x39   :  { %10043 = vmatprep.mubr.msk.f32.mxu0 %vm186_vm3, %v59_v29  ;;  %v123_v29 = vld [vmem:[%s15747_s0 + $0x2d0] sm:$0xff] }
  0x3c   :  { %10044 = vmatmul.mubr.msk.f32.gmra.mrb[26].mxu0 %vm186_vm3, %v60_v30  ;;  %v124_v30 = vld [vmem:[%s15747_s0 + $0x2d8] sm:$0xff] }
  0x3d   :  { %10046 = vmatprep.mubr.msk.f32.mxu0 %vm186_vm3, %v61_v31  ;;  %v125_v31 = vld [vmem:[%s15747_s0 + $0x2e0] sm:$0xff] }
  0x40   :  { %10047 = vmatmul.mubr.msk.f32.gmra.mrb[28].mxu0 %vm186_vm3, %v62_v32  ;;  %v126_v32 = vld [vmem:[%s15747_s0 + $0x2e8] sm:$0xff] }
  0x41   :  { %10049 = vmatprep.mubr.msk.f32.mxu0 %vm186_vm3, %v63_v33  ;;  %v127_v33 = vld [vmem:[%s15747_s0 + $0x2f0] sm:$0xff] }
  0x44   :  { %10050 = vmatmul.mubr.msk.f32.gmra.mrb[30].mxu0 %vm186_vm3, %v64_v34  ;;  %v128_v34 = vld [vmem:[%s15747_s0 + $0x2f8] sm:$0xff] }
  0x45   :  { %10052 = vmatprep.mubr.msk.f32.mxu0 %vm186_vm3, %v65_v35  ;;  %v129_v35 = vld [vmem:[%s15747_s0 + $0x300] sm:$0xff] }
  0x48   :  { %10053 = vmatmul.mubr.msk.f32.gmra.mrb[32].mxu0 %vm186_vm3, %v66_v36  ;;  %v130_v36 = vld [vmem:[%s15747_s0 + $0x308] sm:$0xff] }
  0x49   :  { %10055 = vmatprep.mubr.msk.f32.mxu0 %vm186_vm3, %v67_v37  ;;  %v131_v37 = vld [vmem:[%s15747_s0 + $0x310] sm:$0xff] }
  0x4c   :  { %10056 = vmatmul.mubr.msk.f32.gmra.mrb[34].mxu0 %vm186_vm3, %v68_v38  ;;  %v132_v38 = vld [vmem:[%s15747_s0 + $0x318] sm:$0xff] }
  0x4d   :  { %10058 = vmatprep.mubr.msk.f32.mxu0 %vm186_vm3, %v69_v39  ;;  %v133_v39 = vld [vmem:[%s15747_s0 + $0x320] sm:$0xff] }
  0x50   :  { %10059 = vmatmul.mubr.msk.f32.gmra.mrb[36].mxu0 %vm186_vm3, %v70_v40  ;;  %v134_v40 = vld [vmem:[%s15747_s0 + $0x328] sm:$0xff] }
  0x51   :  { %10061 = vmatprep.mubr.msk.f32.mxu0 %vm186_vm3, %v71_v41  ;;  %v135_v41 = vld [vmem:[%s15747_s0 + $0x330] sm:$0xff] }
  0x54   :  { %10062 = vmatmul.mubr.msk.f32.gmra.mrb[38].mxu0 %vm186_vm3, %v72_v42  ;;  %v136_v42 = vld [vmem:[%s15747_s0 + $0x338] sm:$0xff] }
  0x55   :  { %10064 = vmatprep.mubr.msk.f32.mxu0 %vm186_vm3, %v73_v43  ;;  %v137_v43 = vld [vmem:[%s15747_s0 + $0x340] sm:$0xff] }
  0x58   :  { %10065 = vmatmul.mubr.msk.f32.gmra.mrb[40].mxu0 %vm186_vm3, %v74_v44  ;;  %v138_v44 = vld [vmem:[%s15747_s0 + $0x348] sm:$0xff] }
  0x59   :  { %10067 = vmatprep.mubr.msk.f32.mxu0 %vm186_vm3, %v75_v45  ;;  %v139_v45 = vld [vmem:[%s15747_s0 + $0x350] sm:$0xff] }
  0x5c   :  { %10068 = vmatmul.mubr.msk.f32.gmra.mrb[42].mxu0 %vm186_vm3, %v76_v46  ;;  %v140_v46 = vld [vmem:[%s15747_s0 + $0x358] sm:$0xff] }
  0x5d   :  { %10070 = vmatprep.mubr.msk.f32.mxu0 %vm186_vm3, %v77_v47  ;;  %v141_v47 = vld [vmem:[%s15747_s0 + $0x360] sm:$0xff] }
  0x60   :  { %10071 = vmatmul.mubr.msk.f32.gmra.mrb[44].mxu0 %vm186_vm3, %v78_v48 }
  0x61   :  { %10073 = vmatprep.mubr.msk.f32.mxu0 %vm186_vm3, %v79_v49 }
  0x64   :  { %10074 = vmatmul.mubr.msk.f32.gmra.mrb[46].mxu0 %vm186_vm3, %v80_v50  ;;  %v142_v50 = vld [vmem:[%s15747_s0 + $0x368] sm:$0xff] }
  0x65   :  { %10076 = vmatprep.mubr.msk.f32.mxu0 %vm186_vm3, %v81_v51 }
  0x68   :  { %10077 = vmatmul.mubr.msk.f32.gmra.mrb[48].mxu0 %vm186_vm3, %v82_v52 }
  0x69   :  { %10079 = vmatprep.mubr.msk.f32.mxu0 %vm186_vm3, %v83_v53 }
  0x6c   :  { %10080 = vmatmul.mubr.msk.f32.gmra.mrb[50].mxu0 %vm186_vm3, %v84_v54 }
  0x6d   :  { %10082 = vmatprep.mubr.msk.f32.mxu0 %vm186_vm3, %v85_v55 }
  0x70   :  { %10083 = vmatmul.mubr.msk.f32.gmra.mrb[52].mxu0 %vm186_vm3, %v86_v56 }
  0x71   :  { %10085 = vmatprep.mubr.msk.f32.mxu0 %vm186_vm3, %v87_v57 }
  0x74   :  { %10086 = vmatmul.mubr.msk.f32.gmra.mrb[54].mxu0 %vm186_vm3, %v88_v58 }
  0x75   :  { %10088 = vmatprep.mubr.msk.f32.mxu0 %vm186_vm3, %v89_v59 }
  0x78   :  { %10089 = vmatmul.mubr.msk.f32.gmra.mrb[56].mxu0 %vm186_vm3, %v90_v60 }
  0x79   :  { %10091 = vmatprep.mubr.msk.f32.mxu0 %vm186_vm3, %v91_v61 }
  0x7c   :  { %10092 = vmatmul.mubr.msk.f32.gmra.mrb[58].mxu0 %vm186_vm3, %v92_v62 }
  0x7d   :  { %10094 = vmatprep.mubr.msk.f32.mxu0 %vm186_vm3, %v93_v63 }
  0x80   :  { %10095 = vmatmul.mubr.msk.f32.gmra.mrb[60].mxu0 %vm186_vm3, %v94_v0 }
  0x81   :  { %10097 = vmatprep.mubr.msk.f32.mxu0 %vm186_vm3, %v95_v1 }
  0x84   :  { %10098 = vmatmul.mubr.msk.f32.gmra.mrb[62].mxu0 %vm186_vm3, %v96_v2 }
  0x85   :  { %10100 = vmatprep.mubr.msk.f32.mxu0 %vm186_vm3, %v97_v3 }
  0x88   :  { %10101 = vmatmul.mubr.msk.f32.gmra.mrb[64].mxu0 %vm186_vm3, %v98_v4 }
  0x89   :  { %10103 = vmatprep.mubr.msk.f32.mxu0 %vm186_vm3, %v99_v5 }
  0x8c   :  { %10104 = vmatmul.mubr.msk.f32.gmra.mrb[66].mxu0 %vm186_vm3, %v100_v6 }
  0x8d   :  { %10106 = vmatprep.mubr.msk.f32.mxu0 %vm186_vm3, %v101_v7 }
  0x90   :  { %10107 = vmatmul.mubr.msk.f32.gmra.mrb[68].mxu0 %vm186_vm3, %v102_v8 }
  0x91   :  { %10109 = vmatprep.mubr.msk.f32.mxu0 %vm186_vm3, %v103_v9 }
  0x94   :  { %10110 = vmatmul.mubr.msk.f32.gmra.mrb[70].mxu0 %vm186_vm3, %v104_v10 }
  0x95   :  { %10112 = vmatprep.mubr.msk.f32.mxu0 %vm186_vm3, %v105_v11 }
  0x98   :  { %10113 = vmatmul.mubr.msk.f32.gmra.mrb[72].mxu0 %vm186_vm3, %v106_v12 }
  0x99   :  { %10115 = vmatprep.mubr.msk.f32.mxu0 %vm186_vm3, %v107_v13 }
  0x9c   :  { %10116 = vmatmul.mubr.msk.f32.gmra.mrb[74].mxu0 %vm186_vm3, %v108_v14 }
  0x9d   :  { %10118 = vmatprep.mubr.msk.f32.mxu0 %vm186_vm3, %v109_v15 }
  0xa0   :  { %10119 = vmatmul.mubr.msk.f32.gmra.mrb[76].mxu0 %vm186_vm3, %v110_v16 }
  0xa1   :  { %10121 = vmatprep.mubr.msk.f32.mxu0 %vm186_vm3, %v111_v17 }
  0xa4   :  { %10122 = vmatmul.mubr.msk.f32.gmra.mrb[78].mxu0 %vm186_vm3, %v112_v18 }
  0xa5   :  { %10124 = vmatprep.mubr.msk.f32.mxu0 %vm186_vm3, %v113_v19 }
  0xa8   :  { %10125 = vmatmul.mubr.msk.f32.gmra.mrb[80].mxu0 %vm186_vm3, %v114_v20 }
  0xa9   :  { %10127 = vmatprep.mubr.msk.f32.mxu0 %vm186_vm3, %v115_v21 }
  0xac   :  { %10128 = vmatmul.mubr.msk.f32.gmra.mrb[82].mxu0 %vm186_vm3, %v116_v22 }
  0xad   :  { %10130 = vmatprep.mubr.msk.f32.mxu0 %vm186_vm3, %v117_v23 }
  0xb0   :  { %10131 = vmatmul.mubr.msk.f32.gmra.mrb[84].mxu0 %vm186_vm3, %v118_v24 }
  0xb1   :  { %10133 = vmatprep.mubr.msk.f32.mxu0 %vm186_vm3, %v119_v25 }
  0xb4   :  { %10134 = vmatmul.mubr.msk.f32.gmra.mrb[86].mxu0 %vm186_vm3, %v120_v26 }
  0xb5   :  { %10136 = vmatprep.mubr.msk.f32.mxu0 %vm186_vm3, %v121_v27 }
  0xb8   :  { %10137 = vmatmul.mubr.msk.f32.gmra.mrb[88].mxu0 %vm186_vm3, %v122_v28 }
  0xb9   :  { %10139 = vmatprep.mubr.msk.f32.mxu0 %vm186_vm3, %v123_v29 }
  0xbc   :  { %10140 = vmatmul.mubr.msk.f32.gmra.mrb[90].mxu0 %vm186_vm3, %v124_v30 }
  0xbd   :  { %10142 = vmatprep.mubr.msk.f32.mxu0 %vm186_vm3, %v125_v31 }
  0xc0   :  { %10143 = vmatmul.mubr.msk.f32.gmra.mrb[92].mxu0 %vm186_vm3, %v126_v32 }
  0xc1   :  { %10145 = vmatprep.mubr.msk.f32.mxu0 %vm186_vm3, %v127_v33 }
  0xc4   :  { %10146 = vmatmul.mubr.msk.f32.gmra.mrb[94].mxu0 %vm186_vm3, %v128_v34 }
  0xc5   :  { %10148 = vmatprep.mubr.msk.f32.mxu0 %vm186_vm3, %v129_v35 }
  0xc8   :  { %10149 = vmatmul.mubr.msk.f32.gmra.mrb[96].mxu0 %vm186_vm3, %v130_v36 }
  0xc9   :  { %10151 = vmatprep.mubr.msk.f32.mxu0 %vm186_vm3, %v131_v37 }
  0xcc   :  { %10152 = vmatmul.mubr.msk.f32.gmra.mrb[98].mxu0 %vm186_vm3, %v132_v38 }
  0xcd   :  { %10154 = vmatprep.mubr.msk.f32.mxu0 %vm186_vm3, %v133_v39 }
  0xd0   :  { %10155 = vmatmul.mubr.msk.f32.gmra.mrb[100].mxu0 %vm186_vm3, %v134_v40 }
  0xd1   :  { %10157 = vmatprep.mubr.msk.f32.mxu0 %vm186_vm3, %v135_v41 }
  0xd4   :  { %10158 = vmatmul.mubr.msk.f32.gmra.mrb[102].mxu0 %vm186_vm3, %v136_v42 }
  0xd5   :  { %10160 = vmatprep.mubr.msk.f32.mxu0 %vm186_vm3, %v137_v43 }
  0xd8   :  { %10161 = vmatmul.mubr.msk.f32.gmra.mrb[104].mxu0 %vm186_vm3, %v138_v44 }
  0xd9   :  { %10163 = vmatprep.mubr.msk.f32.mxu0 %vm186_vm3, %v139_v45 }
  0xdb   :  { %v10006_v48 = vpop.f32.mrb[0].mxu0 }
  0xdc   :  { %v689_v49 = vpop.f32.mrb[1].mxu0  ;;  %10164 = vmatmul.mubr.msk.f32.gmra.mrb[106].mxu0 %vm186_vm3, %v140_v46 }
  0xdd   :  { %10166 = vmatprep.mubr.msk.f32.mxu0 %vm186_vm3, %v141_v47 }
  0xde   :  { %14 = vsyncpa [#allocation7], 0  ;;  %v143_v51 = vld [vmem:[%s15747_s0 + $0x370] sm:$0xff]  ;;  %v144_v54 = vld [vmem:[%s15747_s0 + $0x378] sm:$0xff]  ;;  %vm1552_vm4 = vcmask 261120   ;;  %vm1826_vm5 = vcmask 254976  }
  0xdf   :  { %v10009_v52 = vpop.f32.mrb[2].mxu0  ;;  %v145_v55 = vld [vmem:[%s15747_s0 + $0x380] sm:$0xff]  ;;  %v146_v58 = vld [vmem:[%s15747_s0 + $0x388] sm:$0xff]  ;;  %v147_v59 = vld [vmem:[%s15747_s0 + $0x390] sm:$0xff]  ;;  %s11202_s23 = smov 64   ;;  %s11203_s24 = smov 32  }
  0xe0   :  { %v699_v53 = vpop.f32.mrb[3].mxu0  ;;  %10167 = vmatmul.mubr.msk.f32.gmra.mrb[108].mxu0 %vm186_vm3, %v142_v50  ;;  %v148_v62 = vld [vmem:[%s15747_s0 + $0x398] sm:$0xff]  ;;  %v149_v63 = vld [vmem:[%s15747_s0 + $0x3a0] sm:$0xff]  ;;  %v150_v2 = vld [vmem:[%s15747_s0 + $0x3a8] sm:$0xff]  ;;  %s11204_s12 = smov 96   ;;  %vm1995_vm6 = vcmask 523520  }
  0xe1   :  { %10169 = vmatprep.mubr.msk.f32.mxu0 %vm186_vm3, %v143_v51  ;;  %v151_v3 = vld [vmem:[%s15747_s0 + $0x3b0] sm:$0xff]  ;;  %v152_v6 = vld [vmem:[%s15747_s0 + $0x3b8] sm:$0xff]  ;;  %v153_v7 = vld [vmem:[%s15747_s0 + $0x3c0] sm:$0xff]  ;;  %vm2092_vm7 = vcmask 785920   ;;  %vm2189_vm8 = vcmask 1048320   ;;  %vm3004_vm9 = vcmask 523264  }
  0xe2   :  { %v11762_v9 = vld [vmem:[%s15749_s2] ss:$0 sm:$0xff]  ;;  %v154_v11 = vld [vmem:[%s15747_s0 + $0x3c8] sm:$0xff]  ;;  %v155_v12 = vld [vmem:[%s15747_s0 + $0x3d0] sm:$0xff]  ;;  %vm3044_vm10 = vcmask 1041409   ;;  %vm3046_vm11 = vcmask 1043459  }
  0xe3   :  { %v10012_v56 = vpop.f32.mrb[4].mxu0  ;;  %v695_v13 = vadd.f32 %v10006_v48, %v11762_v9  ;;  %v690_v15 = vadd.f32 %v11762_v9, %v689_v49  ;;  %v156_v17 = vld [vmem:[%s15747_s0 + $0x3d8] sm:$0xff]  ;;  %v157_v18 = vld [vmem:[%s15747_s0 + $0x3e0] sm:$0xff]  ;;  %v705_v22 = vadd.f32 %v10009_v52, %v11762_v9  ;;  %v700_v25 = vadd.f32 %v11762_v9, %v699_v53  ;;  %v158_v27 = vld [vmem:[%s15747_s0 + $0x3e8] sm:$0xff] }
  0xe4   :  { %v709_v57 = vpop.f32.mrb[5].mxu0  ;;  %10170 = vmatmul.mubr.msk.f32.gmra.mrb[110].mxu0 %vm186_vm3, %v144_v54  ;;  %v159_v29 = vld [vmem:[%s15747_s0 + $0x3f0] sm:$0xff]  ;;  %v715_v31 = vadd.f32 %v10012_v56, %v11762_v9  ;;  %v160_v44 = vld [vmem:[%s15747_s0 + $0x3f8] sm:$0xff]  ;;  %v161_v47 = vld [vmem:[%s15747_s0 + $0x400] sm:$0xff]  ;;  %vm3048_vm12 = vcmask 1045509   ;;  %vm3050_vm13 = vcmask 1047559  }
  0xe5   :  { %10172 = vmatprep.mubr.msk.f32.mxu0 %vm186_vm3, %v145_v55  ;;  %v1409_v19 = vmax.f32 %v695_v13, 0.0  ;;  %v1408_v21 = vmax.f32 %v690_v15, 0.0  ;;  %v710_v32 = vadd.f32 %v11762_v9, %v709_v57  ;;  %v1411_v36 = vmax.f32 %v705_v22, 0.0 }
  0xe6   :  { %v1410_v40 = vmax.f32 %v700_v25, 0.0  ;;  %v1413_v48 = vmax.f32 %v715_v31, 0.0  ;;  %vm3053_vm14 = vcmask 517120   ;;  %vm3083_vm15 = vcmask 1041920  }
  0xe7   :  { %v11721_v60 = vpop.f32.mrb[6].mxu0  ;;  %v11801_v30 = vsel %vm1552_vm4, %v1409_v19, -inf  ;;  %v11806_v35 = vsel %vm1552_vm4, %v1408_v21, -inf  ;;  %v1412_v49 = vmax.f32 %v710_v32, 0.0  ;;  %v11831_v53 = vsel %vm1552_vm4, %v1411_v36, -inf }
  0xe8   :  { %v11723_v61 = vpop.f32.mrb[7].mxu0  ;;  %10173 = vmatmul.mubr.msk.f32.gmra.mrb[112].mxu0 %vm186_vm3, %v146_v58  ;;  %v725_v50 = vadd.f32 %v11721_v60, %v11762_v9  ;;  %v11841_v58 = vsel %vm1552_vm4, %v1410_v40, -inf  ;;  %vm8886_vm0 = vcmask 9216  }
  0xe9   :  { %10175 = vmatprep.mubr.msk.f32.mxu0 %vm186_vm3, %v147_v59  ;;  %v720_v54 = vadd.f32 %v11762_v9, %v11723_v61  ;;  %v162_v61 = vld [vmem:[%s15747_s0 + $0x408] sm:$0xff] }
  0xeb   :  { %v11733_v0 = vpop.f32.mrb[8].mxu0  ;;  %v1414_v15 = vmax.f32 %v720_v54, 0.0 }
  0xec   :  { %v11735_v1 = vpop.f32.mrb[9].mxu0  ;;  %10176 = vmatmul.mubr.msk.f32.gmra.mrb[114].mxu0 %vm186_vm3, %v148_v62 }
  0xed   :  { %10178 = vmatprep.mubr.msk.f32.mxu0 %vm186_vm3, %v149_v63  ;;  %v730_v21 = vadd.f32 %v11762_v9, %v11735_v1  ;;  %v165_v1 = vld [vmem:[%s15747_s0 + $0x420] sm:$0xff] }
  0xef   :  { %v11745_v4 = vpop.f32.mrb[10].mxu0  ;;  %v1416_v40 = vmax.f32 %v730_v21, 0.0 }
  0xf0   :  { %v11747_v5 = vpop.f32.mrb[11].mxu0  ;;  %10179 = vmatmul.mubr.msk.f32.gmra.mrb[116].mxu0 %vm186_vm3, %v150_v2 }
  0xf1   :  { %10181 = vmatprep.mubr.msk.f32.mxu0 %vm186_vm3, %v151_v3  ;;  %v163_v3 = vld [vmem:[%s15747_s0 + $0x410] sm:$0xff] }
  0xf3   :  { %v11757_v8 = vpop.f32.mrb[12].mxu0 }
  0xf4   :  { %v11764_v10 = vpop.f32.mrb[13].mxu0  ;;  %10182 = vmatmul.mubr.msk.f32.gmra.mrb[118].mxu0 %vm186_vm3, %v152_v6  ;;  %v11859_v6 = vsel %vm1552_vm4, %v1413_v48, -inf  ;;  %v167_v48 = vld [vmem:[%s15747_s0 + $0x430] sm:$0xff] }
  0xf5   :  { %10184 = vmatprep.mubr.msk.f32.mxu0 %vm186_vm3, %v153_v7  ;;  %v11862_v7 = vsel %vm1552_vm4, %v1412_v49, -inf }
  0xf7   :  { %v11775_v14 = vpop.f32.mrb[14].mxu0 }
  0xf8   :  { %v11778_v16 = vpop.f32.mrb[15].mxu0  ;;  %10185 = vmatmul.mubr.msk.f32.gmra.mrb[120].mxu0 %vm186_vm3, %v154_v11  ;;  %v1415_v11 = vmax.f32 %v725_v50, 0.0 }
  0xf9   :  { %10187 = vmatprep.mubr.msk.f32.mxu0 %vm186_vm3, %v155_v12 }
  0xfb   :  { %v10030_v20 = vpop.f32.mrb[16].mxu0 }
  0xfc   :  { %v775_v23 = vadd.f32 %v10030_v20, %v11762_v9  ;;  %v769_v24 = vpop.f32.mrb[17].mxu0  ;;  %10188 = vmatmul.mubr.msk.f32.gmra.mrb[122].mxu0 %vm186_vm3, %v156_v17  ;;  %v735_v17 = vadd.f32 %v11733_v0, %v11762_v9  ;;  %v164_v0 = vld [vmem:[%s15747_s0 + $0x418] sm:$0xff] }
  0xfd   :  { %v770_v26 = vadd.f32 %v11762_v9, %v769_v24  ;;  %10190 = vmatprep.mubr.msk.f32.mxu0 %vm186_vm3, %v157_v18 }
  0xfe   :  { %v1425_v28 = vmax.f32 %v775_v23, 0.0 }
  0xff   :  { %v1424_v33 = vmax.f32 %v770_v26, 0.0  ;;  %v10033_v34 = vpop.f32.mrb[18].mxu0 }
 0x100   :  { %v11809_v37 = vsel %vm1552_vm4, %v1425_v28, -inf  ;;  %v785_v38 = vadd.f32 %v10033_v34, %v11762_v9  ;;  %v779_v39 = vpop.f32.mrb[19].mxu0  ;;  %10191 = vmatmul.mubr.msk.f32.gmra.mrb[124].mxu0 %vm186_vm3, %v158_v27  ;;  %v11889_v27 = vsel %vm1552_vm4, %v1415_v11, -inf  ;;  %v745_v28 = vadd.f32 %v11745_v4, %v11762_v9 }
 0x101   :  { %v1572_v41 = vmax.f32 %v11801_v30, %v11809_v37  ;;  %v11816_v42 = vsel %vm1552_vm4, %v1424_v33, -inf  ;;  %v780_v43 = vadd.f32 %v11762_v9, %v779_v39  ;;  %10193 = vmatprep.mubr.msk.f32.mxu0 %vm186_vm3, %v159_v29  ;;  %v740_v29 = vadd.f32 %v11762_v9, %v11747_v5 }
 0x102   :  { %v1555_v45 = vmax.f32 %v11806_v35, %v11816_v42  ;;  %v1427_v46 = vmax.f32 %v785_v38, 0.0  ;;  %v11896_v33 = vsel %vm1552_vm4, %v1414_v15, -inf  ;;  %v1417_v34 = vmax.f32 %v735_v17, 0.0  ;;  %v169_v17 = vld [vmem:[%s15747_s0 + $0x440] sm:$0xff] }
 0x103   :  { %v1426_v51 = vmax.f32 %v780_v43, 0.0  ;;  %v10036_v52 = vpop.f32.mrb[20].mxu0  ;;  %v1419_v49 = vmax.f32 %v745_v28, 0.0  ;;  %v1418_v50 = vmax.f32 %v740_v29, 0.0 }
 0x104   :  { %v11836_v55 = vsel %vm1552_vm4, %v1427_v46, -inf  ;;  %v795_v56 = vadd.f32 %v10036_v52, %v11762_v9  ;;  %v789_v57 = vpop.f32.mrb[21].mxu0  ;;  %10194 = vmatmul.mubr.msk.f32.gmra.mrb[126].mxu0 %vm186_vm3, %v160_v44  ;;  %v166_v44 = vld [vmem:[%s15747_s0 + $0x428] sm:$0xff] }
 0x105   :  { %v1606_v59 = vmax.f32 %v11831_v53, %v11836_v55  ;;  %v11846_v60 = vsel %vm1552_vm4, %v1426_v51, -inf  ;;  %v790_v62 = vadd.f32 %v11762_v9, %v789_v57  ;;  %10196 = vmatprep.mubr.msk.f32.mxu0 %vm186_vm3, %v161_v47  ;;  %v755_v51 = vadd.f32 %v11757_v8, %v11762_v9 }
 0x106   :  { %v1589_v63 = vmax.f32 %v11841_v58, %v11846_v60  ;;  %v1429_v2 = vmax.f32 %v795_v56, 0.0  ;;  %v11921_v56 = vsel %vm1552_vm4, %v1417_v34, -inf  ;;  %v750_v57 = vadd.f32 %v11762_v9, %v11764_v10  ;;  %v168_v10 = vld [vmem:[%s15747_s0 + $0x438] sm:$0xff] }
 0x107   :  { %v1428_v12 = vmax.f32 %v790_v62, 0.0  ;;  %v10039_v13 = vpop.f32.mrb[22].mxu0  ;;  %v1421_v21 = vmax.f32 %v755_v51, 0.0 }
 0x108   :  { %v11867_v18 = vsel %vm1552_vm4, %v1429_v2, -inf  ;;  %v805_v19 = vadd.f32 %v10039_v13, %v11762_v9  ;;  %v799_v20 = vpop.f32.mrb[23].mxu0  ;;  %10197 = vmatmul.mubr.msk.f32.gmra.mrb[128].mxu0 %vm186_vm3, %v162_v61 }
 0x109   :  { %v1640_v22 = vmax.f32 %v11859_v6, %v11867_v18  ;;  %v11876_v23 = vsel %vm1552_vm4, %v1428_v12, -inf  ;;  %v800_v24 = vadd.f32 %v11762_v9, %v799_v20  ;;  %10199 = vmatprep.mubr.msk.f32.mxu0 %vm186_vm3, %v163_v3  ;;  %v11931_v3 = vsel %vm1552_vm4, %v1416_v40, -inf }
 0x10a   :  { %v1623_v25 = vmax.f32 %v11862_v7, %v11876_v23  ;;  %v1431_v26 = vmax.f32 %v805_v19, 0.0  ;;  %v11949_v19 = vsel %vm1552_vm4, %v1419_v49, -inf  ;;  %v11952_v20 = vsel %vm1552_vm4, %v1418_v50, -inf }
 0x10b   :  { %v1430_v31 = vmax.f32 %v800_v24, 0.0  ;;  %v10042_v32 = vpop.f32.mrb[24].mxu0 }
 0x10c   :  { %v11899_v36 = vsel %vm1552_vm4, %v1431_v26, -inf  ;;  %v815_v38 = vadd.f32 %v10042_v32, %v11762_v9  ;;  %v809_v39 = vpop.f32.mrb[25].mxu0  ;;  %10200 = vmatmul.mubr.msk.f32.gmra.mrb[130].mxu0 %vm186_vm3, %v164_v0  ;;  %v1420_v26 = vmax.f32 %v750_v57, 0.0  ;;  %v760_v32 = vadd.f32 %v11762_v9, %v11778_v16  ;;  %v171_v16 = vld [vmem:[%s15747_s0 + $0x450] sm:$0xff] }
 0x10d   :  { %v1674_v4 = vmax.f32 %v11889_v27, %v11899_v36  ;;  %v11906_v5 = vsel %vm1552_vm4, %v1430_v31, -inf  ;;  %v810_v43 = vadd.f32 %v11762_v9, %v809_v39  ;;  %10202 = vmatprep.mubr.msk.f32.mxu0 %vm186_vm3, %v165_v1  ;;  %v765_v1 = vadd.f32 %v11775_v14, %v11762_v9  ;;  %v170_v14 = vld [vmem:[%s15747_s0 + $0x448] sm:$0xff] }
 0x10e   :  { %v1657_v46 = vmax.f32 %v11896_v33, %v11906_v5  ;;  %v1433_v47 = vmax.f32 %v815_v38, 0.0  ;;  %v11982_v49 = vsel %vm1552_vm4, %v1420_v26, -inf  ;;  %v1422_v57 = vmax.f32 %v760_v32, 0.0 }
 0x10f   :  { %v1432_v52 = vmax.f32 %v810_v43, 0.0  ;;  %v10045_v54 = vpop.f32.mrb[26].mxu0  ;;  %v1423_v50 = vmax.f32 %v765_v1, 0.0 }
 0x110   :  { %v11926_v62 = vsel %vm1552_vm4, %v1433_v47, -inf  ;;  %v825_v61 = vadd.f32 %v10045_v54, %v11762_v9  ;;  %v819_v2 = vpop.f32.mrb[27].mxu0  ;;  %10203 = vmatmul.mubr.msk.f32.gmra.mrb[132].mxu0 %vm186_vm3, %v166_v44  ;;  %v11979_v44 = vsel %vm1552_vm4, %v1421_v21, -inf  ;;  %v173_v21 = vld [vmem:[%s15747_s0 + $0x460] sm:$0xff]  ;;  %v12013_v32 = vsel %vm1552_vm4, %v1422_v57, -inf }
 0x111   :  { %v1708_v8 = vmax.f32 %v11921_v56, %v11926_v62  ;;  %v11936_v11 = vsel %vm1552_vm4, %v1432_v52, -inf  ;;  %v820_v12 = vadd.f32 %v11762_v9, %v819_v2  ;;  %10205 = vmatprep.mubr.msk.f32.mxu0 %vm186_vm3, %v167_v48  ;;  %v12005_v26 = vsel %vm1552_vm4, %v1423_v50, -inf  ;;  %v175_v50 = vld [vmem:[%s15747_s0 + $0x470] sm:$0xff] }
 0x112   :  { %v1691_v13 = vmax.f32 %v11931_v3, %v11936_v11  ;;  %v1435_v15 = vmax.f32 %v825_v61, 0.0 }
 0x113   :  { %v1434_v24 = vmax.f32 %v820_v12, 0.0  ;;  %v10048_v0 = vpop.f32.mrb[28].mxu0 }
 0x114   :  { %v11957_v28 = vsel %vm1552_vm4, %v1435_v15, -inf  ;;  %v835_v29 = vadd.f32 %v10048_v0, %v11762_v9  ;;  %v829_v31 = vpop.f32.mrb[29].mxu0  ;;  %10206 = vmatmul.mubr.msk.f32.gmra.mrb[134].mxu0 %vm186_vm3, %v168_v10  ;;  %v172_v10 = vld [vmem:[%s15747_s0 + $0x458] sm:$0xff] }
 0x115   :  { %v1742_v34 = vmax.f32 %v11949_v19, %v11957_v28  ;;  %v11966_v38 = vsel %vm1552_vm4, %v1434_v24, -inf  ;;  %v830_v39 = vadd.f32 %v11762_v9, %v829_v31  ;;  %10208 = vmatprep.mubr.msk.f32.mxu0 %vm186_vm3, %v169_v17 }
 0x116   :  { %v1725_v40 = vmax.f32 %v11952_v20, %v11966_v38  ;;  %v1437_v43 = vmax.f32 %v835_v29, 0.0 }
 0x117   :  { %v1436_v47 = vmax.f32 %v830_v39, 0.0  ;;  %v10051_v48 = vpop.f32.mrb[30].mxu0 }
 0x118   :  { %v11985_v51 = vsel %vm1552_vm4, %v1437_v43, -inf  ;;  %v845_v52 = vadd.f32 %v10051_v48, %v11762_v9  ;;  %v839_v54 = vpop.f32.mrb[31].mxu0  ;;  %10209 = vmatmul.mubr.msk.f32.gmra.mrb[136].mxu0 %vm186_vm3, %v170_v14 }
 0x119   :  { %v1776_v61 = vmax.f32 %v11979_v44, %v11985_v51  ;;  %v11992_v2 = vsel %vm1552_vm4, %v1436_v47, -inf  ;;  %v840_v12 = vadd.f32 %v11762_v9, %v839_v54  ;;  %10211 = vmatprep.mubr.msk.f32.mxu0 %vm186_vm3, %v171_v16  ;;  %v174_v16 = vld [vmem:[%s15747_s0 + $0x468] sm:$0xff] }
 0x11a   :  { %v1759_v15 = vmax.f32 %v11982_v49, %v11992_v2  ;;  %v1439_v17 = vmax.f32 %v845_v52, 0.0 }
 0x11b   :  { %v1438_v24 = vmax.f32 %v840_v12, 0.0  ;;  %v10054_v0 = vpop.f32.mrb[32].mxu0 }
 0x11c   :  { %v12008_v1 = vsel %vm1552_vm4, %v1439_v17, -inf  ;;  %v855_v29 = vadd.f32 %v10054_v0, %v11762_v9  ;;  %v849_v31 = vpop.f32.mrb[33].mxu0  ;;  %10212 = vmatmul.mubr.msk.f32.gmra.mrb[138].mxu0 %vm186_vm3, %v172_v10  ;;  %v176_v0 = vld [vmem:[%s15747_s0 + $0x478] sm:$0xff] }
 0x11d   :  { %v1810_v39 = vmax.f32 %v12005_v26, %v12008_v1  ;;  %v12018_v14 = vsel %vm1552_vm4, %v1438_v24, -inf  ;;  %v850_v43 = vadd.f32 %v11762_v9, %v849_v31  ;;  %10214 = vmatprep.mubr.msk.f32.mxu0 %vm186_vm3, %v173_v21  ;;  %v2624_v26 = vld [vmem:[%s15750_s3 + $0x88] sm:$0xff] }
 0x11e   :  { %v1793_v47 = vmax.f32 %v12013_v32, %v12018_v14  ;;  %v1441_v48 = vmax.f32 %v855_v29, 0.0 }
 0x11f   :  { %v1440_v52 = vmax.f32 %v850_v43, 0.0  ;;  %v10057_v54 = vpop.f32.mrb[34].mxu0 }
 0x120   :  { %v1573_v57 = vsel %vm1552_vm4, %v1441_v48, -inf  ;;  %v865_v12 = vadd.f32 %v10057_v54, %v11762_v9  ;;  %v859_v10 = vpop.f32.mrb[35].mxu0  ;;  %10215 = vmatmul.mubr.msk.f32.gmra.mrb[140].mxu0 %vm186_vm3, %v174_v16 }
 0x121   :  { %v12036_v17 = vmax.f32 %v1572_v41, %v1573_v57  ;;  %v1556_v21 = vsel %vm1552_vm4, %v1440_v52, -inf  ;;  %v860_v24 = vadd.f32 %v11762_v9, %v859_v10  ;;  %10217 = vmatprep.mubr.msk.f32.mxu0 %vm186_vm3, %v175_v50 }
 0x122   :  { %v12047_v29 = vmax.f32 %v1555_v45, %v1556_v21  ;;  %v1443_v31 = vmax.f32 %v865_v12, 0.0 }
 0x123   :  { %v1442_v43 = vmax.f32 %v860_v24, 0.0  ;;  %v10060_v30 = vpop.f32.mrb[36].mxu0 }
 0x124   :  { %v1607_v37 = vsel %vm1552_vm4, %v1443_v31, -inf  ;;  %v875_v41 = vadd.f32 %v10060_v30, %v11762_v9  ;;  %v869_v16 = vpop.f32.mrb[37].mxu0  ;;  %10218 = vmatmul.mubr.msk.f32.gmra.mrb[142].mxu0 %vm186_vm3, %v176_v0 }
 0x125   :  { %v12055_v48 = vmax.f32 %v1606_v59, %v1607_v37  ;;  %v1590_v50 = vsel %vm1552_vm4, %v1442_v43, -inf  ;;  %v870_v35 = vadd.f32 %v11762_v9, %v869_v16 }
 0x126   :  { %v12062_v42 = vmax.f32 %v1589_v63, %v1590_v50  ;;  %v1445_v45 = vmax.f32 %v875_v41, 0.0 }
 0x127   :  { %v1444_v52 = vmax.f32 %v870_v35, 0.0  ;;  %v10063_v54 = vpop.f32.mrb[38].mxu0 }
 0x128   :  { %v1641_v57 = vsel %vm1552_vm4, %v1445_v45, -inf  ;;  %v885_v12 = vadd.f32 %v10063_v54, %v11762_v9  ;;  %v879_v10 = vpop.f32.mrb[39].mxu0 }
 0x129   :  { %v12069_v53 = vmax.f32 %v1640_v22, %v1641_v57  ;;  %v1624_v55 = vsel %vm1552_vm4, %v1444_v52, -inf  ;;  %v880_v59 = vadd.f32 %v11762_v9, %v879_v10 }
 0x12a   :  { %v12076_v58 = vmax.f32 %v1623_v25, %v1624_v55  ;;  %v1447_v60 = vmax.f32 %v885_v12, 0.0 }
 0x12b   :  { %v1446_v63 = vmax.f32 %v880_v59, 0.0  ;;  %v10066_v21 = vpop.f32.mrb[40].mxu0 }
 0x12c   :  { %v1675_v24 = vsel %vm1552_vm4, %v1447_v60, -inf  ;;  %v895_v0 = vadd.f32 %v10066_v21, %v11762_v9  ;;  %v889_v31 = vpop.f32.mrb[41].mxu0 }
 0x12d   :  { %v12083_v6 = vmax.f32 %v1674_v4, %v1675_v24  ;;  %v1658_v18 = vsel %vm1552_vm4, %v1446_v63, -inf  ;;  %v890_v22 = vadd.f32 %v11762_v9, %v889_v31  ;;  %v2607_v31 = vld [vmem:[%s15750_s3] sm:$0xff] }
 0x12e   :  { %v12090_v7 = vmax.f32 %v1657_v46, %v1658_v18  ;;  %v1449_v23 = vmax.f32 %v895_v0, 0.0  ;;  %v2608_v18 = vld [vmem:[%s15750_s3 + $0x8] sm:$0xff] }
 0x12f   :  { %v1448_v25 = vmax.f32 %v890_v22, 0.0  ;;  %v10069_v43 = vpop.f32.mrb[42].mxu0 }
 0x130   :  { %v1709_v30 = vsel %vm1552_vm4, %v1449_v23, -inf  ;;  %v905_v37 = vadd.f32 %v10069_v43, %v11762_v9  ;;  %v899_v41 = vpop.f32.mrb[43].mxu0 }
 0x131   :  { %v12097_v27 = vmax.f32 %v1708_v8, %v1709_v30  ;;  %v1692_v36 = vsel %vm1552_vm4, %v1448_v25, -inf  ;;  %v900_v4 = vadd.f32 %v11762_v9, %v899_v41  ;;  %v10260_v25 = vpack.c.bf16 %v2608_v18, %v2607_v31 }
 0x132   :  { %v12104_v33 = vmax.f32 %v1691_v13, %v1692_v36  ;;  %v1451_v5 = vmax.f32 %v905_v37, 0.0 }
 0x133   :  { %v1450_v46 = vmax.f32 %v900_v4, 0.0  ;;  %v10072_v16 = vpop.f32.mrb[44].mxu0 }
 0x134   :  { %v1743_v50 = vsel %vm1552_vm4, %v1451_v5, -inf  ;;  %v915_v35 = vadd.f32 %v10072_v16, %v11762_v9  ;;  %v909_v45 = vpop.f32.mrb[45].mxu0 }
 0x135   :  { %v12111_v56 = vmax.f32 %v1742_v34, %v1743_v50  ;;  %v1726_v62 = vsel %vm1552_vm4, %v1450_v46, -inf  ;;  %v910_v8 = vadd.f32 %v11762_v9, %v909_v45 }
 0x136   :  { %v12118_v3 = vmax.f32 %v1725_v40, %v1726_v62  ;;  %v1453_v11 = vmax.f32 %v915_v35, 0.0 }
 0x137   :  { %v1452_v13 = vmax.f32 %v910_v8, 0.0  ;;  %v10075_v52 = vpop.f32.mrb[46].mxu0 }
 0x138   :  { %v1777_v54 = vsel %vm1552_vm4, %v1453_v11, -inf  ;;  %v925_v57 = vadd.f32 %v10075_v52, %v11762_v9  ;;  %v919_v12 = vpop.f32.mrb[47].mxu0 }
 0x139   :  { %v12125_v19 = vmax.f32 %v1776_v61, %v1777_v54  ;;  %v1760_v28 = vsel %vm1552_vm4, %v1452_v13, -inf  ;;  %v920_v34 = vadd.f32 %v11762_v9, %v919_v12 }
 0x13a   :  { %v12132_v20 = vmax.f32 %v1759_v15, %v1760_v28  ;;  %v1455_v38 = vmax.f32 %v925_v57, 0.0  ;;  %v2623_v15 = vld [vmem:[%s15750_s3 + $0x80] sm:$0xff] }
 0x13b   :  { %v1454_v40 = vmax.f32 %v920_v34, 0.0  ;;  %v10078_v10 = vpop.f32.mrb[48].mxu0  ;;  %v10258_v63 = vpack.c.bf16 %v2624_v26, %v2623_v15 }
 0x13c   :  { %v1811_v55 = vsel %vm1552_vm4, %v1455_v38, -inf  ;;  %v935_v59 = vadd.f32 %v10078_v10, %v11762_v9  ;;  %v929_v60 = vpop.f32.mrb[49].mxu0 }
 0x13d   :  { %v12139_v44 = vmax.f32 %v1810_v39, %v1811_v55  ;;  %v1794_v51 = vsel %vm1552_vm4, %v1454_v40, -inf  ;;  %v930_v61 = vadd.f32 %v11762_v9, %v929_v60  ;;  %10259 = vmatprep.subr.bf16.mxu0 %v10258_v63 }
 0x13e   :  { %v12146_v49 = vmax.f32 %v1793_v47, %v1794_v51  ;;  %v1457_v2 = vmax.f32 %v935_v59, 0.0  ;;  %10261 = vmatpush3.bf16.msra.mxu0 %v10260_v25 }
 0x13f   :  { %v1456_v1 = vmax.f32 %v930_v61, 0.0  ;;  %v10081_v39 = vpop.f32.mrb[50].mxu0 }
 0x140   :  { %v12155_v21 = vsel %vm1552_vm4, %v1457_v2, -inf  ;;  %v945_v24 = vadd.f32 %v10081_v39, %v11762_v9  ;;  %v939_v32 = vpop.f32.mrb[51].mxu0 }
 0x141   :  { %v1576_v14 = vmax.f32 %v12036_v17, %v12155_v21  ;;  %v12161_v47 = vsel %vm1552_vm4, %v1456_v1, -inf  ;;  %v940_v0 = vadd.f32 %v11762_v9, %v939_v32 }
 0x142   :  { %v1559_v22 = vmax.f32 %v12047_v29, %v12161_v47  ;;  %v1459_v23 = vmax.f32 %v945_v24, 0.0  ;;  %v2625_v29 = vld [vmem:[%s15750_s3 + $0x90] sm:$0xff]  ;;  %v2626_v47 = vld [vmem:[%s15750_s3 + $0x98] sm:$0xff] }
 0x143   :  { %v1458_v43 = vmax.f32 %v940_v0, 0.0  ;;  %v10084_v30 = vpop.f32.mrb[52].mxu0 }
 0x144   :  { %v12173_v37 = vsel %vm1552_vm4, %v1459_v23, -inf  ;;  %v955_v41 = vadd.f32 %v10084_v30, %v11762_v9  ;;  %v949_v36 = vpop.f32.mrb[53].mxu0 }
 0x145   :  { %v1610_v4 = vmax.f32 %v12055_v48, %v12173_v37  ;;  %v12179_v5 = vsel %vm1552_vm4, %v1458_v43, -inf  ;;  %v950_v46 = vadd.f32 %v11762_v9, %v949_v36  ;;  %v2609_v48 = vld [vmem:[%s15750_s3 + $0x10] sm:$0xff]  ;;  %v2610_v37 = vld [vmem:[%s15750_s3 + $0x18] sm:$0xff] }
 0x146   :  { %v1593_v16 = vmax.f32 %v12062_v42, %v12179_v5  ;;  %v1461_v50 = vmax.f32 %v955_v41, 0.0 }
 0x147   :  { %v1460_v35 = vmax.f32 %v950_v46, 0.0  ;;  %v10087_v45 = vpop.f32.mrb[54].mxu0 }
 0x148   :  { %v12185_v62 = vsel %vm1552_vm4, %v1461_v50, -inf  ;;  %v965_v8 = vadd.f32 %v10087_v45, %v11762_v9  ;;  %v959_v11 = vpop.f32.mrb[55].mxu0 }
 0x149   :  { %v1644_v13 = vmax.f32 %v12069_v53, %v12185_v62  ;;  %v12191_v52 = vsel %vm1552_vm4, %v1460_v35, -inf  ;;  %v960_v54 = vadd.f32 %v11762_v9, %v959_v11  ;;  %v11201_v11 = vmov 0.0  }
 0x14a   :  { %v1627_v57 = vmax.f32 %v12076_v58, %v12191_v52  ;;  %v1463_v12 = vmax.f32 %v965_v8, 0.0  ;;  %1830 = vst.msk [vmem:[#allocation2 + $0x20] sm:$0xff] %vm1552_vm4, %v11201_v11  ;;  %1825 = vst.msk [vmem:[#allocation2] sm:$0xff] %vm1552_vm4, %v11201_v11 }
 0x14b   :  { %v1462_v28 = vmax.f32 %v960_v54, 0.0  ;;  %v10090_v34 = vpop.f32.mrb[56].mxu0  ;;  %1831 = vst.msk [vmem:[#allocation2 + $0x28] sm:$0x3] %vm1826_vm5, %v11201_v11  ;;  %1827 = vst.msk [vmem:[#allocation2 + $0x8] sm:$0x3] %vm1826_vm5, %v11201_v11 }
 0x14c   :  { %v12197_v38 = vsel %vm1552_vm4, %v1463_v12, -inf  ;;  %v975_v40 = vadd.f32 %v10090_v34, %v11762_v9  ;;  %v969_v10 = vpop.f32.mrb[57].mxu0  ;;  %1828 = vst.msk [vmem:[#allocation2 + $0x10] sm:$0xff] %vm1552_vm4, %v11201_v11  ;;  %1832 = vst.msk [vmem:[#allocation2 + $0x30] sm:$0xff] %vm1552_vm4, %v11201_v11 }
 0x14d   :  { %v1678_v55 = vmax.f32 %v12083_v6, %v12197_v38  ;;  %v12203_v59 = vsel %vm1552_vm4, %v1462_v28, -inf  ;;  %v970_v60 = vadd.f32 %v11762_v9, %v969_v10  ;;  %1829 = vst.msk [vmem:[#allocation2 + $0x18] sm:$0x3] %vm1826_vm5, %v11201_v11  ;;  %1833 = vst.msk [vmem:[#allocation2 + $0x38] sm:$0x3] %vm1826_vm5, %v11201_v11 }
 0x14e   :  { %v1661_v51 = vmax.f32 %v12090_v7, %v12203_v59  ;;  %v1465_v61 = vmax.f32 %v975_v40, 0.0  ;;  %1834 = vst.msk [vmem:[#allocation2 + $0x40] sm:$0xff] %vm1552_vm4, %v11201_v11  ;;  %1836 = vst.msk [vmem:[#allocation2 + $0x50] sm:$0xff] %vm1552_vm4, %v11201_v11 }
 0x14f   :  { %v1464_v2 = vmax.f32 %v970_v60, 0.0  ;;  %v10093_v15 = vpop.f32.mrb[58].mxu0  ;;  %1835 = vst.msk [vmem:[#allocation2 + $0x48] sm:$0x3] %vm1826_vm5, %v11201_v11  ;;  %1837 = vst.msk [vmem:[#allocation2 + $0x58] sm:$0x3] %vm1826_vm5, %v11201_v11 }
 0x150   :  { %v12209_v26 = vsel %vm1552_vm4, %v1465_v61, -inf  ;;  %v985_v1 = vadd.f32 %v10093_v15, %v11762_v9  ;;  %v979_v39 = vpop.f32.mrb[59].mxu0  ;;  %1838 = vst.msk [vmem:[#allocation2 + $0x60] sm:$0xff] %vm1552_vm4, %v11201_v11  ;;  %1840 = vst.msk [vmem:[#allocation2 + $0x70] sm:$0xff] %vm1552_vm4, %v11201_v11 }
 0x151   :  { %v1712_v63 = vmax.f32 %v12097_v27, %v12209_v26  ;;  %v12215_v24 = vsel %vm1552_vm4, %v1464_v2, -inf  ;;  %v980_v32 = vadd.f32 %v11762_v9, %v979_v39  ;;  %1839 = vst.msk [vmem:[#allocation2 + $0x68] sm:$0x3] %vm1826_vm5, %v11201_v11  ;;  %1841 = vst.msk [vmem:[#allocation2 + $0x78] sm:$0x3] %vm1826_vm5, %v11201_v11 }
 0x152   :  { %v1695_v0 = vmax.f32 %v12104_v33, %v12215_v24  ;;  %v1467_v31 = vmax.f32 %v985_v1, 0.0  ;;  %1842 = vst.msk [vmem:[#allocation2 + $0x80] sm:$0xff] %vm1552_vm4, %v11201_v11  ;;  %1844 = vst.msk [vmem:[#allocation2 + $0x90] sm:$0xff] %vm1552_vm4, %v11201_v11 }
 0x153   :  { %v1466_v18 = vmax.f32 %v980_v32, 0.0  ;;  %v10096_v23 = vpop.f32.mrb[60].mxu0  ;;  %1843 = vst.msk [vmem:[#allocation2 + $0x88] sm:$0x3] %vm1826_vm5, %v11201_v11  ;;  %1845 = vst.msk [vmem:[#allocation2 + $0x98] sm:$0x3] %vm1826_vm5, %v11201_v11 }
 0x154   :  { %v12221_v25 = vsel %vm1552_vm4, %v1467_v31, -inf  ;;  %v995_v43 = vadd.f32 %v10096_v23, %v11762_v9  ;;  %v989_v30 = vpop.f32.mrb[61].mxu0  ;;  %1846 = vst.msk [vmem:[#allocation2 + $0xa0] sm:$0xff] %vm1552_vm4, %v11201_v11  ;;  %1848 = vst.msk [vmem:[#allocation2 + $0xb0] sm:$0xff] %vm1552_vm4, %v11201_v11 }
 0x155   :  { %v1746_v41 = vmax.f32 %v12111_v56, %v12221_v25  ;;  %v12227_v36 = vsel %vm1552_vm4, %v1466_v18, -inf  ;;  %v990_v46 = vadd.f32 %v11762_v9, %v989_v30  ;;  %1847 = vst.msk [vmem:[#allocation2 + $0xa8] sm:$0x3] %vm1826_vm5, %v11201_v11  ;;  %1849 = vst.msk [vmem:[#allocation2 + $0xb8] sm:$0x3] %vm1826_vm5, %v11201_v11 }
 0x156   :  { %v1729_v50 = vmax.f32 %v12118_v3, %v12227_v36  ;;  %v1469_v35 = vmax.f32 %v995_v43, 0.0  ;;  %1850 = vst.msk [vmem:[#allocation2 + $0xc0] sm:$0xff] %vm1552_vm4, %v11201_v11  ;;  %1852 = vst.msk [vmem:[#allocation2 + $0xd0] sm:$0xff] %vm1552_vm4, %v11201_v11 }
 0x157   :  { %v1468_v45 = vmax.f32 %v990_v46, 0.0  ;;  %v10099_v8 = vpop.f32.mrb[62].mxu0  ;;  %1851 = vst.msk [vmem:[#allocation2 + $0xc8] sm:$0x3] %vm1826_vm5, %v11201_v11  ;;  %1853 = vst.msk [vmem:[#allocation2 + $0xd8] sm:$0x3] %vm1826_vm5, %v11201_v11 }
 0x158   :  { %1854 = vst.msk [vmem:[#allocation2 + $0xe0] sm:$0xff] %vm1552_vm4, %v11201_v11  ;;  %1856 = vst.msk [vmem:[#allocation2 + $0xf0] sm:$0xff] %vm1552_vm4, %v11201_v11  ;;  %v12273_v54 = vsel %vm1552_vm4, %v1469_v35, -inf  ;;  %v1005_v12 = vadd.f32 %v10099_v8, %v11762_v9  ;;  %v999_v28 = vpop.f32.mrb[63].mxu0  ;;  %v2012_v46 = vld [vmem:[#allocation2 + $0x2] sm:$0xff] }
 0x159   :  { %1855 = vst.msk [vmem:[#allocation2 + $0xe8] sm:$0x3] %vm1826_vm5, %v11201_v11  ;;  %1857 = vst.msk [vmem:[#allocation2 + $0xf8] sm:$0x3] %vm1826_vm5, %v11201_v11  ;;  %v1780_v34 = vmax.f32 %v12125_v19, %v12273_v54  ;;  %v12279_v40 = vsel %vm1552_vm4, %v1468_v45, -inf  ;;  %v1000_v10 = vadd.f32 %v11762_v9, %v999_v28  ;;  %v1915_v35 = vld [vmem:[#allocation2 + $0x1] sm:$0xff]  ;;  %2044 = vrot.lane.b32.xlu1 %v2012_v46, %s11202_s23 }
 0x15a   :  { %1858 = vst.msk [vmem:[#allocation2 + $0x100] sm:$0xff] %vm1552_vm4, %v11201_v11  ;;  %1860 = vst.msk [vmem:[#allocation2 + $0x110] sm:$0xff] %vm1552_vm4, %v11201_v11  ;;  %v1763_v60 = vmax.f32 %v12132_v20, %v12279_v40  ;;  %v1471_v61 = vmax.f32 %v1005_v12, 0.0  ;;  %1947 = vrot.lane.b32.xlu0 %v1915_v35, %s11203_s24 }
 0x15b   :  { %1859 = vst.msk [vmem:[#allocation2 + $0x108] sm:$0x3] %vm1826_vm5, %v11201_v11  ;;  %1861 = vst.msk [vmem:[#allocation2 + $0x118] sm:$0x3] %vm1826_vm5, %v11201_v11  ;;  %v1470_v2 = vmax.f32 %v1000_v10, 0.0  ;;  %v10102_v15 = vpop.f32.mrb[64].mxu0 }
 0x15c   :  { %1862 = vst.msk [vmem:[#allocation2 + $0x120] sm:$0xff] %vm1552_vm4, %v11201_v11  ;;  %1864 = vst.msk [vmem:[#allocation2 + $0x130] sm:$0xff] %vm1552_vm4, %v11201_v11  ;;  %v12285_v1 = vsel %vm1552_vm4, %v1471_v61, -inf  ;;  %v1015_v39 = vadd.f32 %v10102_v15, %v11762_v9  ;;  %v1009_v32 = vpop.f32.mrb[65].mxu0 }
 0x15d   :  { %1863 = vst.msk [vmem:[#allocation2 + $0x128] sm:$0x3] %vm1826_vm5, %v11201_v11  ;;  %1865 = vst.msk [vmem:[#allocation2 + $0x138] sm:$0x3] %vm1826_vm5, %v11201_v11  ;;  %v1814_v31 = vmax.f32 %v12139_v44, %v12285_v1  ;;  %v12291_v18 = vsel %vm1552_vm4, %v1470_v2, -inf  ;;  %v1010_v23 = vadd.f32 %v11762_v9, %v1009_v32  ;;  %v1923_v32 = vld [vmem:[#allocation2 + $0xa1] sm:$0xff] }
 0x15e   :  { %v1797_v43 = vmax.f32 %v12146_v49, %v12291_v18  ;;  %v1473_v30 = vmax.f32 %v1015_v39, 0.0  ;;  %1963 = vrot.lane.b32.xlu1 %v1923_v32, %s11203_s24  ;;  %v2627_v1 = vld [vmem:[%s15750_s3 + $0xa0] sm:$0xff] }
 0x15f   :  { %v1472_v45 = vmax.f32 %v1010_v23, 0.0  ;;  %v10105_v8 = vpop.f32.mrb[66].mxu0  ;;  %v2342_v23 = vld [vmem:[#allocation2 + $0x90] sm:$0xff]  ;;  %v2611_v49 = vld [vmem:[%s15750_s3 + $0x20] sm:$0xff] }
 0x160   :  { %v1577_v11 = vsel %vm1552_vm4, %v1473_v30, -inf  ;;  %v1025_v12 = vadd.f32 %v10105_v8, %v11762_v9  ;;  %v1019_v28 = vpop.f32.mrb[67].mxu0  ;;  %2381 = vrot.lane.b32.xlu0 %v2342_v23, %s11202_s23  ;;  %v10262_v8 = vpack.c.bf16 %v2626_v47, %v2625_v29 }
 0x161   :  { %v12303_v10 = vmax.f32 %v1576_v14, %v1577_v11  ;;  %v1560_v61 = vsel %vm1552_vm4, %v1472_v45, -inf  ;;  %v1020_v2 = vadd.f32 %v11762_v9, %v1019_v28  ;;  %v2020_v28 = vld [vmem:[#allocation2 + $0xa2] sm:$0xff] }
 0x162   :  { %v12310_v15 = vmax.f32 %v1559_v22, %v1560_v61  ;;  %v1475_v39 = vmax.f32 %v1025_v12, 0.0  ;;  %v2438_v61 = vld [vmem:[#allocation2 + $0x91] sm:$0xff]  ;;  %10263 = vmatprep.subr.bf16.mxu0 %v10262_v8  ;;  %2060 = vrot.lane.b32.xlu1 %v2020_v28, %s11202_s23 }
 0x163   :  { %v1474_v30 = vmax.f32 %v1020_v2, 0.0  ;;  %v10108_v46 = vpop.f32.mrb[68].mxu0 }
 0x164   :  { %v1611_v17 = vsel %vm1552_vm4, %v1475_v39, -inf  ;;  %v1035_v21 = vadd.f32 %v10108_v46, %v11762_v9  ;;  %v1029_v14 = vpop.f32.mrb[69].mxu0  ;;  %2477 = vrot.lane.b32.xlu0 %v2438_v61, %s11204_s12 }
 0x165   :  { %v12325_v22 = vmax.f32 %v1610_v4, %v1611_v17  ;;  %v1594_v35 = vsel %vm1552_vm4, %v1474_v30, -inf  ;;  %v1030_v45 = vadd.f32 %v11762_v9, %v1029_v14 }
 0x166   :  { %v12332_v11 = vmax.f32 %v1593_v16, %v1594_v35  ;;  %v1477_v12 = vmax.f32 %v1035_v21, 0.0  ;;  %v10264_v16 = vpack.c.bf16 %v2610_v37, %v2609_v48 }
 0x167   :  { %v1476_v2 = vmax.f32 %v1030_v45, 0.0  ;;  %v10111_v39 = vpop.f32.mrb[70].mxu0 }
 0x168   :  { %v1645_v42 = vsel %vm1552_vm4, %v1477_v12, -inf  ;;  %v1045_v4 = vadd.f32 %v10111_v39, %v11762_v9  ;;  %v1039_v5 = vpop.f32.mrb[71].mxu0  ;;  %10265 = vmatpush3.bf16.msra.mxu0 %v10264_v16 }
 0x169   :  { %v12347_v32 = vmax.f32 %v1644_v13, %v1645_v42  ;;  %v1628_v23 = vsel %vm1552_vm4, %v1476_v2, -inf  ;;  %v1040_v30 = vadd.f32 %v11762_v9, %v1039_v5 }
 0x16a   :  { %v12354_v46 = vmax.f32 %v1627_v57, %v1628_v23  ;;  %v1479_v17 = vmax.f32 %v1045_v4, 0.0 }
 0x16b   :  { %v1478_v21 = vmax.f32 %v1040_v30, 0.0  ;;  %v10114_v14 = vpop.f32.mrb[72].mxu0 }
 0x16c   :  { %v1679_v29 = vsel %vm1552_vm4, %v1479_v17, -inf  ;;  %v1055_v47 = vadd.f32 %v10114_v14, %v11762_v9  ;;  %v1049_v53 = vpop.f32.mrb[73].mxu0 }
 0x16d   :  { %v12361_v62 = vmax.f32 %v1678_v55, %v1679_v29  ;;  %v1662_v13 = vsel %vm1552_vm4, %v1478_v21, -inf  ;;  %v1050_v58 = vadd.f32 %v11762_v9, %v1049_v53 }
 0x16e   :  { %v12368_v52 = vmax.f32 %v1661_v51, %v1662_v13  ;;  %v1481_v57 = vmax.f32 %v1055_v47, 0.0  ;;  %v2612_v13 = vld [vmem:[%s15750_s3 + $0x28] sm:$0xff] }
 0x16f   :  { %v1480_v35 = vmax.f32 %v1050_v58, 0.0  ;;  %v10117_v45 = vpop.f32.mrb[74].mxu0 }
 0x170   :  { %v1713_v8 = vsel %vm1552_vm4, %v1481_v57, -inf  ;;  %v1065_v12 = vadd.f32 %v10117_v45, %v11762_v9  ;;  %v1059_v28 = vpop.f32.mrb[75].mxu0 }
 0x171   :  { %v12375_v6 = vmax.f32 %v1712_v63, %v1713_v8  ;;  %v1696_v38 = vsel %vm1552_vm4, %v1480_v35, -inf  ;;  %v1060_v55 = vadd.f32 %v11762_v9, %v1059_v28  ;;  %v10268_v35 = vpack.c.bf16 %v2612_v13, %v2611_v49 }
 0x172   :  { %v12382_v7 = vmax.f32 %v1695_v0, %v1696_v38  ;;  %v1483_v59 = vmax.f32 %v1065_v12, 0.0 }
 0x173   :  { %v1482_v51 = vmax.f32 %v1060_v55, 0.0  ;;  %v10120_v61 = vpop.f32.mrb[76].mxu0 }
 0x174   :  { %v1747_v2 = vsel %vm1552_vm4, %v1483_v59, -inf  ;;  %v1075_v39 = vadd.f32 %v10120_v61, %v11762_v9  ;;  %v1069_v48 = vpop.f32.mrb[77].mxu0 }
 0x175   :  { %v12389_v27 = vmax.f32 %v1746_v41, %v1747_v2  ;;  %v1730_v26 = vsel %vm1552_vm4, %v1482_v51, -inf  ;;  %v1070_v63 = vadd.f32 %v11762_v9, %v1069_v48 }
 0x176   :  { %v12396_v33 = vmax.f32 %v1729_v50, %v1730_v26  ;;  %v1485_v24 = vmax.f32 %v1075_v39, 0.0 }
 0x177   :  { %v1484_v0 = vmax.f32 %v1070_v63, 0.0  ;;  %v10123_v37 = vpop.f32.mrb[78].mxu0 }
 0x178   :  { %v1781_v42 = vsel %vm1552_vm4, %v1485_v24, -inf  ;;  %v1085_v4 = vadd.f32 %v10123_v37, %v11762_v9  ;;  %v1079_v5 = vpop.f32.mrb[79].mxu0 }
 0x179   :  { %v12403_v56 = vmax.f32 %v1780_v34, %v1781_v42  ;;  %v1764_v25 = vsel %vm1552_vm4, %v1484_v0, -inf  ;;  %v1080_v41 = vadd.f32 %v11762_v9, %v1079_v5 }
 0x17a   :  { %v12410_v3 = vmax.f32 %v1763_v60, %v1764_v25  ;;  %v1487_v36 = vmax.f32 %v1085_v4, 0.0 }
 0x17b   :  { %v1486_v50 = vmax.f32 %v1080_v41, 0.0  ;;  %v10126_v16 = vpop.f32.mrb[80].mxu0 }
 0x17c   :  { %v1815_v23 = vsel %vm1552_vm4, %v1487_v36, -inf  ;;  %v1095_v30 = vadd.f32 %v10126_v16, %v11762_v9  ;;  %v1089_v17 = vpop.f32.mrb[81].mxu0 }
 0x17d   :  { %v12417_v19 = vmax.f32 %v1814_v31, %v1815_v23  ;;  %v1798_v54 = vsel %vm1552_vm4, %v1486_v50, -inf  ;;  %v1090_v34 = vadd.f32 %v11762_v9, %v1089_v17  ;;  %v2628_v31 = vld [vmem:[%s15750_s3 + $0xa8] sm:$0xff] }
 0x17e   :  { %v12424_v20 = vmax.f32 %v1797_v43, %v1798_v54  ;;  %v1489_v40 = vmax.f32 %v1095_v30, 0.0  ;;  %v10266_v53 = vpack.c.bf16 %v2628_v31, %v2627_v1 }
 0x17f   :  { %v1488_v60 = vmax.f32 %v1090_v34, 0.0  ;;  %v10129_v21 = vpop.f32.mrb[82].mxu0 }
 0x180   :  { %v12427_v14 = vsel %vm1552_vm4, %v1489_v40, -inf  ;;  %v1105_v29 = vadd.f32 %v10129_v21, %v11762_v9  ;;  %v1099_v44 = vpop.f32.mrb[83].mxu0  ;;  %10267 = vmatprep.subr.bf16.mxu0 %v10266_v53 }
 0x181   :  { %v1580_v18 = vmax.f32 %v12303_v10, %v12427_v14  ;;  %v12442_v43 = vsel %vm1552_vm4, %v1488_v60, -inf  ;;  %v1100_v47 = vadd.f32 %v11762_v9, %v1099_v44  ;;  %v12456_v9 = vld [vmem:[%s15749_s2] ss:$0 sm:$0xff]  ;;  %10269 = vmatpush3.bf16.msra.mxu0 %v10268_v35  ;;  %v2630_v10 = vld [vmem:[%s15750_s3 + $0xb8] sm:$0xff]  ;;  %v2613_v14 = vld [vmem:[%s15750_s3 + $0x30] sm:$0xff] }
 0x182   :  { %v1563_v58 = vmax.f32 %v12310_v15, %v12442_v43  ;;  %v1491_v57 = vmax.f32 %v1105_v29, 0.0 }
 0x183   :  { %v1490_v45 = vmax.f32 %v1100_v47, 0.0  ;;  %v10132_v8 = vpop.f32.mrb[84].mxu0 }
 0x184   :  { %v12451_v12 = vsel %vm1552_vm4, %v1491_v57, -inf  ;;  %v1115_v28 = vadd.f32 %v12456_v9, %v10132_v8  ;;  %v1109_v38 = vpop.f32.mrb[85].mxu0 }
 0x185   :  { %v1614_v55 = vmax.f32 %v12325_v22, %v12451_v12  ;;  %v12462_v59 = vsel %vm1552_vm4, %v1490_v45, -inf  ;;  %v1110_v51 = vadd.f32 %v12456_v9, %v1109_v38 }
 0x186   :  { %v1597_v61 = vmax.f32 %v12332_v11, %v12462_v59  ;;  %v1493_v2 = vmax.f32 %v1115_v28, 0.0 }
 0x187   :  { %v1492_v39 = vmax.f32 %v1110_v51, 0.0  ;;  %v10135_v48 = vpop.f32.mrb[86].mxu0 }
 0x188   :  { %v12468_v26 = vsel %vm1552_vm4, %v1493_v2, -inf  ;;  %v1125_v63 = vadd.f32 %v12456_v9, %v10135_v48  ;;  %v1119_v24 = vpop.f32.mrb[87].mxu0 }
 0x189   :  { %v1648_v0 = vmax.f32 %v12347_v32, %v12468_v26  ;;  %v12474_v37 = vsel %vm1552_vm4, %v1492_v39, -inf  ;;  %v1120_v42 = vadd.f32 %v12456_v9, %v1119_v24 }
 0x18a   :  { %v1631_v4 = vmax.f32 %v12354_v46, %v12474_v37  ;;  %v1495_v5 = vmax.f32 %v1125_v63, 0.0 }
 0x18b   :  { %v1494_v25 = vmax.f32 %v1120_v42, 0.0  ;;  %v10138_v41 = vpop.f32.mrb[88].mxu0 }
 0x18c   :  { %v12480_v36 = vsel %vm1552_vm4, %v1495_v5, -inf  ;;  %v1135_v50 = vadd.f32 %v12456_v9, %v10138_v41  ;;  %v1129_v16 = vpop.f32.mrb[89].mxu0 }
 0x18d   :  { %v1682_v23 = vmax.f32 %v12361_v62, %v12480_v36  ;;  %v12486_v30 = vsel %vm1552_vm4, %v1494_v25, -inf  ;;  %v1130_v17 = vadd.f32 %v12456_v9, %v1129_v16 }
 0x18e   :  { %v1665_v54 = vmax.f32 %v12368_v52, %v12486_v30  ;;  %v1497_v34 = vmax.f32 %v1135_v50, 0.0 }
 0x18f   :  { %v1496_v40 = vmax.f32 %v1130_v17, 0.0  ;;  %v10141_v60 = vpop.f32.mrb[90].mxu0 }
 0x190   :  { %v12492_v21 = vsel %vm1552_vm4, %v1497_v34, -inf  ;;  %v1145_v29 = vadd.f32 %v12456_v9, %v10141_v60  ;;  %v1139_v44 = vpop.f32.mrb[91].mxu0 }
 0x191   :  { %v1716_v1 = vmax.f32 %v12375_v6, %v12492_v21  ;;  %v12498_v31 = vsel %vm1552_vm4, %v1496_v40, -inf  ;;  %v1140_v49 = vadd.f32 %v12456_v9, %v1139_v44 }
 0x192   :  { %v1699_v47 = vmax.f32 %v12382_v7, %v12498_v31  ;;  %v1499_v53 = vmax.f32 %v1145_v29, 0.0 }
 0x193   :  { %v1498_v13 = vmax.f32 %v1140_v49, 0.0  ;;  %v10144_v57 = vpop.f32.mrb[92].mxu0 }
 0x194   :  { %v12504_v35 = vsel %vm1552_vm4, %v1499_v53, -inf  ;;  %v1155_v45 = vadd.f32 %v12456_v9, %v10144_v57  ;;  %v1149_v8 = vpop.f32.mrb[93].mxu0 }
 0x195   :  { %v1750_v28 = vmax.f32 %v12389_v27, %v12504_v35  ;;  %v12510_v38 = vsel %vm1552_vm4, %v1498_v13, -inf  ;;  %v1150_v51 = vadd.f32 %v12456_v9, %v1149_v8 }
 0x196   :  { %v1733_v2 = vmax.f32 %v12396_v33, %v12510_v38  ;;  %v1501_v39 = vmax.f32 %v1155_v45, 0.0 }
 0x197   :  { %v1500_v48 = vmax.f32 %v1150_v51, 0.0  ;;  %v10147_v63 = vpop.f32.mrb[94].mxu0 }
 0x198   :  { %v12516_v24 = vsel %vm1552_vm4, %v1501_v39, -inf  ;;  %v1165_v42 = vadd.f32 %v12456_v9, %v10147_v63  ;;  %v1159_v5 = vpop.f32.mrb[95].mxu0 }
 0x199   :  { %v1784_v25 = vmax.f32 %v12403_v56, %v12516_v24  ;;  %v12522_v41 = vsel %vm1552_vm4, %v1500_v48, -inf  ;;  %v1160_v50 = vadd.f32 %v12456_v9, %v1159_v5 }
 0x19a   :  { %v1767_v16 = vmax.f32 %v12410_v3, %v12522_v41  ;;  %v1503_v17 = vmax.f32 %v1165_v42, 0.0 }
 0x19b   :  { %v1502_v34 = vmax.f32 %v1160_v50, 0.0  ;;  %v10150_v40 = vpop.f32.mrb[96].mxu0 }
 0x19c   :  { %v12528_v60 = vsel %vm1552_vm4, %v1503_v17, -inf  ;;  %v1175_v29 = vadd.f32 %v12456_v9, %v10150_v40  ;;  %v1169_v44 = vpop.f32.mrb[97].mxu0 }
 0x19d   :  { %v1818_v49 = vmax.f32 %v12417_v19, %v12528_v60  ;;  %v12534_v53 = vsel %vm1552_vm4, %v1502_v34, -inf  ;;  %v1170_v13 = vadd.f32 %v12456_v9, %v1169_v44  ;;  %v2629_v44 = vld [vmem:[%s15750_s3 + $0xb0] sm:$0xff] }
 0x19e   :  { %v1801_v57 = vmax.f32 %v12424_v20, %v12534_v53  ;;  %v1505_v45 = vmax.f32 %v1175_v29, 0.0 }
 0x19f   :  { %v1504_v8 = vmax.f32 %v1170_v13, 0.0  ;;  %v10153_v51 = vpop.f32.mrb[98].mxu0  ;;  %v2614_v13 = vld [vmem:[%s15750_s3 + $0x38] sm:$0xff] }
 0x1a0   :  { %v1581_v39 = vsel %vm1552_vm4, %v1505_v45, -inf  ;;  %v1185_v48 = vadd.f32 %v12456_v9, %v10153_v51  ;;  %v1179_v63 = vpop.f32.mrb[99].mxu0 }
 0x1a1   :  { %v12544_v42 = vmax.f32 %v1580_v18, %v1581_v39  ;;  %v1564_v5 = vsel %vm1552_vm4, %v1504_v8, -inf  ;;  %v1180_v50 = vadd.f32 %v12456_v9, %v1179_v63  ;;  %v10272_v39 = vpack.c.bf16 %v2614_v13, %v2613_v14 }
 0x1a2   :  { %v12551_v17 = vmax.f32 %v1563_v58, %v1564_v5  ;;  %v1507_v34 = vmax.f32 %v1185_v48, 0.0  ;;  %v10270_v58 = vpack.c.bf16 %v2630_v10, %v2629_v44 }
 0x1a3   :  { %v1506_v40 = vmax.f32 %v1180_v50, 0.0  ;;  %v10156_v29 = vpop.f32.mrb[100].mxu0 }
 0x1a4   :  { %v1615_v18 = vsel %vm1552_vm4, %v1507_v34, -inf  ;;  %v1195_v15 = vadd.f32 %v12456_v9, %v10156_v29  ;;  %v1189_v43 = vpop.f32.mrb[101].mxu0  ;;  %10271 = vmatprep.subr.bf16.mxu0 %v10270_v58 }
 0x1a5   :  { %v12570_v45 = vmax.f32 %v1614_v55, %v1615_v18  ;;  %v1598_v8 = vsel %vm1552_vm4, %v1506_v40, -inf  ;;  %v1190_v51 = vadd.f32 %v12456_v9, %v1189_v43  ;;  %10273 = vmatpush3.bf16.msra.mxu0 %v10272_v39 }
 0x1a6   :  { %v12577_v48 = vmax.f32 %v1597_v61, %v1598_v8  ;;  %v1509_v63 = vmax.f32 %v1195_v15, 0.0 }
 0x1a7   :  { %v1508_v5 = vmax.f32 %v1190_v51, 0.0  ;;  %v10159_v50 = vpop.f32.mrb[102].mxu0 }
 0x1a8   :  { %v1649_v34 = vsel %vm1552_vm4, %v1509_v63, -inf  ;;  %v1205_v22 = vadd.f32 %v12456_v9, %v10159_v50  ;;  %v1199_v12 = vpop.f32.mrb[103].mxu0 }
 0x1a9   :  { %v12584_v55 = vmax.f32 %v1648_v0, %v1649_v34  ;;  %v1632_v40 = vsel %vm1552_vm4, %v1508_v5, -inf  ;;  %v1200_v11 = vadd.f32 %v12456_v9, %v1199_v12 }
 0x1aa   :  { %v12591_v59 = vmax.f32 %v1631_v4, %v1632_v40  ;;  %v1511_v61 = vmax.f32 %v1205_v22, 0.0 }
 0x1ab   :  { %v1510_v29 = vmax.f32 %v1200_v11, 0.0  ;;  %v10162_v44 = vpop.f32.mrb[104].mxu0 }
 0x1ac   :  { %v1683_v10 = vsel %vm1552_vm4, %v1511_v61, -inf  ;;  %v1215_v14 = vadd.f32 %v12456_v9, %v10162_v44  ;;  %v1209_v18 = vpop.f32.mrb[105].mxu0 }
 0x1ad   :  { %v12598_v32 = vmax.f32 %v1682_v23, %v1683_v10  ;;  %v1666_v26 = vsel %vm1552_vm4, %v1510_v29, -inf  ;;  %v1210_v0 = vadd.f32 %v12456_v9, %v1209_v18 }
 0x1ae   :  { %v12605_v46 = vmax.f32 %v1665_v54, %v1666_v26  ;;  %v1513_v37 = vmax.f32 %v1215_v14, 0.0 }
 0x1af   :  { %v1512_v4 = vmax.f32 %v1210_v0, 0.0  ;;  %v10165_v15 = vpop.f32.mrb[106].mxu0 }
 0x1b0   :  { %v1717_v43 = vsel %vm1552_vm4, %v1513_v37, -inf  ;;  %v1225_v58 = vadd.f32 %v12456_v9, %v10165_v15  ;;  %v1219_v13 = vpop.f32.mrb[107].mxu0 }
 0x1b1   :  { %v12612_v62 = vmax.f32 %v1716_v1, %v1717_v43  ;;  %v1700_v36 = vsel %vm1552_vm4, %v1512_v4, -inf  ;;  %v1220_v23 = vadd.f32 %v12456_v9, %v1219_v13 }
 0x1b2   :  { %v12619_v52 = vmax.f32 %v1699_v47, %v1700_v36  ;;  %v1515_v30 = vmax.f32 %v1225_v58, 0.0 }
 0x1b3   :  { %v1514_v54 = vmax.f32 %v1220_v23, 0.0  ;;  %v10168_v8 = vpop.f32.mrb[108].mxu0 }
 0x1b4   :  { %v1751_v51 = vsel %vm1552_vm4, %v1515_v30, -inf  ;;  %v1235_v39 = vadd.f32 %v12456_v9, %v10168_v8  ;;  %v1229_v63 = vpop.f32.mrb[109].mxu0  ;;  %v2631_v30 = vld [vmem:[%s15750_s3 + $0xc0] sm:$0xff] }
 0x1b5   :  { %v12626_v6 = vmax.f32 %v1750_v28, %v1751_v51  ;;  %v1734_v21 = vsel %vm1552_vm4, %v1514_v54, -inf  ;;  %v1230_v1 = vadd.f32 %v12456_v9, %v1229_v63  ;;  %v2632_v54 = vld [vmem:[%s15750_s3 + $0xc8] sm:$0xff]  ;;  %v2615_v8 = vld [vmem:[%s15750_s3 + $0x40] sm:$0xff] }
 0x1b6   :  { %v12633_v7 = vmax.f32 %v1733_v2, %v1734_v21  ;;  %v1517_v31 = vmax.f32 %v1235_v39, 0.0  ;;  %v10274_v21 = vpack.c.bf16 %v2632_v54, %v2631_v30  ;;  %v1891_v30 = vld [vmem:[#allocation2 + $0xa0] sm:$0xff] }
 0x1b7   :  { %v1516_v47 = vmax.f32 %v1230_v1, 0.0  ;;  %v10171_v5 = vpop.f32.mrb[110].mxu0  ;;  %v2616_v1 = vld [vmem:[%s15750_s3 + $0x48] sm:$0xff]  ;;  %1907 = vst.msk [vmem:[#allocation3 + $0xc0] sm:$0xff] %vm1552_vm4, %v1891_v30 }
 0x1b8   :  { %v1785_v50 = vsel %vm1552_vm4, %v1517_v31, -inf  ;;  %v1245_v34 = vadd.f32 %v12456_v9, %v10171_v5  ;;  %v1239_v22 = vpop.f32.mrb[111].mxu0  ;;  %10275 = vmatprep.subr.bf16.mxu0 %v10274_v21 }
 0x1b9   :  { %v12640_v27 = vmax.f32 %v1784_v25, %v1785_v50  ;;  %v1768_v35 = vsel %vm1552_vm4, %v1516_v47, -inf  ;;  %v1240_v28 = vadd.f32 %v12456_v9, %v1239_v22  ;;  %v10276_v50 = vpack.c.bf16 %v2616_v1, %v2615_v8 }
 0x1ba   :  { %v12647_v33 = vmax.f32 %v1767_v16, %v1768_v35  ;;  %v1519_v38 = vmax.f32 %v1245_v34, 0.0 }
 0x1bb   :  { %v1518_v2 = vmax.f32 %v1240_v28, 0.0  ;;  %v10174_v12 = vpop.f32.mrb[112].mxu0  ;;  %10277 = vmatpush3.bf16.msra.mxu0 %v10276_v50 }
 0x1bc   :  { %v1819_v40 = vsel %vm1552_vm4, %v1519_v38, -inf  ;;  %v1255_v11 = vadd.f32 %v12456_v9, %v10174_v12  ;;  %v1249_v61 = vpop.f32.mrb[113].mxu0 }
 0x1bd   :  { %v12654_v56 = vmax.f32 %v1818_v49, %v1819_v40  ;;  %v1802_v24 = vsel %vm1552_vm4, %v1518_v2, -inf  ;;  %v1250_v25 = vadd.f32 %v12456_v9, %v1249_v61 }
 0x1be   :  { %v12661_v3 = vmax.f32 %v1801_v57, %v1802_v24  ;;  %v1521_v41 = vmax.f32 %v1255_v11, 0.0 }
 0x1bf   :  { %v1520_v16 = vmax.f32 %v1250_v25, 0.0  ;;  %v10177_v29 = vpop.f32.mrb[114].mxu0 }
 0x1c0   :  { %v12664_v44 = vsel %vm1552_vm4, %v1521_v41, -inf  ;;  %v1265_v10 = vadd.f32 %v12456_v9, %v10177_v29  ;;  %v1259_v19 = vpop.f32.mrb[115].mxu0  ;;  %v1883_v29 = vld [vmem:[#allocation2] sm:$0xff] }
 0x1c1   :  { %v1584_v60 = vmax.f32 %v12544_v42, %v12664_v44  ;;  %v12670_v49 = vsel %vm1552_vm4, %v1520_v16, -inf  ;;  %v1260_v14 = vadd.f32 %v12456_v9, %v1259_v19  ;;  %1899 = vst.msk [vmem:[#allocation3] sm:$0xff] %vm1552_vm4, %v1883_v29 }
 0x1c2   :  { %v1567_v20 = vmax.f32 %v12551_v17, %v12670_v49  ;;  %v1523_v53 = vmax.f32 %v1265_v10, 0.0 }
 0x1c3   :  { %v1522_v57 = vmax.f32 %v1260_v14, 0.0  ;;  %v10180_v18 = vpop.f32.mrb[116].mxu0 }
 0x1c4   :  { %v12676_v26 = vsel %vm1552_vm4, %v1523_v53, -inf  ;;  %v1275_v0 = vadd.f32 %v12456_v9, %v10180_v18  ;;  %v1269_v37 = vpop.f32.mrb[117].mxu0 }
 0x1c5   :  { %v1618_v4 = vmax.f32 %v12570_v45, %v12676_v26  ;;  %v12682_v15 = vsel %vm1552_vm4, %v1522_v57, -inf  ;;  %v1270_v43 = vadd.f32 %v12456_v9, %v1269_v37  ;;  %v2634_v45 = vld [vmem:[%s15750_s3 + $0xd8] sm:$0xff] }
 0x1c6   :  { %v1601_v58 = vmax.f32 %v12577_v48, %v12682_v15  ;;  %v1525_v13 = vmax.f32 %v1275_v0, 0.0 }
 0x1c7   :  { %v1524_v36 = vmax.f32 %v1270_v43, 0.0  ;;  %v10183_v23 = vpop.f32.mrb[118].mxu0 }
 0x1c8   :  { %v12697_v51 = vsel %vm1552_vm4, %v1525_v13, -inf  ;;  %v1285_v39 = vadd.f32 %v12456_v9, %v10183_v23  ;;  %v1279_v63 = vpop.f32.mrb[119].mxu0 }
 0x1c9   :  { %v1652_v31 = vmax.f32 %v12584_v55, %v12697_v51  ;;  %v12706_v47 = vsel %vm1552_vm4, %v1524_v36, -inf  ;;  %v1280_v5 = vadd.f32 %v12456_v9, %v1279_v63 }
 0x1ca   :  { %v1635_v34 = vmax.f32 %v12591_v59, %v12706_v47  ;;  %v1527_v22 = vmax.f32 %v1285_v39, 0.0 }
 0x1cb   :  { %v1526_v35 = vmax.f32 %v1280_v5, 0.0  ;;  %v10186_v28 = vpop.f32.mrb[120].mxu0  ;;  %v2045_v0 = vpop.permute.xlu1 %2044 }
 0x1cc   :  { %v12712_v38 = vsel %vm1552_vm4, %v1527_v22, -inf  ;;  %v1295_v2 = vadd.f32 %v12456_v9, %v10186_v28  ;;  %v1289_v12 = vpop.f32.mrb[121].mxu0  ;;  %v1948_v37 = vpop.permute.xlu0 %1947 }
 0x1cd   :  { %v1686_v40 = vmax.f32 %v12598_v32, %v12712_v38  ;;  %v12718_v11 = vsel %vm1552_vm4, %v1526_v35, -inf  ;;  %v1290_v61 = vadd.f32 %v12456_v9, %v1289_v12  ;;  %1996 = vst.msk [vmem:[#allocation3] sm:$0xff] %vm1995_vm6, %v1948_v37 }
 0x1ce   :  { %v1669_v24 = vmax.f32 %v12605_v46, %v12718_v11  ;;  %v1529_v25 = vmax.f32 %v1295_v2, 0.0  ;;  %2093 = vst.msk [vmem:[#allocation3] sm:$0xff] %vm2092_vm7, %v2045_v0 }
 0x1cf   :  { %v1528_v41 = vmax.f32 %v1290_v61, 0.0  ;;  %v10189_v16 = vpop.f32.mrb[122].mxu0 }
 0x1d0   :  { %v12724_v10 = vsel %vm1552_vm4, %v1529_v25, -inf  ;;  %v1305_v19 = vadd.f32 %v12456_v9, %v10189_v16  ;;  %v1299_v14 = vpop.f32.mrb[123].mxu0  ;;  %v1964_v5 = vpop.permute.xlu1 %1963 }
 0x1d1   :  { %v1720_v53 = vmax.f32 %v12612_v62, %v12724_v10  ;;  %v12731_v57 = vsel %vm1552_vm4, %v1528_v41, -inf  ;;  %v1300_v18 = vadd.f32 %v12456_v9, %v1299_v14  ;;  %2004 = vst.msk [vmem:[#allocation3 + $0xc0] sm:$0xff] %vm1995_vm6, %v1964_v5 }
 0x1d2   :  { %v1703_v43 = vmax.f32 %v12619_v52, %v12731_v57  ;;  %v1531_v13 = vmax.f32 %v1305_v19, 0.0 }
 0x1d3   :  { %v1530_v36 = vmax.f32 %v1300_v18, 0.0  ;;  %v10192_v23 = vpop.f32.mrb[124].mxu0 }
 0x1d4   :  { %v12739_v54 = vsel %vm1552_vm4, %v1531_v13, -inf  ;;  %v1315_v8 = vadd.f32 %v12456_v9, %v10192_v23  ;;  %v1309_v39 = vpop.f32.mrb[125].mxu0  ;;  %v2061_v29 = vpop.permute.xlu1 %2060 }
 0x1d5   :  { %v1754_v63 = vmax.f32 %v12626_v6, %v12739_v54  ;;  %v12746_v21 = vsel %vm1552_vm4, %v1530_v36, -inf  ;;  %v1310_v1 = vadd.f32 %v12456_v9, %v1309_v39  ;;  %2101 = vst.msk [vmem:[#allocation3 + $0xc0] sm:$0xff] %vm2092_vm7, %v2061_v29 }
 0x1d6   :  { %v1737_v50 = vmax.f32 %v12633_v7, %v12746_v21  ;;  %v1533_v22 = vmax.f32 %v1315_v8, 0.0 }
 0x1d7   :  { %v1532_v35 = vmax.f32 %v1310_v1, 0.0  ;;  %v10195_v28 = vpop.f32.mrb[126].mxu0 }
 0x1d8   :  { %v12753_v2 = vsel %vm1552_vm4, %v1533_v22, -inf  ;;  %v1325_v12 = vadd.f32 %v12456_v9, %v10195_v28  ;;  %v1319_v61 = vpop.f32.mrb[127].mxu0 }
 0x1d9   :  { %v1788_v25 = vmax.f32 %v12640_v27, %v12753_v2  ;;  %v12759_v41 = vsel %vm1552_vm4, %v1532_v35, -inf  ;;  %v1320_v16 = vadd.f32 %v12456_v9, %v1319_v61 }
 0x1da   :  { %v1771_v19 = vmax.f32 %v12647_v33, %v12759_v41  ;;  %v1535_v14 = vmax.f32 %v1325_v12, 0.0 }
 0x1db   :  { %v1534_v18 = vmax.f32 %v1320_v16, 0.0  ;;  %v10198_v0 = vpop.f32.mrb[128].mxu0 }
 0x1dc   :  { %v12766_v37 = vsel %vm1552_vm4, %v1535_v14, -inf  ;;  %v1335_v13 = vadd.f32 %v12456_v9, %v10198_v0  ;;  %v1329_v36 = vpop.f32.mrb[129].mxu0 }
 0x1dd   :  { %v1822_v23 = vmax.f32 %v12654_v56, %v12766_v37  ;;  %v12772_v30 = vsel %vm1552_vm4, %v1534_v18, -inf  ;;  %v1330_v8 = vadd.f32 %v12456_v9, %v1329_v36 }
 0x1de   :  { %v1805_v39 = vmax.f32 %v12661_v3, %v12772_v30  ;;  %v1537_v1 = vmax.f32 %v1335_v13, 0.0 }
 0x1df   :  { %v1536_v5 = vmax.f32 %v1330_v8, 0.0  ;;  %v10201_v22 = vpop.f32.mrb[130].mxu0 }
 0x1e0   :  { %v1585_v35 = vsel %vm1552_vm4, %v1537_v1, -inf  ;;  %v1345_v28 = vadd.f32 %v12456_v9, %v10201_v22  ;;  %v1339_v12 = vpop.f32.mrb[131].mxu0  ;;  %v2633_v22 = vld [vmem:[%s15750_s3 + $0xd0] sm:$0xff] }
 0x1e1   :  { %v1586_v61 = vmax.f32 %v1584_v60, %v1585_v35  ;;  %v1568_v16 = vsel %vm1552_vm4, %v1536_v5, -inf  ;;  %v1340_v29 = vadd.f32 %v12456_v9, %v1339_v12  ;;  %v10278_v15 = vpack.c.bf16 %v2634_v45, %v2633_v22  ;;  %v2618_v35 = vld [vmem:[%s15750_s3 + $0x58] sm:$0xff] }
 0x1e2   :  { %v1569_v14 = vmax.f32 %v1567_v20, %v1568_v16  ;;  %v1539_v18 = vmax.f32 %v1345_v28, 0.0 }
 0x1e3   :  { %1868 = vst.msk [vmem:[#allocation2 + $0x21] sm:$0xff] %vm1552_vm4, %v1586_v61  ;;  %v1538_v0 = vmax.f32 %v1340_v29, 0.0  ;;  %v10204_v13 = vpop.f32.mrb[132].mxu0  ;;  %10279 = vmatprep.subr.bf16.mxu0 %v10278_v15 }
 0x1e4   :  { %1867 = vst.msk [vmem:[#allocation2 + $0x11] sm:$0xff] %vm1552_vm4, %v1569_v14  ;;  %v1619_v36 = vsel %vm1552_vm4, %v1539_v18, -inf  ;;  %v1355_v42 = vadd.f32 %v12456_v9, %v10204_v13  ;;  %v1349_v44 = vpop.f32.mrb[133].mxu0 }
 0x1e5   :  { %v1620_v60 = vmax.f32 %v1618_v4, %v1619_v36  ;;  %v1602_v8 = vsel %vm1552_vm4, %v1538_v0, -inf  ;;  %v1350_v17 = vadd.f32 %v12456_v9, %v1349_v44  ;;  %v2635_v36 = vld [vmem:[%s15750_s3 + $0xe0] sm:$0xff] }
 0x1e6   :  { %v1603_v49 = vmax.f32 %v1601_v58, %v1602_v8  ;;  %v1541_v20 = vmax.f32 %v1355_v42, 0.0  ;;  %v2617_v58 = vld [vmem:[%s15750_s3 + $0x50] sm:$0xff]  ;;  %v2636_v42 = vld [vmem:[%s15750_s3 + $0xe8] sm:$0xff]  ;;  %v2619_v44 = vld [vmem:[%s15750_s3 + $0x60] sm:$0xff] }
 0x1e7   :  { %1870 = vst.msk [vmem:[#allocation2 + $0x41] sm:$0xff] %vm1552_vm4, %v1620_v60  ;;  %v1540_v1 = vmax.f32 %v1350_v17, 0.0  ;;  %v10207_v5 = vpop.f32.mrb[134].mxu0  ;;  %v10280_v16 = vpack.c.bf16 %v2618_v35, %v2617_v58  ;;  %v2637_v58 = vld [vmem:[%s15750_s3 + $0xf0] sm:$0xff]  ;;  %v2638_v35 = vld [vmem:[%s15750_s3 + $0xf8] sm:$0xff] }
 0x1e8   :  { %1869 = vst.msk [vmem:[#allocation2 + $0x31] sm:$0xff] %vm1552_vm4, %v1603_v49  ;;  %v1653_v26 = vsel %vm1552_vm4, %v1541_v20, -inf  ;;  %v1365_v48 = vadd.f32 %v12456_v9, %v10207_v5  ;;  %v1359_v4 = vpop.f32.mrb[135].mxu0  ;;  %v10282_v49 = vpack.c.bf16 %v2636_v42, %v2635_v36  ;;  %v2620_v20 = vld [vmem:[%s15750_s3 + $0x68] sm:$0xff] }
 0x1e9   :  { %v1654_v28 = vmax.f32 %v1652_v31, %v1653_v26  ;;  %v1636_v12 = vsel %vm1552_vm4, %v1540_v1, -inf  ;;  %v1360_v61 = vadd.f32 %v12456_v9, %v1359_v4  ;;  %10281 = vmatpush3.bf16.msra.mxu0 %v10280_v16  ;;  %v10284_v38 = vpack.c.bf16 %v2620_v20, %v2619_v44 }
 0x1ea   :  { %v1637_v29 = vmax.f32 %v1635_v34, %v1636_v12  ;;  %v1543_v14 = vmax.f32 %v1365_v48, 0.0  ;;  %v12823_v18 = vld [vmem:[#allocation2 + $0x21] sm:$0xff]  ;;  %10283 = vmatprep.subr.bf16.mxu0 %v10282_v49 }
 0x1eb   :  { %v2335_v0 = vld [vmem:[#allocation2 + $0x20] sm:$0xff]  ;;  %1872 = vst.msk [vmem:[#allocation2 + $0x61] sm:$0xff] %vm1552_vm4, %v1654_v28  ;;  %v1542_v13 = vmax.f32 %v1360_v61, 0.0  ;;  %2463 = vrot.lane.b32.xlu0 %v12823_v18, %s11204_s12  ;;  %v10210_v55 = vpop.f32.mrb[136].mxu0  ;;  %v12829_v51 = vld [vmem:[#allocation2 + $0x10] sm:$0xff]  ;;  %2223 = vst.msk [vmem:[#allocation3 + $0x20] sm:$0xff] %vm1552_vm4, %v12823_v18 }
 0x1ec   :  { %2367 = vrot.lane.b32.xlu1 %v2335_v0, %s11202_s23  ;;  %v12831_v31 = vld [vmem:[#allocation2 + $0x11] sm:$0xff]  ;;  %1901 = vst.msk [vmem:[#allocation3 + $0x30] sm:$0xff] %vm1552_vm4, %v2335_v0  ;;  %1871 = vst.msk [vmem:[#allocation2 + $0x51] sm:$0xff] %vm1552_vm4, %v1637_v29  ;;  %v1687_v59 = vsel %vm1552_vm4, %v1543_v14, -inf  ;;  %v1375_v47 = vadd.f32 %v12456_v9, %v10210_v55  ;;  %v1369_v34 = vpop.f32.mrb[137].mxu0  ;;  %v2527_v1 = vld [vmem:[#allocation2 + $0x22] sm:$0xff]  ;;  %v10286_v29 = vpack.c.bf16 %v2638_v35, %v2637_v58 }
 0x1ed   :  { %2222 = vst.msk [vmem:[#allocation3 + $0x8] sm:$0xff] %vm1552_vm4, %v12831_v31  ;;  %1900 = vst.msk [vmem:[#allocation3 + $0x18] sm:$0xff] %vm1552_vm4, %v12829_v51  ;;  %v1688_v60 = vmax.f32 %v1686_v40, %v1687_v59  ;;  %v1670_v8 = vsel %vm1552_vm4, %v1542_v13, -inf  ;;  %v1370_v17 = vadd.f32 %v12456_v9, %v1369_v34  ;;  %v12863_v45 = vld [vmem:[#allocation2 + $0x22] sm:$0xff]  ;;  %v2621_v28 = vld [vmem:[%s15750_s3 + $0x70] sm:$0xff]  ;;  %10285 = vmatpush3.bf16.msra.mxu0 %v10284_v38 }
 0x1ee   :  { %v1671_v5 = vmax.f32 %v1669_v24, %v1670_v8  ;;  %v1545_v22 = vmax.f32 %v1375_v47, 0.0  ;;  %v12865_v26 = vld [vmem:[#allocation2 + $0x40] sm:$0xff]  ;;  %2543 = vst.msk [vmem:[#allocation3 + $0x10] sm:$0xff] %vm1552_vm4, %v2527_v1  ;;  %v2622_v14 = vld [vmem:[%s15750_s3 + $0x78] sm:$0xff]  ;;  %10287 = vmatprep.subr.bf16.mxu0 %v10286_v29 }
 0x1ef   :  { %v12867_v32 = vld [vmem:[#allocation2 + $0x41] sm:$0xff]  ;;  %1874 = vst.msk [vmem:[#allocation2 + $0x81] sm:$0xff] %vm1552_vm4, %v1688_v60  ;;  %v1544_v40 = vmax.f32 %v1370_v17, 0.0  ;;  %2272 = vrot.lane.b32.xlu0 %v12863_v45, %s11203_s24  ;;  %v10213_v46 = vpop.f32.mrb[138].mxu0  ;;  %v12874_v11 = vld [vmem:[#allocation2 + $0x30] sm:$0xff]  ;;  %1903 = vst.msk [vmem:[#allocation3 + $0x60] sm:$0xff] %vm1552_vm4, %v12865_v26 }
 0x1f0   :  { %2143 = vrot.lane.b32.xlu1 %v2335_v0, %s11204_s12  ;;  %v12876_v24 = vld [vmem:[#allocation2 + $0x31] sm:$0xff]  ;;  %2225 = vst.msk [vmem:[#allocation3 + $0x50] sm:$0xff] %vm1552_vm4, %v12867_v32  ;;  %1873 = vst.msk [vmem:[#allocation2 + $0x71] sm:$0xff] %vm1552_vm4, %v1671_v5  ;;  %v1721_v48 = vsel %vm1552_vm4, %v1545_v22, -inf  ;;  %v1385_v4 = vadd.f32 %v12456_v9, %v10213_v46  ;;  %v1379_v15 = vpop.f32.mrb[139].mxu0  ;;  %v2529_v13 = vld [vmem:[#allocation2 + $0x42] sm:$0xff] }
 0x1f1   :  { %2224 = vst.msk [vmem:[#allocation3 + $0x38] sm:$0xff] %vm1552_vm4, %v12876_v24  ;;  %1902 = vst.msk [vmem:[#allocation3 + $0x48] sm:$0xff] %vm1552_vm4, %v12874_v11  ;;  %v1722_v12 = vmax.f32 %v1720_v53, %v1721_v48  ;;  %v1704_v61 = vsel %vm1552_vm4, %v1544_v40, -inf  ;;  %v1380_v16 = vadd.f32 %v12456_v9, %v1379_v15  ;;  %v2528_v0 = vld [vmem:[#allocation2 + $0x32] sm:$0xff]  ;;  %v10288_v53 = vpack.c.bf16 %v2622_v14, %v2621_v28  ;;  %v2241_v41 = vld [vmem:[#allocation2 + $0x42] sm:$0xff] }
 0x1f2   :  { %v1705_v55 = vmax.f32 %v1703_v43, %v1704_v61  ;;  %v1547_v59 = vmax.f32 %v1385_v4, 0.0  ;;  %v12909_v47 = vld [vmem:[#allocation2 + $0x12] sm:$0xff]  ;;  %v12911_v62 = vld [vmem:[#allocation2 + $0x60] sm:$0xff]  ;;  %2544 = vst.msk [vmem:[#allocation3 + $0x28] sm:$0xff] %vm1552_vm4, %v2528_v0  ;;  %2545 = vst.msk [vmem:[#allocation3 + $0x40] sm:$0xff] %vm1552_vm4, %v2529_v13 }
 0x1f3   :  { %v12913_v10 = vld [vmem:[#allocation2 + $0x61] sm:$0xff]  ;;  %1876 = vst.msk [vmem:[#allocation2 + $0xc1] sm:$0xff] %vm1552_vm4, %v1722_v12  ;;  %v1546_v34 = vmax.f32 %v1380_v16, 0.0  ;;  %v10216_v52 = vpop.f32.mrb[140].mxu0  ;;  %2270 = vrot.lane.b32.xlu0 %v12909_v47, %s11203_s24  ;;  %v12922_v57 = vld [vmem:[#allocation2 + $0x50] sm:$0xff]  ;;  %1905 = vst.msk [vmem:[#allocation3 + $0x90] sm:$0xff] %vm1552_vm4, %v12911_v62  ;;  %10289 = vmatpush3.bf16.msra.mxu0 %v10288_v53 }
 0x1f4   :  { %1951 = vrot.lane.b32.xlu1 %v12823_v18, %s11203_s24  ;;  %v12924_v43 = vld [vmem:[#allocation2 + $0x51] sm:$0xff]  ;;  %2227 = vst.msk [vmem:[#allocation3 + $0x80] sm:$0xff] %vm1552_vm4, %v12913_v10  ;;  %1875 = vst.msk [vmem:[#allocation2 + $0xb1] sm:$0xff] %vm1552_vm4, %v1705_v55  ;;  %v1755_v18 = vsel %vm1552_vm4, %v1547_v59, -inf  ;;  %v1395_v42 = vadd.f32 %v12456_v9, %v10216_v52  ;;  %v1389_v44 = vpop.f32.mrb[141].mxu0  ;;  %v2531_v60 = vld [vmem:[#allocation2 + $0x62] sm:$0xff] }
 0x1f5   :  { %v12926_v36 = vld [vmem:[#allocation2 + $0x52] sm:$0xff]  ;;  %2226 = vst.msk [vmem:[#allocation3 + $0x68] sm:$0xff] %vm1552_vm4, %v12924_v43  ;;  %1904 = vst.msk [vmem:[#allocation3 + $0x78] sm:$0xff] %vm1552_vm4, %v12922_v57  ;;  %v1756_v8 = vmax.f32 %v1754_v63, %v1755_v18  ;;  %v1738_v17 = vsel %vm1552_vm4, %v1546_v34, -inf  ;;  %v1390_v49 = vadd.f32 %v12456_v9, %v1389_v44  ;;  %v2243_v53 = vld [vmem:[#allocation2 + $0x62] sm:$0xff] }
 0x1f6   :  { %2546 = vst.msk [vmem:[#allocation3 + $0x58] sm:$0xff] %vm1552_vm4, %v12926_v36  ;;  %2547 = vst.msk [vmem:[#allocation3 + $0x70] sm:$0xff] %vm1552_vm4, %v2531_v60  ;;  %v1739_v20 = vmax.f32 %v1737_v50, %v1738_v17  ;;  %v1549_v1 = vmax.f32 %v1395_v42, 0.0  ;;  %v12950_v5 = vld [vmem:[#allocation2 + $0x81] sm:$0xff] }
 0x1f7   :  { %v12952_v22 = vld [vmem:[#allocation2 + $0x82] sm:$0xff]  ;;  %1878 = vst.msk [vmem:[#allocation2 + $0xe1] sm:$0xff] %vm1552_vm4, %v1756_v8  ;;  %v1548_v6 = vmax.f32 %v1390_v49, 0.0  ;;  %v10219_v54 = vpop.f32.mrb[142].mxu0  ;;  %2371 = vrot.lane.b32.xlu0 %v12865_v26, %s11202_s23  ;;  %v12959_v63 = vld [vmem:[#allocation2 + $0x70] sm:$0xff]  ;;  %2229 = vst.msk [vmem:[#allocation3 + $0xb0] sm:$0xff] %vm1552_vm4, %v12950_v5 }
 0x1f8   :  { %2048 = vrot.lane.b32.xlu1 %v12863_v45, %s11202_s23  ;;  %v12961_v38 = vld [vmem:[#allocation2 + $0x71] sm:$0xff]  ;;  %2549 = vst.msk [vmem:[#allocation3 + $0xa0] sm:$0xff] %vm1552_vm4, %v12952_v22  ;;  %1877 = vst.msk [vmem:[#allocation2 + $0xd1] sm:$0xff] %vm1552_vm4, %v1739_v20  ;;  %v1789_v21 = vsel %vm1552_vm4, %v1549_v1, -inf  ;;  %v1405_v50 = vadd.f32 %v12456_v9, %v10219_v54  ;;  %v1399_v45 = vpop.f32.mrb[143].mxu0  ;;  %v2640_v34 = vld [vmem:[%s15750_s3 + $0x108] sm:$0xff] }
 0x1f9   :  { %v12963_v7 = vld [vmem:[#allocation2 + $0x72] sm:$0xff]  ;;  %2228 = vst.msk [vmem:[#allocation3 + $0x98] sm:$0xff] %vm1552_vm4, %v12961_v38  ;;  %1906 = vst.msk [vmem:[#allocation3 + $0xa8] sm:$0xff] %vm1552_vm4, %v12959_v63  ;;  %v1790_v40 = vmax.f32 %v1788_v25, %v1789_v21  ;;  %v1772_v46 = vsel %vm1552_vm4, %v1548_v6, -inf  ;;  %v1400_v48 = vadd.f32 %v12456_v9, %v1399_v45 }
 0x1fa   :  { %2548 = vst.msk [vmem:[#allocation3 + $0x88] sm:$0xff] %vm1552_vm4, %v12963_v7  ;;  %v1773_v4 = vmax.f32 %v1771_v19, %v1772_v46  ;;  %v1551_v15 = vmax.f32 %v1405_v50, 0.0  ;;  %v12986_v58 = vld [vmem:[#allocation2 + $0xc0] sm:$0xff]  ;;  %v2642_v21 = vld [vmem:[%s15750_s3 + $0x118] sm:$0xff] }
 0x1fb   :  { %v12988_v35 = vld [vmem:[#allocation2 + $0xc1] sm:$0xff]  ;;  %1880 = vst.msk [vmem:[#allocation2 + $0x101] sm:$0xff] %vm1552_vm4, %v1790_v40  ;;  %v1550_v12 = vmax.f32 %v1400_v48, 0.0  ;;  %2467 = vrot.lane.b32.xlu0 %v12867_v32, %s11204_s12  ;;  %v12997_v9 = vld [vmem:[#allocation2 + $0xb0] sm:$0xff]  ;;  %1909 = vst.msk [vmem:[#allocation3 + $0xf0] sm:$0xff] %vm1552_vm4, %v12986_v58 }
 0x1fc   :  { %v12990_v28 = vld [vmem:[#allocation2 + $0xc2] sm:$0xff]  ;;  %2141 = vrot.lane.b32.xlu1 %v12829_v51, %s11204_s12  ;;  %v12999_v27 = vld [vmem:[#allocation2 + $0xb1] sm:$0xff]  ;;  %2231 = vst.msk [vmem:[#allocation3 + $0xe0] sm:$0xff] %vm1552_vm4, %v12988_v35  ;;  %1879 = vst.msk [vmem:[#allocation2 + $0xf1] sm:$0xff] %vm1552_vm4, %v1773_v4  ;;  %v1823_v33 = vsel %vm1552_vm4, %v1551_v15, -inf }
 0x1fd   :  { %2551 = vst.msk [vmem:[#allocation3 + $0xd0] sm:$0xff] %vm1552_vm4, %v12990_v28  ;;  %2230 = vst.msk [vmem:[#allocation3 + $0xc8] sm:$0xff] %vm1552_vm4, %v12999_v27  ;;  %v1824_v2 = vmax.f32 %v1822_v23, %v1823_v33  ;;  %v1806_v25 = vsel %vm1552_vm4, %v1550_v12, -inf }
 0x1fe   :  { %1908 = vst.msk [vmem:[#allocation3 + $0xd8] sm:$0xff] %vm1552_vm4, %v12997_v9  ;;  %v1807_v19 = vmax.f32 %v1805_v39, %v1806_v25  ;;  %v13020_v51 = vld [vmem:[#allocation2 + $0xe0] sm:$0xff] }
 0x1ff   :  { %v13022_v61 = vld [vmem:[#allocation2 + $0xe1] sm:$0xff]  ;;  %1882 = vst.msk [vmem:[#allocation2 + $0x121] sm:$0xff] %vm1552_vm4, %v1824_v2  ;;  %2276 = vrot.lane.b32.xlu0 %v2241_v41, %s11203_s24  ;;  %v13030_v56 = vld [vmem:[#allocation2 + $0xd0] sm:$0xff]  ;;  %1911 = vst.msk [vmem:[#allocation3 + $0x120] sm:$0xff] %vm1552_vm4, %v13020_v51 }
 0x200   :  { %v13024_v16 = vld [vmem:[#allocation2 + $0xe2] sm:$0xff]  ;;  %1949 = vrot.lane.b32.xlu1 %v12831_v31, %s11203_s24  ;;  %v13032_v37 = vld [vmem:[#allocation2 + $0xd1] sm:$0xff]  ;;  %2233 = vst.msk [vmem:[#allocation3 + $0x110] sm:$0xff] %vm1552_vm4, %v13022_v61  ;;  %1881 = vst.msk [vmem:[#allocation2 + $0x111] sm:$0xff] %vm1552_vm4, %v1807_v19 }
 0x201   :  { %v13034_v23 = vld [vmem:[#allocation2 + $0xd2] sm:$0xff]  ;;  %2553 = vst.msk [vmem:[#allocation3 + $0x100] sm:$0xff] %vm1552_vm4, %v13024_v16  ;;  %2232 = vst.msk [vmem:[#allocation3 + $0xf8] sm:$0xff] %vm1552_vm4, %v13032_v37 }
 0x202   :  { %1910 = vst.msk [vmem:[#allocation3 + $0x108] sm:$0xff] %vm1552_vm4, %v13030_v56  ;;  %2552 = vst.msk [vmem:[#allocation3 + $0xe8] sm:$0xff] %vm1552_vm4, %v13034_v23  ;;  %v13049_v3 = vld [vmem:[#allocation2 + $0x100] sm:$0xff] }
 0x203   :  { %v13051_v30 = vld [vmem:[#allocation2 + $0x101] sm:$0xff]  ;;  %2369 = vrot.lane.b32.xlu0 %v12874_v11, %s11202_s23  ;;  %v13059_v31 = vld [vmem:[#allocation2 + $0xf0] sm:$0xff]  ;;  %1913 = vst.msk [vmem:[#allocation3 + $0x150] sm:$0xff] %vm1552_vm4, %v13049_v3 }
 0x204   :  { %v13053_v39 = vld [vmem:[#allocation2 + $0x102] sm:$0xff]  ;;  %2046 = vrot.lane.b32.xlu1 %v12909_v47, %s11202_s23  ;;  %v13061_v29 = vld [vmem:[#allocation2 + $0xf1] sm:$0xff]  ;;  %2235 = vst.msk [vmem:[#allocation3 + $0x140] sm:$0xff] %vm1552_vm4, %v13051_v30  ;;  %1912 = vst.msk [vmem:[#allocation3 + $0x138] sm:$0xff] %vm1552_vm4, %v13059_v31 }
 0x205   :  { %v13063_v14 = vld [vmem:[#allocation2 + $0xf2] sm:$0xff]  ;;  %2555 = vst.msk [vmem:[#allocation3 + $0x130] sm:$0xff] %vm1552_vm4, %v13053_v39  ;;  %2234 = vst.msk [vmem:[#allocation3 + $0x128] sm:$0xff] %vm1552_vm4, %v13061_v29 }
 0x206   :  { %2554 = vst.msk [vmem:[#allocation3 + $0x118] sm:$0xff] %vm1552_vm4, %v13063_v14  ;;  %v13077_v0 = vld [vmem:[#allocation2 + $0x121] sm:$0xff] }
 0x207   :  { %v13079_v13 = vld [vmem:[#allocation2 + $0x122] sm:$0xff]  ;;  %2465 = vrot.lane.b32.xlu0 %v12876_v24, %s11204_s12  ;;  %v13085_v55 = vld [vmem:[#allocation2 + $0x110] sm:$0xff]  ;;  %2237 = vst.msk [vmem:[#allocation3 + $0x170] sm:$0xff] %vm1552_vm4, %v13077_v0 }
 0x208   :  { %2147 = vrot.lane.b32.xlu1 %v12865_v26, %s11204_s12  ;;  %v13087_v59 = vld [vmem:[#allocation2 + $0x111] sm:$0xff]  ;;  %2557 = vst.msk [vmem:[#allocation3 + $0x160] sm:$0xff] %vm1552_vm4, %v13079_v13  ;;  %1914 = vst.msk [vmem:[#allocation3 + $0x168] sm:$0xff] %vm1552_vm4, %v13085_v55  ;;  %v2349_v46 = vld [vmem:[#allocation2 + $0x120] sm:$0xff] }
 0x209   :  { %v13089_v47 = vld [vmem:[#allocation2 + $0x112] sm:$0xff]  ;;  %2236 = vst.msk [vmem:[#allocation3 + $0x158] sm:$0xff] %vm1552_vm4, %v13087_v59 }
 0x20a   :  { %2556 = vst.msk [vmem:[#allocation3 + $0x148] sm:$0xff] %vm1552_vm4, %v13089_v47  ;;  %v2240_v26 = vld [vmem:[#allocation2 + $0x32] sm:$0xff] }
 0x20b   :  { %2274 = vrot.lane.b32.xlu0 %v2240_v26, %s11203_s24 }
 0x20c   :  { %1955 = vrot.lane.b32.xlu1 %v12867_v32, %s11203_s24  ;;  %v2341_v32 = vld [vmem:[#allocation2 + $0x80] sm:$0xff] }
 0x20f   :  { %2375 = vrot.lane.b32.xlu0 %v12911_v62, %s11202_s23 }
 0x210   :  { %2052 = vrot.lane.b32.xlu1 %v2241_v41, %s11202_s23 }
 0x213   :  { %2471 = vrot.lane.b32.xlu0 %v12913_v10, %s11204_s12 }
 0x214   :  { %2145 = vrot.lane.b32.xlu1 %v12874_v11, %s11204_s12  ;;  %v2246_v11 = vld [vmem:[#allocation2 + $0xb2] sm:$0xff] }
 0x217   :  { %2280 = vrot.lane.b32.xlu0 %v2243_v53, %s11203_s24 }
 0x218   :  { %1953 = vrot.lane.b32.xlu1 %v12876_v24, %s11203_s24  ;;  %v13165_v24 = vpop.permute.xlu0 %2381 }
 0x21b   :  { %2373 = vrot.lane.b32.xlu0 %v12922_v57, %s11202_s23 }
 0x21c   :  { %2050 = vrot.lane.b32.xlu1 %v2240_v26, %s11202_s23 }
 0x21f   :  { %2469 = vrot.lane.b32.xlu0 %v12924_v43, %s11204_s12 }
 0x220   :  { %2151 = vrot.lane.b32.xlu1 %v12911_v62, %s11204_s12  ;;  %v13175_v62 = vpop.permute.xlu0 %2477 }
 0x223   :  { %2278 = vrot.lane.b32.xlu0 %v12926_v36, %s11203_s24 }
 0x224   :  { %1959 = vrot.lane.b32.xlu1 %v12913_v10, %s11203_s24  ;;  %v2639_v10 = vld [vmem:[%s15750_s3 + $0x100] sm:$0xff] }
 0x225   :  { %v10290_v52 = vpack.c.bf16 %v2640_v34, %v2639_v10  ;;  %v2542_v34 = vld [vmem:[#allocation2 + $0x132] sm:$0xff] }
 0x226   :  { %2558 = vst.msk [vmem:[#allocation3 + $0x178] sm:$0xff] %vm1552_vm4, %v2542_v34 }
 0x227   :  { %2379 = vrot.lane.b32.xlu0 %v2341_v32, %s11202_s23  ;;  %10291 = vmatprep.subr.bf16.mxu0 %v10290_v52 }
 0x228   :  { %2056 = vrot.lane.b32.xlu1 %v2243_v53, %s11202_s23 }
 0x22b   :  { %2475 = vrot.lane.b32.xlu0 %v12950_v5, %s11204_s12 }
 0x22c   :  { %2149 = vrot.lane.b32.xlu1 %v12922_v57, %s11204_s12 }
 0x22f   :  { %2284 = vrot.lane.b32.xlu0 %v12952_v22, %s11203_s24 }
 0x230   :  { %1957 = vrot.lane.b32.xlu1 %v12924_v43, %s11203_s24 }
 0x233   :  { %2377 = vrot.lane.b32.xlu0 %v12959_v63, %s11202_s23 }
 0x234   :  { %2054 = vrot.lane.b32.xlu1 %v12926_v36, %s11202_s23 }
 0x237   :  { %2473 = vrot.lane.b32.xlu0 %v12961_v38, %s11204_s12 }
 0x238   :  { %2155 = vrot.lane.b32.xlu1 %v2341_v32, %s11204_s12 }
 0x23b   :  { %2282 = vrot.lane.b32.xlu0 %v12963_v7, %s11203_s24 }
 0x23c   :  { %2153 = vrot.lane.b32.xlu1 %v12959_v63, %s11204_s12 }
 0x23f   :  { %2383 = vrot.lane.b32.xlu0 %v12986_v58, %s11202_s23 }
 0x240   :  { %1961 = vrot.lane.b32.xlu1 %v12961_v38, %s11203_s24 }
 0x243   :  { %2479 = vrot.lane.b32.xlu0 %v12988_v35, %s11204_s12 }
 0x244   :  { %2058 = vrot.lane.b32.xlu1 %v12963_v7, %s11202_s23  ;;  %v2641_v7 = vld [vmem:[%s15750_s3 + $0x110] sm:$0xff] }
 0x245   :  { %v10294_v50 = vpack.c.bf16 %v2642_v21, %v2641_v7 }
 0x247   :  { %2288 = vrot.lane.b32.xlu0 %v12990_v28, %s11203_s24 }
 0x248   :  { %2159 = vrot.lane.b32.xlu1 %v12986_v58, %s11204_s12 }
 0x24b   :  { %2286 = vrot.lane.b32.xlu0 %v2246_v11, %s11203_s24 }
 0x24c   :  { %1967 = vrot.lane.b32.xlu1 %v12988_v35, %s11203_s24 }
 0x24f   :  { %2387 = vrot.lane.b32.xlu0 %v13020_v51, %s11202_s23 }
 0x250   :  { %2064 = vrot.lane.b32.xlu1 %v12990_v28, %s11202_s23 }
 0x253   :  { %2483 = vrot.lane.b32.xlu0 %v13022_v61, %s11204_s12 }
 0x254   :  { %2157 = vrot.lane.b32.xlu1 %v12997_v9, %s11204_s12 }
 0x257   :  { %2292 = vrot.lane.b32.xlu0 %v13024_v16, %s11203_s24 }
 0x258   :  { %1965 = vrot.lane.b32.xlu1 %v12999_v27, %s11203_s24 }
 0x25b   :  { %2385 = vrot.lane.b32.xlu0 %v13030_v56, %s11202_s23 }
 0x25c   :  { %2062 = vrot.lane.b32.xlu1 %v2246_v11, %s11202_s23 }
 0x25d   :  { %v2464_v57 = vpop.permute.xlu0 %2463 }
 0x25e   :  { %v2368_v43 = vpop.permute.xlu1 %2367 }
 0x25f   :  { %2481 = vrot.lane.b32.xlu0 %v13032_v37, %s11204_s12 }
 0x260   :  { %2163 = vrot.lane.b32.xlu1 %v13020_v51, %s11204_s12  ;;  %v2350_v51 = vld [vmem:[#allocation2 + $0x130] sm:$0xff] }
 0x261   :  { %v2273_v36 = vpop.permute.xlu0 %2272 }
 0x262   :  { %v2144_v18 = vpop.permute.xlu1 %2143  ;;  %2319 = vst.msk [vmem:[#allocation3 + $0x20] sm:$0xff] %vm1995_vm6, %v2273_v36 }
 0x263   :  { %2290 = vrot.lane.b32.xlu0 %v13034_v23, %s11203_s24 }
 0x264   :  { %1971 = vrot.lane.b32.xlu1 %v13022_v61, %s11203_s24 }
 0x265   :  { %v2271_v44 = vpop.permute.xlu0 %2270 }
 0x266   :  { %v1952_v42 = vpop.permute.xlu1 %1951  ;;  %2318 = vst.msk [vmem:[#allocation3 + $0x8] sm:$0xff] %vm1995_vm6, %v2271_v44 }
 0x267   :  { %1998 = vst.msk [vmem:[#allocation3 + $0x30] sm:$0xff] %vm1995_vm6, %v1952_v42  ;;  %2391 = vrot.lane.b32.xlu0 %v13049_v3, %s11202_s23 }
 0x268   :  { %2415 = vst.msk [vmem:[#allocation3 + $0x8] sm:$0xff] %vm2092_vm7, %v2368_v43  ;;  %2068 = vrot.lane.b32.xlu1 %v13024_v16, %s11202_s23 }
 0x269   :  { %2511 = vst.msk [vmem:[#allocation3 + $0x8] sm:$0xff] %vm2189_vm8, %v2464_v57  ;;  %v2372_v8 = vpop.permute.xlu0 %2371 }
 0x26a   :  { %v2049_v60 = vpop.permute.xlu1 %2048 }
 0x26b   :  { %2095 = vst.msk [vmem:[#allocation3 + $0x30] sm:$0xff] %vm2092_vm7, %v2049_v60  ;;  %2487 = vrot.lane.b32.xlu0 %v13051_v30, %s11204_s12 }
 0x26c   :  { %2161 = vrot.lane.b32.xlu1 %v13030_v56, %s11204_s12  ;;  %v2446_v56 = vld [vmem:[#allocation2 + $0x131] sm:$0xff] }
 0x26d   :  { %v2468_v17 = vpop.permute.xlu0 %2467 }
 0x26e   :  { %v2142_v49 = vpop.permute.xlu1 %2141 }
 0x26f   :  { %2190 = vst.msk [vmem:[#allocation3] sm:$0xff] %vm2189_vm8, %v2142_v49  ;;  %2296 = vrot.lane.b32.xlu0 %v13053_v39, %s11203_s24 }
 0x270   :  { %1969 = vrot.lane.b32.xlu1 %v13032_v37, %s11203_s24  ;;  %v2560_v20 = vld [vmem:[#allocation3 + $0x8] sm:$0xff] }
 0x271   :  { %2762 = vmatprep.mubr.f32.mxu0 %v2560_v20  ;;  %v2277_v1 = vpop.permute.xlu0 %2276 }
 0x272   :  { %v1950_v5 = vpop.permute.xlu1 %1949  ;;  %2321 = vst.msk [vmem:[#allocation3 + $0x50] sm:$0xff] %vm1995_vm6, %v2277_v1 }
 0x273   :  { %1997 = vst.msk [vmem:[#allocation3 + $0x18] sm:$0xff] %vm1995_vm6, %v1950_v5  ;;  %2389 = vrot.lane.b32.xlu0 %v13059_v31, %s11202_s23 }
 0x274   :  { %2066 = vrot.lane.b32.xlu1 %v13034_v23, %s11202_s23 }
 0x275   :  { %v2370_v22 = vpop.permute.xlu0 %2369 }
 0x276   :  { %v2047_v6 = vpop.permute.xlu1 %2046  ;;  %v2559_v54 = vld [vmem:[#allocation3] sm:$0xff]  ;;  %2416 = vst.msk [vmem:[#allocation3 + $0x20] sm:$0xff] %vm2092_vm7, %v2370_v22 }
 0x277   :  { %2094 = vst.msk [vmem:[#allocation3 + $0x18] sm:$0xff] %vm2092_vm7, %v2047_v6  ;;  %2763 = vmatmul.mubr.f32.vlgmr.msra.gmra.mrb[144].mxu0 %v2559_v54  ;;  %2485 = vrot.lane.b32.xlu0 %v13061_v29, %s11204_s12 }
 0x278   :  { %2191 = vst.msk [vmem:[#allocation3 + $0x18] sm:$0xff] %vm2189_vm8, %v2144_v18  ;;  %2167 = vrot.lane.b32.xlu1 %v13049_v3, %s11204_s12  ;;  %10293 = vmatpush3.bf16.msra.mxu0 %v10290_v52 }
 0x279   :  { %v2466_v63 = vpop.permute.xlu0 %2465  ;;  %10295 = vmatprep.subr.bf16.mxu0 %v10294_v50 }
 0x27a   :  { %v2148_v38 = vpop.permute.xlu1 %2147  ;;  %2512 = vst.msk [vmem:[#allocation3 + $0x20] sm:$0xff] %vm2189_vm8, %v2466_v63 }
 0x27b   :  { %2294 = vrot.lane.b32.xlu0 %v13063_v14, %s11203_s24 }
 0x27c   :  { %1975 = vrot.lane.b32.xlu1 %v13051_v30, %s11203_s24  ;;  %10297 = vmatpush3.bf16.msra.mxu0 %v10294_v50 }
 0x27d   :  { %v2275_v45 = vpop.permute.xlu0 %2274 }
 0x27e   :  { %v1956_v40 = vpop.permute.xlu1 %1955  ;;  %2320 = vst.msk [vmem:[#allocation3 + $0x38] sm:$0xff] %vm1995_vm6, %v2275_v45 }
 0x27f   :  { %2000 = vst.msk [vmem:[#allocation3 + $0x60] sm:$0xff] %vm1995_vm6, %v1956_v40  ;;  %2395 = vrot.lane.b32.xlu0 %v2349_v46, %s11202_s23  ;;  %v2562_v58 = vld [vmem:[#allocation3 + $0x18] sm:$0xff] }
 0x280   :  { %2417 = vst.msk [vmem:[#allocation3 + $0x38] sm:$0xff] %vm2092_vm7, %v2372_v8  ;;  %2072 = vrot.lane.b32.xlu1 %v13053_v39, %s11202_s23 }
 0x281   :  { %2513 = vst.msk [vmem:[#allocation3 + $0x38] sm:$0xff] %vm2189_vm8, %v2468_v17  ;;  %v2376_v48 = vpop.permute.xlu0 %2375  ;;  %v2563_v15 = vld [vmem:[#allocation3 + $0x20] sm:$0xff] }
 0x282   :  { %v2053_v4 = vpop.permute.xlu1 %2052  ;;  %2767 = vmatprep.mubr.f32.mxu0 %v2563_v15 }
 0x283   :  { %2097 = vst.msk [vmem:[#allocation3 + $0x60] sm:$0xff] %vm2092_vm7, %v2053_v4  ;;  %2491 = vrot.lane.b32.xlu0 %v13077_v0, %s11204_s12  ;;  %2768 = vmatmul.mubr.f32.gmra.mrb[146].mxu0 %v2562_v58 }
 0x284   :  { %2165 = vrot.lane.b32.xlu1 %v13059_v31, %s11204_s12 }
 0x285   :  { %v2472_v35 = vpop.permute.xlu0 %2471 }
 0x286   :  { %v2146_v28 = vpop.permute.xlu1 %2145 }
 0x287   :  { %2192 = vst.msk [vmem:[#allocation3 + $0x30] sm:$0xff] %vm2189_vm8, %v2146_v28  ;;  %2300 = vrot.lane.b32.xlu0 %v13079_v13, %s11203_s24  ;;  %v2534_v13 = vld [vmem:[#allocation2 + $0x92] sm:$0xff] }
 0x288   :  { %1973 = vrot.lane.b32.xlu1 %v13061_v29, %s11203_s24  ;;  %v2566_v12 = vld [vmem:[#allocation3 + $0x38] sm:$0xff]  ;;  %2550 = vst.msk [vmem:[#allocation3 + $0xb8] sm:$0xff] %vm1552_vm4, %v2534_v13 }
 0x289   :  { %2772 = vmatprep.mubr.f32.mxu0 %v2566_v12  ;;  %v2281_v9 = vpop.permute.xlu0 %2280 }
 0x28a   :  { %v1954_v27 = vpop.permute.xlu1 %1953  ;;  %2323 = vst.msk [vmem:[#allocation3 + $0x80] sm:$0xff] %vm1995_vm6, %v2281_v9 }
 0x28b   :  { %1999 = vst.msk [vmem:[#allocation3 + $0x48] sm:$0xff] %vm1995_vm6, %v1954_v27  ;;  %2393 = vrot.lane.b32.xlu0 %v13085_v55, %s11202_s23 }
 0x28c   :  { %2070 = vrot.lane.b32.xlu1 %v13063_v14, %s11202_s23 }
 0x28d   :  { %v2374_v33 = vpop.permute.xlu0 %2373 }
 0x28e   :  { %v2051_v2 = vpop.permute.xlu1 %2050  ;;  %v2565_v25 = vld [vmem:[#allocation3 + $0x30] sm:$0xff]  ;;  %2418 = vst.msk [vmem:[#allocation3 + $0x50] sm:$0xff] %vm2092_vm7, %v2374_v33 }
 0x28f   :  { %2096 = vst.msk [vmem:[#allocation3 + $0x48] sm:$0xff] %vm2092_vm7, %v2051_v2  ;;  %2773 = vmatmul.mubr.f32.gmra.mrb[148].mxu0 %v2565_v25  ;;  %2489 = vrot.lane.b32.xlu0 %v13087_v59, %s11204_s12 }
 0x290   :  { %2193 = vst.msk [vmem:[#allocation3 + $0x48] sm:$0xff] %vm2189_vm8, %v2148_v38  ;;  %2169 = vrot.lane.b32.xlu1 %v13085_v55, %s11204_s12 }
 0x291   :  { %v2470_v41 = vpop.permute.xlu0 %2469 }
 0x292   :  { %v2152_v19 = vpop.permute.xlu1 %2151  ;;  %2514 = vst.msk [vmem:[#allocation3 + $0x50] sm:$0xff] %vm2189_vm8, %v2470_v41 }
 0x293   :  { %2298 = vrot.lane.b32.xlu0 %v13089_v47, %s11203_s24 }
 0x294   :  { %1977 = vrot.lane.b32.xlu1 %v13087_v59, %s11203_s24 }
 0x295   :  { %v2279_v61 = vpop.permute.xlu0 %2278 }
 0x296   :  { %v1960_v16 = vpop.permute.xlu1 %1959  ;;  %2322 = vst.msk [vmem:[#allocation3 + $0x68] sm:$0xff] %vm1995_vm6, %v2279_v61 }
 0x297   :  { %2002 = vst.msk [vmem:[#allocation3 + $0x90] sm:$0xff] %vm1995_vm6, %v1960_v16  ;;  %2397 = vrot.lane.b32.xlu0 %v2350_v51, %s11202_s23  ;;  %v2568_v30 = vld [vmem:[#allocation3 + $0x48] sm:$0xff] }
 0x298   :  { %2419 = vst.msk [vmem:[#allocation3 + $0x68] sm:$0xff] %vm2092_vm7, %v2376_v48  ;;  %2074 = vrot.lane.b32.xlu1 %v13089_v47, %s11202_s23 }
 0x299   :  { %2515 = vst.msk [vmem:[#allocation3 + $0x68] sm:$0xff] %vm2189_vm8, %v2472_v35  ;;  %v2380_v37 = vpop.permute.xlu0 %2379  ;;  %v2569_v3 = vld [vmem:[#allocation3 + $0x50] sm:$0xff] }
 0x29a   :  { %v2057_v23 = vpop.permute.xlu1 %2056  ;;  %2777 = vmatprep.mubr.f32.mxu0 %v2569_v3 }
 0x29b   :  { %2099 = vst.msk [vmem:[#allocation3 + $0x90] sm:$0xff] %vm2092_vm7, %v2057_v23  ;;  %2493 = vrot.lane.b32.xlu0 %v2446_v56, %s11204_s12  ;;  %2778 = vmatmul.mubr.f32.gmra.mrb[150].mxu0 %v2568_v30 }
 0x29c   :  { %2171 = vrot.lane.b32.xlu1 %v2349_v46, %s11204_s12 }
 0x29d   :  { %v2476_v39 = vpop.permute.xlu0 %2475 }
 0x29e   :  { %v2150_v31 = vpop.permute.xlu1 %2149 }
 0x29f   :  { %2194 = vst.msk [vmem:[#allocation3 + $0x60] sm:$0xff] %vm2189_vm8, %v2150_v31 }
 0x2a0   :  { %v2572_v29 = vld [vmem:[#allocation3 + $0x68] sm:$0xff] }
 0x2a1   :  { %2782 = vmatprep.mubr.f32.mxu0 %v2572_v29  ;;  %v2285_v14 = vpop.permute.xlu0 %2284 }
 0x2a2   :  { %v1958_v0 = vpop.permute.xlu1 %1957  ;;  %2325 = vst.msk [vmem:[#allocation3 + $0xb0] sm:$0xff] %vm1995_vm6, %v2285_v14 }
 0x2a3   :  { %2001 = vst.msk [vmem:[#allocation3 + $0x78] sm:$0xff] %vm1995_vm6, %v1958_v0 }
 0x2a4   :  { %2422 = vst.msk [vmem:[#allocation3 + $0xb0] sm:$0xff] %vm2092_vm7, %v13165_v24 }
 0x2a5   :  { %2518 = vst.msk [vmem:[#allocation3 + $0xb0] sm:$0xff] %vm2189_vm8, %v13175_v62  ;;  %v2378_v55 = vpop.permute.xlu0 %2377 }
 0x2a6   :  { %v2055_v59 = vpop.permute.xlu1 %2054  ;;  %v2571_v47 = vld [vmem:[#allocation3 + $0x60] sm:$0xff]  ;;  %2420 = vst.msk [vmem:[#allocation3 + $0x80] sm:$0xff] %vm2092_vm7, %v2378_v55 }
 0x2a7   :  { %2098 = vst.msk [vmem:[#allocation3 + $0x78] sm:$0xff] %vm2092_vm7, %v2055_v59  ;;  %2783 = vmatmul.mubr.f32.gmra.mrb[152].mxu0 %v2571_v47 }
 0x2a8   :  { %2195 = vst.msk [vmem:[#allocation3 + $0x78] sm:$0xff] %vm2189_vm8, %v2152_v19 }
 0x2a9   :  { %v2474_v26 = vpop.permute.xlu0 %2473 }
 0x2aa   :  { %v2156_v53 = vpop.permute.xlu1 %2155  ;;  %2516 = vst.msk [vmem:[#allocation3 + $0x80] sm:$0xff] %vm2189_vm8, %v2474_v26 }
 0x2ac   :  { %v2581_v60 = vld [vmem:[#allocation3 + $0xb0] sm:$0xff] }
 0x2ad   :  { %v2283_v32 = vpop.permute.xlu0 %2282 }
 0x2ae   :  { %v2154_v11 = vpop.permute.xlu1 %2153  ;;  %2324 = vst.msk [vmem:[#allocation3 + $0x98] sm:$0xff] %vm1995_vm6, %v2283_v32 }
 0x2af   :  { %2196 = vst.msk [vmem:[#allocation3 + $0x90] sm:$0xff] %vm2189_vm8, %v2154_v11  ;;  %v2574_v52 = vld [vmem:[#allocation3 + $0x78] sm:$0xff] }
 0x2b0   :  { %2421 = vst.msk [vmem:[#allocation3 + $0x98] sm:$0xff] %vm2092_vm7, %v2380_v37 }
 0x2b1   :  { %2517 = vst.msk [vmem:[#allocation3 + $0x98] sm:$0xff] %vm2189_vm8, %v2476_v39  ;;  %v2384_v24 = vpop.permute.xlu0 %2383  ;;  %v2575_v10 = vld [vmem:[#allocation3 + $0x80] sm:$0xff] }
 0x2b2   :  { %v1962_v62 = vpop.permute.xlu1 %1961  ;;  %2787 = vmatprep.mubr.f32.mxu0 %v2575_v10 }
 0x2b3   :  { %2003 = vst.msk [vmem:[#allocation3 + $0xa8] sm:$0xff] %vm1995_vm6, %v1962_v62  ;;  %2788 = vmatmul.mubr.f32.gmra.mrb[154].mxu0 %v2574_v52 }
 0x2b5   :  { %v2480_v57 = vpop.permute.xlu0 %2479 }
 0x2b6   :  { %v2059_v43 = vpop.permute.xlu1 %2058  ;;  %v2577_v18 = vld [vmem:[#allocation3 + $0x90] sm:$0xff] }
 0x2b7   :  { %2100 = vst.msk [vmem:[#allocation3 + $0xa8] sm:$0xff] %vm2092_vm7, %v2059_v43 }
 0x2b8   :  { %2197 = vst.msk [vmem:[#allocation3 + $0xa8] sm:$0xff] %vm2189_vm8, %v2156_v53  ;;  %v2578_v36 = vld [vmem:[#allocation3 + $0x98] sm:$0xff] }
 0x2b9   :  { %2792 = vmatprep.mubr.f32.mxu0 %v2578_v36  ;;  %v2289_v42 = vpop.permute.xlu0 %2288  ;;  %v2561_v36 = vld [vmem:[#allocation3 + $0x10] sm:$0xff] }
 0x2ba   :  { %v2160_v44 = vpop.permute.xlu1 %2159  ;;  %2793 = vmatmul.mubr.f32.gmra.mrb[156].mxu0 %v2577_v18  ;;  %2327 = vst.msk [vmem:[#allocation3 + $0xe0] sm:$0xff] %vm1995_vm6, %v2289_v42  ;;  %v2564_v18 = vld [vmem:[#allocation3 + $0x28] sm:$0xff]  ;;  %v2567_v42 = vld [vmem:[#allocation3 + $0x40] sm:$0xff] }
 0x2bb   :  { %2797 = vmatprep.mubr.f32.mxu0 %v2581_v60  ;;  %v2573_v60 = vld [vmem:[#allocation3 + $0x70] sm:$0xff] }
 0x2bd   :  { %v2287_v8 = vpop.permute.xlu0 %2286 }
 0x2be   :  { %v1968_v17 = vpop.permute.xlu1 %1967  ;;  %2326 = vst.msk [vmem:[#allocation3 + $0xc8] sm:$0xff] %vm1995_vm6, %v2287_v8  ;;  %v2576_v8 = vld [vmem:[#allocation3 + $0x88] sm:$0xff] }
 0x2bf   :  { %2006 = vst.msk [vmem:[#allocation3 + $0xf0] sm:$0xff] %vm1995_vm6, %v1968_v17  ;;  %v2580_v49 = vld [vmem:[#allocation3 + $0xa8] sm:$0xff]  ;;  %v2579_v17 = vld [vmem:[#allocation3 + $0xa0] sm:$0xff] }
 0x2c0   :  { %2423 = vst.msk [vmem:[#allocation3 + $0xc8] sm:$0xff] %vm2092_vm7, %v2384_v24  ;;  %2798 = vmatmul.mubr.f32.gmra.mrb[158].mxu0 %v2580_v49  ;;  %v2582_v49 = vld [vmem:[#allocation3 + $0xb8] sm:$0xff] }
 0x2c1   :  { %2519 = vst.msk [vmem:[#allocation3 + $0xc8] sm:$0xff] %vm2189_vm8, %v2480_v57  ;;  %v2388_v20 = vpop.permute.xlu0 %2387 }
 0x2c2   :  { %v2065_v1 = vpop.permute.xlu1 %2064 }
 0x2c3   :  { %2103 = vst.msk [vmem:[#allocation3 + $0xf0] sm:$0xff] %vm2092_vm7, %v2065_v1  ;;  %v2588_v1 = vld [vmem:[#allocation3 + $0xe8] sm:$0xff] }
 0x2c5   :  { %v2484_v5 = vpop.permute.xlu0 %2483 }
 0x2c6   :  { %v2158_v22 = vpop.permute.xlu1 %2157 }
 0x2c7   :  { %2198 = vst.msk [vmem:[#allocation3 + $0xc0] sm:$0xff] %vm2189_vm8, %v2158_v22  ;;  %v2594_v22 = vld [vmem:[#allocation3 + $0x118] sm:$0xff] }
 0x2c8   :  { %v2584_v6 = vld [vmem:[#allocation3 + $0xc8] sm:$0xff] }
 0x2c9   :  { %2802 = vmatprep.mubr.f32.mxu0 %v2584_v6  ;;  %v2293_v54 = vpop.permute.xlu0 %2292  ;;  %v2597_v6 = vld [vmem:[#allocation3 + $0x130] sm:$0xff] }
 0x2ca   :  { %v1966_v63 = vpop.permute.xlu1 %1965  ;;  %2329 = vst.msk [vmem:[#allocation3 + $0x110] sm:$0xff] %vm1995_vm6, %v2293_v54  ;;  %v2600_v54 = vld [vmem:[#allocation3 + $0x148] sm:$0xff] }
 0x2cb   :  { %2005 = vst.msk [vmem:[#allocation3 + $0xd8] sm:$0xff] %vm1995_vm6, %v1966_v63  ;;  %v2603_v63 = vld [vmem:[#allocation3 + $0x160] sm:$0xff] }
 0x2cd   :  { %v2386_v38 = vpop.permute.xlu0 %2385 }
 0x2ce   :  { %v2063_v7 = vpop.permute.xlu1 %2062  ;;  %v2583_v21 = vld [vmem:[#allocation3 + $0xc0] sm:$0xff]  ;;  %2424 = vst.msk [vmem:[#allocation3 + $0xe0] sm:$0xff] %vm2092_vm7, %v2386_v38  ;;  %v2606_v38 = vld [vmem:[#allocation3 + $0x178] sm:$0xff] }
 0x2cf   :  { %2102 = vst.msk [vmem:[#allocation3 + $0xd8] sm:$0xff] %vm2092_vm7, %v2063_v7  ;;  %2803 = vmatmul.mubr.f32.gmra.mrb[160].mxu0 %v2583_v21 }
 0x2d0   :  { %2199 = vst.msk [vmem:[#allocation3 + $0xd8] sm:$0xff] %vm2189_vm8, %v2160_v44  ;;  %v2570_v44 = vld [vmem:[#allocation3 + $0x58] sm:$0xff] }
 0x2d1   :  { %v2482_v50 = vpop.permute.xlu0 %2481 }
 0x2d2   :  { %v2164_v45 = vpop.permute.xlu1 %2163  ;;  %2520 = vst.msk [vmem:[#allocation3 + $0xe0] sm:$0xff] %vm2189_vm8, %v2482_v50 }
 0x2d5   :  { %v2291_v40 = vpop.permute.xlu0 %2290 }
 0x2d6   :  { %v1972_v46 = vpop.permute.xlu1 %1971  ;;  %2328 = vst.msk [vmem:[#allocation3 + $0xf8] sm:$0xff] %vm1995_vm6, %v2291_v40 }
 0x2d7   :  { %2008 = vst.msk [vmem:[#allocation3 + $0x120] sm:$0xff] %vm1995_vm6, %v1972_v46  ;;  %v2586_v58 = vld [vmem:[#allocation3 + $0xd8] sm:$0xff] }
 0x2d8   :  { %2425 = vst.msk [vmem:[#allocation3 + $0xf8] sm:$0xff] %vm2092_vm7, %v2388_v20  ;;  %v2585_v20 = vld [vmem:[#allocation3 + $0xd0] sm:$0xff] }
 0x2d9   :  { %2521 = vst.msk [vmem:[#allocation3 + $0xf8] sm:$0xff] %vm2189_vm8, %v2484_v5  ;;  %v2392_v48 = vpop.permute.xlu0 %2391  ;;  %v2587_v15 = vld [vmem:[#allocation3 + $0xe0] sm:$0xff] }
 0x2da   :  { %v2069_v4 = vpop.permute.xlu1 %2068  ;;  %2807 = vmatprep.mubr.f32.mxu0 %v2587_v15  ;;  %v2591_v5 = vld [vmem:[#allocation3 + $0x100] sm:$0xff] }
 0x2db   :  { %2105 = vst.msk [vmem:[#allocation3 + $0x120] sm:$0xff] %vm2092_vm7, %v2069_v4  ;;  %2808 = vmatmul.mubr.f32.gmra.mrb[162].mxu0 %v2586_v58 }
 0x2dd   :  { %v2488_v35 = vpop.permute.xlu0 %2487 }
 0x2de   :  { %v2162_v28 = vpop.permute.xlu1 %2161 }
 0x2df   :  { %2200 = vst.msk [vmem:[#allocation3 + $0xf0] sm:$0xff] %vm2189_vm8, %v2162_v28 }
 0x2e0   :  { %v2590_v12 = vld [vmem:[#allocation3 + $0xf8] sm:$0xff] }
 0x2e1   :  { %2812 = vmatprep.mubr.f32.mxu0 %v2590_v12  ;;  %v2297_v9 = vpop.permute.xlu0 %2296 }
 0x2e2   :  { %v1970_v27 = vpop.permute.xlu1 %1969  ;;  %2331 = vst.msk [vmem:[#allocation3 + $0x140] sm:$0xff] %vm1995_vm6, %v2297_v9 }
 0x2e3   :  { %2007 = vst.msk [vmem:[#allocation3 + $0x108] sm:$0xff] %vm1995_vm6, %v1970_v27 }
 0x2e5   :  { %v2390_v33 = vpop.permute.xlu0 %2389 }
 0x2e6   :  { %v2067_v2 = vpop.permute.xlu1 %2066  ;;  %v2589_v25 = vld [vmem:[#allocation3 + $0xf0] sm:$0xff]  ;;  %2426 = vst.msk [vmem:[#allocation3 + $0x110] sm:$0xff] %vm2092_vm7, %v2390_v33 }
 0x2e7   :  { %2104 = vst.msk [vmem:[#allocation3 + $0x108] sm:$0xff] %vm2092_vm7, %v2067_v2  ;;  %2813 = vmatmul.mubr.f32.gmra.mrb[164].mxu0 %v2589_v25 }
 0x2e8   :  { %2201 = vst.msk [vmem:[#allocation3 + $0x108] sm:$0xff] %vm2189_vm8, %v2164_v45 }
 0x2e9   :  { %v2486_v41 = vpop.permute.xlu0 %2485 }
 0x2ea   :  { %v2168_v19 = vpop.permute.xlu1 %2167  ;;  %2522 = vst.msk [vmem:[#allocation3 + $0x110] sm:$0xff] %vm2189_vm8, %v2486_v41 }
 0x2ed   :  { %v2295_v51 = vpop.permute.xlu0 %2294 }
 0x2ee   :  { %v1976_v61 = vpop.permute.xlu1 %1975  ;;  %2330 = vst.msk [vmem:[#allocation3 + $0x128] sm:$0xff] %vm1995_vm6, %v2295_v51 }
 0x2ef   :  { %2010 = vst.msk [vmem:[#allocation3 + $0x150] sm:$0xff] %vm1995_vm6, %v1976_v61  ;;  %v2592_v23 = vld [vmem:[#allocation3 + $0x108] sm:$0xff] }
 0x2f0   :  { %2427 = vst.msk [vmem:[#allocation3 + $0x128] sm:$0xff] %vm2092_vm7, %v2392_v48 }
 0x2f1   :  { %2523 = vst.msk [vmem:[#allocation3 + $0x128] sm:$0xff] %vm2189_vm8, %v2488_v35  ;;  %v2396_v16 = vpop.permute.xlu0 %2395  ;;  %v2593_v37 = vld [vmem:[#allocation3 + $0x110] sm:$0xff] }
 0x2f2   :  { %v2073_v56 = vpop.permute.xlu1 %2072  ;;  %2817 = vmatprep.mubr.f32.mxu0 %v2593_v37 }
 0x2f3   :  { %2107 = vst.msk [vmem:[#allocation3 + $0x150] sm:$0xff] %vm2092_vm7, %v2073_v56  ;;  %2818 = vmatmul.mubr.f32.gmra.mrb[166].mxu0 %v2592_v23 }
 0x2f5   :  { %v2492_v3 = vpop.permute.xlu0 %2491 }
 0x2f6   :  { %v2166_v30 = vpop.permute.xlu1 %2165 }
 0x2f7   :  { %2202 = vst.msk [vmem:[#allocation3 + $0x120] sm:$0xff] %vm2189_vm8, %v2166_v30 }
 0x2f8   :  { %v2596_v39 = vld [vmem:[#allocation3 + $0x128] sm:$0xff] }
 0x2f9   :  { %2822 = vmatprep.mubr.f32.mxu0 %v2596_v39  ;;  %v2301_v31 = vpop.permute.xlu0 %2300 }
 0x2fa   :  { %v1974_v29 = vpop.permute.xlu1 %1973  ;;  %2333 = vst.msk [vmem:[#allocation3 + $0x170] sm:$0xff] %vm1995_vm6, %v2301_v31 }
 0x2fb   :  { %2009 = vst.msk [vmem:[#allocation3 + $0x138] sm:$0xff] %vm1995_vm6, %v1974_v29 }
 0x2fd   :  { %v2394_v14 = vpop.permute.xlu0 %2393 }
 0x2fe   :  { %v2071_v0 = vpop.permute.xlu1 %2070  ;;  %v2595_v13 = vld [vmem:[#allocation3 + $0x120] sm:$0xff]  ;;  %2428 = vst.msk [vmem:[#allocation3 + $0x140] sm:$0xff] %vm2092_vm7, %v2394_v14 }
 0x2ff   :  { %2106 = vst.msk [vmem:[#allocation3 + $0x138] sm:$0xff] %vm2092_vm7, %v2071_v0  ;;  %2823 = vmatmul.mubr.f32.gmra.mrb[168].mxu0 %v2595_v13 }
 0x300   :  { %2203 = vst.msk [vmem:[#allocation3 + $0x138] sm:$0xff] %vm2189_vm8, %v2168_v19 }
 0x301   :  { %v2490_v55 = vpop.permute.xlu0 %2489 }
 0x302   :  { %v2170_v59 = vpop.permute.xlu1 %2169  ;;  %2524 = vst.msk [vmem:[#allocation3 + $0x140] sm:$0xff] %vm2189_vm8, %v2490_v55 }
 0x303   :  { %2204 = vst.msk [vmem:[#allocation3 + $0x150] sm:$0xff] %vm2189_vm8, %v2170_v59 }
 0x305   :  { %v2299_v47 = vpop.permute.xlu0 %2298 }
 0x306   :  { %v1978_v26 = vpop.permute.xlu1 %1977  ;;  %2332 = vst.msk [vmem:[#allocation3 + $0x158] sm:$0xff] %vm1995_vm6, %v2299_v47 }
 0x307   :  { %2011 = vst.msk [vmem:[#allocation3 + $0x168] sm:$0xff] %vm1995_vm6, %v1978_v26  ;;  %v2598_v24 = vld [vmem:[#allocation3 + $0x138] sm:$0xff] }
 0x308   :  { %2429 = vst.msk [vmem:[#allocation3 + $0x158] sm:$0xff] %vm2092_vm7, %v2396_v16 }
 0x309   :  { %2525 = vst.msk [vmem:[#allocation3 + $0x158] sm:$0xff] %vm2189_vm8, %v2492_v3  ;;  %v2398_v53 = vpop.permute.xlu0 %2397  ;;  %v2599_v11 = vld [vmem:[#allocation3 + $0x140] sm:$0xff] }
 0x30a   :  { %v2075_v32 = vpop.permute.xlu1 %2074  ;;  %2430 = vst.msk [vmem:[#allocation3 + $0x170] sm:$0xff] %vm2092_vm7, %v2398_v53  ;;  %2827 = vmatprep.mubr.f32.mxu0 %v2599_v11  ;;  %v2601_v52 = vld [vmem:[#allocation3 + $0x150] sm:$0xff]  ;;  %v10399_v11 = vld [vmem:[%s15752_s5 + $0x500] ss:$8 sps:$4 sm:$0xff]  }
 0x30b   :  { %2108 = vst.msk [vmem:[#allocation3 + $0x168] sm:$0xff] %vm2092_vm7, %v2075_v32  ;;  %2828 = vmatmul.mubr.f32.gmra.mrb[170].mxu0 %v2598_v24  ;;  %v10397_v32 = vld [vmem:[%s15752_s5 + $0x504] ss:$8 sps:$4 sm:$0xff]   ;;  %v10400_v24 = vld [vmem:[%s15752_s5 + $0x514] ss:$8 sps:$4 sm:$0xff]  }
 0x30c   :  { %8326 = vmatprep.subr.bf16.mxu1 %v10397_v32 }
 0x30d   :  { %v2494_v62 = vpop.permute.xlu0 %2493  ;;  %8327 = vmatpush1.bf16.msra.mxu1 %v10399_v11  ;;  %v10432_v11 = vld [vmem:[%s15752_s5 + $0x590] ss:$8 sps:$4 sm:$0xff]  }
 0x30e   :  { %v2172_v10 = vpop.permute.xlu1 %2171  ;;  %2526 = vst.msk [vmem:[#allocation3 + $0x170] sm:$0xff] %vm2189_vm8, %v2494_v62  ;;  %v10402_v62 = vld [vmem:[%s15752_s5 + $0x510] ss:$8 sps:$4 sm:$0xff]   ;;  %8328 = vmatprep.subr.bf16.mxu1 %v10400_v24 }
 0x30f   :  { %2205 = vst.msk [vmem:[#allocation3 + $0x168] sm:$0xff] %vm2189_vm8, %v2172_v10  ;;  %v10403_v10 = vld [vmem:[%s15752_s5 + $0x524] ss:$8 sps:$4 sm:$0xff]  }
 0x310   :  { %v2602_v34 = vld [vmem:[#allocation3 + $0x158] sm:$0xff] }
 0x311   :  { %2832 = vmatprep.mubr.f32.mxu0 %v2602_v34  ;;  %v10421_v34 = vld [vmem:[%s15752_s5] ss:$8 sps:$4 sm:$0xff]   ;;  %8329 = vmatpush1.bf16.msra.mxu1 %v10402_v62 }
 0x312   :  { %2833 = vmatmul.mubr.f32.gmra.mrb[172].mxu0 %v2601_v52  ;;  %v10423_v52 = vld [vmem:[%s15752_s5 + $0x4] ss:$8 sps:$4 sm:$0xff]   ;;  %8330 = vmatprep.subr.bf16.mxu1 %v10403_v10 }
 0x313   :  { %8121 = vmatprep.subr.bf16.mxu0 %v10423_v52  ;;  %v10436_v10 = vld [vmem:[%s15752_s5 + $0x5a4] ss:$8 sps:$4 sm:$0xff]  }
 0x315   :  { %v2605_v57 = vld [vmem:[#allocation3 + $0x170] sm:$0xff] }
 0x316   :  { %v2604_v43 = vld [vmem:[#allocation3 + $0x168] sm:$0xff]  ;;  %2837 = vmatprep.mubr.f32.mxu0 %v2605_v57 }
 0x317   :  { %2838 = vmatmul.mubr.f32.gmra.mrb[174].mxu0 %v2604_v43  ;;  %v10405_v57 = vld [vmem:[%s15752_s5 + $0x520] ss:$8 sps:$4 sm:$0xff]   ;;  %v10429_v43 = vld [vmem:[%s15752_s5 + $0x14] ss:$8 sps:$4 sm:$0xff]  }
 0x318   :  { %10228 = vmatprep.mubr.msk.f32.mxu0 %vm1552_vm4, %v2561_v36  ;;  %v10406_v36 = vld [vmem:[%s15752_s5 + $0x534] ss:$8 sps:$4 sm:$0xff]   ;;  %8331 = vmatpush1.bf16.msra.mxu1 %v10405_v57 }
 0x319   :  { %8332 = vmatprep.subr.bf16.mxu1 %v10406_v36  ;;  %v10438_v36 = vld [vmem:[%s15752_s5 + $0x5a0] ss:$8 sps:$4 sm:$0xff]  }
 0x31b   :  { %10229 = vmatmul.mubr.msk.f32.vlgmr.msra.gmra.mrb[176].mxu0 %vm1552_vm4, %v2564_v18  ;;  %v10427_v18 = vld [vmem:[%s15752_s5 + $0x10] ss:$8 sps:$4 sm:$0xff]  }
 0x31c   :  { %10231 = vmatprep.mubr.msk.f32.mxu0 %vm1552_vm4, %v2567_v42  ;;  %8122 = vmatpush1.bf16.msra.mxu0 %v10421_v34  ;;  %v10435_v42 = vld [vmem:[%s15752_s5 + $0x24] ss:$8 sps:$4 sm:$0xff]  }
 0x31d   :  { %8123 = vmatprep.subr.bf16.mxu0 %v10429_v43 }
 0x31f   :  { %10232 = vmatmul.mubr.msk.f32.gmra.mrb[178].mxu0 %vm1552_vm4, %v2570_v44 }
 0x320   :  { %10234 = vmatprep.mubr.msk.f32.mxu0 %vm1552_vm4, %v2573_v60  ;;  %v10408_v60 = vld [vmem:[%s15752_s5 + $0x530] ss:$8 sps:$4 sm:$0xff]   ;;  %8124 = vmatpush1.bf16.msra.mxu0 %v10427_v18 }
 0x321   :  { %8125 = vmatprep.subr.bf16.mxu0 %v10435_v42  ;;  %8333 = vmatpush1.bf16.msra.mxu1 %v10408_v60 }
 0x323   :  { %10235 = vmatmul.mubr.msk.f32.gmra.mrb[180].mxu0 %vm1552_vm4, %v2576_v8 }
 0x324   :  { %10237 = vmatprep.mubr.msk.f32.mxu0 %vm1552_vm4, %v2579_v17  ;;  %v10409_v17 = vld [vmem:[%s15752_s5 + $0x544] ss:$8 sps:$4 sm:$0xff]  }
 0x325   :  { %8334 = vmatprep.subr.bf16.mxu1 %v10409_v17 }
 0x327   :  { %10238 = vmatmul.mubr.msk.f32.gmra.mrb[182].mxu0 %vm1552_vm4, %v2582_v49  ;;  %v10433_v49 = vld [vmem:[%s15752_s5 + $0x20] ss:$8 sps:$4 sm:$0xff]  }
 0x328   :  { %10240 = vmatprep.mubr.msk.f32.mxu0 %vm1552_vm4, %v2585_v20  ;;  %8126 = vmatpush1.bf16.msra.mxu0 %v10433_v49 }
 0x32b   :  { %10241 = vmatmul.mubr.msk.f32.gmra.mrb[184].mxu0 %vm1552_vm4, %v2588_v1  ;;  %v10441_v1 = vld [vmem:[%s15752_s5 + $0x34] ss:$8 sps:$4 sm:$0xff]  }
 0x32c   :  { %10243 = vmatprep.mubr.msk.f32.mxu0 %vm1552_vm4, %v2591_v5  ;;  %v10411_v5 = vld [vmem:[%s15752_s5 + $0x540] ss:$8 sps:$4 sm:$0xff]   ;;  %8127 = vmatprep.subr.bf16.mxu0 %v10441_v1 }
 0x32d   :  { %8335 = vmatpush1.bf16.msra.mxu1 %v10411_v5 }
 0x32f   :  { %10244 = vmatmul.mubr.msk.f32.gmra.mrb[186].mxu0 %vm1552_vm4, %v2594_v22  ;;  %v10412_v22 = vld [vmem:[%s15752_s5 + $0x554] ss:$8 sps:$4 sm:$0xff]  }
 0x330   :  { %10246 = vmatprep.mubr.msk.f32.mxu0 %vm1552_vm4, %v2597_v6  ;;  %v10439_v6 = vld [vmem:[%s15752_s5 + $0x30] ss:$8 sps:$4 sm:$0xff]   ;;  %8336 = vmatprep.subr.bf16.mxu1 %v10412_v22 }
 0x331   :  { %8128 = vmatpush1.bf16.msra.mxu0 %v10439_v6 }
 0x333   :  { %10247 = vmatmul.mubr.msk.f32.gmra.mrb[188].mxu0 %vm1552_vm4, %v2600_v54 }
 0x334   :  { %10249 = vmatprep.mubr.msk.f32.mxu0 %vm1552_vm4, %v2603_v63 }
 0x337   :  { %10250 = vmatmul.mubr.msk.f32.gmra.mrb[190].mxu0 %vm1552_vm4, %v2606_v38 }
 0x34a   :  { %v9897_v7 = vpop.f32.mrb[144].mxu0 }
 0x34b   :  { %v9898_v21 = vpop.f32.mrb[145].mxu0 }
 0x34c   :  { %v13364_v50 = vadd.f32 %v9898_v21, %v9897_v7  ;;  %v10414_v7 = vld [vmem:[%s15752_s5 + $0x550] ss:$8 sps:$4 sm:$0xff]   ;;  %v10415_v21 = vld [vmem:[%s15752_s5 + $0x564] ss:$8 sps:$4 sm:$0xff]  }
 0x34d   :  { %8337 = vmatpush1.bf16.msra.mxu1 %v10414_v7 }
 0x34e   :  { %8338 = vmatprep.subr.bf16.mxu1 %v10415_v21 }
 0x356   :  { %v9900_v45 = vpop.f32.mrb[146].mxu0 }
 0x357   :  { %v9901_v40 = vpop.f32.mrb[147].mxu0 }
 0x358   :  { %v13366_v46 = vadd.f32 %v9901_v40, %v9900_v45  ;;  %v10417_v40 = vld [vmem:[%s15752_s5 + $0x560] ss:$8 sps:$4 sm:$0xff]  }
 0x359   :  { %8339 = vmatpush1.bf16.msra.mxu1 %v10417_v40 }
 0x362   :  { %v9903_v48 = vpop.f32.mrb[148].mxu0 }
 0x363   :  { %v9904_v4 = vpop.f32.mrb[149].mxu0 }
 0x364   :  { %v13368_v15 = vadd.f32 %v9904_v4, %v9903_v48  ;;  %v13463_v4 = vld [vmem:[%s15751_s4] ss:$0 sm:$0xff] }
 0x36e   :  { %v9906_v58 = vpop.f32.mrb[150].mxu0 }
 0x36f   :  { %v9907_v35 = vpop.f32.mrb[151].mxu0 }
 0x370   :  { %v13370_v28 = vadd.f32 %v9907_v35, %v9906_v58  ;;  %v10418_v58 = vld [vmem:[%s15752_s5 + $0x574] ss:$8 sps:$4 sm:$0xff]  }
 0x371   :  { %8340 = vmatprep.subr.bf16.mxu1 %v10418_v58 }
 0x37a   :  { %v9909_v12 = vpop.f32.mrb[152].mxu0 }
 0x37b   :  { %v9910_v9 = vpop.f32.mrb[153].mxu0 }
 0x37c   :  { %v13372_v27 = vadd.f32 %v9910_v9, %v9909_v12  ;;  %v2770_v12 = vadd.f32 %v13366_v46, %v13463_v4  ;;  %v2780_v46 = vadd.f32 %v13370_v28, %v13463_v4 }
 0x37e   :  { %v2785_v32 = vadd.f32 %v13372_v27, %v13463_v4 }
 0x386   :  { %v9912_v33 = vpop.f32.mrb[154].mxu0 }
 0x387   :  { %v9913_v2 = vpop.f32.mrb[155].mxu0 }
 0x388   :  { %v13374_v25 = vadd.f32 %v9913_v2, %v9912_v33  ;;  %v2765_v33 = vadd.f32 %v13364_v50, %v13463_v4  ;;  %v10420_v2 = vld [vmem:[%s15752_s5 + $0x570] ss:$8 sps:$4 sm:$0xff]  }
 0x389   :  { %8341 = vmatpush1.bf16.msra.mxu1 %v10420_v2 }
 0x38d   :  { %v9915_v41 = vpop.f32.mrb[156].mxu0 }
 0x38e   :  { %v9916_v19 = vpop.f32.mrb[157].mxu0 }
 0x38f   :  { %v13376_v51 = vadd.f32 %v9916_v19, %v9915_v41 }
 0x391   :  { %v2795_v43 = vadd.f32 %v13376_v51, %v13463_v4 }
 0x393   :  { %v9918_v61 = vpop.f32.mrb[158].mxu0 }
 0x394   :  { %v9919_v16 = vpop.f32.mrb[159].mxu0 }
 0x395   :  { %v13378_v56 = vadd.f32 %v9919_v16, %v9918_v61  ;;  %v10424_v61 = vld [vmem:[%s15752_s5 + $0x584] ss:$8 sps:$4 sm:$0xff]  }
 0x396   :  { %8342 = vmatprep.subr.bf16.mxu1 %v10424_v61 }
 0x397   :  { %v2800_v27 = vadd.f32 %v13378_v56, %v13463_v4 }
 0x3a2   :  { %v9921_v37 = vpop.f32.mrb[160].mxu0 }
 0x3a3   :  { %v9922_v23 = vpop.f32.mrb[161].mxu0 }
 0x3a4   :  { %v13380_v3 = vadd.f32 %v9922_v23, %v9921_v37 }
 0x3a6   :  { %v2805_v51 = vadd.f32 %v13380_v3, %v13463_v4 }
 0x3ae   :  { %v9924_v30 = vpop.f32.mrb[162].mxu0 }
 0x3af   :  { %v9925_v39 = vpop.f32.mrb[163].mxu0 }
 0x3b0   :  { %v13382_v31 = vadd.f32 %v9925_v39, %v9924_v30  ;;  %v2775_v30 = vadd.f32 %v13368_v15, %v13463_v4  ;;  %v10426_v39 = vld [vmem:[%s15752_s5 + $0x580] ss:$8 sps:$4 sm:$0xff]   ;;  %v2790_v15 = vadd.f32 %v13374_v25, %v13463_v4 }
 0x3b1   :  { %8343 = vmatpush1.bf16.msra.mxu1 %v10426_v39 }
 0x3b2   :  { %v2810_v56 = vadd.f32 %v13382_v31, %v13463_v4 }
 0x3ba   :  { %v9927_v29 = vpop.f32.mrb[164].mxu0 }
 0x3bb   :  { %v9928_v14 = vpop.f32.mrb[165].mxu0 }
 0x3bc   :  { %v13384_v0 = vadd.f32 %v9928_v14, %v9927_v29 }
 0x3be   :  { %v2815_v31 = vadd.f32 %v13384_v0, %v13463_v4 }
 0x3c6   :  { %v9930_v13 = vpop.f32.mrb[166].mxu0 }
 0x3c7   :  { %v9931_v55 = vpop.f32.mrb[167].mxu0 }
 0x3c8   :  { %v13386_v59 = vadd.f32 %v9931_v55, %v9930_v13  ;;  %v10430_v13 = vld [vmem:[%s15752_s5 + $0x594] ss:$8 sps:$4 sm:$0xff]  }
 0x3c9   :  { %8344 = vmatprep.subr.bf16.mxu1 %v10430_v13 }
 0x3ca   :  { %8345 = vmatpush1.bf16.msra.mxu1 %v10432_v11  ;;  %v2820_v6 = vadd.f32 %v13386_v59, %v13463_v4 }
 0x3cb   :  { %8346 = vmatprep.subr.bf16.mxu1 %v10436_v10 }
 0x3ce   :  { %8347 = vmatpush1.bf16.msra.mxu1 %v10438_v36 }
 0x3d2   :  { %v9933_v47 = vpop.f32.mrb[168].mxu0 }
 0x3d3   :  { %v9934_v26 = vpop.f32.mrb[169].mxu0 }
 0x3d4   :  { %v13388_v53 = vadd.f32 %v9934_v26, %v9933_v47 }
 0x3d6   :  { %v2825_v59 = vadd.f32 %v13388_v53, %v13463_v4 }
 0x3de   :  { %v9936_v44 = vpop.f32.mrb[170].mxu0 }
 0x3df   :  { %v9937_v8 = vpop.f32.mrb[171].mxu0 }
 0x3e0   :  { %v13435_v20 = vadd.f32 %v9937_v8, %v9936_v44 }
 0x3e2   :  { %v2830_v40 = vadd.f32 %v13435_v20, %v13463_v4 }
 0x3e5   :  { %v9939_v54 = vpop.f32.mrb[172].mxu0 }
 0x3e6   :  { %v9940_v63 = vpop.f32.mrb[173].mxu0 }
 0x3e7   :  { %v13449_v38 = vadd.f32 %v9940_v63, %v9939_v54 }
 0x3e9   :  { %v2835_v20 = vadd.f32 %v13449_v38, %v13463_v4 }
 0x3ea   :  { %v9942_v45 = vpop.f32.mrb[174].mxu0 }
 0x3eb   :  { %v9943_v48 = vpop.f32.mrb[175].mxu0 }
 0x3ec   :  { %v13468_v35 = vadd.f32 %v9943_v48, %v9942_v45 }
 0x3ee   :  { %v10230_v9 = vpop.f32.mrb[176].mxu0  ;;  %v2840_v2 = vadd.f32 %v13468_v35, %v13463_v4 }
 0x3ef   :  { %v2915_v41 = vadd.f32 %v10230_v9, %v2770_v12  ;;  %v2909_v19 = vpop.f32.mrb[177].mxu0 }
 0x3f0   :  { %v2910_v16 = vadd.f32 %v2909_v19, %v2765_v33 }
 0x3f1   :  { %v2989_v37 = vmax.f32 %v2915_v41, 0.0 }
 0x3f2   :  { %v2988_v23 = vmax.f32 %v2910_v16, 0.0  ;;  %v10233_v50 = vpop.f32.mrb[178].mxu0 }
 0x3f3   :  { %3006 = vst.msk [vmem:[#allocation4 + $0x8] sm:$0xff] %vm3004_vm9, %v2989_v37  ;;  %v2925_v29 = vadd.f32 %v10233_v50, %v2780_v46  ;;  %v2919_v14 = vpop.f32.mrb[179].mxu0  ;;  %v10442_v37 = vld [vmem:[%s15752_s5 + $0x5b4] ss:$8 sps:$4 sm:$0xff]  }
 0x3f4   :  { %3005 = vst.msk [vmem:[#allocation4] sm:$0xff] %vm3004_vm9, %v2988_v23  ;;  %v2920_v28 = vadd.f32 %v2919_v14, %v2775_v30  ;;  %8348 = vmatprep.subr.bf16.mxu1 %v10442_v37  ;;  %v10448_v37 = vld [vmem:[%s15752_s5 + $0x5c4] ss:$8 sps:$4 sm:$0xff]  }
 0x3f5   :  { %v2991_v55 = vmax.f32 %v2925_v29, 0.0 }
 0x3f6   :  { %v2990_v47 = vmax.f32 %v2920_v28, 0.0  ;;  %v10236_v26 = vpop.f32.mrb[180].mxu0 }
 0x3f7   :  { %3008 = vst.msk [vmem:[#allocation4 + $0x18] sm:$0xff] %vm3004_vm9, %v2991_v55  ;;  %v2935_v24 = vadd.f32 %v10236_v26, %v2790_v15  ;;  %v2929_v62 = vpop.f32.mrb[181].mxu0 }
 0x3f8   :  { %3007 = vst.msk [vmem:[#allocation4 + $0x10] sm:$0xff] %vm3004_vm9, %v2990_v47  ;;  %v2930_v25 = vadd.f32 %v2929_v62, %v2785_v32 }
 0x3f9   :  { %v2993_v34 = vmax.f32 %v2935_v24, 0.0 }
 0x3fa   :  { %v2992_v52 = vmax.f32 %v2930_v25, 0.0  ;;  %v10239_v57 = vpop.f32.mrb[182].mxu0 }
 0x3fb   :  { %3010 = vst.msk [vmem:[#allocation4 + $0x28] sm:$0xff] %vm3004_vm9, %v2993_v34  ;;  %v2945_v18 = vadd.f32 %v10239_v57, %v2800_v27  ;;  %v2939_v42 = vpop.f32.mrb[183].mxu0 }
 0x3fc   :  { %3009 = vst.msk [vmem:[#allocation4 + $0x20] sm:$0xff] %vm3004_vm9, %v2992_v52  ;;  %v2940_v44 = vadd.f32 %v2939_v42, %v2795_v43  ;;  %v10444_v43 = vld [vmem:[%s15752_s5 + $0x5b0] ss:$8 sps:$4 sm:$0xff]  }
 0x3fd   :  { %v2995_v60 = vmax.f32 %v2945_v18, 0.0  ;;  %8349 = vmatpush1.bf16.msra.mxu1 %v10444_v43 }
 0x3fe   :  { %v2994_v8 = vmax.f32 %v2940_v44, 0.0  ;;  %v10242_v17 = vpop.f32.mrb[184].mxu0  ;;  %v9132_v55 = vld.sshfl [vmem:[#allocation4 + $0x1b] sm:$0x1 pattern:$0x76325410]  ;;  %8350 = vmatprep.subr.bf16.mxu1 %v10448_v37 }
 0x3ff   :  { %3012 = vst.msk [vmem:[#allocation4 + $0x38] sm:$0xff] %vm3004_vm9, %v2995_v60  ;;  %v2955_v49 = vadd.f32 %v10242_v17, %v2810_v56  ;;  %v2949_v1 = vpop.f32.mrb[185].mxu0  ;;  %v9116_v35 = vld.sshfl [vmem:[#allocation4 + $0x13] sm:$0x1 pattern:$0x76325410] }
 0x400   :  { %3011 = vst.msk [vmem:[#allocation4 + $0x30] sm:$0xff] %vm3004_vm9, %v2994_v8  ;;  %v2950_v5 = vadd.f32 %v2949_v1, %v2805_v51  ;;  %v9112_v30 = vld.sshfl [vmem:[#allocation4 + $0x11] sm:$0x1 pattern:$0x76325410] }
 0x401   :  { %v2997_v22 = vmax.f32 %v2955_v49, 0.0  ;;  %v9124_v13 = vld.sshfl [vmem:[#allocation4 + $0x17] sm:$0x1 pattern:$0x76325410] }
 0x402   :  { %v2996_v54 = vmax.f32 %v2950_v5, 0.0  ;;  %v10245_v63 = vpop.f32.mrb[186].mxu0  ;;  %v9120_v26 = vld.sshfl [vmem:[#allocation4 + $0x15] sm:$0x1 pattern:$0x76325410] }
 0x403   :  { %3014 = vst.msk [vmem:[#allocation4 + $0x48] sm:$0xff] %vm3004_vm9, %v2997_v22  ;;  %v2965_v3 = vadd.f32 %v10245_v63, %v2820_v6  ;;  %v2959_v7 = vpop.f32.mrb[187].mxu0  ;;  %v9128_v60 = vld.sshfl [vmem:[#allocation4 + $0x19] sm:$0x1 pattern:$0x76325410] }
 0x404   :  { %3013 = vst.msk [vmem:[#allocation4 + $0x40] sm:$0xff] %vm3004_vm9, %v2996_v54  ;;  %v2960_v21 = vadd.f32 %v2959_v7, %v2815_v31  ;;  %v9140_v1 = vld.sshfl [vmem:[#allocation4 + $0x1f] sm:$0x1 pattern:$0x76325410] }
 0x405   :  { %v2999_v45 = vmax.f32 %v2965_v3, 0.0  ;;  %v9136_v5 = vld.sshfl [vmem:[#allocation4 + $0x1d] sm:$0x1 pattern:$0x76325410] }
 0x406   :  { %v2998_v48 = vmax.f32 %v2960_v21, 0.0  ;;  %v10248_v58 = vpop.f32.mrb[188].mxu0 }
 0x407   :  { %3016 = vst.msk [vmem:[#allocation4 + $0x58] sm:$0xff] %vm3004_vm9, %v2999_v45  ;;  %v2975_v12 = vadd.f32 %v10248_v58, %v2830_v40  ;;  %v2969_v0 = vpop.f32.mrb[189].mxu0 }
 0x408   :  { %3015 = vst.msk [vmem:[#allocation4 + $0x50] sm:$0xff] %vm3004_vm9, %v2998_v48  ;;  %v2970_v9 = vadd.f32 %v2969_v0, %v2825_v59  ;;  %v9148_v0 = vld.sshfl [vmem:[#allocation4 + $0x23] sm:$0x1 pattern:$0x76325410] }
 0x409   :  { %v3001_v33 = vmax.f32 %v2975_v12, 0.0 }
 0x40a   :  { %v3000_v41 = vmax.f32 %v2970_v9, 0.0  ;;  %v10251_v19 = vpop.f32.mrb[190].mxu0  ;;  %v9144_v9 = vld.sshfl [vmem:[#allocation4 + $0x21] sm:$0x1 pattern:$0x76325410] }
 0x40b   :  { %3018 = vst.msk [vmem:[#allocation4 + $0x68] sm:$0xff] %vm3004_vm9, %v3001_v33  ;;  %v2985_v61 = vadd.f32 %v10251_v19, %v2840_v2  ;;  %v2979_v53 = vpop.f32.mrb[191].mxu0  ;;  %v10445_v33 = vld [vmem:[%s15752_s5 + $0x40] ss:$8 sps:$4 sm:$0xff]  }
 0x40c   :  { %3017 = vst.msk [vmem:[#allocation4 + $0x60] sm:$0xff] %vm3004_vm9, %v3000_v41  ;;  %v2980_v16 = vadd.f32 %v2979_v53, %v2835_v20  ;;  %v10447_v20 = vld [vmem:[%s15752_s5 + $0x44] ss:$8 sps:$4 sm:$0xff]  }
 0x40d   :  { %v3003_v46 = vmax.f32 %v2985_v61, 0.0  ;;  %8129 = vmatprep.subr.bf16.mxu0 %v10447_v20 }
 0x40e   :  { %v3002_v23 = vmax.f32 %v2980_v16, 0.0  ;;  %v9133_v50 = vld.sshfl [vmem:[#allocation4 + $0x5b] sm:$0x1 pattern:$0x76325410]  ;;  %8130 = vmatpush1.bf16.msra.mxu0 %v10445_v33 }
 0x40f   :  { %3020 = vst.msk [vmem:[#allocation4 + $0x78] sm:$0xff] %vm3004_vm9, %v3003_v46  ;;  %v9117_v38 = vld.sshfl [vmem:[#allocation4 + $0x53] sm:$0x1 pattern:$0x76325410]  ;;  %v13542_v29 = vrot.slane %v9133_v50, 7 }
 0x410   :  { %3019 = vst.msk [vmem:[#allocation4 + $0x70] sm:$0xff] %vm3004_vm9, %v3002_v23  ;;  %v3580_v4 = vrot.slane %v9117_v38, 7  ;;  %v9113_v39 = vld.sshfl [vmem:[#allocation4 + $0x51] sm:$0x1 pattern:$0x76325410] }
 0x411   :  { %v3524_v14 = vrot.slane %v9113_v39, 7  ;;  %v9125_v28 = vld.sshfl [vmem:[#allocation4 + $0x57] sm:$0x1 pattern:$0x76325410]  ;;  %v3805_v52 = vsel %vm3044_vm10, %v13542_v29, %v9132_v55 }
 0x412   :  { %v3581_v15 = vsel %vm3044_vm10, %v3580_v4, %v9116_v35  ;;  %v3692_v47 = vrot.slane %v9125_v28, 7  ;;  %v9121_v32 = vld.sshfl [vmem:[#allocation4 + $0x55] sm:$0x1 pattern:$0x76325410]  ;;  %v3806_v54 = vsel %vm3046_vm11, %v13542_v29, %v3805_v52 }
 0x413   :  { %v3582_v11 = vsel %vm3046_vm11, %v3580_v4, %v3581_v15  ;;  %v3525_v24 = vsel %vm3044_vm10, %v3524_v14, %v9112_v30  ;;  %v3636_v62 = vrot.slane %v9121_v32, 7  ;;  %v9129_v10 = vld.sshfl [vmem:[#allocation4 + $0x59] sm:$0x1 pattern:$0x76325410]  ;;  %v3807_v41 = vsel %vm3048_vm12, %v13542_v29, %v3806_v54 }
 0x414   :  { %v3583_v25 = vsel %vm3048_vm12, %v3580_v4, %v3582_v11  ;;  %v3526_v34 = vsel %vm3046_vm11, %v3524_v14, %v3525_v24  ;;  %v3693_v27 = vsel %vm3044_vm10, %v3692_v47, %v9124_v13  ;;  %v9141_v57 = vld.sshfl [vmem:[#allocation4 + $0x5f] sm:$0x1 pattern:$0x76325410]  ;;  %v3748_v49 = vrot.slane %v9129_v10, 7 }
 0x415   :  { %v3584_v36 = vsel %vm3050_vm13, %v3580_v4, %v3583_v25  ;;  %v3527_v18 = vsel %vm3048_vm12, %v3524_v14, %v3526_v34  ;;  %v3694_v42 = vsel %vm3046_vm11, %v3692_v47, %v3693_v27  ;;  %v3637_v44 = vsel %vm3044_vm10, %v3636_v62, %v9120_v26  ;;  %v9137_v56 = vld.sshfl [vmem:[#allocation4 + $0x5d] sm:$0x1 pattern:$0x76325410]  ;;  %v10450_v38 = vld [vmem:[%s15752_s5 + $0x5c0] ss:$8 sps:$4 sm:$0xff]  }
 0x416   :  { %3585 = vrot.lane.b32.xlu1 %v3584_v36, %s11202_s23  ;;  %v3528_v8 = vsel %vm3050_vm13, %v3524_v14, %v3527_v18  ;;  %v3695_v17 = vsel %vm3048_vm12, %v3692_v47, %v3694_v42  ;;  %v3638_v51 = vsel %vm3046_vm11, %v3636_v62, %v3637_v44  ;;  %v9149_v22 = vld.sshfl [vmem:[#allocation4 + $0x63] sm:$0x1 pattern:$0x76325410]  ;;  %v3916_v63 = vrot.slane %v9141_v57, 7  ;;  %8351 = vmatpush1.bf16.msra.mxu1 %v10450_v38 }
 0x417   :  { %3529 = vrot.lane.b32.xlu0 %v3528_v8, %s11202_s23  ;;  %v3639_v6 = vsel %vm3048_vm12, %v3636_v62, %v3638_v51  ;;  %v3860_v31 = vrot.slane %v9137_v56, 7  ;;  %v9145_v3 = vld.sshfl [vmem:[#allocation4 + $0x61] sm:$0x1 pattern:$0x76325410]  ;;  %v3749_v7 = vsel %vm3044_vm10, %v3748_v49, %v9128_v60  ;;  %v13568_v21 = vrot.slane %v9149_v22, 7 }
 0x418   :  { %v13570_v45 = vrot.slane %v9145_v3, 7  ;;  %v9157_v40 = vld.sshfl [vmem:[#allocation4 + $0x67] sm:$0x1 pattern:$0x76325410]  ;;  %v3696_v48 = vsel %vm3050_vm13, %v3692_v47, %v3695_v17  ;;  %v3750_v58 = vsel %vm3046_vm11, %v3748_v49, %v3749_v7  ;;  %v3917_v59 = vsel %vm3044_vm10, %v3916_v63, %v9140_v1 }
 0x419   :  { %v3861_v12 = vsel %vm3044_vm10, %v3860_v31, %v9136_v5  ;;  %v3640_v2 = vsel %vm3050_vm13, %v3636_v62, %v3639_v6  ;;  %v9153_v19 = vld.sshfl [vmem:[#allocation4 + $0x65] sm:$0x1 pattern:$0x76325410]  ;;  %v3751_v61 = vsel %vm3048_vm12, %v3748_v49, %v3750_v58  ;;  %v3918_v53 = vsel %vm3046_vm11, %v3916_v63, %v3917_v59  ;;  %v10451_v25 = vld [vmem:[%s15752_s5 + $0x50] ss:$8 sps:$4 sm:$0xff]  }
 0x41a   :  { %3697 = vrot.lane.b32.xlu1 %v3696_v48, %s11202_s23  ;;  %v13589_v16 = vrot.slane %v9157_v40, 7  ;;  %v3862_v46 = vsel %vm3046_vm11, %v3860_v31, %v3861_v12  ;;  %v4029_v23 = vsel %vm3044_vm10, %v13568_v21, %v9148_v0  ;;  %v3973_v50 = vsel %vm3044_vm10, %v13570_v45, %v9144_v9  ;;  %v9165_v35 = vld.sshfl [vmem:[#allocation4 + $0x6b] sm:$0x1 pattern:$0x76325410] }
 0x41b   :  { %3641 = vrot.lane.b32.xlu0 %v3640_v2, %s11202_s23  ;;  %v3808_v4 = vsel %vm3050_vm13, %v13542_v29, %v3807_v41  ;;  %v9156_v30 = vld.sshfl [vmem:[#allocation4 + $0x27] sm:$0x1 pattern:$0x76325410]  ;;  %v13604_v39 = vrot.slane %v9153_v19, 7  ;;  %v3752_v13 = vsel %vm3050_vm13, %v3748_v49, %v3751_v61  ;;  %v3919_v28 = vsel %vm3048_vm12, %v3916_v63, %v3918_v53 }
 0x41c   :  { %v9161_v14 = vld.sshfl [vmem:[#allocation4 + $0x69] sm:$0x1 pattern:$0x76325410]  ;;  %v3863_v15 = vsel %vm3048_vm12, %v3860_v31, %v3862_v46  ;;  %v4030_v29 = vsel %vm3046_vm11, %v13568_v21, %v4029_v23  ;;  %v3974_v47 = vsel %vm3046_vm11, %v13570_v45, %v3973_v50  ;;  %v13615_v26 = vrot.slane %v9165_v35, 7 }
 0x41d   :  { %v9152_v55 = vld.sshfl [vmem:[#allocation4 + $0x25] sm:$0x1 pattern:$0x76325410]  ;;  %v4141_v11 = vsel %vm3044_vm10, %v13589_v16, %v9156_v30  ;;  %v13621_v10 = vrot.slane %v9161_v14, 7  ;;  %v3920_v34 = vsel %vm3050_vm13, %v3916_v63, %v3919_v28  ;;  %v3864_v43 = vsel %vm3050_vm13, %v3860_v31, %v3863_v15 }
 0x41e   :  { %3809 = vrot.lane.b32.xlu1 %v3808_v4, %s11202_s23  ;;  %v9173_v32 = vld.sshfl [vmem:[#allocation4 + $0x6f] sm:$0x1 pattern:$0x76325410]  ;;  %v4085_v24 = vsel %vm3044_vm10, %v13604_v39, %v9152_v55  ;;  %v10453_v57 = vld [vmem:[%s15752_s5 + $0x54] ss:$8 sps:$4 sm:$0xff]   ;;  %v4031_v36 = vsel %vm3048_vm12, %v13568_v21, %v4030_v29  ;;  %v3975_v18 = vsel %vm3048_vm12, %v13570_v45, %v3974_v47  ;;  %v4142_v60 = vsel %vm3046_vm11, %v13589_v16, %v4141_v11 }
 0x41f   :  { %3753 = vrot.lane.b32.xlu0 %v3752_v13, %s11202_s23  ;;  %v9164_v62 = vld.sshfl [vmem:[#allocation4 + $0x2b] sm:$0x1 pattern:$0x76325410]  ;;  %v10454_v44 = vld [vmem:[%s15752_s5 + $0x5d4] ss:$8 sps:$4 sm:$0xff]   ;;  %v4086_v56 = vsel %vm3046_vm11, %v13604_v39, %v4085_v24  ;;  %8131 = vmatprep.subr.bf16.mxu0 %v10453_v57  ;;  %v4032_v6 = vsel %vm3050_vm13, %v13568_v21, %v4031_v36  ;;  %v3976_v31 = vsel %vm3050_vm13, %v13570_v45, %v3975_v18 }
 0x420   :  { %v9160_v27 = vld.sshfl [vmem:[#allocation4 + $0x29] sm:$0x1 pattern:$0x76325410]  ;;  %v4253_v8 = vsel %vm3044_vm10, %v13615_v26, %v9164_v62  ;;  %v13646_v17 = vrot.slane %v9173_v32, 7  ;;  %8132 = vmatpush1.bf16.msra.mxu0 %v10451_v25  ;;  %8352 = vmatprep.subr.bf16.mxu1 %v10454_v44  ;;  %v4143_v3 = vsel %vm3048_vm12, %v13589_v16, %v4142_v60  ;;  %v4087_v7 = vsel %vm3048_vm12, %v13604_v39, %v4086_v56 }
 0x421   :  { %v9169_v52 = vld.sshfl [vmem:[#allocation4 + $0x6d] sm:$0x1 pattern:$0x76325410]  ;;  %v4197_v49 = vsel %vm3044_vm10, %v13621_v10, %v9160_v27  ;;  %v10456_v22 = vld [vmem:[%s15752_s5 + $0x5d0] ss:$8 sps:$4 sm:$0xff]   ;;  %v4254_v40 = vsel %vm3046_vm11, %v13615_v26, %v4253_v8  ;;  %v4144_v41 = vsel %vm3050_vm13, %v13589_v16, %v4143_v3  ;;  %v4088_v19 = vsel %vm3050_vm13, %v13604_v39, %v4087_v7 }
 0x422   :  { %3921 = vrot.lane.b32.xlu1 %v3920_v34, %s11202_s23  ;;  %v9085_v42 = vld.sshfl [vmem:[#allocation4 + $0x43] sm:$0x1 pattern:$0x76325410]  ;;  %v13650_v5 = vrot.slane %v9169_v52, 7  ;;  %v4198_v58 = vsel %vm3046_vm11, %v13621_v10, %v4197_v49  ;;  %8353 = vmatpush1.bf16.msra.mxu1 %v10456_v22  ;;  %v4255_v20 = vsel %vm3048_vm12, %v13615_v26, %v4254_v40 }
 0x423   :  { %3865 = vrot.lane.b32.xlu0 %v3864_v43, %s11202_s23  ;;  %v9081_v51 = vld.sshfl [vmem:[#allocation4 + $0x41] sm:$0x1 pattern:$0x76325410]  ;;  %v13674_v59 = vrot.slane %v9085_v42, 7  ;;  %v4199_v37 = vsel %vm3048_vm12, %v13621_v10, %v4198_v58  ;;  %v4256_v55 = vsel %vm3050_vm13, %v13615_v26, %v4255_v20 }
 0x424   :  { %v9172_v1 = vld.sshfl [vmem:[#allocation4 + $0x2f] sm:$0x1 pattern:$0x76325410]  ;;  %v10457_v21 = vld [vmem:[%s15752_s5 + $0x60] ss:$8 sps:$4 sm:$0xff]   ;;  %v4200_v15 = vsel %vm3050_vm13, %v13621_v10, %v4199_v37 }
 0x425   :  { %v9168_v54 = vld.sshfl [vmem:[#allocation4 + $0x2d] sm:$0x1 pattern:$0x76325410]  ;;  %v4365_v45 = vsel %vm3044_vm10, %v13646_v17, %v9172_v1  ;;  %v13681_v33 = vrot.slane %v9081_v51, 7 }
 0x426   :  { %v9093_v63 = vld.sshfl [vmem:[#allocation4 + $0x47] sm:$0x1 pattern:$0x76325410]  ;;  %4033 = vrot.lane.b32.xlu1 %v4032_v6, %s11202_s23  ;;  %v4309_v0 = vsel %vm3044_vm10, %v13650_v5, %v9168_v54  ;;  %v10462_v53 = vld [vmem:[%s15752_s5 + $0x5e0] ss:$8 sps:$4 sm:$0xff]   ;;  %v4366_v16 = vsel %vm3046_vm11, %v13646_v17, %v4365_v45 }
 0x427   :  { %v9089_v48 = vld.sshfl [vmem:[#allocation4 + $0x45] sm:$0x1 pattern:$0x76325410]  ;;  %3977 = vrot.lane.b32.xlu0 %v3976_v31, %s11202_s23  ;;  %v13700_v46 = vrot.slane %v9093_v63, 7  ;;  %v4310_v35 = vsel %vm3046_vm11, %v13650_v5, %v4309_v0  ;;  %v4367_v29 = vsel %vm3048_vm12, %v13646_v17, %v4366_v16 }
 0x428   :  { %v10459_v12 = vld [vmem:[%s15752_s5 + $0x64] ss:$8 sps:$4 sm:$0xff]   ;;  %v9084_v9 = vld.sshfl [vmem:[#allocation4 + $0x3] sm:$0x1 pattern:$0x76325410]  ;;  %v4311_v11 = vsel %vm3048_vm12, %v13650_v5, %v4310_v35  ;;  %v4368_v52 = vsel %vm3050_vm13, %v13646_v17, %v4367_v29 }
 0x429   :  { %v10460_v2 = vld [vmem:[%s15752_s5 + $0x5e4] ss:$8 sps:$4 sm:$0xff]   ;;  %v9080_v61 = vld.sshfl [vmem:[#allocation4 + $0x1] sm:$0x1 pattern:$0x76325410]  ;;  %8133 = vmatprep.subr.bf16.mxu0 %v10459_v12  ;;  %v3133_v38 = vsel %vm3044_vm10, %v13674_v59, %v9084_v9  ;;  %v4312_v43 = vsel %vm3050_vm13, %v13650_v5, %v4311_v11 }
 0x42a   :  { %4145 = vrot.lane.b32.xlu1 %v4144_v41, %s11202_s23  ;;  %v13702_v23 = vrot.slane %v9089_v48, 7  ;;  %8134 = vmatpush1.bf16.msra.mxu0 %v10457_v21  ;;  %v10463_v50 = vld [vmem:[%s15752_s5 + $0x70] ss:$8 sps:$4 sm:$0xff]   ;;  %v10465_v39 = vld [vmem:[%s15752_s5 + $0x74] ss:$8 sps:$4 sm:$0xff]   ;;  %v3076_v14 = vsel %vm3044_vm10, %v13681_v33, %v9080_v61  ;;  %v3134_v24 = vsel %vm3046_vm11, %v13674_v59, %v3133_v38 }
 0x42b   :  { %4089 = vrot.lane.b32.xlu0 %v4088_v19, %s11202_s23  ;;  %v9092_v4 = vld.sshfl [vmem:[#allocation4 + $0x7] sm:$0x1 pattern:$0x76325410]  ;;  %8354 = vmatprep.subr.bf16.mxu1 %v10460_v2  ;;  %v10466_v28 = vld [vmem:[%s15752_s5 + $0x5f4] ss:$8 sps:$4 sm:$0xff]   ;;  %v3077_v25 = vsel %vm3046_vm11, %v13681_v33, %v3076_v14  ;;  %v3135_v36 = vsel %vm3048_vm12, %v13674_v59, %v3134_v24 }
 0x42c   :  { %v9181_v30 = vld.sshfl [vmem:[#allocation4 + $0x73] sm:$0x1 pattern:$0x76325410]  ;;  %8355 = vmatpush1.bf16.msra.mxu1 %v10462_v53  ;;  %8135 = vmatprep.subr.bf16.mxu0 %v10465_v39  ;;  %v3245_v26 = vsel %vm3044_vm10, %v13700_v46, %v9092_v4  ;;  %v3078_v60 = vsel %vm3048_vm12, %v13681_v33, %v3077_v25  ;;  %v10469_v49 = vld [vmem:[%s15752_s5 + $0x80] ss:$8 sps:$4 sm:$0xff]   ;;  %v3136_v3 = vsel %vm3050_vm13, %v13674_v59, %v3135_v36 }
 0x42d   :  { %v9177_v13 = vld.sshfl [vmem:[#allocation4 + $0x71] sm:$0x1 pattern:$0x76325410]  ;;  %v13733_v62 = vrot.slane %v9181_v30, 7  ;;  %8356 = vmatprep.subr.bf16.mxu1 %v10466_v28  ;;  %v3246_v18 = vsel %vm3046_vm11, %v13700_v46, %v3245_v26  ;;  %v3079_v7 = vsel %vm3050_vm13, %v13681_v33, %v3078_v60 }
 0x42e   :  { %v9088_v47 = vld.sshfl [vmem:[#allocation4 + $0x5] sm:$0x1 pattern:$0x76325410]  ;;  %4257 = vrot.lane.b32.xlu1 %v4256_v55, %s11202_s23  ;;  %8136 = vmatpush1.bf16.msra.mxu0 %v10463_v50  ;;  %v10468_v27 = vld [vmem:[%s15752_s5 + $0x5f0] ss:$8 sps:$4 sm:$0xff]   ;;  %v3247_v40 = vsel %vm3048_vm12, %v13700_v46, %v3246_v18 }
 0x42f   :  { %v9189_v32 = vld.sshfl [vmem:[#allocation4 + $0x77] sm:$0x1 pattern:$0x76325410]  ;;  %4201 = vrot.lane.b32.xlu0 %v4200_v15, %s11202_s23  ;;  %v3189_v57 = vsel %vm3044_vm10, %v13702_v23, %v9088_v47  ;;  %v13751_v44 = vrot.slane %v9177_v13, 7  ;;  %v3248_v53 = vsel %vm3050_vm13, %v13700_v46, %v3247_v40 }
 0x430   :  { %v9185_v10 = vld.sshfl [vmem:[#allocation4 + $0x75] sm:$0x1 pattern:$0x76325410]  ;;  %8357 = vmatpush1.bf16.msra.mxu1 %v10468_v27  ;;  %v13756_v8 = vrot.slane %v9189_v32, 7  ;;  %v3190_v1 = vsel %vm3046_vm11, %v13702_v23, %v3189_v57 }
 0x431   :  { %v9101_v34 = vld.sshfl [vmem:[#allocation4 + $0x4b] sm:$0x1 pattern:$0x76325410]  ;;  %v13758_v17 = vrot.slane %v9185_v10, 7  ;;  %v3191_v58 = vsel %vm3048_vm12, %v13702_v23, %v3190_v1 }
 0x432   :  { %v9180_v42 = vld.sshfl [vmem:[#allocation4 + $0x33] sm:$0x1 pattern:$0x76325410]  ;;  %4369 = vrot.lane.b32.xlu1 %v4368_v52, %s11202_s23  ;;  %v13760_v51 = vrot.slane %v9101_v34, 7  ;;  %v3192_v38 = vsel %vm3050_vm13, %v13702_v23, %v3191_v58 }
 0x433   :  { %v9176_v56 = vld.sshfl [vmem:[#allocation4 + $0x31] sm:$0x1 pattern:$0x76325410]  ;;  %4313 = vrot.lane.b32.xlu0 %v4312_v43, %s11202_s23  ;;  %v4477_v5 = vsel %vm3044_vm10, %v13733_v62, %v9180_v42  ;;  %v10471_v54 = vld [vmem:[%s15752_s5 + $0x84] ss:$8 sps:$4 sm:$0xff]  }
 0x434   :  { %v9188_v22 = vld.sshfl [vmem:[#allocation4 + $0x37] sm:$0x1 pattern:$0x76325410]  ;;  %v4421_v48 = vsel %vm3044_vm10, %v13751_v44, %v9176_v56  ;;  %8137 = vmatprep.subr.bf16.mxu0 %v10471_v54  ;;  %v4478_v45 = vsel %vm3046_vm11, %v13733_v62, %v4477_v5  ;;  %v10475_v35 = vld [vmem:[%s15752_s5 + $0x604] ss:$8 sps:$4 sm:$0xff]  }
 0x435   :  { %v9097_v6 = vld.sshfl [vmem:[#allocation4 + $0x49] sm:$0x1 pattern:$0x76325410]  ;;  %v4589_v59 = vsel %vm3044_vm10, %v13756_v8, %v9188_v22  ;;  %8138 = vmatpush1.bf16.msra.mxu0 %v10469_v49  ;;  %v4422_v41 = vsel %vm3046_vm11, %v13751_v44, %v4421_v48  ;;  %v4479_v37 = vsel %vm3048_vm12, %v13733_v62, %v4478_v45  ;;  %8367 = vmatprep.subr.bf16.mxu1 %v10475_v35  ;;  %v10476_v47 = vld [vmem:[%s15752_s5 + $0x90] ss:$8 sps:$4 sm:$0xff]  }
 0x436   :  { %v9100_v63 = vld.sshfl [vmem:[#allocation4 + $0xb] sm:$0x1 pattern:$0x76325410]  ;;  %3137 = vrot.lane.b32.xlu1 %v3136_v3, %s11202_s23  ;;  %v13793_v33 = vrot.slane %v9097_v6, 7  ;;  %v4590_v16 = vsel %vm3046_vm11, %v13756_v8, %v4589_v59  ;;  %v4423_v39 = vsel %vm3048_vm12, %v13751_v44, %v4422_v41  ;;  %v4480_v23 = vsel %vm3050_vm13, %v13733_v62, %v4479_v37 }
 0x437   :  { %v9109_v31 = vld.sshfl [vmem:[#allocation4 + $0x4f] sm:$0x1 pattern:$0x76325410]  ;;  %3080 = vrot.lane.b32.xlu0 %v3079_v7, %s11202_s23  ;;  %v3357_v9 = vsel %vm3044_vm10, %v13760_v51, %v9100_v63  ;;  %v4591_v55 = vsel %vm3048_vm12, %v13756_v8, %v4590_v16  ;;  %v4424_v10 = vsel %vm3050_vm13, %v13751_v44, %v4423_v39  ;;  %v10478_v57 = vld [vmem:[%s15752_s5 + $0x94] ss:$8 sps:$4 sm:$0xff]  }
 0x438   :  { %v9105_v21 = vld.sshfl [vmem:[#allocation4 + $0x4d] sm:$0x1 pattern:$0x76325410]  ;;  %v13795_v2 = vrot.slane %v9109_v31, 7  ;;  %v3358_v46 = vsel %vm3046_vm11, %v13760_v51, %v3357_v9  ;;  %v4592_v60 = vsel %vm3050_vm13, %v13756_v8, %v4591_v55  ;;  %8139 = vmatprep.subr.bf16.mxu0 %v10478_v57 }
 0x439   :  { %v9184_v12 = vld.sshfl [vmem:[#allocation4 + $0x35] sm:$0x1 pattern:$0x76325410]  ;;  %v13799_v61 = vrot.slane %v9105_v21, 7  ;;  %v3359_v11 = vsel %vm3048_vm12, %v13760_v51, %v3358_v46  ;;  %8140 = vmatpush1.bf16.msra.mxu0 %v10476_v47 }
 0x43a   :  { %v4533_v0 = vsel %vm3044_vm10, %v13758_v17, %v9184_v12  ;;  %v9096_v19 = vld.sshfl [vmem:[#allocation4 + $0x9] sm:$0x1 pattern:$0x76325410]  ;;  %3249 = vrot.lane.b32.xlu1 %v3248_v53, %s11202_s23  ;;  %v3360_v49 = vsel %vm3050_vm13, %v13760_v51, %v3359_v11  ;;  %v10484_v46 = vld [vmem:[%s15752_s5 + $0xa4] ss:$8 sps:$4 sm:$0xff]  }
 0x43b   :  { %v9108_v20 = vld.sshfl [vmem:[#allocation4 + $0xf] sm:$0x1 pattern:$0x76325410]  ;;  %v4534_v4 = vsel %vm3046_vm11, %v13758_v17, %v4533_v0  ;;  %3193 = vrot.lane.b32.xlu0 %v3192_v38, %s11202_s23  ;;  %v3301_v14 = vsel %vm3044_vm10, %v13793_v33, %v9096_v19  ;;  %v10482_v53 = vld [vmem:[%s15752_s5 + $0xa0] ss:$8 sps:$4 sm:$0xff]   ;;  %8141 = vmatprep.subr.bf16.mxu0 %v10484_v46 }
 0x43c   :  { %v9104_v50 = vld.sshfl [vmem:[#allocation4 + $0xd] sm:$0x1 pattern:$0x76325410]  ;;  %v3469_v13 = vsel %vm3044_vm10, %v13795_v2, %v9108_v20  ;;  %v4535_v32 = vsel %vm3048_vm12, %v13758_v17, %v4534_v4  ;;  %v3302_v25 = vsel %vm3046_vm11, %v13793_v33, %v3301_v14 }
 0x43d   :  { %v9197_v30 = vld.sshfl [vmem:[#allocation4 + $0x7b] sm:$0x1 pattern:$0x76325410]  ;;  %v3413_v15 = vsel %vm3044_vm10, %v13799_v61, %v9104_v50  ;;  %v3470_v34 = vsel %vm3046_vm11, %v13795_v2, %v3469_v13  ;;  %v4536_v56 = vsel %vm3050_vm13, %v13758_v17, %v4535_v32  ;;  %v3303_v54 = vsel %vm3048_vm12, %v13793_v33, %v3302_v25  ;;  %8142 = vmatpush1.bf16.msra.mxu0 %v10482_v53 }
 0x43e   :  { %v9193_v28 = vld.sshfl [vmem:[#allocation4 + $0x79] sm:$0x1 pattern:$0x76325410]  ;;  %v13837_v24 = vrot.slane %v9197_v30, 7  ;;  %4481 = vrot.lane.b32.xlu1 %v4480_v23, %s11202_s23  ;;  %v3414_v43 = vsel %vm3046_vm11, %v13799_v61, %v3413_v15  ;;  %v3471_v63 = vsel %vm3048_vm12, %v13795_v2, %v3470_v34  ;;  %v3304_v37 = vsel %vm3050_vm13, %v13793_v33, %v3303_v54 }
 0x43f   :  { %v9115_v29 = vld.sshfl [vmem:[#allocation4 + $0x52] sm:$0x1 pattern:$0x76325410]  ;;  %4425 = vrot.lane.b32.xlu0 %v4424_v10, %s11202_s23  ;;  %v13852_v36 = vrot.slane %v9193_v28, 7  ;;  %v3415_v51 = vsel %vm3048_vm12, %v13799_v61, %v3414_v43  ;;  %v3472_v16 = vsel %vm3050_vm13, %v13795_v2, %v3471_v63 }
 0x440   :  { %v3553_v26 = vrot.slane %v9115_v29, 7  ;;  %v9114_v62 = vld.sshfl [vmem:[#allocation4 + $0x12] sm:$0x1 pattern:$0x76325410]  ;;  %v3416_v50 = vsel %vm3050_vm13, %v13799_v61, %v3415_v51 }
 0x441   :  { %v9205_v27 = vld.sshfl [vmem:[#allocation4 + $0x7f] sm:$0x1 pattern:$0x76325410]  ;;  %v10488_v54 = vld [vmem:[%s15752_s5 + $0xb0] ss:$8 sps:$4 sm:$0xff]  }
 0x442   :  { %v9111_v52 = vld.sshfl [vmem:[#allocation4 + $0x50] sm:$0x1 pattern:$0x76325410]  ;;  %v3554_v42 = vsel %vm3044_vm10, %v3553_v26, %v9114_v62  ;;  %4593 = vrot.lane.b32.xlu1 %v4592_v60, %s11202_s23  ;;  %v13878_v45 = vrot.slane %v9205_v27, 7 }
 0x443   :  { %v9201_v18 = vld.sshfl [vmem:[#allocation4 + $0x7d] sm:$0x1 pattern:$0x76325410]  ;;  %v3497_v44 = vrot.slane %v9111_v52, 7  ;;  %v3555_v22 = vsel %vm3046_vm11, %v3553_v26, %v3554_v42  ;;  %4537 = vrot.lane.b32.xlu0 %v4536_v56, %s11202_s23 }
 0x444   :  { %v9196_v1 = vld.sshfl [vmem:[#allocation4 + $0x3b] sm:$0x1 pattern:$0x76325410]  ;;  %v3556_v8 = vsel %vm3048_vm12, %v3553_v26, %v3555_v22  ;;  %v13882_v9 = vrot.slane %v9201_v18, 7 }
 0x445   :  { %v9192_v5 = vld.sshfl [vmem:[#allocation4 + $0x39] sm:$0x1 pattern:$0x76325410]  ;;  %v3557_v3 = vsel %vm3050_vm13, %v3553_v26, %v3556_v8  ;;  %v4701_v21 = vsel %vm3044_vm10, %v13837_v24, %v9196_v1 }
 0x446   :  { %v9110_v6 = vld.sshfl [vmem:[#allocation4 + $0x10] sm:$0x1 pattern:$0x76325410]  ;;  %v4645_v58 = vsel %vm3044_vm10, %v13852_v36, %v9192_v5  ;;  %3559 = vst.msk [vmem:[#allocation5 + $0x12] sm:$0x3] %vm3053_vm14, %v3557_v3  ;;  %3361 = vrot.lane.b32.xlu1 %v3360_v49, %s11202_s23  ;;  %v4702_v33 = vsel %vm3046_vm11, %v13837_v24, %v4701_v21 }
 0x447   :  { %v3498_v31 = vsel %vm3044_vm10, %v3497_v44, %v9110_v6  ;;  %v9123_v17 = vld.sshfl [vmem:[#allocation4 + $0x56] sm:$0x1 pattern:$0x76325410]  ;;  %3305 = vrot.lane.b32.xlu0 %v3304_v37, %s11202_s23  ;;  %v4646_v13 = vsel %vm3046_vm11, %v13852_v36, %v4645_v58  ;;  %v4703_v26 = vsel %vm3048_vm12, %v13837_v24, %v4702_v33 }
 0x448   :  { %v3499_v7 = vsel %vm3046_vm11, %v3497_v44, %v3498_v31  ;;  %v9122_v40 = vld.sshfl [vmem:[#allocation4 + $0x16] sm:$0x1 pattern:$0x76325410]  ;;  %v3665_v48 = vrot.slane %v9123_v17, 7  ;;  %v4647_v27 = vsel %vm3048_vm12, %v13852_v36, %v4646_v13  ;;  %v4704_v63 = vsel %vm3050_vm13, %v13837_v24, %v4703_v26 }
 0x449   :  { %v3500_v59 = vsel %vm3048_vm12, %v3497_v44, %v3499_v7  ;;  %v9118_v12 = vld.sshfl [vmem:[#allocation4 + $0x14] sm:$0x1 pattern:$0x76325410]  ;;  %v4648_v8 = vsel %vm3050_vm13, %v13852_v36, %v4647_v27  ;;  %v10494_v13 = vld [vmem:[%s15752_s5 + $0xc0] ss:$8 sps:$4 sm:$0xff]  }
 0x44a   :  { %v9119_v0 = vld.sshfl [vmem:[#allocation4 + $0x54] sm:$0x1 pattern:$0x76325410]  ;;  %v3501_v41 = vsel %vm3050_vm13, %v3497_v44, %v3500_v59  ;;  %v3666_v19 = vsel %vm3044_vm10, %v3665_v48, %v9122_v40  ;;  %3473 = vrot.lane.b32.xlu1 %v3472_v16, %s11202_s23 }
 0x44b   :  { %v3609_v20 = vrot.slane %v9119_v0, 7  ;;  %v9204_v35 = vld.sshfl [vmem:[#allocation4 + $0x3f] sm:$0x1 pattern:$0x76325410]  ;;  %v3667_v38 = vsel %vm3046_vm11, %v3665_v48, %v3666_v19  ;;  %3417 = vrot.lane.b32.xlu0 %v3416_v50, %s11202_s23 }
 0x44c   :  { %3503 = vst.msk [vmem:[#allocation5 + $0x10] sm:$0x3] %vm3053_vm14, %v3501_v41  ;;  %v9131_v4 = vld.sshfl [vmem:[#allocation4 + $0x5a] sm:$0x1 pattern:$0x76325410]  ;;  %v3668_v2 = vsel %vm3048_vm12, %v3665_v48, %v3667_v38  ;;  %v4813_v15 = vsel %vm3044_vm10, %v13878_v45, %v9204_v35 }
 0x44d   :  { %v9200_v30 = vld.sshfl [vmem:[#allocation4 + $0x3d] sm:$0x1 pattern:$0x76325410]  ;;  %v3610_v61 = vsel %vm3044_vm10, %v3609_v20, %v9118_v12  ;;  %v3777_v14 = vrot.slane %v9131_v4, 7  ;;  %v3669_v28 = vsel %vm3050_vm13, %v3665_v48, %v3668_v2  ;;  %v4814_v42 = vsel %vm3046_vm11, %v13878_v45, %v4813_v15 }
 0x44e   :  { %v9130_v39 = vld.sshfl [vmem:[#allocation4 + $0x1a] sm:$0x1 pattern:$0x76325410]  ;;  %v3611_v23 = vsel %vm3046_vm11, %v3609_v20, %v3610_v61  ;;  %3671 = vst.msk [vmem:[#allocation5 + $0x16] sm:$0x3] %vm3053_vm14, %v3669_v28  ;;  %v4757_v62 = vsel %vm3044_vm10, %v13882_v9, %v9200_v30  ;;  %4705 = vrot.lane.b32.xlu1 %v4704_v63, %s11202_s23  ;;  %v4815_v7 = vsel %vm3048_vm12, %v13878_v45, %v4814_v42 }
 0x44f   :  { %v9127_v55 = vld.sshfl [vmem:[#allocation4 + $0x58] sm:$0x1 pattern:$0x76325410]  ;;  %v3612_v29 = vsel %vm3048_vm12, %v3609_v20, %v3611_v23  ;;  %v3778_v47 = vsel %vm3044_vm10, %v3777_v14, %v9130_v39  ;;  %v4758_v1 = vsel %vm3046_vm11, %v13882_v9, %v4757_v62  ;;  %v10490_v3 = vld [vmem:[%s15752_s5 + $0xb4] ss:$8 sps:$4 sm:$0xff]   ;;  %4649 = vrot.lane.b32.xlu0 %v4648_v8, %s11202_s23  ;;  %v4816_v53 = vsel %vm3050_vm13, %v13878_v45, %v4815_v7 }
 0x450   :  { %v9126_v32 = vld.sshfl [vmem:[#allocation4 + $0x18] sm:$0x1 pattern:$0x76325410]  ;;  %v3721_v11 = vrot.slane %v9127_v55, 7  ;;  %v3613_v10 = vsel %vm3050_vm13, %v3609_v20, %v3612_v29  ;;  %v3779_v25 = vsel %vm3046_vm11, %v3777_v14, %v3778_v47  ;;  %v4759_v21 = vsel %vm3048_vm12, %v13882_v9, %v4758_v1  ;;  %8143 = vmatprep.subr.bf16.mxu0 %v10490_v3 }
 0x451   :  { %v9139_v34 = vld.sshfl [vmem:[#allocation4 + $0x5e] sm:$0x1 pattern:$0x76325410]  ;;  %3615 = vst.msk [vmem:[#allocation5 + $0x14] sm:$0x3] %vm3053_vm14, %v3613_v10  ;;  %v3780_v52 = vsel %vm3048_vm12, %v3777_v14, %v3779_v25  ;;  %8144 = vmatpush1.bf16.msra.mxu0 %v10488_v54  ;;  %v4760_v35 = vsel %vm3050_vm13, %v13882_v9, %v4759_v21 }
 0x452   :  { %v3722_v57 = vsel %vm3044_vm10, %v3721_v11, %v9126_v32  ;;  %v9138_v43 = vld.sshfl [vmem:[#allocation4 + $0x1e] sm:$0x1 pattern:$0x76325410]  ;;  %v3889_v18 = vrot.slane %v9139_v34, 7  ;;  %v3781_v44 = vsel %vm3050_vm13, %v3777_v14, %v3780_v52  ;;  %4817 = vrot.lane.b32.xlu1 %v4816_v53, %s11202_s23 }
 0x453   :  { %v3723_v60 = vsel %vm3046_vm11, %v3721_v11, %v3722_v57  ;;  %v9134_v56 = vld.sshfl [vmem:[#allocation4 + $0x1c] sm:$0x1 pattern:$0x76325410]  ;;  %3783 = vst.msk [vmem:[#allocation5 + $0x1a] sm:$0x3] %vm3053_vm14, %v3781_v44  ;;  %4761 = vrot.lane.b32.xlu0 %v4760_v35, %s11202_s23 }
 0x454   :  { %v9135_v49 = vld.sshfl [vmem:[#allocation4 + $0x5c] sm:$0x1 pattern:$0x76325410]  ;;  %v3724_v5 = vsel %vm3048_vm12, %v3721_v11, %v3723_v60  ;;  %v3890_v22 = vsel %vm3044_vm10, %v3889_v18, %v9138_v43  ;;  %v10496_v15 = vld [vmem:[%s15752_s5 + $0xc4] ss:$8 sps:$4 sm:$0xff]  }
 0x455   :  { %v3833_v6 = vrot.slane %v9135_v49, 7  ;;  %v3725_v31 = vsel %vm3050_vm13, %v3721_v11, %v3724_v5  ;;  %v3891_v17 = vsel %vm3046_vm11, %v3889_v18, %v3890_v22  ;;  %v9147_v51 = vld.sshfl [vmem:[#allocation4 + $0x62] sm:$0x1 pattern:$0x76325410]  ;;  %8145 = vmatprep.subr.bf16.mxu0 %v10496_v15 }
 0x456   :  { %3727 = vst.msk [vmem:[#allocation5 + $0x18] sm:$0x3] %vm3053_vm14, %v3725_v31  ;;  %v3892_v24 = vsel %vm3048_vm12, %v3889_v18, %v3891_v17  ;;  %v9146_v40 = vld.sshfl [vmem:[#allocation4 + $0x22] sm:$0x1 pattern:$0x76325410]  ;;  %8146 = vmatpush1.bf16.msra.mxu0 %v10494_v13 }
 0x457   :  { %v3834_v36 = vsel %vm3044_vm10, %v3833_v6, %v9134_v56  ;;  %v4001_v48 = vrot.slane %v9147_v51, 7  ;;  %v3893_v58 = vsel %vm3050_vm13, %v3889_v18, %v3892_v24  ;;  %v9143_v12 = vld.sshfl [vmem:[#allocation4 + $0x60] sm:$0x1 pattern:$0x76325410] }
 0x458   :  { %v3835_v59 = vsel %vm3046_vm11, %v3833_v6, %v3834_v36  ;;  %3895 = vst.msk [vmem:[#allocation5 + $0x1e] sm:$0x3] %vm3053_vm14, %v3893_v58  ;;  %v9142_v19 = vld.sshfl [vmem:[#allocation4 + $0x20] sm:$0x1 pattern:$0x76325410] }
 0x459   :  { %v3836_v0 = vsel %vm3048_vm12, %v3833_v6, %v3835_v59  ;;  %v4002_v41 = vsel %vm3044_vm10, %v4001_v48, %v9146_v40  ;;  %v3945_v20 = vrot.slane %v9143_v12, 7  ;;  %v9155_v50 = vld.sshfl [vmem:[#allocation4 + $0x66] sm:$0x1 pattern:$0x76325410] }
 0x45a   :  { %v3837_v37 = vsel %vm3050_vm13, %v3833_v6, %v3836_v0  ;;  %v4003_v16 = vsel %vm3046_vm11, %v4001_v48, %v4002_v41  ;;  %v9154_v46 = vld.sshfl [vmem:[#allocation4 + $0x26] sm:$0x1 pattern:$0x76325410]  ;;  %v4113_v33 = vrot.slane %v9155_v50, 7 }
 0x45b   :  { %3839 = vst.msk [vmem:[#allocation5 + $0x1c] sm:$0x3] %vm3053_vm14, %v3837_v37  ;;  %v4004_v38 = vsel %vm3048_vm12, %v4001_v48, %v4003_v16  ;;  %v3946_v4 = vsel %vm3044_vm10, %v3945_v20, %v9142_v19  ;;  %v9150_v2 = vld.sshfl [vmem:[#allocation4 + $0x24] sm:$0x1 pattern:$0x76325410] }
 0x45c   :  { %v4005_v45 = vsel %vm3050_vm13, %v4001_v48, %v4004_v38  ;;  %v3947_v30 = vsel %vm3046_vm11, %v3945_v20, %v3946_v4  ;;  %v9151_v61 = vld.sshfl [vmem:[#allocation4 + $0x64] sm:$0x1 pattern:$0x76325410]  ;;  %v4114_v39 = vsel %vm3044_vm10, %v4113_v33, %v9154_v46  ;;  %v10500_v8 = vld [vmem:[%s15752_s5 + $0xd0] ss:$8 sps:$4 sm:$0xff]  }
 0x45d   :  { %4007 = vst.msk [vmem:[#allocation5 + $0x22] sm:$0x3] %vm3053_vm14, %v4005_v45  ;;  %v3948_v9 = vsel %vm3048_vm12, %v3945_v20, %v3947_v30  ;;  %v4057_v14 = vrot.slane %v9151_v61, 7  ;;  %v4115_v23 = vsel %vm3046_vm11, %v4113_v33, %v4114_v39  ;;  %v10502_v3 = vld [vmem:[%s15752_s5 + $0xd4] ss:$8 sps:$4 sm:$0xff]  }
 0x45e   :  { %v3949_v28 = vsel %vm3050_vm13, %v3945_v20, %v3948_v9  ;;  %v9163_v55 = vld.sshfl [vmem:[#allocation4 + $0x6a] sm:$0x1 pattern:$0x76325410]  ;;  %v4116_v29 = vsel %vm3048_vm12, %v4113_v33, %v4115_v23  ;;  %8147 = vmatprep.subr.bf16.mxu0 %v10502_v3  ;;  %v10508_v13 = vld [vmem:[%s15752_s5 + $0xe4] ss:$8 sps:$4 sm:$0xff]  }
 0x45f   :  { %3951 = vst.msk [vmem:[#allocation5 + $0x20] sm:$0x3] %vm3053_vm14, %v3949_v28  ;;  %v4058_v47 = vsel %vm3044_vm10, %v4057_v14, %v9150_v2  ;;  %v9162_v32 = vld.sshfl [vmem:[#allocation4 + $0x2a] sm:$0x1 pattern:$0x76325410]  ;;  %v4117_v26 = vsel %vm3050_vm13, %v4113_v33, %v4116_v29  ;;  %8148 = vmatpush1.bf16.msra.mxu0 %v10500_v8 }
 0x460   :  { %v4225_v11 = vrot.slane %v9163_v55, 7  ;;  %v4059_v62 = vsel %vm3046_vm11, %v4057_v14, %v4058_v47  ;;  %v9159_v10 = vld.sshfl [vmem:[#allocation4 + $0x68] sm:$0x1 pattern:$0x76325410]  ;;  %8149 = vmatprep.subr.bf16.mxu0 %v10508_v13 }
 0x461   :  { %4119 = vst.msk [vmem:[#allocation5 + $0x26] sm:$0x3] %vm3053_vm14, %v4117_v26  ;;  %v4060_v25 = vsel %vm3048_vm12, %v4057_v14, %v4059_v62  ;;  %v9158_v27 = vld.sshfl [vmem:[#allocation4 + $0x28] sm:$0x1 pattern:$0x76325410] }
 0x462   :  { %v4226_v34 = vsel %vm3044_vm10, %v4225_v11, %v9162_v32  ;;  %v4169_v52 = vrot.slane %v9159_v10, 7  ;;  %v4061_v57 = vsel %vm3050_vm13, %v4057_v14, %v4060_v25  ;;  %v9171_v18 = vld.sshfl [vmem:[#allocation4 + $0x6e] sm:$0x1 pattern:$0x76325410] }
 0x463   :  { %v4227_v43 = vsel %vm3046_vm11, %v4225_v11, %v4226_v34  ;;  %4063 = vst.msk [vmem:[#allocation5 + $0x24] sm:$0x3] %vm3053_vm14, %v4061_v57  ;;  %v9170_v60 = vld.sshfl [vmem:[#allocation4 + $0x2e] sm:$0x1 pattern:$0x76325410] }
 0x464   :  { %v4228_v42 = vsel %vm3048_vm12, %v4225_v11, %v4227_v43  ;;  %v4170_v44 = vsel %vm3044_vm10, %v4169_v52, %v9158_v27  ;;  %v4337_v56 = vrot.slane %v9171_v18, 7  ;;  %v9166_v5 = vld.sshfl [vmem:[#allocation4 + $0x2c] sm:$0x1 pattern:$0x76325410] }
 0x465   :  { %v4229_v49 = vsel %vm3050_vm13, %v4225_v11, %v4228_v42  ;;  %v4171_v1 = vsel %vm3046_vm11, %v4169_v52, %v4170_v44  ;;  %v9167_v22 = vld.sshfl [vmem:[#allocation4 + $0x6c] sm:$0x1 pattern:$0x76325410]  ;;  %v10506_v61 = vld [vmem:[%s15752_s5 + $0xe0] ss:$8 sps:$4 sm:$0xff]  }
 0x466   :  { %4231 = vst.msk [vmem:[#allocation5 + $0x2a] sm:$0x3] %vm3053_vm14, %v4229_v49  ;;  %v4172_v6 = vsel %vm3048_vm12, %v4169_v52, %v4171_v1  ;;  %v4338_v54 = vsel %vm3044_vm10, %v4337_v56, %v9170_v60  ;;  %v4281_v63 = vrot.slane %v9167_v22, 7  ;;  %8150 = vmatpush1.bf16.msra.mxu0 %v10506_v61  ;;  %v10512_v49 = vld [vmem:[%s15752_s5 + $0xf0] ss:$8 sps:$4 sm:$0xff]  }
 0x467   :  { %v4173_v31 = vsel %vm3050_vm13, %v4169_v52, %v4172_v6  ;;  %v4339_v17 = vsel %vm3046_vm11, %v4337_v56, %v4338_v54  ;;  %v9083_v51 = vld.sshfl [vmem:[#allocation4 + $0x42] sm:$0x1 pattern:$0x76325410]  ;;  %v10514_v6 = vld [vmem:[%s15752_s5 + $0xf4] ss:$8 sps:$4 sm:$0xff]  }
 0x468   :  { %4175 = vst.msk [vmem:[#allocation5 + $0x28] sm:$0x3] %vm3053_vm14, %v4173_v31  ;;  %v4340_v7 = vsel %vm3048_vm12, %v4337_v56, %v4339_v17  ;;  %v4282_v24 = vsel %vm3044_vm10, %v4281_v63, %v9166_v5  ;;  %v9082_v36 = vld.sshfl [vmem:[#allocation4 + $0x2] sm:$0x1 pattern:$0x76325410]  ;;  %8151 = vmatprep.subr.bf16.mxu0 %v10514_v6 }
 0x469   :  { %v3105_v40 = vrot.slane %v9083_v51, 7  ;;  %v4341_v48 = vsel %vm3050_vm13, %v4337_v56, %v4340_v7  ;;  %v4283_v21 = vsel %vm3046_vm11, %v4281_v63, %v4282_v24  ;;  %v9079_v58 = vld.sshfl [vmem:[#allocation4 + $0x40] sm:$0x1 pattern:$0x76325410] }
 0x46a   :  { %4343 = vst.msk [vmem:[#allocation5 + $0x2e] sm:$0x3] %vm3053_vm14, %v4341_v48  ;;  %v4284_v59 = vsel %vm3048_vm12, %v4281_v63, %v4283_v21  ;;  %v9078_v0 = vld.sshfl [vmem:[#allocation4] sm:$0x1 pattern:$0x76325410]  ;;  %8152 = vmatpush1.bf16.msra.mxu0 %v10512_v49 }
 0x46b   :  { %v3106_v12 = vsel %vm3044_vm10, %v3105_v40, %v9082_v36  ;;  %v3043_v41 = vrot.slane %v9079_v58, 7  ;;  %v4285_v19 = vsel %vm3050_vm13, %v4281_v63, %v4284_v59  ;;  %v9091_v53 = vld.sshfl [vmem:[#allocation4 + $0x46] sm:$0x1 pattern:$0x76325410] }
 0x46c   :  { %v3107_v20 = vsel %vm3046_vm11, %v3105_v40, %v3106_v12  ;;  %4287 = vst.msk [vmem:[#allocation5 + $0x2c] sm:$0x3] %vm3053_vm14, %v4285_v19  ;;  %v9090_v50 = vld.sshfl [vmem:[#allocation4 + $0x6] sm:$0x1 pattern:$0x76325410] }
 0x46d   :  { %v3108_v37 = vsel %vm3048_vm12, %v3105_v40, %v3107_v20  ;;  %v3045_v16 = vsel %vm3044_vm10, %v3043_v41, %v9078_v0  ;;  %v3217_v35 = vrot.slane %v9091_v53, 7  ;;  %v9086_v46 = vld.sshfl [vmem:[#allocation4 + $0x4] sm:$0x1 pattern:$0x76325410] }
 0x46e   :  { %v3109_v38 = vsel %vm3050_vm13, %v3105_v40, %v3108_v37  ;;  %v3047_v4 = vsel %vm3046_vm11, %v3043_v41, %v3045_v16  ;;  %v9087_v33 = vld.sshfl [vmem:[#allocation4 + $0x44] sm:$0x1 pattern:$0x76325410] }
 0x46f   :  { %3111 = vst.msk [vmem:[#allocation5 + $0x2] sm:$0x3] %vm3053_vm14, %v3109_v38  ;;  %v3049_v45 = vsel %vm3048_vm12, %v3043_v41, %v3047_v4  ;;  %v3218_v30 = vsel %vm3044_vm10, %v3217_v35, %v9090_v50  ;;  %v3161_v2 = vrot.slane %v9087_v33, 7  ;;  %v10520_v0 = vld [vmem:[%s15752_s5 + $0x104] ss:$8 sps:$4 sm:$0xff]  }
 0x470   :  { %v3051_v9 = vsel %vm3050_vm13, %v3043_v41, %v3049_v45  ;;  %v3219_v39 = vsel %vm3046_vm11, %v3217_v35, %v3218_v30  ;;  %v9179_v14 = vld.sshfl [vmem:[#allocation4 + $0x72] sm:$0x1 pattern:$0x76325410]  ;;  %8162 = vmatprep.subr.bf16.mxu0 %v10520_v0 }
 0x471   :  { %3054 = vst.msk [vmem:[#allocation5] sm:$0x3] %vm3053_vm14, %v3051_v9  ;;  %v3220_v28 = vsel %vm3048_vm12, %v3217_v35, %v3219_v39  ;;  %v3162_v23 = vsel %vm3044_vm10, %v3161_v2, %v9086_v46  ;;  %v9178_v55 = vld.sshfl [vmem:[#allocation4 + $0x32] sm:$0x1 pattern:$0x76325410] }
 0x472   :  { %v4449_v15 = vrot.slane %v9179_v14, 7  ;;  %v3221_v29 = vsel %vm3050_vm13, %v3217_v35, %v3220_v28  ;;  %v3163_v47 = vsel %vm3046_vm11, %v3161_v2, %v3162_v23  ;;  %v9175_v32 = vld.sshfl [vmem:[#allocation4 + $0x70] sm:$0x1 pattern:$0x76325410] }
 0x473   :  { %3223 = vst.msk [vmem:[#allocation5 + $0x6] sm:$0x3] %vm3053_vm14, %v3221_v29  ;;  %v3164_v11 = vsel %vm3048_vm12, %v3161_v2, %v3163_v47  ;;  %v9174_v62 = vld.sshfl [vmem:[#allocation4 + $0x30] sm:$0x1 pattern:$0x76325410] }
 0x474   :  { %v4450_v26 = vsel %vm3044_vm10, %v4449_v15, %v9178_v55  ;;  %v4393_v10 = vrot.slane %v9175_v32, 7  ;;  %v3165_v25 = vsel %vm3050_vm13, %v3161_v2, %v3164_v11  ;;  %v9187_v27 = vld.sshfl [vmem:[#allocation4 + $0x76] sm:$0x1 pattern:$0x76325410] }
 0x475   :  { %v4451_v34 = vsel %vm3046_vm11, %v4449_v15, %v4450_v26  ;;  %3167 = vst.msk [vmem:[#allocation5 + $0x4] sm:$0x3] %vm3053_vm14, %v3165_v25  ;;  %v9186_v43 = vld.sshfl [vmem:[#allocation4 + $0x36] sm:$0x1 pattern:$0x76325410] }
 0x476   :  { %v4452_v52 = vsel %vm3048_vm12, %v4449_v15, %v4451_v34  ;;  %v4394_v57 = vsel %vm3044_vm10, %v4393_v10, %v9174_v62  ;;  %v4561_v18 = vrot.slane %v9187_v27, 7  ;;  %v9182_v60 = vld.sshfl [vmem:[#allocation4 + $0x34] sm:$0x1 pattern:$0x76325410] }
 0x477   :  { %v4453_v42 = vsel %vm3050_vm13, %v4449_v15, %v4452_v52  ;;  %v4395_v44 = vsel %vm3046_vm11, %v4393_v10, %v4394_v57  ;;  %v9183_v56 = vld.sshfl [vmem:[#allocation4 + $0x74] sm:$0x1 pattern:$0x76325410] }
 0x478   :  { %4455 = vst.msk [vmem:[#allocation5 + $0x32] sm:$0x3] %vm3053_vm14, %v4453_v42  ;;  %v4396_v1 = vsel %vm3048_vm12, %v4393_v10, %v4395_v44  ;;  %v4562_v5 = vsel %vm3044_vm10, %v4561_v18, %v9186_v43  ;;  %v4505_v22 = vrot.slane %v9183_v56, 7 }
 0x479   :  { %v4397_v54 = vsel %vm3050_vm13, %v4393_v10, %v4396_v1  ;;  %v4563_v63 = vsel %vm3046_vm11, %v4561_v18, %v4562_v5  ;;  %v9099_v8 = vld.sshfl [vmem:[#allocation4 + $0x4a] sm:$0x1 pattern:$0x76325410] }
 0x47a   :  { %4399 = vst.msk [vmem:[#allocation5 + $0x30] sm:$0x3] %vm3053_vm14, %v4397_v54  ;;  %v4564_v31 = vsel %vm3048_vm12, %v4561_v18, %v4563_v63  ;;  %v4506_v17 = vsel %vm3044_vm10, %v4505_v22, %v9182_v60  ;;  %v3329_v51 = vrot.slane %v9099_v8, 7 }
 0x47b   :  { %v9098_v3 = vld.sshfl [vmem:[#allocation4 + $0xa] sm:$0x1 pattern:$0x76325410]  ;;  %v4565_v7 = vsel %vm3050_vm13, %v4561_v18, %v4564_v31  ;;  %v4507_v24 = vsel %vm3046_vm11, %v4505_v22, %v4506_v17  ;;  %v11205_v31 = vmov 1983009808  }
 0x47c   :  { %v9095_v36 = vld.sshfl [vmem:[#allocation4 + $0x48] sm:$0x1 pattern:$0x76325410]  ;;  %4567 = vst.msk [vmem:[#allocation5 + $0x36] sm:$0x3] %vm3053_vm14, %v4565_v7  ;;  %v4508_v40 = vsel %vm3048_vm12, %v4505_v22, %v4507_v24  ;;  %v3330_v48 = vsel %vm3044_vm10, %v3329_v51, %v9098_v3  ;;  %v4839_v17 = vunpack.c.l.s4 %v11205_v31 }
 0x47d   :  { %v3273_v21 = vrot.slane %v9095_v36, 7  ;;  %v4509_v58 = vsel %vm3050_vm13, %v4505_v22, %v4508_v40  ;;  %v3331_v59 = vsel %vm3046_vm11, %v3329_v51, %v3330_v48  ;;  %v9094_v12 = vld.sshfl [vmem:[#allocation4 + $0x8] sm:$0x1 pattern:$0x76325410] }
 0x47e   :  { %4511 = vst.msk [vmem:[#allocation5 + $0x34] sm:$0x3] %vm3053_vm14, %v4509_v58  ;;  %v3332_v41 = vsel %vm3048_vm12, %v3329_v51, %v3331_v59  ;;  %v9107_v20 = vld.sshfl [vmem:[#allocation4 + $0x4e] sm:$0x1 pattern:$0x76325410]  ;;  %v4840_v24 = vunpack.c.0.s8 %v4839_v17 }
 0x47f   :  { %v3274_v19 = vsel %vm3044_vm10, %v3273_v21, %v9094_v12  ;;  %v3333_v53 = vsel %vm3050_vm13, %v3329_v51, %v3332_v41  ;;  %v9106_v16 = vld.sshfl [vmem:[#allocation4 + $0xe] sm:$0x1 pattern:$0x76325410]  ;;  %v3441_v50 = vrot.slane %v9107_v20, 7  ;;  %v4841_v51 = vlaneseq }
 0x480   :  { %v3275_v37 = vsel %vm3046_vm11, %v3273_v21, %v3274_v19  ;;  %3335 = vst.msk [vmem:[#allocation5 + $0xa] sm:$0x3] %vm3053_vm14, %v3333_v53  ;;  %v9103_v38 = vld.sshfl [vmem:[#allocation4 + $0x4c] sm:$0x1 pattern:$0x76325410] }
 0x481   :  { %v3276_v35 = vsel %vm3048_vm12, %v3273_v21, %v3275_v37  ;;  %v3442_v46 = vsel %vm3044_vm10, %v3441_v50, %v9106_v16  ;;  %v3385_v33 = vrot.slane %v9103_v38, 7  ;;  %v9102_v30 = vld.sshfl [vmem:[#allocation4 + $0xc] sm:$0x1 pattern:$0x76325410]  ;;  %v14121_v36 = vshrl.u32 %v4841_v51, 7 }
 0x482   :  { %v3277_v4 = vsel %vm3050_vm13, %v3273_v21, %v3276_v35  ;;  %v3443_v45 = vsel %vm3046_vm11, %v3441_v50, %v3442_v46  ;;  %v9195_v9 = vld.sshfl [vmem:[#allocation4 + $0x7a] sm:$0x1 pattern:$0x76325410]  ;;  %v10473_v35 = vld [vmem:[%s15752_s5 + $0x600] ss:$8 sps:$4 sm:$0xff]  }
 0x483   :  { %3279 = vst.msk [vmem:[#allocation5 + $0x8] sm:$0x3] %vm3053_vm14, %v3277_v4  ;;  %v3444_v2 = vsel %vm3048_vm12, %v3441_v50, %v3443_v45  ;;  %v3386_v61 = vsel %vm3044_vm10, %v3385_v33, %v9102_v30  ;;  %v9194_v13 = vld.sshfl [vmem:[#allocation4 + $0x3a] sm:$0x1 pattern:$0x76325410]  ;;  %v14126_v21 = vsub.s32 %v4840_v24, %v14121_v36 }
 0x484   :  { %v3445_v39 = vsel %vm3050_vm13, %v3441_v50, %v3444_v2  ;;  %v3387_v14 = vsel %vm3046_vm11, %v3385_v33, %v3386_v61  ;;  %v4673_v28 = vrot.slane %v9195_v9, 7  ;;  %v9191_v55 = vld.sshfl [vmem:[#allocation4 + $0x78] sm:$0x1 pattern:$0x76325410] }
 0x485   :  { %3447 = vst.msk [vmem:[#allocation5 + $0xe] sm:$0x3] %vm3053_vm14, %v3445_v39  ;;  %v3388_v23 = vsel %vm3048_vm12, %v3385_v33, %v3387_v14  ;;  %v4617_v47 = vrot.slane %v9191_v55, 7  ;;  %v10481_v46 = vld [vmem:[%s15752_s5 + $0x614] ss:$8 sps:$4 sm:$0xff]  }
 0x486   :  { %v3389_v15 = vsel %vm3050_vm13, %v3385_v33, %v3388_v23  ;;  %v4674_v29 = vsel %vm3044_vm10, %v4673_v28, %v9194_v13  ;;  %v9190_v11 = vld.sshfl [vmem:[#allocation4 + $0x38] sm:$0x1 pattern:$0x76325410]  ;;  %v10487_v39 = vld [vmem:[%s15752_s5 + $0x624] ss:$8 sps:$4 sm:$0xff]  }
 0x487   :  { %3391 = vst.msk [vmem:[#allocation5 + $0xc] sm:$0x3] %vm3053_vm14, %v3389_v15  ;;  %v4675_v32 = vsel %vm3046_vm11, %v4673_v28, %v4674_v29  ;;  %v4618_v62 = vsel %vm3044_vm10, %v4617_v47, %v9190_v11  ;;  %v9203_v10 = vld.sshfl [vmem:[#allocation4 + $0x7e] sm:$0x1 pattern:$0x76325410] }
 0x488   :  { %v4676_v26 = vsel %vm3048_vm12, %v4673_v28, %v4675_v32  ;;  %v4619_v34 = vsel %vm3046_vm11, %v4617_v47, %v4618_v62  ;;  %v9202_v27 = vld.sshfl [vmem:[#allocation4 + $0x3e] sm:$0x1 pattern:$0x76325410]  ;;  %v4785_v52 = vrot.slane %v9203_v10, 7  ;;  %v3586_v63 = vpop.permute.xlu1 %3585 }
 0x489   :  { %v4677_v25 = vsel %vm3050_vm13, %v4673_v28, %v4676_v26  ;;  %v4620_v57 = vsel %vm3048_vm12, %v4617_v47, %v4619_v34  ;;  %v9199_v43 = vld.sshfl [vmem:[#allocation4 + $0x7c] sm:$0x1 pattern:$0x76325410]  ;;  %3588 = vst.msk [vmem:[#allocation5 + $0x12] sm:$0x3] %vm3083_vm15, %v3586_v63  ;;  %v3530_v8 = vpop.permute.xlu0 %3529 }
 0x48a   :  { %4679 = vst.msk [vmem:[#allocation5 + $0x3a] sm:$0x3] %vm3053_vm14, %v4677_v25  ;;  %v4621_v18 = vsel %vm3050_vm13, %v4617_v47, %v4620_v57  ;;  %v4786_v42 = vsel %vm3044_vm10, %v4785_v52, %v9202_v27  ;;  %v4729_v44 = vrot.slane %v9199_v43, 7  ;;  %v10479_v2 = vld [vmem:[%s15752_s5 + $0x610] ss:$8 sps:$4 sm:$0xff]  }
 0x48b   :  { %4623 = vst.msk [vmem:[#allocation5 + $0x38] sm:$0x3] %vm3053_vm14, %v4621_v18  ;;  %v4787_v60 = vsel %vm3046_vm11, %v4785_v52, %v4786_v42  ;;  %v9198_v56 = vld.sshfl [vmem:[#allocation4 + $0x3c] sm:$0x1 pattern:$0x76325410] }
 0x48c   :  { %v4788_v49 = vsel %vm3048_vm12, %v4785_v52, %v4787_v60  ;;  %v4730_v1 = vsel %vm3044_vm10, %v4729_v44, %v9198_v56  ;;  %3532 = vst.msk [vmem:[#allocation5 + $0x10] sm:$0x3] %vm3083_vm15, %v3530_v8  ;;  %v3698_v3 = vpop.permute.xlu1 %3697  ;;  %v10485_v28 = vld [vmem:[%s15752_s5 + $0x620] ss:$8 sps:$4 sm:$0xff]   ;;  %v10493_v55 = vld [vmem:[%s15752_s5 + $0x634] ss:$8 sps:$4 sm:$0xff]  }
 0x48d   :  { %v4789_v5 = vsel %vm3050_vm13, %v4785_v52, %v4788_v49  ;;  %v4731_v22 = vsel %vm3046_vm11, %v4729_v44, %v4730_v1  ;;  %3700 = vst.msk [vmem:[#allocation5 + $0x16] sm:$0x3] %vm3083_vm15, %v3698_v3  ;;  %v3642_v7 = vpop.permute.xlu0 %3641  ;;  %v10491_v29 = vld [vmem:[%s15752_s5 + $0x630] ss:$8 sps:$4 sm:$0xff]   ;;  %v10499_v32 = vld [vmem:[%s15752_s5 + $0x644] ss:$8 sps:$4 sm:$0xff]  }
 0x48e   :  { %4791 = vst.msk [vmem:[#allocation5 + $0x3e] sm:$0x3] %vm3053_vm14, %v4789_v5  ;;  %v4732_v6 = vsel %vm3048_vm12, %v4729_v44, %v4731_v22  ;;  %v10497_v26 = vld [vmem:[%s15752_s5 + $0x640] ss:$8 sps:$4 sm:$0xff]   ;;  %v10505_v10 = vld [vmem:[%s15752_s5 + $0x654] ss:$8 sps:$4 sm:$0xff]  }
 0x48f   :  { %v4733_v54 = vsel %vm3050_vm13, %v4729_v44, %v4732_v6  ;;  %3644 = vst.msk [vmem:[#allocation5 + $0x14] sm:$0x3] %vm3083_vm15, %v3642_v7  ;;  %v10503_v34 = vld [vmem:[%s15752_s5 + $0x650] ss:$8 sps:$4 sm:$0xff]   ;;  %v10511_v52 = vld [vmem:[%s15752_s5 + $0x664] ss:$8 sps:$4 sm:$0xff]  }
 0x490   :  { %4735 = vst.msk [vmem:[#allocation5 + $0x3c] sm:$0x3] %vm3053_vm14, %v4733_v54  ;;  %v3810_v40 = vpop.permute.xlu1 %3809  ;;  %v10509_v43 = vld [vmem:[%s15752_s5 + $0x660] ss:$8 sps:$4 sm:$0xff]   ;;  %v10517_v42 = vld [vmem:[%s15752_s5 + $0x674] ss:$8 sps:$4 sm:$0xff]  }
 0x491   :  { %3812 = vst.msk [vmem:[#allocation5 + $0x1a] sm:$0x3] %vm3083_vm15, %v3810_v40  ;;  %v3754_v48 = vpop.permute.xlu0 %3753  ;;  %v10515_v1 = vld [vmem:[%s15752_s5 + $0x670] ss:$8 sps:$4 sm:$0xff]   ;;  %v10523_v54 = vld [vmem:[%s15752_s5 + $0x684] ss:$8 sps:$4 sm:$0xff]  }
 0x492   :  { %3756 = vst.msk [vmem:[#allocation5 + $0x18] sm:$0x3] %vm3083_vm15, %v3754_v48  ;;  %v10518_v8 = vld [vmem:[%s15752_s5 + $0x100] ss:$8 sps:$4 sm:$0xff]   ;;  %v10526_v51 = vld [vmem:[%s15752_s5 + $0x114] ss:$8 sps:$4 sm:$0xff]  }
 0x493   :  { %v10521_v24 = vld [vmem:[%s15752_s5 + $0x680] ss:$8 sps:$4 sm:$0xff]   ;;  %v10529_v48 = vld [vmem:[%s15752_s5 + $0x694] ss:$8 sps:$4 sm:$0xff]  }
 0x494   :  { %v3922_v58 = vpop.permute.xlu1 %3921 }
 0x495   :  { %3924 = vst.msk [vmem:[#allocation5 + $0x1e] sm:$0x3] %vm3083_vm15, %v3922_v58  ;;  %v3866_v59 = vpop.permute.xlu0 %3865  ;;  %v10524_v58 = vld [vmem:[%s15752_s5 + $0x110] ss:$8 sps:$4 sm:$0xff]  }
 0x496   :  { %v4823_v12 = vld [vmem:[#allocation5 + $0x10] sm:$0xff]  ;;  %3868 = vst.msk [vmem:[#allocation5 + $0x1c] sm:$0x3] %vm3083_vm15, %v3866_v59  ;;  %v10532_v59 = vld [vmem:[%s15752_s5 + $0x124] ss:$8 sps:$4 sm:$0xff]  }
 0x497   :  { %v4871_v0 = vcombine.high %v4823_v12, %v4823_v12  ;;  %v14131_v41 = vrot.slane %v4823_v12, %v14126_v21 }
 0x498   :  { %v4034_v19 = vpop.permute.xlu1 %4033 }
 0x499   :  { %v4885_v20 = vrot.slane %v4871_v0, %v14126_v21  ;;  %4036 = vst.msk [vmem:[#allocation5 + $0x22] sm:$0x3] %vm3083_vm15, %v4034_v19  ;;  %v3978_v53 = vpop.permute.xlu0 %3977  ;;  %v10527_v0 = vld [vmem:[%s15752_s5 + $0x690] ss:$8 sps:$4 sm:$0xff]  }
 0x49a   :  { %3980 = vst.msk [vmem:[#allocation5 + $0x20] sm:$0x3] %vm3083_vm15, %v3978_v53  ;;  %v10530_v53 = vld [vmem:[%s15752_s5 + $0x120] ss:$8 sps:$4 sm:$0xff]  }
 0x49b   :  { %v4887_v37 = vcombine.high %v4885_v20, %v4885_v20  ;;  %v5015_v4 = vpack.c.bf16 %v4885_v20, %v4885_v20  ;;  %v10535_v20 = vld [vmem:[%s15752_s5 + $0x6a4] ss:$8 sps:$4 sm:$0xff]  }
 0x49c   :  { %v4146_v16 = vpop.permute.xlu1 %4145 }
 0x49d   :  { %v5016_v50 = vpack.c.bf16 %v4887_v37, %v4887_v37  ;;  %4148 = vst.msk [vmem:[#allocation5 + $0x26] sm:$0x3] %vm3083_vm15, %v4146_v16  ;;  %v4090_v38 = vpop.permute.xlu0 %4089  ;;  %v14143_v33 = vld [vmem:[#allocation5 + $0x18] sm:$0xff] }
 0x49e   :  { %4092 = vst.msk [vmem:[#allocation5 + $0x24] sm:$0x3] %vm3083_vm15, %v4090_v38  ;;  %v14148_v45 = vrot.slane %v14143_v33, %v14126_v21  ;;  %v10538_v37 = vld [vmem:[%s15752_s5 + $0x134] ss:$8 sps:$4 sm:$0xff]  }
 0x49f   :  { %8358 = vmatprep.mubr.bf16.mxu1 %v5016_v50  ;;  %v10533_v50 = vld [vmem:[%s15752_s5 + $0x6a0] ss:$8 sps:$4 sm:$0xff]   ;;  %v10541_v38 = vld [vmem:[%s15752_s5 + $0x6b4] ss:$8 sps:$4 sm:$0xff]  }
 0x4a0   :  { %8359 = vmatmul.mubr.bf16.vlgmr.msra.gmra.mrb[0].mxu1 %v5015_v4  ;;  %v4258_v30 = vpop.permute.xlu1 %4257  ;;  %v4903_v61 = vcombine.high %v14148_v45, %v14148_v45  ;;  %v10536_v4 = vld [vmem:[%s15752_s5 + $0x130] ss:$8 sps:$4 sm:$0xff]  }
 0x4a1   :  { %8368 = vmatpush1.bf16.msra.mxu1 %v10473_v35  ;;  %4260 = vst.msk [vmem:[#allocation5 + $0x2a] sm:$0x3] %vm3083_vm15, %v4258_v30  ;;  %v4202_v9 = vpop.permute.xlu0 %4201  ;;  %v10539_v30 = vld [vmem:[%s15752_s5 + $0x6b0] ss:$8 sps:$4 sm:$0xff]  }
 0x4a2   :  { %8369 = vmatprep.subr.bf16.mxu1 %v10481_v46  ;;  %4204 = vst.msk [vmem:[#allocation5 + $0x28] sm:$0x3] %vm3083_vm15, %v4202_v9  ;;  %v5018_v14 = vpack.c.bf16 %v4903_v61, %v4903_v61  ;;  %v10544_v46 = vld [vmem:[%s15752_s5 + $0x144] ss:$8 sps:$4 sm:$0xff]   ;;  %v10542_v61 = vld [vmem:[%s15752_s5 + $0x140] ss:$8 sps:$4 sm:$0xff]  }
 0x4a3   :  { %v10550_v9 = vld [vmem:[%s15752_s5 + $0x154] ss:$8 sps:$4 sm:$0xff]  }
 0x4a4   :  { %8399 = vmatprep.mubr.bf16.mxu1 %v5018_v14  ;;  %v4370_v13 = vpop.permute.xlu1 %4369  ;;  %v10553_v14 = vld [vmem:[%s15752_s5 + $0x6d4] ss:$8 sps:$4 sm:$0xff]  }
 0x4a5   :  { %8370 = vmatpush1.bf16.msra.mxu1 %v10479_v2  ;;  %4372 = vst.msk [vmem:[#allocation5 + $0x2e] sm:$0x3] %vm3083_vm15, %v4370_v13  ;;  %v4314_v23 = vpop.permute.xlu0 %4313  ;;  %v10547_v2 = vld [vmem:[%s15752_s5 + $0x6c4] ss:$8 sps:$4 sm:$0xff]   ;;  %v10548_v13 = vld [vmem:[%s15752_s5 + $0x150] ss:$8 sps:$4 sm:$0xff]  }
 0x4a6   :  { %8371 = vmatprep.subr.bf16.mxu1 %v10487_v39  ;;  %4316 = vst.msk [vmem:[#allocation5 + $0x2c] sm:$0x3] %vm3083_vm15, %v4314_v23  ;;  %v10545_v39 = vld [vmem:[%s15752_s5 + $0x6c0] ss:$8 sps:$4 sm:$0xff]   ;;  %v10551_v23 = vld [vmem:[%s15752_s5 + $0x6d0] ss:$8 sps:$4 sm:$0xff]  }
 0x4a8   :  { %v3138_v15 = vpop.permute.xlu1 %3137 }
 0x4a9   :  { %8372 = vmatpush1.bf16.msra.mxu1 %v10485_v28  ;;  %3140 = vst.msk [vmem:[#allocation5 + $0x2] sm:$0x3] %vm3083_vm15, %v3138_v15  ;;  %v3081_v47 = vpop.permute.xlu0 %3080  ;;  %v10556_v28 = vld [vmem:[%s15752_s5 + $0x164] ss:$8 sps:$4 sm:$0xff]   ;;  %v10554_v15 = vld [vmem:[%s15752_s5 + $0x160] ss:$8 sps:$4 sm:$0xff]  }
 0x4aa   :  { %8373 = vmatprep.subr.bf16.mxu1 %v10493_v55  ;;  %3084 = vst.msk [vmem:[#allocation5] sm:$0x3] %vm3083_vm15, %v3081_v47  ;;  %v10559_v55 = vld [vmem:[%s15752_s5 + $0x6e4] ss:$8 sps:$4 sm:$0xff]   ;;  %v10562_v47 = vld [vmem:[%s15752_s5 + $0x174] ss:$8 sps:$4 sm:$0xff]  }
 0x4ac   :  { %v3250_v11 = vpop.permute.xlu1 %3249 }
 0x4ad   :  { %8374 = vmatpush1.bf16.msra.mxu1 %v10491_v29  ;;  %3252 = vst.msk [vmem:[#allocation5 + $0x6] sm:$0x3] %vm3083_vm15, %v3250_v11  ;;  %v3194_v62 = vpop.permute.xlu0 %3193  ;;  %v4888_v29 = vcombine.high %v14143_v33, %v14143_v33  ;;  %v10565_v11 = vld [vmem:[%s15752_s5 + $0x6f4] ss:$8 sps:$4 sm:$0xff]   ;;  %v10560_v33 = vld [vmem:[%s15752_s5 + $0x170] ss:$8 sps:$4 sm:$0xff]  }
 0x4ae   :  { %8375 = vmatprep.subr.bf16.mxu1 %v10499_v32  ;;  %3196 = vst.msk [vmem:[#allocation5 + $0x4] sm:$0x3] %vm3083_vm15, %v3194_v62  ;;  %v10557_v32 = vld [vmem:[%s15752_s5 + $0x6e0] ss:$8 sps:$4 sm:$0xff]   ;;  %v10568_v62 = vld [vmem:[%s15752_s5 + $0x184] ss:$8 sps:$4 sm:$0xff]  }
 0x4b0   :  { %v4482_v25 = vpop.permute.xlu1 %4481 }
 0x4b1   :  { %8376 = vmatpush1.bf16.msra.mxu1 %v10497_v26  ;;  %4484 = vst.msk [vmem:[#allocation5 + $0x32] sm:$0x3] %vm3083_vm15, %v4482_v25  ;;  %v4426_v27 = vpop.permute.xlu0 %4425  ;;  %v14310_v26 = vrot.slane %v4888_v29, %v14126_v21  ;;  %v10571_v25 = vld [vmem:[%s15752_s5 + $0x704] ss:$8 sps:$4 sm:$0xff]   ;;  %v10632_v29 = vld [vmem:[%s15752_s5 + $0x230] ss:$8 sps:$4 sm:$0xff]  }
 0x4b2   :  { %8377 = vmatprep.subr.bf16.mxu1 %v10505_v10  ;;  %4428 = vst.msk [vmem:[#allocation5 + $0x30] sm:$0x3] %vm3083_vm15, %v4426_v27  ;;  %v10563_v10 = vld [vmem:[%s15752_s5 + $0x6f0] ss:$8 sps:$4 sm:$0xff]  }
 0x4b3   :  { %v4904_v27 = vcombine.high %v14310_v26, %v14310_v26 }
 0x4b4   :  { %v4594_v57 = vpop.permute.xlu1 %4593 }
 0x4b5   :  { %8378 = vmatpush1.bf16.msra.mxu1 %v10503_v34  ;;  %4596 = vst.msk [vmem:[#allocation5 + $0x36] sm:$0x3] %vm3083_vm15, %v4594_v57  ;;  %v4538_v18 = vpop.permute.xlu0 %4537  ;;  %v4821_v44 = vld [vmem:[#allocation5] sm:$0xff] }
 0x4b6   :  { %8379 = vmatprep.subr.bf16.mxu1 %v10511_v52  ;;  %4540 = vst.msk [vmem:[#allocation5 + $0x34] sm:$0x3] %vm3083_vm15, %v4538_v18  ;;  %v4844_v60 = vrot.slane %v4821_v44, %v14126_v21  ;;  %v4837_v56 = vcombine.high %v4821_v44, %v4821_v44  ;;  %v10566_v34 = vld [vmem:[%s15752_s5 + $0x180] ss:$8 sps:$4 sm:$0xff]   ;;  %v10574_v52 = vld [vmem:[%s15752_s5 + $0x194] ss:$8 sps:$4 sm:$0xff]  }
 0x4b7   :  { %v10569_v57 = vld [vmem:[%s15752_s5 + $0x700] ss:$8 sps:$4 sm:$0xff]   ;;  %v10577_v18 = vld [vmem:[%s15752_s5 + $0x714] ss:$8 sps:$4 sm:$0xff]   ;;  %v10572_v44 = vld [vmem:[%s15752_s5 + $0x190] ss:$8 sps:$4 sm:$0xff]  }
 0x4b8   :  { %v3362_v49 = vpop.permute.xlu1 %3361  ;;  %v4852_v5 = vcombine.high %v4844_v60, %v4844_v60  ;;  %v14205_v22 = vrot.slane %v4837_v56, %v14126_v21  ;;  %v5005_v17 = vpack.c.bf16 %v4844_v60, %v4844_v60  ;;  %v10580_v60 = vld [vmem:[%s15752_s5 + $0x1a4] ss:$8 sps:$4 sm:$0xff]  }
 0x4b9   :  { %8380 = vmatpush1.bf16.msra.mxu1 %v10509_v43  ;;  %3364 = vst.msk [vmem:[#allocation5 + $0xa] sm:$0x3] %vm3083_vm15, %v3362_v49  ;;  %v3306_v6 = vpop.permute.xlu0 %3305  ;;  %v5017_v43 = vpack.c.bf16 %v14148_v45, %v14148_v45  ;;  %v10575_v45 = vld [vmem:[%s15752_s5 + $0x710] ss:$8 sps:$4 sm:$0xff]   ;;  %v10583_v56 = vld [vmem:[%s15752_s5 + $0x724] ss:$8 sps:$4 sm:$0xff]  }
 0x4ba   :  { %8381 = vmatprep.subr.bf16.mxu1 %v10517_v42  ;;  %3308 = vst.msk [vmem:[#allocation5 + $0x8] sm:$0x3] %vm3083_vm15, %v3306_v6  ;;  %v5006_v63 = vpack.c.bf16 %v4852_v5, %v4852_v5  ;;  %v4853_v31 = vcombine.high %v14205_v22, %v14205_v22  ;;  %v5020_v42 = vpack.c.bf16 %v4904_v27, %v4904_v27  ;;  %v10578_v49 = vld [vmem:[%s15752_s5 + $0x1a0] ss:$8 sps:$4 sm:$0xff]   ;;  %v10589_v6 = vld [vmem:[%s15752_s5 + $0x734] ss:$8 sps:$4 sm:$0xff]  }
 0x4bb   :  { %v10581_v5 = vld [vmem:[%s15752_s5 + $0x720] ss:$8 sps:$4 sm:$0xff]   ;;  %v10652_v27 = vld [vmem:[%s15752_s5 + $0x264] ss:$8 sps:$4 sm:$0xff]  }
 0x4bc   :  { %8153 = vmatprep.mubr.bf16.mxu0 %v5006_v63  ;;  %v3474_v3 = vpop.permute.xlu1 %3473  ;;  %v5008_v7 = vpack.c.bf16 %v4853_v31, %v4853_v31  ;;  %v10592_v63 = vld [vmem:[%s15752_s5 + $0x1c4] ss:$8 sps:$4 sm:$0xff]  }
 0x4bd   :  { %8382 = vmatpush1.bf16.msra.mxu1 %v10515_v1  ;;  %8154 = vmatmul.mubr.bf16.vlgmr.msra.gmra.mrb[192].mxu0 %v5005_v17  ;;  %3476 = vst.msk [vmem:[#allocation5 + $0xe] sm:$0x3] %vm3083_vm15, %v3474_v3  ;;  %v3418_v40 = vpop.permute.xlu0 %3417  ;;  %v10586_v1 = vld [vmem:[%s15752_s5 + $0x1b4] ss:$8 sps:$4 sm:$0xff]   ;;  %v10595_v31 = vld [vmem:[%s15752_s5 + $0x744] ss:$8 sps:$4 sm:$0xff]  }
 0x4be   :  { %8383 = vmatprep.subr.bf16.mxu1 %v10523_v54  ;;  %8163 = vmatpush1.bf16.msra.mxu0 %v10518_v8  ;;  %3420 = vst.msk [vmem:[#allocation5 + $0xc] sm:$0x3] %vm3083_vm15, %v3418_v40  ;;  %v10584_v54 = vld [vmem:[%s15752_s5 + $0x1b0] ss:$8 sps:$4 sm:$0xff]   ;;  %v10590_v17 = vld [vmem:[%s15752_s5 + $0x1c0] ss:$8 sps:$4 sm:$0xff]  }
 0x4bf   :  { %8194 = vmatprep.mubr.bf16.mxu0 %v5008_v7  ;;  %8164 = vmatprep.subr.bf16.mxu0 %v10526_v51  ;;  %v10587_v8 = vld [vmem:[%s15752_s5 + $0x730] ss:$8 sps:$4 sm:$0xff]   ;;  %v10598_v51 = vld [vmem:[%s15752_s5 + $0x1d4] ss:$8 sps:$4 sm:$0xff]   ;;  %v10593_v3 = vld [vmem:[%s15752_s5 + $0x740] ss:$8 sps:$4 sm:$0xff]  }
 0x4c0   :  { %v4706_v12 = vpop.permute.xlu1 %4705  ;;  %v10601_v7 = vld [vmem:[%s15752_s5 + $0x754] ss:$8 sps:$4 sm:$0xff]   ;;  %v10604_v40 = vld [vmem:[%s15752_s5 + $0x1e4] ss:$8 sps:$4 sm:$0xff]  }
 0x4c1   :  { %8384 = vmatpush1.bf16.msra.mxu1 %v10521_v24  ;;  %4708 = vst.msk [vmem:[#allocation5 + $0x3a] sm:$0x3] %vm3083_vm15, %v4706_v12  ;;  %v4650_v19 = vpop.permute.xlu0 %4649  ;;  %v10596_v24 = vld [vmem:[%s15752_s5 + $0x1d0] ss:$8 sps:$4 sm:$0xff]   ;;  %v10602_v12 = vld [vmem:[%s15752_s5 + $0x1e0] ss:$8 sps:$4 sm:$0xff]  }
 0x4c2   :  { %8385 = vmatprep.subr.bf16.mxu1 %v10529_v48  ;;  %8165 = vmatpush1.bf16.msra.mxu0 %v10524_v58  ;;  %4652 = vst.msk [vmem:[#allocation5 + $0x38] sm:$0x3] %vm3083_vm15, %v4650_v19  ;;  %v10599_v48 = vld [vmem:[%s15752_s5 + $0x750] ss:$8 sps:$4 sm:$0xff]   ;;  %v10607_v58 = vld [vmem:[%s15752_s5 + $0x764] ss:$8 sps:$4 sm:$0xff]  }
 0x4c3   :  { %8166 = vmatprep.subr.bf16.mxu0 %v10532_v59  ;;  %v10605_v19 = vld [vmem:[%s15752_s5 + $0x760] ss:$8 sps:$4 sm:$0xff]  }
 0x4c4   :  { %v4818_v16 = vpop.permute.xlu1 %4817 }
 0x4c5   :  { %8386 = vmatpush1.bf16.msra.mxu1 %v10527_v0  ;;  %4820 = vst.msk [vmem:[#allocation5 + $0x3e] sm:$0x3] %vm3083_vm15, %v4818_v16  ;;  %v4762_v35 = vpop.permute.xlu0 %4761  ;;  %v14397_v59 = vld [vmem:[#allocation5 + $0x8] sm:$0xff]  ;;  %v10610_v0 = vld [vmem:[%s15752_s5 + $0x1f4] ss:$8 sps:$4 sm:$0xff]  }
 0x4c6   :  { %8387 = vmatprep.subr.bf16.mxu1 %v10535_v20  ;;  %8167 = vmatpush1.bf16.msra.mxu0 %v10530_v53  ;;  %4764 = vst.msk [vmem:[#allocation5 + $0x3c] sm:$0x3] %vm3083_vm15, %v4762_v35  ;;  %v14410_v20 = vrot.slane %v14397_v59, %v14126_v21  ;;  %v10613_v53 = vld [vmem:[%s15752_s5 + $0x774] ss:$8 sps:$4 sm:$0xff]   ;;  %v10616_v16 = vld [vmem:[%s15752_s5 + $0x204] ss:$8 sps:$4 sm:$0xff]  }
 0x4c7   :  { %8168 = vmatprep.subr.bf16.mxu0 %v10538_v37  ;;  %v10608_v37 = vld [vmem:[%s15752_s5 + $0x1f0] ss:$8 sps:$4 sm:$0xff]  }
 0x4c8   :  { %v4869_v35 = vcombine.high %v14410_v20, %v14410_v20 }
 0x4c9   :  { %8388 = vmatpush1.bf16.msra.mxu1 %v10533_v50  ;;  %v10611_v50 = vld [vmem:[%s15752_s5 + $0x770] ss:$8 sps:$4 sm:$0xff]  }
 0x4ca   :  { %8389 = vmatprep.subr.bf16.mxu1 %v10541_v38  ;;  %8169 = vmatpush1.bf16.msra.mxu0 %v10536_v4  ;;  %v10619_v38 = vld [vmem:[%s15752_s5 + $0x784] ss:$8 sps:$4 sm:$0xff]   ;;  %v10614_v4 = vld [vmem:[%s15752_s5 + $0x200] ss:$8 sps:$4 sm:$0xff]  }
 0x4cb   :  { %8170 = vmatprep.subr.bf16.mxu0 %v10544_v46  ;;  %v5007_v46 = vpack.c.bf16 %v14205_v22, %v14205_v22  ;;  %v10620_v22 = vld [vmem:[%s15752_s5 + $0x210] ss:$8 sps:$4 sm:$0xff]  }
 0x4cd   :  { %8390 = vmatpush1.bf16.msra.mxu1 %v10539_v30  ;;  %v10622_v30 = vld [vmem:[%s15752_s5 + $0x214] ss:$8 sps:$4 sm:$0xff]  }
 0x4ce   :  { %8391 = vmatprep.subr.bf16.mxu1 %v10547_v2  ;;  %8171 = vmatpush1.bf16.msra.mxu0 %v10542_v61  ;;  %v5010_v2 = vpack.c.bf16 %v4869_v35, %v4869_v35  ;;  %v10617_v61 = vld [vmem:[%s15752_s5 + $0x780] ss:$8 sps:$4 sm:$0xff]  }
 0x4cf   :  { %8172 = vmatprep.subr.bf16.mxu0 %v10550_v9  ;;  %v10625_v9 = vld [vmem:[%s15752_s5 + $0x794] ss:$8 sps:$4 sm:$0xff]   ;;  %v10689_v35 = vld [vmem:[%s15752_s5 + $0x840] ss:$8 sps:$4 sm:$0xff]  }
 0x4d1   :  { %8392 = vmatpush1.bf16.msra.mxu1 %v10545_v39  ;;  %v10628_v39 = vld [vmem:[%s15752_s5 + $0x224] ss:$8 sps:$4 sm:$0xff]  }
 0x4d2   :  { %8393 = vmatprep.subr.bf16.mxu1 %v10553_v14  ;;  %8173 = vmatpush1.bf16.msra.mxu0 %v10548_v13  ;;  %v10623_v14 = vld [vmem:[%s15752_s5 + $0x790] ss:$8 sps:$4 sm:$0xff]   ;;  %v10631_v13 = vld [vmem:[%s15752_s5 + $0x7a4] ss:$8 sps:$4 sm:$0xff]  }
 0x4d3   :  { %8174 = vmatprep.subr.bf16.mxu0 %v10556_v28  ;;  %v10626_v28 = vld [vmem:[%s15752_s5 + $0x220] ss:$8 sps:$4 sm:$0xff]  }
 0x4d5   :  { %8394 = vmatpush1.bf16.msra.mxu1 %v10551_v23  ;;  %v10634_v23 = vld [vmem:[%s15752_s5 + $0x234] ss:$8 sps:$4 sm:$0xff]  }
 0x4d6   :  { %8395 = vmatprep.subr.bf16.mxu1 %v10559_v55  ;;  %8175 = vmatpush1.bf16.msra.mxu0 %v10554_v15  ;;  %v10629_v55 = vld [vmem:[%s15752_s5 + $0x7a0] ss:$8 sps:$4 sm:$0xff]   ;;  %v10637_v15 = vld [vmem:[%s15752_s5 + $0x7b4] ss:$8 sps:$4 sm:$0xff]  }
 0x4d7   :  { %8176 = vmatprep.subr.bf16.mxu0 %v10562_v47  ;;  %v10640_v47 = vld [vmem:[%s15752_s5 + $0x244] ss:$8 sps:$4 sm:$0xff]  }
 0x4d9   :  { %8396 = vmatpush1.bf16.msra.mxu1 %v10557_v32  ;;  %v10635_v32 = vld [vmem:[%s15752_s5 + $0x7b0] ss:$8 sps:$4 sm:$0xff]  }
 0x4da   :  { %8397 = vmatprep.subr.bf16.mxu1 %v10565_v11  ;;  %8177 = vmatpush1.bf16.msra.mxu0 %v10560_v33  ;;  %v10643_v11 = vld [vmem:[%s15752_s5 + $0x7c4] ss:$8 sps:$4 sm:$0xff]   ;;  %v10638_v33 = vld [vmem:[%s15752_s5 + $0x240] ss:$8 sps:$4 sm:$0xff]  }
 0x4db   :  { %8178 = vmatprep.subr.bf16.mxu0 %v10568_v62  ;;  %v10646_v62 = vld [vmem:[%s15752_s5 + $0x254] ss:$8 sps:$4 sm:$0xff]  }
 0x4dd   :  { %8398 = vmatpush1.bf16.msra.mxu1 %v10563_v10  ;;  %v10641_v10 = vld [vmem:[%s15752_s5 + $0x7c0] ss:$8 sps:$4 sm:$0xff]  }
 0x4de   :  { %8408 = vmatprep.subr.bf16.mxu1 %v10571_v25  ;;  %8179 = vmatpush1.bf16.msra.mxu0 %v10566_v34  ;;  %v10649_v25 = vld [vmem:[%s15752_s5 + $0x7d4] ss:$8 sps:$4 sm:$0xff]   ;;  %v10644_v34 = vld [vmem:[%s15752_s5 + $0x250] ss:$8 sps:$4 sm:$0xff]  }
 0x4df   :  { %8180 = vmatprep.subr.bf16.mxu0 %v10574_v52  ;;  %v10647_v52 = vld [vmem:[%s15752_s5 + $0x7d0] ss:$8 sps:$4 sm:$0xff]  }
 0x4e0   :  { %8400 = vmatmul.mubr.bf16.vlgmr.msra.gmra.mrb[0].mxu1 %v5017_v43  ;;  %v10650_v43 = vld [vmem:[%s15752_s5 + $0x260] ss:$8 sps:$4 sm:$0xff]  }
 0x4e1   :  { %8409 = vmatpush1.bf16.msra.mxu1 %v10569_v57  ;;  %8440 = vmatprep.mubr.bf16.mxu1 %v5020_v42  ;;  %v10655_v57 = vld [vmem:[%s15752_s5 + $0x7e4] ss:$8 sps:$4 sm:$0xff]  }
 0x4e2   :  { %8410 = vmatprep.subr.bf16.mxu1 %v10577_v18  ;;  %8181 = vmatpush1.bf16.msra.mxu0 %v10572_v44  ;;  %v10658_v18 = vld [vmem:[%s15752_s5 + $0x274] ss:$8 sps:$4 sm:$0xff]   ;;  %v14509_v42 = vld [vmem:[#allocation5 + $0x20] sm:$0xff] }
 0x4e3   :  { %8182 = vmatprep.subr.bf16.mxu0 %v10580_v60  ;;  %v10653_v44 = vld [vmem:[%s15752_s5 + $0x7e0] ss:$8 sps:$4 sm:$0xff]   ;;  %v10661_v60 = vld [vmem:[%s15752_s5 + $0x7f4] ss:$8 sps:$4 sm:$0xff]  }
 0x4e5   :  { %8411 = vmatpush1.bf16.msra.mxu1 %v10575_v45  ;;  %v10656_v45 = vld [vmem:[%s15752_s5 + $0x270] ss:$8 sps:$4 sm:$0xff]  }
 0x4e6   :  { %8412 = vmatprep.subr.bf16.mxu1 %v10583_v56  ;;  %8183 = vmatpush1.bf16.msra.mxu0 %v10578_v49  ;;  %v14522_v56 = vrot.slane %v14509_v42, %v14126_v21  ;;  %v10664_v49 = vld [vmem:[%s15752_s5 + $0x284] ss:$8 sps:$4 sm:$0xff]  }
 0x4e7   :  { %8184 = vmatprep.subr.bf16.mxu0 %v10586_v1  ;;  %v10659_v1 = vld [vmem:[%s15752_s5 + $0x7f0] ss:$8 sps:$4 sm:$0xff]  }
 0x4e9   :  { %8413 = vmatpush1.bf16.msra.mxu1 %v10581_v5  ;;  %v10667_v5 = vld [vmem:[%s15752_s5 + $0x804] ss:$8 sps:$4 sm:$0xff]  }
 0x4ea   :  { %8414 = vmatprep.subr.bf16.mxu1 %v10589_v6  ;;  %8185 = vmatpush1.bf16.msra.mxu0 %v10584_v54  ;;  %v10662_v6 = vld [vmem:[%s15752_s5 + $0x280] ss:$8 sps:$4 sm:$0xff]   ;;  %v4920_v54 = vcombine.high %v14522_v56, %v14522_v56 }
 0x4eb   :  { %8186 = vmatprep.subr.bf16.mxu0 %v10592_v63  ;;  %v10670_v63 = vld [vmem:[%s15752_s5 + $0x294] ss:$8 sps:$4 sm:$0xff]  }
 0x4ed   :  { %8415 = vmatpush1.bf16.msra.mxu1 %v10587_v8  ;;  %v10665_v8 = vld [vmem:[%s15752_s5 + $0x800] ss:$8 sps:$4 sm:$0xff]  }
 0x4ee   :  { %8416 = vmatprep.subr.bf16.mxu1 %v10595_v31  ;;  %8187 = vmatpush1.bf16.msra.mxu0 %v10590_v17  ;;  %v5019_v31 = vpack.c.bf16 %v14310_v26, %v14310_v26  ;;  %v10673_v17 = vld [vmem:[%s15752_s5 + $0x814] ss:$8 sps:$4 sm:$0xff]   ;;  %v10671_v26 = vld [vmem:[%s15752_s5 + $0x810] ss:$8 sps:$4 sm:$0xff]  }
 0x4ef   :  { %8188 = vmatprep.subr.bf16.mxu0 %v10598_v51  ;;  %v5022_v51 = vpack.c.bf16 %v4920_v54, %v4920_v54  ;;  %v10741_v54 = vld [vmem:[%s15752_s5 + $0x350] ss:$8 sps:$4 sm:$0xff]  }
 0x4f1   :  { %8417 = vmatpush1.bf16.msra.mxu1 %v10593_v3  ;;  %v10668_v3 = vld [vmem:[%s15752_s5 + $0x290] ss:$8 sps:$4 sm:$0xff]  }
 0x4f2   :  { %8418 = vmatprep.subr.bf16.mxu1 %v10601_v7  ;;  %8189 = vmatpush1.bf16.msra.mxu0 %v10596_v24  ;;  %v10676_v7 = vld [vmem:[%s15752_s5 + $0x2a4] ss:$8 sps:$4 sm:$0xff]  }
 0x4f3   :  { %8190 = vmatprep.subr.bf16.mxu0 %v10604_v40  ;;  %v10679_v24 = vld [vmem:[%s15752_s5 + $0x824] ss:$8 sps:$4 sm:$0xff]   ;;  %v10674_v40 = vld [vmem:[%s15752_s5 + $0x2a0] ss:$8 sps:$4 sm:$0xff]  }
 0x4f5   :  { %8419 = vmatpush1.bf16.msra.mxu1 %v10599_v48  ;;  %v10682_v48 = vld [vmem:[%s15752_s5 + $0x2b4] ss:$8 sps:$4 sm:$0xff]  }
 0x4f6   :  { %8420 = vmatprep.subr.bf16.mxu1 %v10607_v58  ;;  %8191 = vmatpush1.bf16.msra.mxu0 %v10602_v12  ;;  %v10677_v58 = vld [vmem:[%s15752_s5 + $0x820] ss:$8 sps:$4 sm:$0xff]   ;;  %v10685_v12 = vld [vmem:[%s15752_s5 + $0x834] ss:$8 sps:$4 sm:$0xff]  }
 0x4f7   :  { %8192 = vmatprep.subr.bf16.mxu0 %v10610_v0  ;;  %v10680_v0 = vld [vmem:[%s15752_s5 + $0x2b0] ss:$8 sps:$4 sm:$0xff]  }
 0x4f9   :  { %8421 = vmatpush1.bf16.msra.mxu1 %v10605_v19  ;;  %v10688_v19 = vld [vmem:[%s15752_s5 + $0x2c4] ss:$8 sps:$4 sm:$0xff]  }
 0x4fa   :  { %8422 = vmatprep.subr.bf16.mxu1 %v10613_v53  ;;  %8193 = vmatpush1.bf16.msra.mxu0 %v10608_v37  ;;  %v10683_v53 = vld [vmem:[%s15752_s5 + $0x830] ss:$8 sps:$4 sm:$0xff]   ;;  %v10691_v37 = vld [vmem:[%s15752_s5 + $0x844] ss:$8 sps:$4 sm:$0xff]  }
 0x4fb   :  { %8203 = vmatprep.subr.bf16.mxu0 %v10616_v16  ;;  %v10686_v16 = vld [vmem:[%s15752_s5 + $0x2c0] ss:$8 sps:$4 sm:$0xff]  }
 0x4fd   :  { %8423 = vmatpush1.bf16.msra.mxu1 %v10611_v50  ;;  %8195 = vmatmul.mubr.bf16.vlgmr.msra.gmra.mrb[192].mxu0 %v5007_v46  ;;  %v10694_v50 = vld [vmem:[%s15752_s5 + $0x2d4] ss:$8 sps:$4 sm:$0xff]   ;;  %v10700_v46 = vld [vmem:[%s15752_s5 + $0x2e4] ss:$8 sps:$4 sm:$0xff]  }
 0x4fe   :  { %8424 = vmatprep.subr.bf16.mxu1 %v10619_v38  ;;  %8204 = vmatpush1.bf16.msra.mxu0 %v10614_v4  ;;  %v10697_v38 = vld [vmem:[%s15752_s5 + $0x854] ss:$8 sps:$4 sm:$0xff]   ;;  %v10692_v4 = vld [vmem:[%s15752_s5 + $0x2d0] ss:$8 sps:$4 sm:$0xff]  }
 0x4ff   :  { %8235 = vmatprep.mubr.bf16.mxu0 %v5010_v2  ;;  %8205 = vmatprep.subr.bf16.mxu0 %v10622_v30  ;;  %v10695_v30 = vld [vmem:[%s15752_s5 + $0x850] ss:$8 sps:$4 sm:$0xff]   ;;  %v4854_v2 = vcombine.high %v14397_v59, %v14397_v59  ;;  %v10701_v59 = vld [vmem:[%s15752_s5 + $0x860] ss:$8 sps:$4 sm:$0xff]  }
 0x501   :  { %8425 = vmatpush1.bf16.msra.mxu1 %v10617_v61  ;;  %v10703_v61 = vld [vmem:[%s15752_s5 + $0x864] ss:$8 sps:$4 sm:$0xff]  }
 0x502   :  { %8426 = vmatprep.subr.bf16.mxu1 %v10625_v9  ;;  %8206 = vmatpush1.bf16.msra.mxu0 %v10620_v22  ;;  %v10698_v9 = vld [vmem:[%s15752_s5 + $0x2e0] ss:$8 sps:$4 sm:$0xff]   ;;  %v10706_v22 = vld [vmem:[%s15752_s5 + $0x2f4] ss:$8 sps:$4 sm:$0xff]  }
 0x503   :  { %8207 = vmatprep.subr.bf16.mxu0 %v10628_v39  ;;  %v14621_v39 = vrot.slane %v4854_v2, %v14126_v21  ;;  %v10775_v2 = vld [vmem:[%s15752_s5 + $0x920] ss:$8 sps:$4 sm:$0xff]  }
 0x505   :  { %8427 = vmatpush1.bf16.msra.mxu1 %v10623_v14  ;;  %v10709_v14 = vld [vmem:[%s15752_s5 + $0x874] ss:$8 sps:$4 sm:$0xff]  }
 0x506   :  { %8428 = vmatprep.subr.bf16.mxu1 %v10631_v13  ;;  %8208 = vmatpush1.bf16.msra.mxu0 %v10626_v28  ;;  %v10704_v13 = vld [vmem:[%s15752_s5 + $0x2f0] ss:$8 sps:$4 sm:$0xff]   ;;  %v10712_v28 = vld [vmem:[%s15752_s5 + $0x304] ss:$8 sps:$4 sm:$0xff]  }
 0x507   :  { %8209 = vmatprep.subr.bf16.mxu0 %v10634_v23  ;;  %v10707_v23 = vld [vmem:[%s15752_s5 + $0x870] ss:$8 sps:$4 sm:$0xff]  }
 0x509   :  { %8429 = vmatpush1.bf16.msra.mxu1 %v10629_v55  ;;  %v4870_v55 = vcombine.high %v14621_v39, %v14621_v39 }
 0x50a   :  { %8430 = vmatprep.subr.bf16.mxu1 %v10637_v15  ;;  %8210 = vmatpush1.bf16.msra.mxu0 %v10632_v29  ;;  %v10716_v15 = vld [vmem:[%s15752_s5 + $0x884] ss:$8 sps:$4 sm:$0xff]   ;;  %v10710_v29 = vld [vmem:[%s15752_s5 + $0x300] ss:$8 sps:$4 sm:$0xff]  }
 0x50b   :  { %8211 = vmatprep.subr.bf16.mxu0 %v10640_v47  ;;  %v5009_v47 = vpack.c.bf16 %v14410_v20, %v14410_v20  ;;  %v10717_v20 = vld [vmem:[%s15752_s5 + $0x310] ss:$8 sps:$4 sm:$0xff]  }
 0x50d   :  { %8431 = vmatpush1.bf16.msra.mxu1 %v10635_v32  ;;  %v10719_v32 = vld [vmem:[%s15752_s5 + $0x314] ss:$8 sps:$4 sm:$0xff]  }
 0x50e   :  { %8432 = vmatprep.subr.bf16.mxu1 %v10643_v11  ;;  %8212 = vmatpush1.bf16.msra.mxu0 %v10638_v33  ;;  %v5012_v11 = vpack.c.bf16 %v4870_v55, %v4870_v55  ;;  %v10714_v33 = vld [vmem:[%s15752_s5 + $0x880] ss:$8 sps:$4 sm:$0xff]   ;;  %v10795_v55 = vld [vmem:[%s15752_s5 + $0x954] ss:$8 sps:$4 sm:$0xff]  }
 0x50f   :  { %8213 = vmatprep.subr.bf16.mxu0 %v10646_v62  ;;  %v10722_v62 = vld [vmem:[%s15752_s5 + $0x894] ss:$8 sps:$4 sm:$0xff]  }
 0x511   :  { %8433 = vmatpush1.bf16.msra.mxu1 %v10641_v10  ;;  %v10725_v10 = vld [vmem:[%s15752_s5 + $0x324] ss:$8 sps:$4 sm:$0xff]  }
 0x512   :  { %8434 = vmatprep.subr.bf16.mxu1 %v10649_v25  ;;  %8214 = vmatpush1.bf16.msra.mxu0 %v10644_v34  ;;  %v10720_v25 = vld [vmem:[%s15752_s5 + $0x890] ss:$8 sps:$4 sm:$0xff]   ;;  %v10728_v34 = vld [vmem:[%s15752_s5 + $0x8a4] ss:$8 sps:$4 sm:$0xff]  }
 0x513   :  { %8215 = vmatprep.subr.bf16.mxu0 %v10652_v27  ;;  %v10723_v27 = vld [vmem:[%s15752_s5 + $0x320] ss:$8 sps:$4 sm:$0xff]  }
 0x515   :  { %8435 = vmatpush1.bf16.msra.mxu1 %v10647_v52  ;;  %v10731_v52 = vld [vmem:[%s15752_s5 + $0x334] ss:$8 sps:$4 sm:$0xff]  }
 0x516   :  { %8436 = vmatprep.subr.bf16.mxu1 %v10655_v57  ;;  %8216 = vmatpush1.bf16.msra.mxu0 %v10650_v43  ;;  %v10726_v57 = vld [vmem:[%s15752_s5 + $0x8a0] ss:$8 sps:$4 sm:$0xff]   ;;  %v10734_v43 = vld [vmem:[%s15752_s5 + $0x8b4] ss:$8 sps:$4 sm:$0xff]  }
 0x517   :  { %8217 = vmatprep.subr.bf16.mxu0 %v10658_v18  ;;  %v10729_v18 = vld [vmem:[%s15752_s5 + $0x330] ss:$8 sps:$4 sm:$0xff]  }
 0x519   :  { %8437 = vmatpush1.bf16.msra.mxu1 %v10653_v44  ;;  %v10737_v44 = vld [vmem:[%s15752_s5 + $0x344] ss:$8 sps:$4 sm:$0xff]  }
 0x51a   :  { %8438 = vmatprep.subr.bf16.mxu1 %v10661_v60  ;;  %8218 = vmatpush1.bf16.msra.mxu0 %v10656_v45  ;;  %v10732_v60 = vld [vmem:[%s15752_s5 + $0x8b0] ss:$8 sps:$4 sm:$0xff]   ;;  %v10740_v45 = vld [vmem:[%s15752_s5 + $0x8c4] ss:$8 sps:$4 sm:$0xff]  }
 0x51b   :  { %8219 = vmatprep.subr.bf16.mxu0 %v10664_v49  ;;  %v10735_v49 = vld [vmem:[%s15752_s5 + $0x340] ss:$8 sps:$4 sm:$0xff]  }
 0x51d   :  { %8439 = vmatpush1.bf16.msra.mxu1 %v10659_v1  ;;  %v10743_v1 = vld [vmem:[%s15752_s5 + $0x354] ss:$8 sps:$4 sm:$0xff]  }
 0x51e   :  { %8449 = vmatprep.subr.bf16.mxu1 %v10667_v5  ;;  %8220 = vmatpush1.bf16.msra.mxu0 %v10662_v6  ;;  %v10738_v5 = vld [vmem:[%s15752_s5 + $0x8c0] ss:$8 sps:$4 sm:$0xff]   ;;  %v10746_v6 = vld [vmem:[%s15752_s5 + $0x8d4] ss:$8 sps:$4 sm:$0xff]  }
 0x51f   :  { %8221 = vmatprep.subr.bf16.mxu0 %v10670_v63  ;;  %v10749_v63 = vld [vmem:[%s15752_s5 + $0x364] ss:$8 sps:$4 sm:$0xff]  }
 0x520   :  { %8441 = vmatmul.mubr.bf16.vlgmr.msra.gmra.mrb[0].mxu1 %v5019_v31  ;;  %v10752_v31 = vld [vmem:[%s15752_s5 + $0x8e4] ss:$8 sps:$4 sm:$0xff]  }
 0x521   :  { %8450 = vmatpush1.bf16.msra.mxu1 %v10665_v8  ;;  %8481 = vmatprep.mubr.bf16.mxu1 %v5022_v51  ;;  %v10744_v8 = vld [vmem:[%s15752_s5 + $0x8d0] ss:$8 sps:$4 sm:$0xff]   ;;  %v4905_v51 = vcombine.high %v14509_v42, %v14509_v42 }
 0x522   :  { %8451 = vmatprep.subr.bf16.mxu1 %v10673_v17  ;;  %8222 = vmatpush1.bf16.msra.mxu0 %v10668_v3  ;;  %v10747_v17 = vld [vmem:[%s15752_s5 + $0x360] ss:$8 sps:$4 sm:$0xff]   ;;  %v10755_v3 = vld [vmem:[%s15752_s5 + $0x374] ss:$8 sps:$4 sm:$0xff]   ;;  %v10753_v42 = vld [vmem:[%s15752_s5 + $0x370] ss:$8 sps:$4 sm:$0xff]  }
 0x523   :  { %8223 = vmatprep.subr.bf16.mxu0 %v10676_v7  ;;  %v10750_v7 = vld [vmem:[%s15752_s5 + $0x8e0] ss:$8 sps:$4 sm:$0xff]  }
 0x525   :  { %8452 = vmatpush1.bf16.msra.mxu1 %v10671_v26  ;;  %v10758_v26 = vld [vmem:[%s15752_s5 + $0x8f4] ss:$8 sps:$4 sm:$0xff]  }
 0x526   :  { %8453 = vmatprep.subr.bf16.mxu1 %v10679_v24  ;;  %8224 = vmatpush1.bf16.msra.mxu0 %v10674_v40  ;;  %v14732_v24 = vrot.slane %v4905_v51, %v14126_v21  ;;  %v10761_v40 = vld [vmem:[%s15752_s5 + $0x384] ss:$8 sps:$4 sm:$0xff]   ;;  %v10829_v51 = vld [vmem:[%s15752_s5 + $0x9b0] ss:$8 sps:$4 sm:$0xff]  }
 0x527   :  { %8225 = vmatprep.subr.bf16.mxu0 %v10682_v48  ;;  %v10756_v48 = vld [vmem:[%s15752_s5 + $0x8f0] ss:$8 sps:$4 sm:$0xff]  }
 0x529   :  { %8454 = vmatpush1.bf16.msra.mxu1 %v10677_v58  ;;  %v10764_v58 = vld [vmem:[%s15752_s5 + $0x904] ss:$8 sps:$4 sm:$0xff]  }
 0x52a   :  { %8455 = vmatprep.subr.bf16.mxu1 %v10685_v12  ;;  %8226 = vmatpush1.bf16.msra.mxu0 %v10680_v0  ;;  %v10759_v12 = vld [vmem:[%s15752_s5 + $0x380] ss:$8 sps:$4 sm:$0xff]   ;;  %v4921_v0 = vcombine.high %v14732_v24, %v14732_v24 }
 0x52b   :  { %8227 = vmatprep.subr.bf16.mxu0 %v10688_v19  ;;  %v10768_v19 = vld [vmem:[%s15752_s5 + $0x394] ss:$8 sps:$4 sm:$0xff]  }
 0x52d   :  { %8456 = vmatpush1.bf16.msra.mxu1 %v10683_v53  ;;  %v10762_v53 = vld [vmem:[%s15752_s5 + $0x900] ss:$8 sps:$4 sm:$0xff]  }
 0x52e   :  { %8457 = vmatprep.subr.bf16.mxu1 %v10691_v37  ;;  %8228 = vmatpush1.bf16.msra.mxu0 %v10686_v16  ;;  %v5021_v37 = vpack.c.bf16 %v14522_v56, %v14522_v56  ;;  %v10771_v16 = vld [vmem:[%s15752_s5 + $0x914] ss:$8 sps:$4 sm:$0xff]   ;;  %v10769_v56 = vld [vmem:[%s15752_s5 + $0x910] ss:$8 sps:$4 sm:$0xff]  }
 0x52f   :  { %8229 = vmatprep.subr.bf16.mxu0 %v10694_v50  ;;  %v5024_v50 = vpack.c.bf16 %v4921_v0, %v4921_v0  ;;  %v10849_v0 = vld [vmem:[%s15752_s5 + $0x9e4] ss:$8 sps:$4 sm:$0xff]  }
 0x531   :  { %8458 = vmatpush1.bf16.msra.mxu1 %v10689_v35  ;;  %v10766_v35 = vld [vmem:[%s15752_s5 + $0x390] ss:$8 sps:$4 sm:$0xff]  }
 0x532   :  { %8459 = vmatprep.subr.bf16.mxu1 %v10697_v38  ;;  %8230 = vmatpush1.bf16.msra.mxu0 %v10692_v4  ;;  %v10774_v38 = vld [vmem:[%s15752_s5 + $0x3a4] ss:$8 sps:$4 sm:$0xff]  }
 0x533   :  { %8231 = vmatprep.subr.bf16.mxu0 %v10700_v46  ;;  %v10777_v4 = vld [vmem:[%s15752_s5 + $0x924] ss:$8 sps:$4 sm:$0xff]   ;;  %v10772_v46 = vld [vmem:[%s15752_s5 + $0x3a0] ss:$8 sps:$4 sm:$0xff]  }
 0x535   :  { %8460 = vmatpush1.bf16.msra.mxu1 %v10695_v30  ;;  %v10780_v30 = vld [vmem:[%s15752_s5 + $0x3b4] ss:$8 sps:$4 sm:$0xff]  }
 0x536   :  { %8461 = vmatprep.subr.bf16.mxu1 %v10703_v61  ;;  %8232 = vmatpush1.bf16.msra.mxu0 %v10698_v9  ;;  %v10783_v61 = vld [vmem:[%s15752_s5 + $0x934] ss:$8 sps:$4 sm:$0xff]   ;;  %v10778_v9 = vld [vmem:[%s15752_s5 + $0x3b0] ss:$8 sps:$4 sm:$0xff]  }
 0x537   :  { %8233 = vmatprep.subr.bf16.mxu0 %v10706_v22  ;;  %v10786_v22 = vld [vmem:[%s15752_s5 + $0x3c4] ss:$8 sps:$4 sm:$0xff]  }
 0x539   :  { %8462 = vmatpush1.bf16.msra.mxu1 %v10701_v59  ;;  %v10781_v59 = vld [vmem:[%s15752_s5 + $0x930] ss:$8 sps:$4 sm:$0xff]  }
 0x53a   :  { %8463 = vmatprep.subr.bf16.mxu1 %v10709_v14  ;;  %8234 = vmatpush1.bf16.msra.mxu0 %v10704_v13  ;;  %v10789_v14 = vld [vmem:[%s15752_s5 + $0x944] ss:$8 sps:$4 sm:$0xff]   ;;  %v10784_v13 = vld [vmem:[%s15752_s5 + $0x3c0] ss:$8 sps:$4 sm:$0xff]  }
 0x53b   :  { %8244 = vmatprep.subr.bf16.mxu0 %v10712_v28  ;;  %v10792_v28 = vld [vmem:[%s15752_s5 + $0x3d4] ss:$8 sps:$4 sm:$0xff]  }
 0x53d   :  { %8464 = vmatpush1.bf16.msra.mxu1 %v10707_v23  ;;  %8236 = vmatmul.mubr.bf16.vlgmr.msra.gmra.mrb[192].mxu0 %v5009_v47  ;;  %v10787_v23 = vld [vmem:[%s15752_s5 + $0x940] ss:$8 sps:$4 sm:$0xff]   ;;  %v10793_v47 = vld [vmem:[%s15752_s5 + $0x950] ss:$8 sps:$4 sm:$0xff]  }
 0x53e   :  { %8465 = vmatprep.subr.bf16.mxu1 %v10716_v15  ;;  %8245 = vmatpush1.bf16.msra.mxu0 %v10710_v29  ;;  %v10790_v15 = vld [vmem:[%s15752_s5 + $0x3d0] ss:$8 sps:$4 sm:$0xff]   ;;  %v10798_v29 = vld [vmem:[%s15752_s5 + $0x3e4] ss:$8 sps:$4 sm:$0xff]  }
 0x53f   :  { %8276 = vmatprep.mubr.bf16.mxu0 %v5012_v11  ;;  %8246 = vmatprep.subr.bf16.mxu0 %v10719_v32  ;;  %v10801_v32 = vld [vmem:[%s15752_s5 + $0x964] ss:$8 sps:$4 sm:$0xff]   ;;  %v10796_v11 = vld [vmem:[%s15752_s5 + $0x3e0] ss:$8 sps:$4 sm:$0xff]  }
 0x541   :  { %8466 = vmatpush1.bf16.msra.mxu1 %v10714_v33  ;;  %v10804_v33 = vld [vmem:[%s15752_s5 + $0x3f4] ss:$8 sps:$4 sm:$0xff]  }
 0x542   :  { %8467 = vmatprep.subr.bf16.mxu1 %v10722_v62  ;;  %8247 = vmatpush1.bf16.msra.mxu0 %v10717_v20  ;;  %v10799_v62 = vld [vmem:[%s15752_s5 + $0x960] ss:$8 sps:$4 sm:$0xff]   ;;  %v10807_v20 = vld [vmem:[%s15752_s5 + $0x974] ss:$8 sps:$4 sm:$0xff]  }
 0x543   :  { %8248 = vmatprep.subr.bf16.mxu0 %v10725_v10  ;;  %v10802_v10 = vld [vmem:[%s15752_s5 + $0x3f0] ss:$8 sps:$4 sm:$0xff]  }
 0x545   :  { %8468 = vmatpush1.bf16.msra.mxu1 %v10720_v25  ;;  %v10810_v25 = vld [vmem:[%s15752_s5 + $0x404] ss:$8 sps:$4 sm:$0xff]  }
 0x546   :  { %8469 = vmatprep.subr.bf16.mxu1 %v10728_v34  ;;  %8249 = vmatpush1.bf16.msra.mxu0 %v10723_v27  ;;  %v10805_v34 = vld [vmem:[%s15752_s5 + $0x970] ss:$8 sps:$4 sm:$0xff]   ;;  %v4886_v27 = vcombine.high %v14131_v41, %v14131_v41 }
 0x547   :  { %8250 = vmatprep.subr.bf16.mxu0 %v10731_v52  ;;  %v10813_v52 = vld [vmem:[%s15752_s5 + $0x984] ss:$8 sps:$4 sm:$0xff]  }
 0x549   :  { %8470 = vmatpush1.bf16.msra.mxu1 %v10726_v57  ;;  %v10808_v57 = vld [vmem:[%s15752_s5 + $0x400] ss:$8 sps:$4 sm:$0xff]  }
 0x54a   :  { %8471 = vmatprep.subr.bf16.mxu1 %v10734_v43  ;;  %8251 = vmatpush1.bf16.msra.mxu0 %v10729_v18  ;;  %v5011_v43 = vpack.c.bf16 %v14621_v39, %v14621_v39  ;;  %v10816_v18 = vld [vmem:[%s15752_s5 + $0x414] ss:$8 sps:$4 sm:$0xff]   ;;  %v10814_v39 = vld [vmem:[%s15752_s5 + $0x410] ss:$8 sps:$4 sm:$0xff]  }
 0x54b   :  { %8252 = vmatprep.subr.bf16.mxu0 %v10737_v44  ;;  %v5014_v44 = vpack.c.bf16 %v4886_v27, %v4886_v27  ;;  %v10886_v27 = vld [vmem:[%s15752_s5 + $0x4d0] ss:$8 sps:$4 sm:$0xff]  }
 0x54d   :  { %8472 = vmatpush1.bf16.msra.mxu1 %v10732_v60  ;;  %v10811_v60 = vld [vmem:[%s15752_s5 + $0x980] ss:$8 sps:$4 sm:$0xff]  }
 0x54e   :  { %8473 = vmatprep.subr.bf16.mxu1 %v10740_v45  ;;  %8253 = vmatpush1.bf16.msra.mxu0 %v10735_v49  ;;  %v10819_v45 = vld [vmem:[%s15752_s5 + $0x994] ss:$8 sps:$4 sm:$0xff]   ;;  %v10822_v49 = vld [vmem:[%s15752_s5 + $0x424] ss:$8 sps:$4 sm:$0xff]  }
 0x54f   :  { %8254 = vmatprep.subr.bf16.mxu0 %v10743_v1  ;;  %v10817_v1 = vld [vmem:[%s15752_s5 + $0x990] ss:$8 sps:$4 sm:$0xff]  }
 0x551   :  { %8474 = vmatpush1.bf16.msra.mxu1 %v10738_v5  ;;  %v10825_v5 = vld [vmem:[%s15752_s5 + $0x9a4] ss:$8 sps:$4 sm:$0xff]  }
 0x552   :  { %8475 = vmatprep.subr.bf16.mxu1 %v10746_v6  ;;  %8255 = vmatpush1.bf16.msra.mxu0 %v10741_v54  ;;  %v10820_v6 = vld [vmem:[%s15752_s5 + $0x420] ss:$8 sps:$4 sm:$0xff]   ;;  %v10828_v54 = vld [vmem:[%s15752_s5 + $0x434] ss:$8 sps:$4 sm:$0xff]  }
 0x553   :  { %8256 = vmatprep.subr.bf16.mxu0 %v10749_v63  ;;  %v10823_v63 = vld [vmem:[%s15752_s5 + $0x9a0] ss:$8 sps:$4 sm:$0xff]  }
 0x555   :  { %8476 = vmatpush1.bf16.msra.mxu1 %v10744_v8  ;;  %v10831_v8 = vld [vmem:[%s15752_s5 + $0x9b4] ss:$8 sps:$4 sm:$0xff]  }
 0x556   :  { %8477 = vmatprep.subr.bf16.mxu1 %v10752_v31  ;;  %8257 = vmatpush1.bf16.msra.mxu0 %v10747_v17  ;;  %v10826_v31 = vld [vmem:[%s15752_s5 + $0x430] ss:$8 sps:$4 sm:$0xff]   ;;  %v10834_v17 = vld [vmem:[%s15752_s5 + $0x444] ss:$8 sps:$4 sm:$0xff]  }
 0x557   :  { %8258 = vmatprep.subr.bf16.mxu0 %v10755_v3  ;;  %v10837_v3 = vld [vmem:[%s15752_s5 + $0x9c4] ss:$8 sps:$4 sm:$0xff]  }
 0x559   :  { %8478 = vmatpush1.bf16.msra.mxu1 %v10750_v7  ;;  %v10832_v7 = vld [vmem:[%s15752_s5 + $0x440] ss:$8 sps:$4 sm:$0xff]  }
 0x55a   :  { %8479 = vmatprep.subr.bf16.mxu1 %v10758_v26  ;;  %8259 = vmatpush1.bf16.msra.mxu0 %v10753_v42  ;;  %v10840_v26 = vld [vmem:[%s15752_s5 + $0x454] ss:$8 sps:$4 sm:$0xff]   ;;  %v10835_v42 = vld [vmem:[%s15752_s5 + $0x9c0] ss:$8 sps:$4 sm:$0xff]  }
 0x55b   :  { %8260 = vmatprep.subr.bf16.mxu0 %v10761_v40  ;;  %v10843_v40 = vld [vmem:[%s15752_s5 + $0x9d4] ss:$8 sps:$4 sm:$0xff]  }
 0x55d   :  { %8480 = vmatpush1.bf16.msra.mxu1 %v10756_v48  ;;  %v10838_v48 = vld [vmem:[%s15752_s5 + $0x450] ss:$8 sps:$4 sm:$0xff]  }
 0x55e   :  { %8490 = vmatprep.subr.bf16.mxu1 %v10764_v58  ;;  %8261 = vmatpush1.bf16.msra.mxu0 %v10759_v12  ;;  %v10846_v58 = vld [vmem:[%s15752_s5 + $0x464] ss:$8 sps:$4 sm:$0xff]   ;;  %v10841_v12 = vld [vmem:[%s15752_s5 + $0x9d0] ss:$8 sps:$4 sm:$0xff]  }
 0x55f   :  { %8262 = vmatprep.subr.bf16.mxu0 %v10768_v19  ;;  %v10844_v19 = vld [vmem:[%s15752_s5 + $0x460] ss:$8 sps:$4 sm:$0xff]  }
 0x560   :  { %8482 = vmatmul.mubr.bf16.vlgmr.msra.gmra.mrb[0].mxu1 %v5021_v37  ;;  %v14925_v37 = vld [vmem:[#allocation5 + $0x28] sm:$0xff] }
 0x561   :  { %8491 = vmatpush1.bf16.msra.mxu1 %v10762_v53  ;;  %8522 = vmatprep.mubr.bf16.mxu1 %v5024_v50  ;;  %v10852_v53 = vld [vmem:[%s15752_s5 + $0x474] ss:$8 sps:$4 sm:$0xff]  }
 0x562   :  { %8492 = vmatprep.subr.bf16.mxu1 %v10771_v16  ;;  %8263 = vmatpush1.bf16.msra.mxu0 %v10766_v35  ;;  %v10847_v16 = vld [vmem:[%s15752_s5 + $0x9e0] ss:$8 sps:$4 sm:$0xff]   ;;  %v10855_v50 = vld [vmem:[%s15752_s5 + $0x9f4] ss:$8 sps:$4 sm:$0xff]   ;;  %v10850_v35 = vld [vmem:[%s15752_s5 + $0x470] ss:$8 sps:$4 sm:$0xff]  }
 0x563   :  { %8264 = vmatprep.subr.bf16.mxu0 %v10774_v38  ;;  %v14938_v38 = vrot.slane %v14925_v37, %v14126_v21 }
 0x565   :  { %8493 = vmatpush1.bf16.msra.mxu1 %v10769_v56  ;;  %v10858_v56 = vld [vmem:[%s15752_s5 + $0x484] ss:$8 sps:$4 sm:$0xff]  }
 0x566   :  { %8494 = vmatprep.subr.bf16.mxu1 %v10777_v4  ;;  %8265 = vmatpush1.bf16.msra.mxu0 %v10772_v46  ;;  %v10853_v4 = vld [vmem:[%s15752_s5 + $0x9f0] ss:$8 sps:$4 sm:$0xff]   ;;  %v10861_v46 = vld [vmem:[%s15752_s5 + $0xa04] ss:$8 sps:$4 sm:$0xff]  }
 0x567   :  { %8266 = vmatprep.subr.bf16.mxu0 %v10780_v30  ;;  %v10856_v30 = vld [vmem:[%s15752_s5 + $0x480] ss:$8 sps:$4 sm:$0xff]  }
 0x569   :  { %8495 = vmatpush1.bf16.msra.mxu1 %v10775_v2  ;;  %v4937_v2 = vcombine.high %v14938_v38, %v14938_v38 }
 0x56a   :  { %8496 = vmatprep.subr.bf16.mxu1 %v10783_v61  ;;  %8267 = vmatpush1.bf16.msra.mxu0 %v10778_v9  ;;  %v10864_v61 = vld [vmem:[%s15752_s5 + $0x494] ss:$8 sps:$4 sm:$0xff]   ;;  %v10859_v9 = vld [vmem:[%s15752_s5 + $0xa00] ss:$8 sps:$4 sm:$0xff]  }
 0x56b   :  { %8268 = vmatprep.subr.bf16.mxu0 %v10786_v22  ;;  %v5023_v22 = vpack.c.bf16 %v14732_v24, %v14732_v24  ;;  %v10865_v24 = vld [vmem:[%s15752_s5 + $0xa10] ss:$8 sps:$4 sm:$0xff]  }
 0x56d   :  { %8497 = vmatpush1.bf16.msra.mxu1 %v10781_v59  ;;  %v10867_v59 = vld [vmem:[%s15752_s5 + $0xa14] ss:$8 sps:$4 sm:$0xff]  }
 0x56e   :  { %8498 = vmatprep.subr.bf16.mxu1 %v10789_v14  ;;  %8269 = vmatpush1.bf16.msra.mxu0 %v10784_v13  ;;  %v5026_v14 = vpack.c.bf16 %v4937_v2, %v4937_v2  ;;  %v10862_v13 = vld [vmem:[%s15752_s5 + $0x490] ss:$8 sps:$4 sm:$0xff]   ;;  %v10943_v2 = vld [vmem:[%s15752_s5 + $0xb44] ss:$8 sps:$4 sm:$0xff]  }
 0x56f   :  { %8270 = vmatprep.subr.bf16.mxu0 %v10792_v28  ;;  %v10870_v28 = vld [vmem:[%s15752_s5 + $0x4a4] ss:$8 sps:$4 sm:$0xff]  }
 0x571   :  { %8499 = vmatpush1.bf16.msra.mxu1 %v10787_v23  ;;  %v10873_v23 = vld [vmem:[%s15752_s5 + $0xa24] ss:$8 sps:$4 sm:$0xff]  }
 0x572   :  { %8500 = vmatprep.subr.bf16.mxu1 %v10795_v55  ;;  %8271 = vmatpush1.bf16.msra.mxu0 %v10790_v15  ;;  %v10868_v55 = vld [vmem:[%s15752_s5 + $0x4a0] ss:$8 sps:$4 sm:$0xff]   ;;  %v10876_v15 = vld [vmem:[%s15752_s5 + $0x4b4] ss:$8 sps:$4 sm:$0xff]  }
 0x573   :  { %8272 = vmatprep.subr.bf16.mxu0 %v10798_v29  ;;  %v10871_v29 = vld [vmem:[%s15752_s5 + $0xa20] ss:$8 sps:$4 sm:$0xff]  }
 0x575   :  { %8501 = vmatpush1.bf16.msra.mxu1 %v10793_v47  ;;  %v10879_v47 = vld [vmem:[%s15752_s5 + $0xa34] ss:$8 sps:$4 sm:$0xff]  }
 0x576   :  { %8502 = vmatprep.subr.bf16.mxu1 %v10801_v32  ;;  %8273 = vmatpush1.bf16.msra.mxu0 %v10796_v11  ;;  %v10874_v32 = vld [vmem:[%s15752_s5 + $0x4b0] ss:$8 sps:$4 sm:$0xff]   ;;  %v10882_v11 = vld [vmem:[%s15752_s5 + $0x4c4] ss:$8 sps:$4 sm:$0xff]  }
 0x577   :  { %8274 = vmatprep.subr.bf16.mxu0 %v10804_v33  ;;  %v10877_v33 = vld [vmem:[%s15752_s5 + $0xa30] ss:$8 sps:$4 sm:$0xff]  }
 0x579   :  { %8503 = vmatpush1.bf16.msra.mxu1 %v10799_v62  ;;  %v10885_v62 = vld [vmem:[%s15752_s5 + $0xa44] ss:$8 sps:$4 sm:$0xff]  }
 0x57a   :  { %8504 = vmatprep.subr.bf16.mxu1 %v10807_v20  ;;  %8275 = vmatpush1.bf16.msra.mxu0 %v10802_v10  ;;  %v10880_v20 = vld [vmem:[%s15752_s5 + $0x4c0] ss:$8 sps:$4 sm:$0xff]   ;;  %v10888_v10 = vld [vmem:[%s15752_s5 + $0x4d4] ss:$8 sps:$4 sm:$0xff]  }
 0x57b   :  { %8285 = vmatprep.subr.bf16.mxu0 %v10810_v25  ;;  %v10883_v25 = vld [vmem:[%s15752_s5 + $0xa40] ss:$8 sps:$4 sm:$0xff]  }
 0x57d   :  { %8505 = vmatpush1.bf16.msra.mxu1 %v10805_v34  ;;  %8277 = vmatmul.mubr.bf16.vlgmr.msra.gmra.mrb[192].mxu0 %v5011_v43  ;;  %v10891_v34 = vld [vmem:[%s15752_s5 + $0xa54] ss:$8 sps:$4 sm:$0xff]   ;;  %v10897_v43 = vld [vmem:[%s15752_s5 + $0xa64] ss:$8 sps:$4 sm:$0xff]  }
 0x57e   :  { %8506 = vmatprep.subr.bf16.mxu1 %v10813_v52  ;;  %8286 = vmatpush1.bf16.msra.mxu0 %v10808_v57  ;;  %v10894_v52 = vld [vmem:[%s15752_s5 + $0x4e4] ss:$8 sps:$4 sm:$0xff]   ;;  %v10889_v57 = vld [vmem:[%s15752_s5 + $0xa50] ss:$8 sps:$4 sm:$0xff]  }
 0x57f   :  { %8317 = vmatprep.mubr.bf16.mxu0 %v5014_v44  ;;  %8287 = vmatprep.subr.bf16.mxu0 %v10816_v18  ;;  %v10892_v18 = vld [vmem:[%s15752_s5 + $0x4e0] ss:$8 sps:$4 sm:$0xff]   ;;  %v10900_v44 = vld [vmem:[%s15752_s5 + $0x4f4] ss:$8 sps:$4 sm:$0xff]  }
 0x581   :  { %8507 = vmatpush1.bf16.msra.mxu1 %v10811_v60  ;;  %v10895_v60 = vld [vmem:[%s15752_s5 + $0xa60] ss:$8 sps:$4 sm:$0xff]  }
 0x582   :  { %8508 = vmatprep.subr.bf16.mxu1 %v10819_v45  ;;  %8288 = vmatpush1.bf16.msra.mxu0 %v10814_v39  ;;  %v10903_v45 = vld [vmem:[%s15752_s5 + $0xa74] ss:$8 sps:$4 sm:$0xff]   ;;  %v10898_v39 = vld [vmem:[%s15752_s5 + $0x4f0] ss:$8 sps:$4 sm:$0xff]  }
 0x583   :  { %8289 = vmatprep.subr.bf16.mxu0 %v10822_v49  ;;  %v10901_v49 = vld [vmem:[%s15752_s5 + $0xa70] ss:$8 sps:$4 sm:$0xff]  }
 0x585   :  { %8509 = vmatpush1.bf16.msra.mxu1 %v10817_v1  ;;  %v10906_v1 = vld [vmem:[%s15752_s5 + $0xa84] ss:$8 sps:$4 sm:$0xff]  }
 0x586   :  { %8510 = vmatprep.subr.bf16.mxu1 %v10825_v5  ;;  %8290 = vmatpush1.bf16.msra.mxu0 %v10820_v6  ;;  %v5013_v5 = vpack.c.bf16 %v14131_v41, %v14131_v41  ;;  %v10904_v6 = vld [vmem:[%s15752_s5 + $0xa80] ss:$8 sps:$4 sm:$0xff]   ;;  %v10912_v41 = vld [vmem:[%s15752_s5 + $0xaa4] ss:$8 sps:$4 sm:$0xff]  }
 0x587   :  { %8291 = vmatprep.subr.bf16.mxu0 %v10828_v54  ;;  %v10909_v54 = vld [vmem:[%s15752_s5 + $0xa94] ss:$8 sps:$4 sm:$0xff]  }
 0x589   :  { %8511 = vmatpush1.bf16.msra.mxu1 %v10823_v63  ;;  %v10907_v63 = vld [vmem:[%s15752_s5 + $0xa90] ss:$8 sps:$4 sm:$0xff]  }
 0x58a   :  { %8512 = vmatprep.subr.bf16.mxu1 %v10831_v8  ;;  %8292 = vmatpush1.bf16.msra.mxu0 %v10826_v31  ;;  %v10910_v8 = vld [vmem:[%s15752_s5 + $0xaa0] ss:$8 sps:$4 sm:$0xff]   ;;  %v10915_v31 = vld [vmem:[%s15752_s5 + $0xab4] ss:$8 sps:$4 sm:$0xff]  }
 0x58b   :  { %8293 = vmatprep.subr.bf16.mxu0 %v10834_v17  ;;  %v10913_v17 = vld [vmem:[%s15752_s5 + $0xab0] ss:$8 sps:$4 sm:$0xff]  }
 0x58d   :  { %8513 = vmatpush1.bf16.msra.mxu1 %v10829_v51  ;;  %v10918_v51 = vld [vmem:[%s15752_s5 + $0xac4] ss:$8 sps:$4 sm:$0xff]  }
 0x58e   :  { %8514 = vmatprep.subr.bf16.mxu1 %v10837_v3  ;;  %8294 = vmatpush1.bf16.msra.mxu0 %v10832_v7  ;;  %v10916_v3 = vld [vmem:[%s15752_s5 + $0xac0] ss:$8 sps:$4 sm:$0xff]   ;;  %v10921_v7 = vld [vmem:[%s15752_s5 + $0xad4] ss:$8 sps:$4 sm:$0xff]  }
 0x58f   :  { %8295 = vmatprep.subr.bf16.mxu0 %v10840_v26  ;;  %v10919_v26 = vld [vmem:[%s15752_s5 + $0xad0] ss:$8 sps:$4 sm:$0xff]  }
 0x591   :  { %8515 = vmatpush1.bf16.msra.mxu1 %v10835_v42  ;;  %v10924_v42 = vld [vmem:[%s15752_s5 + $0xae4] ss:$8 sps:$4 sm:$0xff]  }
 0x592   :  { %8516 = vmatprep.subr.bf16.mxu1 %v10843_v40  ;;  %8296 = vmatpush1.bf16.msra.mxu0 %v10838_v48  ;;  %v4922_v40 = vcombine.high %v14925_v37, %v14925_v37  ;;  %v10922_v48 = vld [vmem:[%s15752_s5 + $0xae0] ss:$8 sps:$4 sm:$0xff]  }
 0x593   :  { %8297 = vmatprep.subr.bf16.mxu0 %v10846_v58  ;;  %v10927_v58 = vld [vmem:[%s15752_s5 + $0xaf4] ss:$8 sps:$4 sm:$0xff]   ;;  %v10928_v37 = vld [vmem:[%s15752_s5 + $0xb00] ss:$8 sps:$4 sm:$0xff]  }
 0x595   :  { %8517 = vmatpush1.bf16.msra.mxu1 %v10841_v12  ;;  %v15093_v12 = vrot.slane %v4922_v40, %v14126_v21  ;;  %v11001_v40 = vld [vmem:[%s15752_s5 + $0xc80] ss:$8 sps:$4 sm:$0xff]  }
 0x596   :  { %8518 = vmatprep.subr.bf16.mxu1 %v10849_v0  ;;  %8298 = vmatpush1.bf16.msra.mxu0 %v10844_v19  ;;  %v10925_v0 = vld [vmem:[%s15752_s5 + $0xaf0] ss:$8 sps:$4 sm:$0xff]   ;;  %v10930_v19 = vld [vmem:[%s15752_s5 + $0xb04] ss:$8 sps:$4 sm:$0xff]  }
 0x597   :  { %8299 = vmatprep.subr.bf16.mxu0 %v10852_v53  ;;  %v4938_v53 = vcombine.high %v15093_v12, %v15093_v12 }
 0x599   :  { %8519 = vmatpush1.bf16.msra.mxu1 %v10847_v16  ;;  %v5025_v16 = vpack.c.bf16 %v14938_v38, %v14938_v38  ;;  %v10935_v38 = vld [vmem:[%s15752_s5 + $0xb20] ss:$8 sps:$4 sm:$0xff]  }
 0x59a   :  { %8520 = vmatprep.subr.bf16.mxu1 %v10855_v50  ;;  %8300 = vmatpush1.bf16.msra.mxu0 %v10850_v35  ;;  %v10934_v50 = vld [vmem:[%s15752_s5 + $0xb14] ss:$8 sps:$4 sm:$0xff]   ;;  %v5028_v35 = vpack.c.bf16 %v4938_v53, %v4938_v53  ;;  %v11010_v53 = vld [vmem:[%s15752_s5 + $0xcb0] ss:$8 sps:$4 sm:$0xff]  }
 0x59b   :  { %8301 = vmatprep.subr.bf16.mxu0 %v10858_v56  ;;  %v10932_v56 = vld [vmem:[%s15752_s5 + $0xb10] ss:$8 sps:$4 sm:$0xff]  }
 0x59d   :  { %8521 = vmatpush1.bf16.msra.mxu1 %v10853_v4  ;;  %v10937_v4 = vld [vmem:[%s15752_s5 + $0xb24] ss:$8 sps:$4 sm:$0xff]  }
 0x59e   :  { %8531 = vmatprep.subr.bf16.mxu1 %v10861_v46  ;;  %8302 = vmatpush1.bf16.msra.mxu0 %v10856_v30  ;;  %v10940_v46 = vld [vmem:[%s15752_s5 + $0xb34] ss:$8 sps:$4 sm:$0xff]   ;;  %v10938_v30 = vld [vmem:[%s15752_s5 + $0xb30] ss:$8 sps:$4 sm:$0xff]  }
 0x59f   :  { %8303 = vmatprep.subr.bf16.mxu0 %v10864_v61  ;;  %v10941_v61 = vld [vmem:[%s15752_s5 + $0xb40] ss:$8 sps:$4 sm:$0xff]  }
 0x5a0   :  { %8523 = vmatmul.mubr.bf16.vlgmr.msra.gmra.mrb[0].mxu1 %v5023_v22  ;;  %v10944_v22 = vld [vmem:[%s15752_s5 + $0xb50] ss:$8 sps:$4 sm:$0xff]  }
 0x5a1   :  { %8532 = vmatpush1.bf16.msra.mxu1 %v10859_v9  ;;  %8563 = vmatprep.mubr.bf16.mxu1 %v5026_v14  ;;  %v10946_v9 = vld [vmem:[%s15752_s5 + $0xb54] ss:$8 sps:$4 sm:$0xff]   ;;  %v10947_v14 = vld [vmem:[%s15752_s5 + $0xb60] ss:$8 sps:$4 sm:$0xff]  }
 0x5a2   :  { %8533 = vmatprep.subr.bf16.mxu1 %v10867_v59  ;;  %8304 = vmatpush1.bf16.msra.mxu0 %v10862_v13  ;;  %v10949_v59 = vld [vmem:[%s15752_s5 + $0xb64] ss:$8 sps:$4 sm:$0xff]   ;;  %v10952_v13 = vld [vmem:[%s15752_s5 + $0xb74] ss:$8 sps:$4 sm:$0xff]  }
 0x5a3   :  { %8305 = vmatprep.subr.bf16.mxu0 %v10870_v28  ;;  %v10950_v28 = vld [vmem:[%s15752_s5 + $0xb70] ss:$8 sps:$4 sm:$0xff]  }
 0x5a5   :  { %8534 = vmatpush1.bf16.msra.mxu1 %v10865_v24  ;;  %v10955_v24 = vld [vmem:[%s15752_s5 + $0xb84] ss:$8 sps:$4 sm:$0xff]  }
 0x5a6   :  { %8535 = vmatprep.subr.bf16.mxu1 %v10873_v23  ;;  %8306 = vmatpush1.bf16.msra.mxu0 %v10868_v55  ;;  %v10953_v23 = vld [vmem:[%s15752_s5 + $0xb80] ss:$8 sps:$4 sm:$0xff]   ;;  %v10958_v55 = vld [vmem:[%s15752_s5 + $0xb94] ss:$8 sps:$4 sm:$0xff]  }
 0x5a7   :  { %8307 = vmatprep.subr.bf16.mxu0 %v10876_v15  ;;  %v10956_v15 = vld [vmem:[%s15752_s5 + $0xb90] ss:$8 sps:$4 sm:$0xff]  }
 0x5a9   :  { %8536 = vmatpush1.bf16.msra.mxu1 %v10871_v29  ;;  %v10961_v29 = vld [vmem:[%s15752_s5 + $0xba4] ss:$8 sps:$4 sm:$0xff]  }
 0x5aa   :  { %8537 = vmatprep.subr.bf16.mxu1 %v10879_v47  ;;  %8308 = vmatpush1.bf16.msra.mxu0 %v10874_v32  ;;  %v10959_v47 = vld [vmem:[%s15752_s5 + $0xba0] ss:$8 sps:$4 sm:$0xff]   ;;  %v10964_v32 = vld [vmem:[%s15752_s5 + $0xbb4] ss:$8 sps:$4 sm:$0xff]  }
 0x5ab   :  { %8309 = vmatprep.subr.bf16.mxu0 %v10882_v11  ;;  %v10962_v11 = vld [vmem:[%s15752_s5 + $0xbb0] ss:$8 sps:$4 sm:$0xff]  }
 0x5ad   :  { %8538 = vmatpush1.bf16.msra.mxu1 %v10877_v33  ;;  %v10967_v33 = vld [vmem:[%s15752_s5 + $0xbc4] ss:$8 sps:$4 sm:$0xff]  }
 0x5ae   :  { %8539 = vmatprep.subr.bf16.mxu1 %v10885_v62  ;;  %8310 = vmatpush1.bf16.msra.mxu0 %v10880_v20  ;;  %v10965_v62 = vld [vmem:[%s15752_s5 + $0xbc0] ss:$8 sps:$4 sm:$0xff]   ;;  %v10970_v20 = vld [vmem:[%s15752_s5 + $0xbd4] ss:$8 sps:$4 sm:$0xff]  }
 0x5af   :  { %8311 = vmatprep.subr.bf16.mxu0 %v10888_v10  ;;  %v10968_v10 = vld [vmem:[%s15752_s5 + $0xbd0] ss:$8 sps:$4 sm:$0xff]  }
 0x5b1   :  { %8540 = vmatpush1.bf16.msra.mxu1 %v10883_v25  ;;  %v10973_v25 = vld [vmem:[%s15752_s5 + $0xbe4] ss:$8 sps:$4 sm:$0xff]  }
 0x5b2   :  { %8541 = vmatprep.subr.bf16.mxu1 %v10891_v34  ;;  %8312 = vmatpush1.bf16.msra.mxu0 %v10886_v27  ;;  %v15189_v34 = vld [vmem:[#allocation5 + $0x30] sm:$0xff]  ;;  %v10971_v27 = vld [vmem:[%s15752_s5 + $0xbe0] ss:$8 sps:$4 sm:$0xff]  }
 0x5b3   :  { %8313 = vmatprep.subr.bf16.mxu0 %v10894_v52  ;;  %v10976_v52 = vld [vmem:[%s15752_s5 + $0xbf4] ss:$8 sps:$4 sm:$0xff]  }
 0x5b5   :  { %8542 = vmatpush1.bf16.msra.mxu1 %v10889_v57  ;;  %v15199_v57 = vrot.slane %v15189_v34, %v14126_v21 }
 0x5b6   :  { %8543 = vmatprep.subr.bf16.mxu1 %v10897_v43  ;;  %8314 = vmatpush1.bf16.msra.mxu0 %v10892_v18  ;;  %v10974_v43 = vld [vmem:[%s15752_s5 + $0xbf0] ss:$8 sps:$4 sm:$0xff]   ;;  %v10979_v18 = vld [vmem:[%s15752_s5 + $0xc04] ss:$8 sps:$4 sm:$0xff]  }
 0x5b7   :  { %8315 = vmatprep.subr.bf16.mxu0 %v10900_v44  ;;  %v4954_v44 = vcombine.high %v15199_v57, %v15199_v57 }
 0x5b9   :  { %8544 = vmatpush1.bf16.msra.mxu1 %v10895_v60  ;;  %v10977_v60 = vld [vmem:[%s15752_s5 + $0xc00] ss:$8 sps:$4 sm:$0xff]  }
 0x5ba   :  { %8545 = vmatprep.subr.bf16.mxu1 %v10903_v45  ;;  %8316 = vmatpush1.bf16.msra.mxu0 %v10898_v39  ;;  %v5027_v45 = vpack.c.bf16 %v15093_v12, %v15093_v12  ;;  %v10982_v39 = vld [vmem:[%s15752_s5 + $0xc14] ss:$8 sps:$4 sm:$0xff]   ;;  %v11009_v12 = vld [vmem:[%s15752_s5 + $0xca4] ss:$8 sps:$4 sm:$0xff]  }
 0x5bd   :  { %8546 = vmatpush1.bf16.msra.mxu1 %v10901_v49  ;;  %8318 = vmatmul.mubr.bf16.vlgmr.msra.gmra.mrb[192].mxu0 %v5013_v5  ;;  %v5030_v49 = vpack.c.bf16 %v4954_v44, %v4954_v44  ;;  %v10985_v5 = vld [vmem:[%s15752_s5 + $0xc24] ss:$8 sps:$4 sm:$0xff]   ;;  %v11059_v44 = vld [vmem:[%s15752_s5 + $0xdb0] ss:$8 sps:$4 sm:$0xff]  }
 0x5be   :  { %8547 = vmatprep.subr.bf16.mxu1 %v10906_v1  ;;  %v10980_v1 = vld [vmem:[%s15752_s5 + $0xc10] ss:$8 sps:$4 sm:$0xff]  }
 0x5c1   :  { %8548 = vmatpush1.bf16.msra.mxu1 %v10904_v6  ;;  %v10983_v6 = vld [vmem:[%s15752_s5 + $0xc20] ss:$8 sps:$4 sm:$0xff]  }
 0x5c2   :  { %8549 = vmatprep.subr.bf16.mxu1 %v10909_v54  ;;  %v10988_v54 = vld [vmem:[%s15752_s5 + $0xc34] ss:$8 sps:$4 sm:$0xff]  }
 0x5c5   :  { %8550 = vmatpush1.bf16.msra.mxu1 %v10907_v63  ;;  %v10986_v63 = vld [vmem:[%s15752_s5 + $0xc30] ss:$8 sps:$4 sm:$0xff]  }
 0x5c6   :  { %8551 = vmatprep.subr.bf16.mxu1 %v10912_v41  ;;  %v10991_v41 = vld [vmem:[%s15752_s5 + $0xc44] ss:$8 sps:$4 sm:$0xff]  }
 0x5c9   :  { %8552 = vmatpush1.bf16.msra.mxu1 %v10910_v8  ;;  %v10989_v8 = vld [vmem:[%s15752_s5 + $0xc40] ss:$8 sps:$4 sm:$0xff]  }
 0x5ca   :  { %8553 = vmatprep.subr.bf16.mxu1 %v10915_v31  ;;  %v10994_v31 = vld [vmem:[%s15752_s5 + $0xc54] ss:$8 sps:$4 sm:$0xff]  }
 0x5cd   :  { %8554 = vmatpush1.bf16.msra.mxu1 %v10913_v17  ;;  %v10992_v17 = vld [vmem:[%s15752_s5 + $0xc50] ss:$8 sps:$4 sm:$0xff]  }
 0x5ce   :  { %8555 = vmatprep.subr.bf16.mxu1 %v10918_v51  ;;  %v10997_v51 = vld [vmem:[%s15752_s5 + $0xc64] ss:$8 sps:$4 sm:$0xff]  }
 0x5d1   :  { %8556 = vmatpush1.bf16.msra.mxu1 %v10916_v3  ;;  %v10995_v3 = vld [vmem:[%s15752_s5 + $0xc60] ss:$8 sps:$4 sm:$0xff]  }
 0x5d2   :  { %8557 = vmatprep.subr.bf16.mxu1 %v10921_v7  ;;  %v11000_v7 = vld [vmem:[%s15752_s5 + $0xc74] ss:$8 sps:$4 sm:$0xff]  }
 0x5d5   :  { %8558 = vmatpush1.bf16.msra.mxu1 %v10919_v26  ;;  %v10998_v26 = vld [vmem:[%s15752_s5 + $0xc70] ss:$8 sps:$4 sm:$0xff]  }
 0x5d6   :  { %8559 = vmatprep.subr.bf16.mxu1 %v10924_v42  ;;  %v11003_v42 = vld [vmem:[%s15752_s5 + $0xc84] ss:$8 sps:$4 sm:$0xff]  }
 0x5d9   :  { %8560 = vmatpush1.bf16.msra.mxu1 %v10922_v48  ;;  %v11006_v48 = vld [vmem:[%s15752_s5 + $0xc94] ss:$8 sps:$4 sm:$0xff]  }
 0x5da   :  { %8561 = vmatprep.subr.bf16.mxu1 %v10927_v58  ;;  %v11004_v58 = vld [vmem:[%s15752_s5 + $0xc90] ss:$8 sps:$4 sm:$0xff]  }
 0x5dd   :  { %8562 = vmatpush1.bf16.msra.mxu1 %v10925_v0  ;;  %v11007_v0 = vld [vmem:[%s15752_s5 + $0xca0] ss:$8 sps:$4 sm:$0xff]  }
 0x5de   :  { %8572 = vmatprep.subr.bf16.mxu1 %v10930_v19  ;;  %v11012_v19 = vld [vmem:[%s15752_s5 + $0xcb4] ss:$8 sps:$4 sm:$0xff]  }
 0x5e0   :  { %8564 = vmatmul.mubr.bf16.vlgmr.msra.gmra.mrb[0].mxu1 %v5025_v16  ;;  %v11013_v16 = vld [vmem:[%s15752_s5 + $0xcc0] ss:$8 sps:$4 sm:$0xff]  }
 0x5e1   :  { %8573 = vmatpush1.bf16.msra.mxu1 %v10928_v37  ;;  %8604 = vmatprep.mubr.bf16.mxu1 %v5028_v35  ;;  %v11015_v37 = vld [vmem:[%s15752_s5 + $0xcc4] ss:$8 sps:$4 sm:$0xff]   ;;  %v11016_v35 = vld [vmem:[%s15752_s5 + $0xcd0] ss:$8 sps:$4 sm:$0xff]  }
 0x5e2   :  { %8574 = vmatprep.subr.bf16.mxu1 %v10934_v50  ;;  %v11018_v50 = vld [vmem:[%s15752_s5 + $0xcd4] ss:$8 sps:$4 sm:$0xff]  }
 0x5e5   :  { %8575 = vmatpush1.bf16.msra.mxu1 %v10932_v56  ;;  %v11021_v56 = vld [vmem:[%s15752_s5 + $0xce4] ss:$8 sps:$4 sm:$0xff]  }
 0x5e6   :  { %8576 = vmatprep.subr.bf16.mxu1 %v10937_v4  ;;  %v4939_v4 = vcombine.high %v15189_v34, %v15189_v34  ;;  %v11050_v34 = vld [vmem:[%s15752_s5 + $0xd80] ss:$8 sps:$4 sm:$0xff]  }
 0x5e9   :  { %8577 = vmatpush1.bf16.msra.mxu1 %v10935_v38  ;;  %v11019_v38 = vld [vmem:[%s15752_s5 + $0xce0] ss:$8 sps:$4 sm:$0xff]  }
 0x5ea   :  { %8578 = vmatprep.subr.bf16.mxu1 %v10940_v46  ;;  %v11024_v46 = vld [vmem:[%s15752_s5 + $0xcf4] ss:$8 sps:$4 sm:$0xff]  }
 0x5ed   :  { %8579 = vmatpush1.bf16.msra.mxu1 %v10938_v30  ;;  %v15304_v30 = vrot.slane %v4939_v4, %v14126_v21 }
 0x5ee   :  { %8580 = vmatprep.subr.bf16.mxu1 %v10943_v2  ;;  %v11022_v2 = vld [vmem:[%s15752_s5 + $0xcf0] ss:$8 sps:$4 sm:$0xff]  }
 0x5f1   :  { %8581 = vmatpush1.bf16.msra.mxu1 %v10941_v61  ;;  %v11027_v61 = vld [vmem:[%s15752_s5 + $0xd04] ss:$8 sps:$4 sm:$0xff]  }
 0x5f2   :  { %8582 = vmatprep.subr.bf16.mxu1 %v10946_v9  ;;  %v4955_v9 = vcombine.high %v15304_v30, %v15304_v30 }
 0x5f5   :  { %8583 = vmatpush1.bf16.msra.mxu1 %v10944_v22  ;;  %v11025_v22 = vld [vmem:[%s15752_s5 + $0xd00] ss:$8 sps:$4 sm:$0xff]  }
 0x5f6   :  { %8584 = vmatprep.subr.bf16.mxu1 %v10949_v59  ;;  %v5029_v59 = vpack.c.bf16 %v15199_v57, %v15199_v57  ;;  %v11058_v57 = vld [vmem:[%s15752_s5 + $0xda4] ss:$8 sps:$4 sm:$0xff]  }
 0x5f9   :  { %8585 = vmatpush1.bf16.msra.mxu1 %v10947_v14  ;;  %v11031_v14 = vld [vmem:[%s15752_s5 + $0xd14] ss:$8 sps:$4 sm:$0xff]  }
 0x5fa   :  { %8586 = vmatprep.subr.bf16.mxu1 %v10952_v13  ;;  %v5032_v13 = vpack.c.bf16 %v4955_v9, %v4955_v9  ;;  %v11080_v9 = vld [vmem:[%s15752_s5 + $0xe20] ss:$8 sps:$4 sm:$0xff]  }
 0x5fd   :  { %8587 = vmatpush1.bf16.msra.mxu1 %v10950_v28  ;;  %v11029_v28 = vld [vmem:[%s15752_s5 + $0xd10] ss:$8 sps:$4 sm:$0xff]  }
 0x5fe   :  { %8588 = vmatprep.subr.bf16.mxu1 %v10955_v24  ;;  %v11034_v24 = vld [vmem:[%s15752_s5 + $0xd24] ss:$8 sps:$4 sm:$0xff]  }
 0x601   :  { %8589 = vmatpush1.bf16.msra.mxu1 %v10953_v23  ;;  %v11032_v23 = vld [vmem:[%s15752_s5 + $0xd20] ss:$8 sps:$4 sm:$0xff]  }
 0x602   :  { %8590 = vmatprep.subr.bf16.mxu1 %v10958_v55  ;;  %v11037_v55 = vld [vmem:[%s15752_s5 + $0xd34] ss:$8 sps:$4 sm:$0xff]  }
 0x605   :  { %8591 = vmatpush1.bf16.msra.mxu1 %v10956_v15  ;;  %v11035_v15 = vld [vmem:[%s15752_s5 + $0xd30] ss:$8 sps:$4 sm:$0xff]  }
 0x606   :  { %8592 = vmatprep.subr.bf16.mxu1 %v10961_v29  ;;  %v11040_v29 = vld [vmem:[%s15752_s5 + $0xd44] ss:$8 sps:$4 sm:$0xff]  }
 0x609   :  { %8593 = vmatpush1.bf16.msra.mxu1 %v10959_v47  ;;  %v11038_v47 = vld [vmem:[%s15752_s5 + $0xd40] ss:$8 sps:$4 sm:$0xff]  }
 0x60a   :  { %8594 = vmatprep.subr.bf16.mxu1 %v10964_v32  ;;  %v11043_v32 = vld [vmem:[%s15752_s5 + $0xd54] ss:$8 sps:$4 sm:$0xff]  }
 0x60d   :  { %8595 = vmatpush1.bf16.msra.mxu1 %v10962_v11  ;;  %v11041_v11 = vld [vmem:[%s15752_s5 + $0xd50] ss:$8 sps:$4 sm:$0xff]  }
 0x60e   :  { %8596 = vmatprep.subr.bf16.mxu1 %v10967_v33  ;;  %v11046_v33 = vld [vmem:[%s15752_s5 + $0xd64] ss:$8 sps:$4 sm:$0xff]  }
 0x611   :  { %8597 = vmatpush1.bf16.msra.mxu1 %v10965_v62  ;;  %v11044_v62 = vld [vmem:[%s15752_s5 + $0xd60] ss:$8 sps:$4 sm:$0xff]  }
 0x612   :  { %8598 = vmatprep.subr.bf16.mxu1 %v10970_v20  ;;  %v11049_v20 = vld [vmem:[%s15752_s5 + $0xd74] ss:$8 sps:$4 sm:$0xff]  }
 0x615   :  { %8599 = vmatpush1.bf16.msra.mxu1 %v10968_v10  ;;  %v11047_v10 = vld [vmem:[%s15752_s5 + $0xd70] ss:$8 sps:$4 sm:$0xff]  }
 0x616   :  { %8600 = vmatprep.subr.bf16.mxu1 %v10973_v25  ;;  %v11052_v25 = vld [vmem:[%s15752_s5 + $0xd84] ss:$8 sps:$4 sm:$0xff]  }
 0x619   :  { %8601 = vmatpush1.bf16.msra.mxu1 %v10971_v27  ;;  %v11055_v27 = vld [vmem:[%s15752_s5 + $0xd94] ss:$8 sps:$4 sm:$0xff]  }
 0x61a   :  { %8602 = vmatprep.subr.bf16.mxu1 %v10976_v52  ;;  %v11053_v52 = vld [vmem:[%s15752_s5 + $0xd90] ss:$8 sps:$4 sm:$0xff]  }
 0x61d   :  { %8603 = vmatpush1.bf16.msra.mxu1 %v10974_v43  ;;  %v11056_v43 = vld [vmem:[%s15752_s5 + $0xda0] ss:$8 sps:$4 sm:$0xff]  }
 0x61e   :  { %8613 = vmatprep.subr.bf16.mxu1 %v10979_v18  ;;  %v11061_v18 = vld [vmem:[%s15752_s5 + $0xdb4] ss:$8 sps:$4 sm:$0xff]  }
 0x620   :  { %8605 = vmatmul.mubr.bf16.vlgmr.msra.gmra.mrb[0].mxu1 %v5027_v45  ;;  %v11062_v45 = vld [vmem:[%s15752_s5 + $0xdc0] ss:$8 sps:$4 sm:$0xff]  }
 0x621   :  { %8614 = vmatpush1.bf16.msra.mxu1 %v10977_v60  ;;  %8645 = vmatprep.mubr.bf16.mxu1 %v5030_v49  ;;  %v11064_v60 = vld [vmem:[%s15752_s5 + $0xdc4] ss:$8 sps:$4 sm:$0xff]  }
 0x622   :  { %8615 = vmatprep.subr.bf16.mxu1 %v10982_v39  ;;  %v11067_v39 = vld [vmem:[%s15752_s5 + $0xdd4] ss:$8 sps:$4 sm:$0xff]  }
 0x625   :  { %8616 = vmatpush1.bf16.msra.mxu1 %v10980_v1  ;;  %v11065_v1 = vld [vmem:[%s15752_s5 + $0xdd0] ss:$8 sps:$4 sm:$0xff]  }
 0x626   :  { %8617 = vmatprep.subr.bf16.mxu1 %v10985_v5 }
 0x629   :  { %8618 = vmatpush1.bf16.msra.mxu1 %v10983_v6  ;;  %v11070_v6 = vld [vmem:[%s15752_s5 + $0xde4] ss:$8 sps:$4 sm:$0xff]  }
 0x62a   :  { %8619 = vmatprep.subr.bf16.mxu1 %v10988_v54 }
 0x62d   :  { %8620 = vmatpush1.bf16.msra.mxu1 %v10986_v63 }
 0x62e   :  { %8621 = vmatprep.subr.bf16.mxu1 %v10991_v41  ;;  %v15404_v41 = vld [vmem:[#allocation5 + $0x38] sm:$0xff] }
 0x631   :  { %8622 = vmatpush1.bf16.msra.mxu1 %v10989_v8  ;;  %v11068_v8 = vld [vmem:[%s15752_s5 + $0xde0] ss:$8 sps:$4 sm:$0xff]  }
 0x632   :  { %8623 = vmatprep.subr.bf16.mxu1 %v10994_v31  ;;  %v11073_v31 = vld [vmem:[%s15752_s5 + $0xdf4] ss:$8 sps:$4 sm:$0xff]  }
 0x635   :  { %8624 = vmatpush1.bf16.msra.mxu1 %v10992_v17  ;;  %v15414_v17 = vrot.slane %v15404_v41, %v14126_v21 }
 0x636   :  { %8625 = vmatprep.subr.bf16.mxu1 %v10997_v51  ;;  %v11071_v51 = vld [vmem:[%s15752_s5 + $0xdf0] ss:$8 sps:$4 sm:$0xff]  }
 0x639   :  { %8626 = vmatpush1.bf16.msra.mxu1 %v10995_v3  ;;  %v11076_v3 = vld [vmem:[%s15752_s5 + $0xe04] ss:$8 sps:$4 sm:$0xff]  }
 0x63a   :  { %8627 = vmatprep.subr.bf16.mxu1 %v11000_v7  ;;  %v4971_v7 = vcombine.high %v15414_v17, %v15414_v17 }
 0x63d   :  { %8628 = vmatpush1.bf16.msra.mxu1 %v10998_v26  ;;  %v11074_v26 = vld [vmem:[%s15752_s5 + $0xe00] ss:$8 sps:$4 sm:$0xff]  }
 0x63e   :  { %8629 = vmatprep.subr.bf16.mxu1 %v11003_v42  ;;  %v5031_v42 = vpack.c.bf16 %v15304_v30, %v15304_v30  ;;  %v8797_v30 = vld [vmem:[%s15754_s7 + $0xa0] sm:$0xff] }
 0x641   :  { %8630 = vmatpush1.bf16.msra.mxu1 %v11001_v40  ;;  %v11079_v40 = vld [vmem:[%s15752_s5 + $0xe14] ss:$8 sps:$4 sm:$0xff]  }
 0x642   :  { %8631 = vmatprep.subr.bf16.mxu1 %v11006_v48  ;;  %v5034_v48 = vpack.c.bf16 %v4971_v7, %v4971_v7 }
 0x645   :  { %8632 = vmatpush1.bf16.msra.mxu1 %v11004_v58  ;;  %v11077_v58 = vld [vmem:[%s15752_s5 + $0xe10] ss:$8 sps:$4 sm:$0xff]  }
 0x646   :  { %8633 = vmatprep.subr.bf16.mxu1 %v11009_v12  ;;  %v11082_v12 = vld [vmem:[%s15752_s5 + $0xe24] ss:$8 sps:$4 sm:$0xff]  }
 0x649   :  { %8634 = vmatpush1.bf16.msra.mxu1 %v11007_v0  ;;  %v8793_v0 = vld [vmem:[%s15754_s7 + $0x80] sm:$0xff] }
 0x64a   :  { %8635 = vmatprep.subr.bf16.mxu1 %v11012_v19  ;;  %v8794_v19 = vld [vmem:[%s15754_s7 + $0x88] sm:$0xff] }
 0x64d   :  { %8636 = vmatpush1.bf16.msra.mxu1 %v11010_v53  ;;  %v8777_v53 = vld [vmem:[%s15754_s7] sm:$0xff] }
 0x64e   :  { %8637 = vmatprep.subr.bf16.mxu1 %v11015_v37  ;;  %v10298_v37 = vpack.c.bf16 %v8794_v19, %v8793_v0  ;;  %v11104_v0 = vld [vmem:[%s15752_s5 + $0xea0] ss:$8 sps:$4 sm:$0xff]   ;;  %v11109_v19 = vld [vmem:[%s15752_s5 + $0xeb4] ss:$8 sps:$4 sm:$0xff]  }
 0x650   :  { %10299 = vmatprep.subr.bf16.mxu0 %v10298_v37  ;;  %v11112_v37 = vld [vmem:[%s15752_s5 + $0xec4] ss:$8 sps:$4 sm:$0xff]  }
 0x651   :  { %8638 = vmatpush1.bf16.msra.mxu1 %v11013_v16  ;;  %v8778_v16 = vld [vmem:[%s15754_s7 + $0x8] sm:$0xff] }
 0x652   :  { %8639 = vmatprep.subr.bf16.mxu1 %v11018_v50  ;;  %v8795_v50 = vld [vmem:[%s15754_s7 + $0x90] sm:$0xff] }
 0x655   :  { %8640 = vmatpush1.bf16.msra.mxu1 %v11016_v35  ;;  %v8796_v35 = vld [vmem:[%s15754_s7 + $0x98] sm:$0xff] }
 0x656   :  { %8641 = vmatprep.subr.bf16.mxu1 %v11021_v56  ;;  %v10300_v56 = vpack.c.bf16 %v8778_v16, %v8777_v53  ;;  %v10302_v4 = vpack.c.bf16 %v8796_v35, %v8795_v50  ;;  %v11107_v53 = vld [vmem:[%s15752_s5 + $0xeb0] ss:$8 sps:$4 sm:$0xff]   ;;  %v11110_v16 = vld [vmem:[%s15752_s5 + $0xec0] ss:$8 sps:$4 sm:$0xff]   ;;  %v11115_v50 = vld [vmem:[%s15752_s5 + $0xed4] ss:$8 sps:$4 sm:$0xff]  }
 0x657   :  { %v11113_v35 = vld [vmem:[%s15752_s5 + $0xed0] ss:$8 sps:$4 sm:$0xff]  }
 0x658   :  { %10301 = vmatpush3.bf16.msra.mxu0 %v10300_v56  ;;  %v11118_v56 = vld [vmem:[%s15752_s5 + $0xee4] ss:$8 sps:$4 sm:$0xff]  }
 0x659   :  { %8642 = vmatpush1.bf16.msra.mxu1 %v11019_v38  ;;  %v8779_v38 = vld [vmem:[%s15754_s7 + $0x10] sm:$0xff]  ;;  %10303 = vmatprep.subr.bf16.mxu0 %v10302_v4  ;;  %v4956_v4 = vcombine.high %v15404_v41, %v15404_v41  ;;  %v11124_v41 = vld [vmem:[%s15752_s5 + $0xf04] ss:$8 sps:$4 sm:$0xff]  }
 0x65a   :  { %8643 = vmatprep.subr.bf16.mxu1 %v11024_v46  ;;  %v8780_v46 = vld [vmem:[%s15754_s7 + $0x18] sm:$0xff] }
 0x65d   :  { %8644 = vmatpush1.bf16.msra.mxu1 %v11022_v2  ;;  %v8798_v2 = vld [vmem:[%s15754_s7 + $0xa8] sm:$0xff] }
 0x65e   :  { %8654 = vmatprep.subr.bf16.mxu1 %v11027_v61  ;;  %v10304_v61 = vpack.c.bf16 %v8780_v46, %v8779_v38  ;;  %v11116_v38 = vld [vmem:[%s15752_s5 + $0xee0] ss:$8 sps:$4 sm:$0xff]   ;;  %v11121_v46 = vld [vmem:[%s15752_s5 + $0xef4] ss:$8 sps:$4 sm:$0xff]  }
 0x660   :  { %8646 = vmatmul.mubr.bf16.vlgmr.msra.gmra.mrb[0].mxu1 %v5029_v59  ;;  %v8781_v59 = vld [vmem:[%s15754_s7 + $0x20] sm:$0xff]  ;;  %10305 = vmatpush3.bf16.msra.mxu0 %v10304_v61 }
 0x661   :  { %8655 = vmatpush1.bf16.msra.mxu1 %v11025_v22  ;;  %8686 = vmatprep.mubr.bf16.mxu1 %v5032_v13  ;;  %v10306_v22 = vpack.c.bf16 %v8798_v2, %v8797_v30  ;;  %v11085_v13 = vld [vmem:[%s15752_s5 + $0xe34] ss:$8 sps:$4 sm:$0xff]   ;;  %v15603_v30 = vrot.slane %v4956_v4, %v14126_v21  ;;  %v11119_v2 = vld [vmem:[%s15752_s5 + $0xef0] ss:$8 sps:$4 sm:$0xff]   ;;  %v5033_v21 = vpack.c.bf16 %v15414_v17, %v15414_v17  ;;  %v11129_v17 = vld [vmem:[%s15752_s5 + $0xf20] ss:$8 sps:$4 sm:$0xff]  }
 0x662   :  { %8656 = vmatprep.subr.bf16.mxu1 %v11031_v14  ;;  %v8782_v14 = vld [vmem:[%s15754_s7 + $0x28] sm:$0xff]  ;;  %v9718_v4 = vld [vmem:[%s15755_s8] ss:$0 sm:$0xff] }
 0x663   :  { %10307 = vmatprep.subr.bf16.mxu0 %v10306_v22  ;;  %v4972_v61 = vcombine.high %v15603_v30, %v15603_v30  ;;  %v11128_v22 = vld [vmem:[%s15752_s5 + $0xf14] ss:$8 sps:$4 sm:$0xff]  }
 0x665   :  { %8657 = vmatpush1.bf16.msra.mxu1 %v11029_v28  ;;  %v8799_v28 = vld [vmem:[%s15754_s7 + $0xb0] sm:$0xff] }
 0x666   :  { %8658 = vmatprep.subr.bf16.mxu1 %v11034_v24  ;;  %v8800_v24 = vld [vmem:[%s15754_s7 + $0xb8] sm:$0xff] }
 0x669   :  { %8659 = vmatpush1.bf16.msra.mxu1 %v11032_v23  ;;  %v10308_v23 = vpack.c.bf16 %v8782_v14, %v8781_v59  ;;  %v5036_v59 = vpack.c.bf16 %v4972_v61, %v4972_v61  ;;  %v11126_v14 = vld [vmem:[%s15752_s5 + $0xf10] ss:$8 sps:$4 sm:$0xff]  }
 0x66a   :  { %8660 = vmatprep.subr.bf16.mxu1 %v11037_v55  ;;  %v11083_v55 = vld [vmem:[%s15752_s5 + $0xe30] ss:$8 sps:$4 sm:$0xff]  }
 0x66b   :  { %10309 = vmatpush3.bf16.msra.mxu0 %v10308_v23  ;;  %v11137_v23 = vld [vmem:[%s15752_s5 + $0xf44] ss:$8 sps:$4 sm:$0xff]  }
 0x66d   :  { %8661 = vmatpush1.bf16.msra.mxu1 %v11035_v15  ;;  %v10310_v15 = vpack.c.bf16 %v8800_v24, %v8799_v28  ;;  %v11134_v28 = vld [vmem:[%s15752_s5 + $0xf34] ss:$8 sps:$4 sm:$0xff]   ;;  %v11132_v24 = vld [vmem:[%s15752_s5 + $0xf30] ss:$8 sps:$4 sm:$0xff]  }
 0x66e   :  { %8662 = vmatprep.subr.bf16.mxu1 %v11040_v29  ;;  %v8783_v29 = vld [vmem:[%s15754_s7 + $0x30] sm:$0xff] }
 0x66f   :  { %10311 = vmatprep.subr.bf16.mxu0 %v10310_v15  ;;  %v11140_v15 = vld [vmem:[%s15752_s5 + $0xf54] ss:$8 sps:$4 sm:$0xff]  }
 0x671   :  { %8663 = vmatpush1.bf16.msra.mxu1 %v11038_v47  ;;  %v8784_v47 = vld [vmem:[%s15754_s7 + $0x38] sm:$0xff] }
 0x672   :  { %8664 = vmatprep.subr.bf16.mxu1 %v11043_v32  ;;  %v11088_v32 = vld [vmem:[%s15752_s5 + $0xe44] ss:$8 sps:$4 sm:$0xff]  }
 0x675   :  { %8665 = vmatpush1.bf16.msra.mxu1 %v11041_v11  ;;  %v8801_v11 = vld [vmem:[%s15754_s7 + $0xc0] sm:$0xff] }
 0x676   :  { %8666 = vmatprep.subr.bf16.mxu1 %v11046_v33  ;;  %v8802_v33 = vld [vmem:[%s15754_s7 + $0xc8] sm:$0xff] }
 0x679   :  { %8667 = vmatpush1.bf16.msra.mxu1 %v11044_v62  ;;  %v10312_v62 = vpack.c.bf16 %v8784_v47, %v8783_v29  ;;  %v11138_v29 = vld [vmem:[%s15752_s5 + $0xf50] ss:$8 sps:$4 sm:$0xff]   ;;  %v11143_v47 = vld [vmem:[%s15752_s5 + $0xf64] ss:$8 sps:$4 sm:$0xff]  }
 0x67a   :  { %8668 = vmatprep.subr.bf16.mxu1 %v11049_v20  ;;  %v11086_v20 = vld [vmem:[%s15752_s5 + $0xe40] ss:$8 sps:$4 sm:$0xff]  }
 0x67b   :  { %10313 = vmatpush3.bf16.msra.mxu0 %v10312_v62  ;;  %v11149_v62 = vld [vmem:[%s15752_s5 + $0xf84] ss:$8 sps:$4 sm:$0xff]  }
 0x67d   :  { %8669 = vmatpush1.bf16.msra.mxu1 %v11047_v10  ;;  %v10314_v10 = vpack.c.bf16 %v8802_v33, %v8801_v11  ;;  %v11146_v11 = vld [vmem:[%s15752_s5 + $0xf74] ss:$8 sps:$4 sm:$0xff]   ;;  %v11144_v33 = vld [vmem:[%s15752_s5 + $0xf70] ss:$8 sps:$4 sm:$0xff]  }
 0x67e   :  { %8670 = vmatprep.subr.bf16.mxu1 %v11052_v25  ;;  %v8785_v25 = vld [vmem:[%s15754_s7 + $0x40] sm:$0xff] }
 0x67f   :  { %10315 = vmatprep.subr.bf16.mxu0 %v10314_v10  ;;  %v11152_v10 = vld [vmem:[%s15752_s5 + $0xf94] ss:$8 sps:$4 sm:$0xff]  }
 0x681   :  { %8671 = vmatpush1.bf16.msra.mxu1 %v11050_v34  ;;  %v8786_v34 = vld [vmem:[%s15754_s7 + $0x48] sm:$0xff] }
 0x682   :  { %8672 = vmatprep.subr.bf16.mxu1 %v11055_v27  ;;  %v11091_v27 = vld [vmem:[%s15752_s5 + $0xe54] ss:$8 sps:$4 sm:$0xff]  }
 0x685   :  { %8673 = vmatpush1.bf16.msra.mxu1 %v11053_v52  ;;  %v8803_v52 = vld [vmem:[%s15754_s7 + $0xd0] sm:$0xff] }
 0x686   :  { %8674 = vmatprep.subr.bf16.mxu1 %v11058_v57  ;;  %v8804_v57 = vld [vmem:[%s15754_s7 + $0xd8] sm:$0xff] }
 0x689   :  { %8675 = vmatpush1.bf16.msra.mxu1 %v11056_v43  ;;  %v10316_v43 = vpack.c.bf16 %v8786_v34, %v8785_v25  ;;  %v11150_v25 = vld [vmem:[%s15752_s5 + $0xf90] ss:$8 sps:$4 sm:$0xff]   ;;  %v11155_v34 = vld [vmem:[%s15752_s5 + $0xfa4] ss:$8 sps:$4 sm:$0xff]  }
 0x68a   :  { %8676 = vmatprep.subr.bf16.mxu1 %v11061_v18  ;;  %v11089_v18 = vld [vmem:[%s15752_s5 + $0xe50] ss:$8 sps:$4 sm:$0xff]  }
 0x68b   :  { %10317 = vmatpush3.bf16.msra.mxu0 %v10316_v43  ;;  %v11161_v43 = vld [vmem:[%s15752_s5 + $0xfc4] ss:$8 sps:$4 sm:$0xff]  }
 0x68d   :  { %8677 = vmatpush1.bf16.msra.mxu1 %v11059_v44  ;;  %v10318_v44 = vpack.c.bf16 %v8804_v57, %v8803_v52  ;;  %v11158_v52 = vld [vmem:[%s15752_s5 + $0xfb4] ss:$8 sps:$4 sm:$0xff]   ;;  %v11156_v57 = vld [vmem:[%s15752_s5 + $0xfb0] ss:$8 sps:$4 sm:$0xff]  }
 0x68e   :  { %8678 = vmatprep.subr.bf16.mxu1 %v11064_v60  ;;  %v8787_v60 = vld [vmem:[%s15754_s7 + $0x50] sm:$0xff] }
 0x68f   :  { %10319 = vmatprep.subr.bf16.mxu0 %v10318_v44  ;;  %v11164_v44 = vld [vmem:[%s15752_s5 + $0xfd4] ss:$8 sps:$4 sm:$0xff]  }
 0x690   :  { %v15394_v49 = vpop.f32.mrb[192].mxu0 }
 0x691   :  { %8679 = vmatpush1.bf16.msra.mxu1 %v11062_v45  ;;  %v15399_v5 = vpop.f32.mrb[193].mxu0  ;;  %v8788_v45 = vld [vmem:[%s15754_s7 + $0x58] sm:$0xff] }
 0x692   :  { %8680 = vmatprep.subr.bf16.mxu1 %v11067_v39  ;;  %v8323_v54 = vpop.f32.mrb[194].mxu0  ;;  %v11094_v39 = vld [vmem:[%s15752_s5 + $0xe64] ss:$8 sps:$4 sm:$0xff]  }
 0x693   :  { %v8324_v63 = vpop.f32.mrb[195].mxu0  ;;  %v10320_v54 = vpack.c.bf16 %v8788_v45, %v8787_v60  ;;  %v11162_v60 = vld [vmem:[%s15752_s5 + $0xfd0] ss:$8 sps:$4 sm:$0xff]   ;;  %v11167_v45 = vld [vmem:[%s15752_s5 + $0xfe4] ss:$8 sps:$4 sm:$0xff]  }
 0x694   :  { %v11092_v63 = vld [vmem:[%s15752_s5 + $0xe60] ss:$8 sps:$4 sm:$0xff]  }
 0x695   :  { %8681 = vmatpush1.bf16.msra.mxu1 %v11065_v1  ;;  %v8805_v1 = vld [vmem:[%s15754_s7 + $0xe0] sm:$0xff]  ;;  %10321 = vmatpush3.bf16.msra.mxu0 %v10320_v54  ;;  %v5035_v54 = vpack.c.bf16 %v15603_v30, %v15603_v30 }
 0x696   :  { %8682 = vmatprep.subr.bf16.mxu1 %v11070_v6  ;;  %v8806_v6 = vld [vmem:[%s15754_s7 + $0xe8] sm:$0xff] }
 0x699   :  { %8683 = vmatpush1.bf16.msra.mxu1 %v11068_v8  ;;  %v10322_v8 = vpack.c.bf16 %v8806_v6, %v8805_v1  ;;  %v11170_v1 = vld [vmem:[%s15752_s5 + $0xff4] ss:$8 sps:$4 sm:$0xff]   ;;  %v11168_v6 = vld [vmem:[%s15752_s5 + $0xff0] ss:$8 sps:$4 sm:$0xff]  }
 0x69a   :  { %8684 = vmatprep.subr.bf16.mxu1 %v11073_v31  ;;  %v8789_v31 = vld [vmem:[%s15754_s7 + $0x60] sm:$0xff] }
 0x69b   :  { %10323 = vmatprep.subr.bf16.mxu0 %v10322_v8  ;;  %v8808_v8 = vld [vmem:[%s15754_s7 + $0xf8] sm:$0xff] }
 0x69d   :  { %8685 = vmatpush1.bf16.msra.mxu1 %v11071_v51  ;;  %v8790_v51 = vld [vmem:[%s15754_s7 + $0x68] sm:$0xff] }
 0x69e   :  { %8695 = vmatprep.subr.bf16.mxu1 %v11076_v3  ;;  %v11097_v3 = vld [vmem:[%s15752_s5 + $0xe74] ss:$8 sps:$4 sm:$0xff]   ;;  %v10324_v7 = vpack.c.bf16 %v8790_v51, %v8789_v31 }
 0x69f   :  { %v8791_v31 = vld [vmem:[%s15754_s7 + $0x70] sm:$0xff] }
 0x6a0   :  { %8687 = vmatmul.mubr.bf16.vlgmr.msra.gmra.mrb[0].mxu1 %v5031_v42  ;;  %v11100_v42 = vld [vmem:[%s15752_s5 + $0xe84] ss:$8 sps:$4 sm:$0xff]   ;;  %10325 = vmatpush3.bf16.msra.mxu0 %v10324_v7 }
 0x6a1   :  { %8696 = vmatpush1.bf16.msra.mxu1 %v11074_v26  ;;  %8727 = vmatprep.mubr.bf16.mxu1 %v5034_v48  ;;  %v11095_v26 = vld [vmem:[%s15752_s5 + $0xe70] ss:$8 sps:$4 sm:$0xff]   ;;  %v11103_v48 = vld [vmem:[%s15752_s5 + $0xe94] ss:$8 sps:$4 sm:$0xff]  }
 0x6a2   :  { %8697 = vmatprep.subr.bf16.mxu1 %v11079_v40  ;;  %v11098_v40 = vld [vmem:[%s15752_s5 + $0xe80] ss:$8 sps:$4 sm:$0xff]  }
 0x6a5   :  { %8698 = vmatpush1.bf16.msra.mxu1 %v11077_v58  ;;  %v11101_v58 = vld [vmem:[%s15752_s5 + $0xe90] ss:$8 sps:$4 sm:$0xff]  }
 0x6a6   :  { %8699 = vmatprep.subr.bf16.mxu1 %v11082_v12  ;;  %v11106_v12 = vld [vmem:[%s15752_s5 + $0xea4] ss:$8 sps:$4 sm:$0xff]  }
 0x6a9   :  { %8700 = vmatpush1.bf16.msra.mxu1 %v11080_v9  ;;  %v11122_v9 = vld [vmem:[%s15752_s5 + $0xf00] ss:$8 sps:$4 sm:$0xff]  }
 0x6aa   :  { %8701 = vmatprep.subr.bf16.mxu1 %v11085_v13  ;;  %v11131_v13 = vld [vmem:[%s15752_s5 + $0xf24] ss:$8 sps:$4 sm:$0xff]  }
 0x6ad   :  { %8702 = vmatpush1.bf16.msra.mxu1 %v11083_v55  ;;  %v11135_v55 = vld [vmem:[%s15752_s5 + $0xf40] ss:$8 sps:$4 sm:$0xff]  }
 0x6ae   :  { %8703 = vmatprep.subr.bf16.mxu1 %v11088_v32  ;;  %v11141_v32 = vld [vmem:[%s15752_s5 + $0xf60] ss:$8 sps:$4 sm:$0xff]  }
 0x6b1   :  { %8704 = vmatpush1.bf16.msra.mxu1 %v11086_v20  ;;  %v11147_v20 = vld [vmem:[%s15752_s5 + $0xf80] ss:$8 sps:$4 sm:$0xff]  }
 0x6b2   :  { %8705 = vmatprep.subr.bf16.mxu1 %v11091_v27  ;;  %v11153_v27 = vld [vmem:[%s15752_s5 + $0xfa0] ss:$8 sps:$4 sm:$0xff]  }
 0x6b5   :  { %8706 = vmatpush1.bf16.msra.mxu1 %v11089_v18  ;;  %v11159_v18 = vld [vmem:[%s15752_s5 + $0xfc0] ss:$8 sps:$4 sm:$0xff]  }
 0x6b6   :  { %8707 = vmatprep.subr.bf16.mxu1 %v11094_v39  ;;  %v11165_v39 = vld [vmem:[%s15752_s5 + $0xfe0] ss:$8 sps:$4 sm:$0xff]  }
 0x6b9   :  { %8708 = vmatpush1.bf16.msra.mxu1 %v11092_v63  ;;  %v8807_v63 = vld [vmem:[%s15754_s7 + $0xf0] sm:$0xff] }
 0x6ba   :  { %8709 = vmatprep.subr.bf16.mxu1 %v11097_v3  ;;  %v10326_v51 = vpack.c.bf16 %v8808_v8, %v8807_v63  ;;  %v8792_v3 = vld [vmem:[%s15754_s7 + $0x78] sm:$0xff] }
 0x6bb   :  { %v10328_v7 = vpack.c.bf16 %v8792_v3, %v8791_v31 }
 0x6bc   :  { %10327 = vmatprep.subr.bf16.mxu0 %v10326_v51 }
 0x6bd   :  { %8710 = vmatpush1.bf16.msra.mxu1 %v11095_v26  ;;  %10329 = vmatpush3.bf16.msra.mxu0 %v10328_v7  ;;  %v5553_v26 = vsub.s32 0, %v14121_v36 }
 0x6be   :  { %8711 = vmatprep.subr.bf16.mxu1 %v11100_v42  ;;  %v5549_v42 = vld [vmem:[%s15753_s6] sm:$0x3]  ;;  %s11206_s6 = smov [#allocation6]  }
 0x6bf   :  { %s8907_s8 = sshll.u32 %s11206_s6, 4  ;;  %s8908_s8 = int_to_ptr.vmem [resolvable:$true] %s8907_s8 }
 0x6c0   :  { %s11176_s30 = scalar_lea.vmem %s8908_s8, 32  ;;  %p11181_p1 = scmp.lt.s32.totalorder %s8908_s8, %s8908_s8 }
 0x6c1   :  { %8712 = vmatpush1.bf16.msra.mxu1 %v11098_v40  ;;  %v5557_v40 = vsub.s32 1, %v14121_v36  ;;  %p11177_p0 = scmp.ne.s32.totalorder %s8908_s8, %s11176_s30  ;;  %p11182_p2 = scmp.lt.s32.totalorder %s11176_s30, %s11176_s30 }
 0x6c2   :  { %8713 = vmatprep.subr.bf16.mxu1 %v11103_v48  ;;  %v5554_v48 = vrot.slane %v5549_v42, %v5553_v26 }
 0x6c3   :  { %p11183_p3 = por %p11182_p2, %p11181_p1 }
 0x6c5   :  { %8714 = vmatpush1.bf16.msra.mxu1 %v11101_v58  ;;  %v5558_v58 = vrot.slane %v5549_v42, %v5557_v40  ;;  %p11184_p4 = pnand %p11183_p3, %p11177_p0 }
 0x6c6   :  { %8715 = vmatprep.subr.bf16.mxu1 %v11106_v12  ;;  %v10330_v12 = vadd.f32 %v15394_v49, %v5554_v48 }
 0x6c9   :  { %8716 = vmatpush1.bf16.msra.mxu1 %v11104_v0  ;;  %v10332_v0 = vadd.f32 %v15399_v5, %v5558_v58 }
 0x6ca   :  { %8717 = vmatprep.subr.bf16.mxu1 %v11109_v19 }
 0x6cd   :  { %8718 = vmatpush1.bf16.msra.mxu1 %v11107_v53 }
 0x6ce   :  { %8719 = vmatprep.subr.bf16.mxu1 %v11112_v37 }
 0x6d1   :  { %8720 = vmatpush1.bf16.msra.mxu1 %v11110_v16 }
 0x6d2   :  { %8721 = vmatprep.subr.bf16.mxu1 %v11115_v50 }
 0x6d5   :  { %8722 = vmatpush1.bf16.msra.mxu1 %v11113_v35 }
 0x6d6   :  { %8723 = vmatprep.subr.bf16.mxu1 %v11118_v56 }
 0x6d9   :  { %8724 = vmatpush1.bf16.msra.mxu1 %v11116_v38 }
 0x6da   :  { %8725 = vmatprep.subr.bf16.mxu1 %v11121_v46 }
 0x6dd   :  { %8726 = vmatpush1.bf16.msra.mxu1 %v11119_v2 }
 0x6de   :  { %8736 = vmatprep.subr.bf16.mxu1 %v11124_v41 }
 0x6e0   :  { %8728 = vmatmul.mubr.bf16.vlgmr.msra.gmra.mrb[0].mxu1 %v5033_v21 }
 0x6e1   :  { %8737 = vmatpush1.bf16.msra.mxu1 %v11122_v9  ;;  %8768 = vmatprep.mubr.bf16.mxu1 %v5036_v59 }
 0x6e2   :  { %8738 = vmatprep.subr.bf16.mxu1 %v11128_v22 }
 0x6e5   :  { %8739 = vmatpush1.bf16.msra.mxu1 %v11126_v14 }
 0x6e6   :  { %8740 = vmatprep.subr.bf16.mxu1 %v11131_v13 }
 0x6e9   :  { %8741 = vmatpush1.bf16.msra.mxu1 %v11129_v17 }
 0x6ea   :  { %8742 = vmatprep.subr.bf16.mxu1 %v11134_v28 }
 0x6ed   :  { %8743 = vmatpush1.bf16.msra.mxu1 %v11132_v24 }
 0x6ee   :  { %8744 = vmatprep.subr.bf16.mxu1 %v11137_v23 }
 0x6f1   :  { %8745 = vmatpush1.bf16.msra.mxu1 %v11135_v55 }
 0x6f2   :  { %8746 = vmatprep.subr.bf16.mxu1 %v11140_v15 }
 0x6f5   :  { %8747 = vmatpush1.bf16.msra.mxu1 %v11138_v29 }
 0x6f6   :  { %8748 = vmatprep.subr.bf16.mxu1 %v11143_v47 }
 0x6f9   :  { %8749 = vmatpush1.bf16.msra.mxu1 %v11141_v32 }
 0x6fa   :  { %8750 = vmatprep.subr.bf16.mxu1 %v11146_v11 }
 0x6fd   :  { %8751 = vmatpush1.bf16.msra.mxu1 %v11144_v33 }
 0x6fe   :  { %8752 = vmatprep.subr.bf16.mxu1 %v11149_v62 }
 0x701   :  { %8753 = vmatpush1.bf16.msra.mxu1 %v11147_v20 }
 0x702   :  { %8754 = vmatprep.subr.bf16.mxu1 %v11152_v10 }
 0x705   :  { %8755 = vmatpush1.bf16.msra.mxu1 %v11150_v25 }
 0x706   :  { %8756 = vmatprep.subr.bf16.mxu1 %v11155_v34 }
 0x709   :  { %8757 = vmatpush1.bf16.msra.mxu1 %v11153_v27 }
 0x70a   :  { %8758 = vmatprep.subr.bf16.mxu1 %v11158_v52 }
 0x70d   :  { %8759 = vmatpush1.bf16.msra.mxu1 %v11156_v57 }
 0x70e   :  { %8760 = vmatprep.subr.bf16.mxu1 %v11161_v43 }
 0x711   :  { %8761 = vmatpush1.bf16.msra.mxu1 %v11159_v18 }
 0x712   :  { %8762 = vmatprep.subr.bf16.mxu1 %v11164_v44 }
 0x715   :  { %8763 = vmatpush1.bf16.msra.mxu1 %v11162_v60 }
 0x716   :  { %8764 = vmatprep.subr.bf16.mxu1 %v11167_v45 }
 0x719   :  { %8765 = vmatpush1.bf16.msra.mxu1 %v11165_v39 }
 0x71a   :  { %8766 = vmatprep.subr.bf16.mxu1 %v11170_v1 }
 0x71d   :  { %8767 = vmatpush1.bf16.msra.mxu1 %v11168_v6 }
 0x720   :  { %8769 = vmatmul.mubr.bf16.vlgmr.msra.gmra.mrb[0].mxu1 %v5035_v54 }
 0x7f3   :  { %v8770_v19 = vpop.f32.mrb[0].mxu1 }
 0x7f4   :  { %v10331_v53 = vadd.f32 %v10330_v12, %v8770_v19  ;;  %v8772_v37 = vpop.f32.mrb[1].mxu1 }
 0x7f5   :  { %v10333_v16 = vadd.f32 %v10332_v0, %v8772_v37  ;;  %v8774_v50 = vpop.f32.mrb[2].mxu1 }
 0x7f6   :  { %v8775_v35 = vpop.f32.mrb[3].mxu1 }
 0x7f7   :  { %8880 = vmatprep.mubr.f32.mxu0 %v10333_v16 }
 0x7f8   :  { %8881 = vmatmul.mubr.f32.vlgmr.msra.gmra.mrb[196].mxu0 %v10331_v53 }
 0x8cb   :  { %v9997_v56 = vpop.f32.mrb[196].mxu0 }
 0x8cc   :  { %v9998_v36 = vpop.f32.mrb[197].mxu0 }
 0x8cd   :  { %v9999_v38 = vadd.f32 %v9998_v36, %v9997_v56 }
 0x8cf   :  { %v8883_v46 = vadd.f32 %v9999_v38, %v9718_v4 }
 0x8d1   :  { %v8887_v49 = vsel %vm8886_vm0, %v8883_v46, -inf }
 0x8d2   :  { %8888 = vmax.xlane.f32.xlu0 %v8887_v49 }
 0x95f   :  { %v8889_v5 = vpop.xlane.xlu0 %8888 }
 0x960   :  { %v8890_v30 = vsub.f32 %v8883_v46, %v8889_v5 }
 0x962   :  { %v8891_v2 = vmul.f32 1.442695, %v8890_v30 }
 0x964   :  { %11171 = vpow2.f32 %v8891_v2 }
 0x96e   :  { %v11172_v41 = vpop.eup %11171 }
 0x96f   :  { %v8893_v61 = vsel %vm8886_vm0, %v11172_v41, 0.0 }
 0x970   :  { %8894 = vadd.xlane.f32.xlu1 %v8893_v61 }
 0x9fd   :  { %v8895_v9 = vpop.xlane.xlu1 %8894 }
 0x9fe   :  { %11173 = vlog2.f32 %v8895_v9 }
 0xa08   :  { %v11174_v21 = vpop.eup %11173 }
 0xa09   :  { %v8897_v22 = vmul.f32 0.6931472, %v11174_v21 }
 0xa0b   :  { %v8898_v59 = vadd.f32 %v8897_v22, %v8889_v5 }
 0xa0d   :  { %v8899_v14 = vsub.f32 %v8883_v46, %v8898_v59 }
 0xa0f   :  { %8900 = vst.msk [vmem:[#allocation6] sm:$0x3] %vm8886_vm0, %v8899_v14 }
 0xa10   :  { %11187 = shalt.err (!%p11184_p4)
}
 0xa11   :  { %s11188_s13 = scalar_lea.hbm %s15756_s9, 32 }
 0xa12   :  { %p11189_p5 = scmp.ne.s32.totalorder %s15756_s9, %s11188_s13  ;;  %p11192_p6 = scmp.lt.u32.totalorder %s11188_s13, %s15756_s9 }
 0xa14   :  { %p11194_p7 = pnand %p11192_p6, %p11189_p5 }
 0xa16   :  { %11197 = shalt.err (!%p11194_p7)
}
 0xa17   :  { %8910 = dma.vmem_to_hbm [thread:$0]  %s8908_s8, 32, %s15756_s9, [#allocation7]  }
 0xa18   :  { %11198 = dma.done.wait [#allocation7], 32  }
 0xa19   :  { %11199 = vsyncadd [#allocation7], 4294967264 }
 0xa1a   :  { %8914 = vsyncpa [#allocation7], 1 }

</bundles_post_ra>
